<compile_context>
chip_gen: v7x
topology: tpu7x:2x2x1
jax: 0.10.0
libtpu: 0.0.40
codegen_flags: <defaults>
</compile_context>

<pallas_src>
import functools

import jax
import jax.numpy as jnp
from jax import lax
from jax.experimental import pallas as pl
from jax.experimental.pallas import tpu as pltpu

EPS_GEM = 1e-6   # GeM / SeqGeM clamp eps (torch clamp(min=eps))
EPS_L2 = 1e-12   # F.normalize eps


# ---------------- fused CosPlace head + SeqGeM kernel ----------------
def _fused_kernel(tb, sl, hw, hw_chunk, pow_dtype, matmul_dtype,
                  scalars_ref, x_ref, w_ref, b_ref, ff_ref, agg_ref):
    # scalars_ref: (2,) SMEM = [p_gem, p_seqgem]
    # x_ref:  (TB*SL, HW, C)   backbone features for TB sequences of SL frames
    # w_ref:  (C, O)           fc weight (resident; constant index_map)
    # b_ref:  (1, O)           fc bias  (resident)
    # ff_ref: (1, TB*SL, O)    per-frame descriptors
    # agg_ref:(1, TB, O)       seqgem-aggregated descriptors
    tns = tb * sl
    C = x_ref.shape[-1]
    n_chunks = hw // hw_chunk
    pow_is_f32 = jnp.dtype(pow_dtype) == jnp.dtype(jnp.float32)
    mm_is_f32 = jnp.dtype(matmul_dtype) == jnp.dtype(jnp.float32)

    p_gem = scalars_ref[0]
    p_seq = scalars_ref[1]
    inv_p_gem = 1.0 / p_gem
    inv_p_seq = 1.0 / p_seq
    p_pow = p_gem if pow_is_f32 else p_gem.astype(pow_dtype)

    # ---- per-location L2Norm + GeM pow, chunked over HW (VMEM-friendly) ----
    def chunk_body(h, acc):
        start = h * hw_chunk
        if n_chunks > 1 and hw_chunk % 8 == 0:
            start = pl.multiple_of(start, hw_chunk)
        xh = x_ref[:, pl.ds(start, hw_chunk), :].astype(jnp.float32)
        # L2Norm over channels: x * rsqrt(max(sum x^2, eps^2)), in f32.
        ssq = jnp.sum(xh * xh, axis=-1, keepdims=True)
        xn = xh * lax.rsqrt(jnp.maximum(ssq, EPS_L2 * EPS_L2))
        xc = jnp.maximum(xn, EPS_GEM)
        if not pow_is_f32:
            xc = xc.astype(pow_dtype)            # bf16 EUP path (v6e/v7x)
        xp = jnp.exp(p_pow * jnp.log(xc))        # clamp(x,eps)^p, operand > 0
        return acc + jnp.sum(xp.astype(jnp.float32), axis=1)   # f32 accumulate

    acc0 = jnp.zeros((tns, C), jnp.float32)
    if n_chunks == 1:
        acc = chunk_body(0, acc0)
    else:
        acc = lax.fori_loop(0, n_chunks, chunk_body, acc0,
                            unroll=True if n_chunks <= 8 else 2)

    # GeM: mean over spatial, then ^(1/p) (f32 throughout).
    g = acc * (1.0 / hw)
    g = jnp.exp(inv_p_gem * jnp.log(g))                         # (TNS, C)

    # Linear(features_dim -> fc_output_dim): one tall MXU matmul.
    if mm_is_f32:
        y = jnp.dot(g, w_ref[...].astype(jnp.float32),
                    preferred_element_type=jnp.float32)
    else:
        y = jnp.dot(g.astype(matmul_dtype), w_ref[...],
                    preferred_element_type=jnp.float32)
    y = y + b_ref[...]

    # final L2Norm (f32)
    ssq_y = jnp.sum(y * y, axis=-1, keepdims=True)
    y = y * lax.rsqrt(jnp.maximum(ssq_y, EPS_L2 * EPS_L2))
    ff_ref[0] = y                                               # (TNS, O)

    # SeqGeM over each group of SL consecutive frames (avg_pool1d over SL).
    y3 = y.reshape(tb, sl, -1)                                  # (TB, SL, O)
    yp = jnp.exp(p_seq * jnp.log(jnp.maximum(y3, EPS_GEM)))
    m = jnp.mean(yp, axis=1)                                    # (TB, O)
    agg_ref[0] = jnp.exp(inv_p_seq * jnp.log(m))


# ---------------- tiling helpers ----------------
def _vmem_limit_bytes():
    """Per-generation scoped-VMEM limit: ~3/4 of physical, capped at 100 MiB.

    v7x (64 MiB physical) -> ~48 MiB; v5e/v6e (128 MiB) -> ~96 MiB.
    """
    phys = 64 << 20
    try:
        info = pltpu.get_tpu_info()
        phys = int(getattr(info, "vmem_capacity_bytes", phys))
    except Exception:
        pass
    return int(min(phys * 3 // 4, 100 << 20))


def _select_hw_chunk(hw, max_chunk=32):
    """Largest multiple-of-8 divisor of HW up to max_chunk (else HW itself)."""
    best = hw
    for c in range(8, min(hw, max_chunk) + 1, 8):
        if hw % c == 0:
            best = c
    return best


def _select_seq_tile(B, sl, hw, C, O, in_bytes, hw_chunk, resident_bytes,
                     budget_bytes):
    """Pick TB (sequences per grid step) from a VMEM budget.

    Prefers (TB*SL) % 8 == 0 (unmasked stores, full MXU M-dim) and >= 4 grid
    steps (so v7x's two TensorCores each get >= 2 steps of pipelining).
    """
    per_frame = (2 * hw * C * in_bytes            # double-buffered input block
                 + (3 * hw_chunk + 4) * C * 4     # chunk intermediates + acc + g
                 + 4 * O * 4)                     # double-buffered ff/agg outputs
    avail = max(budget_bytes - resident_bytes, per_frame * sl)
    max_tb = max(1, (avail // per_frame) // sl)
    divisors = [t for t in range(1, B + 1) if B % t == 0 and t <= max_tb]
    if not divisors:
        divisors = [1]
    for min_steps in (4, 2, 1):
        cands = [t for t in divisors if B // t >= min_steps]
        if not cands:
            continue
        aligned = [t for t in cands if (t * sl) % 8 == 0]
        return max(aligned) if aligned else max(cands)
    return 1


# ---------------- wrapper ----------------
def jist_forward_and_aggregate(feats, w, b, p_gem, p_seqgem, seq_length, *,
                               matmul_dtype=jnp.bfloat16,
                               pow_dtype=jnp.bfloat16,
                               seq_tile=None):
    """feats: (N, HW, C) backbone features (f32 or bf16), N = B*seq_length.

    Returns (frames_features (N, O) f32, aggregated (B, O) f32), matching
    JistModel.forward per frame followed by JistModel.aggregate('seqgem').
    On v5e prefer pow_dtype=f32 (no bf16 EUP) with bf16 `feats`.
    """
    N, HW, C = feats.shape
    O = w.shape[-1]
    B = N // seq_length
    assert B * seq_length == N

    w = jnp.asarray(w).reshape(C, O).astype(matmul_dtype)
    b = jnp.asarray(b).reshape(1, O).astype(jnp.float32)

    in_bytes = jnp.dtype(feats.dtype).itemsize
    w_bytes = jnp.dtype(matmul_dtype).itemsize
    vmem_limit = _vmem_limit_bytes()
    hw_chunk = _select_hw_chunk(HW)
    assert HW % hw_chunk == 0
    resident = C * O * w_bytes + O * 4
    if seq_tile is None:
        seq_tile = _select_seq_tile(B, seq_length, HW, C, O, in_bytes,
                                    hw_chunk, resident,
                                    int(vmem_limit * 0.7))
    TB = int(seq_tile)
    assert B % TB == 0
    TNS = TB * seq_length
    G = B // TB

    scalars = jnp.concatenate(
        [jnp.ravel(p_gem), jnp.ravel(p_seqgem)]).astype(jnp.float32)

    kernel = functools.partial(_fused_kernel, TB, seq_length, HW, hw_chunk,
                               pow_dtype, matmul_dtype)

    def build(single_buffer_params):
        if single_buffer_params:
            # Grid-invariant operands: keep a single VMEM copy.
            w_spec = pl.BlockSpec((C, O), lambda i: (0, 0),
                                  pipeline_mode=pl.Buffered(1))
            b_spec = pl.BlockSpec((1, O), lambda i: (0, 0),
                                  pipeline_mode=pl.Buffered(1))
        else:
            w_spec = pl.BlockSpec((C, O), lambda i: (0, 0))
            b_spec = pl.BlockSpec((1, O), lambda i: (0, 0))
        return pl.pallas_call(
            kernel,
            out_shape=(
                jax.ShapeDtypeStruct((G, TNS, O), jnp.float32),  # frame descs
                jax.ShapeDtypeStruct((G, TB, O), jnp.float32),   # seqgem agg
            ),
            grid=(G,),
            in_specs=[
                pl.BlockSpec(memory_space=pltpu.MemorySpace.SMEM),  # [p_gem, p_seq]
                pl.BlockSpec((TNS, HW, C), lambda i: (i, 0, 0)),    # TB sequences
                w_spec,
                b_spec,
            ],
            out_specs=(
                pl.BlockSpec((1, TNS, O), lambda i: (i, 0, 0)),
                pl.BlockSpec((1, TB, O), lambda i: (i, 0, 0)),
            ),
            compiler_params=pltpu.CompilerParams(
                dimension_semantics=("parallel",),
                vmem_limit_bytes=vmem_limit),
        )

    try:
        ff3, agg3 = build(True)(scalars, feats, w, b)
    except Exception:
        # pl.Buffered(1) not supported on this jax build -> default buffering.
        ff3, agg3 = build(False)(scalars, feats, w, b)

    # Contiguous, copy-free reshapes back to the module's layouts.
    return ff3.reshape(N, O), agg3.reshape(B, O)


# ---------------- pure-JAX references ----------------
def ref_head(feats, w, b, p):
    x = feats / jnp.maximum(jnp.linalg.norm(feats, axis=-1, keepdims=True), EPS_L2)
    g = jnp.mean(jnp.maximum(x, EPS_GEM) ** p, axis=1) ** (1.0 / p)
    y = g @ w + b
    return y / jnp.maximum(jnp.linalg.norm(y, axis=-1, keepdims=True), EPS_L2)


def ref_seqgem(ff, sl, p):
    B = ff.shape[0] // sl
    x = ff.reshape(B, sl, -1)
    return jnp.mean(jnp.maximum(x, EPS_GEM) ** p, axis=1) ** (1.0 / p)


if __name__ == "__main__":
    key = jax.random.PRNGKey(0)
    # B sequences of SL frames; backbone feature maps C x 8 x 8 (HW = 64).
    B, SL = 8, 4
    N = B * SL
    C, HW = 256, 64          # features_dim = 256
    O = 128                  # fc_output_dim = 128

    k1, k2, k3 = jax.random.split(key, 3)
    # Backbone features already in (N, H*W, C): channels on the lane axis.
    # TODO(synk): make the ResNet backbone emit NHWC so no NCHW->NHWC HBM
    # transpose is needed in front of this kernel.
    feats = jax.random.normal(k1, (N, HW, C), dtype=jnp.float32)
    fc_w = jax.random.normal(k2, (C, O), dtype=jnp.float32) * (1.0 / jnp.sqrt(C))
    fc_b = jax.random.normal(k3, (1, O), dtype=jnp.float32) * 0.01
    p_gem = jnp.array([3.0], dtype=jnp.float32)      # CosPlace GeM p
    p_seqgem = jnp.array([3.0], dtype=jnp.float32)   # SeqGeM p (init = 3)

    ref_ff = ref_head(feats, fc_w, fc_b, 3.0)
    ref_agg = ref_seqgem(ref_ff, SL, 3.0)

    # Exact f32 path: matches the PyTorch module numerics.
    ff, agg = jist_forward_and_aggregate(
        feats, fc_w, fc_b, p_gem, p_seqgem, SL,
        matmul_dtype=jnp.float32, pow_dtype=jnp.float32)
    jax.block_until_ready((ff, agg))
    assert ff.shape == (N, O) and agg.shape == (B, O)
    assert jnp.allclose(ff, ref_ff, atol=1e-4, rtol=1e-4)
    assert jnp.allclose(agg, ref_agg, atol=1e-4, rtol=1e-4)

    # Production path (v6e/v7x): bf16 input DMA + bf16 EUP pow + bf16 MXU matmul
    # (f32 norms/accumulators). Final L2 norm cancels systematic scale error.
    ff_b, agg_b = jist_forward_and_aggregate(
        feats.astype(jnp.bfloat16), fc_w, fc_b, p_gem, p_seqgem, SL,
        matmul_dtype=jnp.bfloat16, pow_dtype=jnp.bfloat16)
    jax.block_until_ready((ff_b, agg_b))
    assert jnp.allclose(ff_b, ref_ff, atol=3e-2, rtol=3e-2)
    assert jnp.allclose(agg_b, ref_agg, atol=3e-2, rtol=3e-2)

    print("KERNEL_OK")
</pallas_src>

<mosaic_0001>
module attributes {stable_mosaic.version = 11 : i64} {
  func.func @_fused_kernel(%arg0: i32, %arg1: memref<2xf32, #tpu.memory_space<smem>>, %arg2: memref<8x64x256xf32, #tpu.memory_space<vmem>>, %arg3: memref<256x128xf32, #tpu.memory_space<vmem>>, %arg4: memref<1x128xf32, #tpu.memory_space<vmem>>, %arg5: memref<1x8x128xf32, #tpu.memory_space<vmem>>, %arg6: memref<1x2x128xf32, #tpu.memory_space<vmem>>) attributes {dimension_semantics = [#tpu.dimension_semantics<parallel>], iteration_bounds = array<i64: 4>, scalar_prefetch = 0 : i64, scratch_operands = 0 : i64, tpu.core_type = #tpu.core_type<tc>, window_params = [{transform_indices = @transform_0, window_bounds = array<i64: 2>}, {transform_indices = @transform_1, window_bounds = array<i64: 8, 64, 256>}, {pipeline_mode = #tpu.pipeline_mode<synchronous>, transform_indices = @transform_2, window_bounds = array<i64: 256, 128>}, {pipeline_mode = #tpu.pipeline_mode<synchronous>, transform_indices = @transform_3, window_bounds = array<i64: 1, 128>}, {transform_indices = @transform_4, window_bounds = array<i64: 1, 8, 128>}, {transform_indices = @transform_5, window_bounds = array<i64: 1, 2, 128>}]} {
    %c0 = arith.constant 0 : index
    %0 = memref.load %arg1[%c0] : memref<2xf32, #tpu.memory_space<smem>>
    %c1 = arith.constant 1 : index
    %1 = memref.load %arg1[%c1] : memref<2xf32, #tpu.memory_space<smem>>
    %cst = arith.constant 1.000000e+00 : f32
    %2 = arith.divf %cst, %0 : f32
    %cst_0 = arith.constant 1.000000e+00 : f32
    %3 = arith.divf %cst_0, %1 : f32
    %cst_1 = arith.constant 0.000000e+00 : f32
    %4 = vector.broadcast %cst_1 : f32 to vector<8x256xf32>
    %c0_i32 = arith.constant 0 : i32
    %c32_i32 = arith.constant 32 : i32
    %5 = arith.muli %c0_i32, %c32_i32 : i32
    %6 = tpu.assume_multiple %5, 32 : i32
    %c0_2 = arith.constant 0 : index
    %7 = arith.index_cast %6 : i32 to index
    %c0_3 = arith.constant 0 : index
    %8 = vector.load %arg2[%c0_2, %7, %c0_3] : memref<8x64x256xf32, #tpu.memory_space<vmem>>, vector<8x32x256xf32>
    %9 = arith.mulf %8, %8 : vector<8x32x256xf32>
    %cst_4 = arith.constant dense<0.000000e+00> : vector<8x32xf32>
    %10 = vector.multi_reduction <add>, %9, %cst_4 [2] : vector<8x32x256xf32> to vector<8x32xf32>
    %11 = vector.shape_cast %10 : vector<8x32xf32> to vector<8x32x1xf32>
    %cst_5 = arith.constant 1.000000e-24 : f32
    %12 = vector.broadcast %cst_5 : f32 to vector<8x32x1xf32>
    %13 = arith.maximumf %11, %12 : vector<8x32x1xf32>
    %14 = math.rsqrt %13 : vector<8x32x1xf32>
    %15 = vector.broadcast %14 : vector<8x32x1xf32> to vector<8x32x256xf32>
    %16 = arith.mulf %8, %15 : vector<8x32x256xf32>
    %cst_6 = arith.constant 9.99999997E-7 : f32
    %17 = vector.broadcast %cst_6 : f32 to vector<8x32x256xf32>
    %18 = arith.maximumf %16, %17 : vector<8x32x256xf32>
    %19 = math.log %18 : vector<8x32x256xf32>
    %20 = vector.broadcast %0 : f32 to vector<8x32x256xf32>
    %21 = arith.mulf %20, %19 : vector<8x32x256xf32>
    %22 = math.exp %21 : vector<8x32x256xf32>
    %cst_7 = arith.constant dense<0.000000e+00> : vector<8x256xf32>
    %23 = vector.multi_reduction <add>, %22, %cst_7 [1] : vector<8x32x256xf32> to vector<8x256xf32>
    %24 = arith.addf %4, %23 : vector<8x256xf32>
    %c1_i32 = arith.constant 1 : i32
    %c32_i32_8 = arith.constant 32 : i32
    %25 = arith.muli %c1_i32, %c32_i32_8 : i32
    %26 = tpu.assume_multiple %25, 32 : i32
    %c0_9 = arith.constant 0 : index
    %27 = arith.index_cast %26 : i32 to index
    %c0_10 = arith.constant 0 : index
    %28 = vector.load %arg2[%c0_9, %27, %c0_10] : memref<8x64x256xf32, #tpu.memory_space<vmem>>, vector<8x32x256xf32>
    %29 = arith.mulf %28, %28 : vector<8x32x256xf32>
    %cst_11 = arith.constant dense<0.000000e+00> : vector<8x32xf32>
    %30 = vector.multi_reduction <add>, %29, %cst_11 [2] : vector<8x32x256xf32> to vector<8x32xf32>
    %31 = vector.shape_cast %30 : vector<8x32xf32> to vector<8x32x1xf32>
    %cst_12 = arith.constant 1.000000e-24 : f32
    %32 = vector.broadcast %cst_12 : f32 to vector<8x32x1xf32>
    %33 = arith.maximumf %31, %32 : vector<8x32x1xf32>
    %34 = math.rsqrt %33 : vector<8x32x1xf32>
    %35 = vector.broadcast %34 : vector<8x32x1xf32> to vector<8x32x256xf32>
    %36 = arith.mulf %28, %35 : vector<8x32x256xf32>
    %cst_13 = arith.constant 9.99999997E-7 : f32
    %37 = vector.broadcast %cst_13 : f32 to vector<8x32x256xf32>
    %38 = arith.maximumf %36, %37 : vector<8x32x256xf32>
    %39 = math.log %38 : vector<8x32x256xf32>
    %40 = vector.broadcast %0 : f32 to vector<8x32x256xf32>
    %41 = arith.mulf %40, %39 : vector<8x32x256xf32>
    %42 = math.exp %41 : vector<8x32x256xf32>
    %cst_14 = arith.constant dense<0.000000e+00> : vector<8x256xf32>
    %43 = vector.multi_reduction <add>, %42, %cst_14 [1] : vector<8x32x256xf32> to vector<8x256xf32>
    %44 = arith.addf %24, %43 : vector<8x256xf32>
    %c2_i32 = arith.constant 2 : i32
    %cst_15 = arith.constant 1.562500e-02 : f32
    %45 = vector.broadcast %cst_15 : f32 to vector<8x256xf32>
    %46 = arith.mulf %44, %45 : vector<8x256xf32>
    %47 = math.log %46 : vector<8x256xf32>
    %48 = vector.broadcast %2 : f32 to vector<8x256xf32>
    %49 = arith.mulf %48, %47 : vector<8x256xf32>
    %50 = math.exp %49 : vector<8x256xf32>
    %c0_16 = arith.constant 0 : index
    %c0_17 = arith.constant 0 : index
    %51 = vector.load %arg3[%c0_16, %c0_17] : memref<256x128xf32, #tpu.memory_space<vmem>>, vector<256x128xf32>
    %cst_18 = arith.constant dense<0.000000e+00> : vector<8x128xf32>
    %52 = tpu.matmul %50, %51, %cst_18 {dimension_numbers = #tpu.dot_dimension_numbers<[1], [0], [0], [1], [0, 0, 1, 1], [], []>} : vector<8x256xf32>, vector<256x128xf32>, vector<8x128xf32> -> vector<8x128xf32>
    %c0_19 = arith.constant 0 : index
    %c0_20 = arith.constant 0 : index
    %53 = vector.load %arg4[%c0_19, %c0_20] : memref<1x128xf32, #tpu.memory_space<vmem>>, vector<1x128xf32>
    %54 = vector.broadcast %53 : vector<1x128xf32> to vector<8x128xf32>
    %55 = arith.addf %52, %54 : vector<8x128xf32>
    %56 = arith.mulf %55, %55 : vector<8x128xf32>
    %cst_21 = arith.constant dense<0.000000e+00> : vector<8xf32>
    %57 = vector.multi_reduction <add>, %56, %cst_21 [1] : vector<8x128xf32> to vector<8xf32>
    %58 = vector.shape_cast %57 : vector<8xf32> to vector<8x1xf32>
    %cst_22 = arith.constant 1.000000e-24 : f32
    %59 = vector.broadcast %cst_22 : f32 to vector<8x1xf32>
    %60 = arith.maximumf %58, %59 : vector<8x1xf32>
    %61 = math.rsqrt %60 : vector<8x1xf32>
    %62 = vector.broadcast %61 : vector<8x1xf32> to vector<8x128xf32>
    %63 = arith.mulf %55, %62 : vector<8x128xf32>
    %c0_23 = arith.constant 0 : index
    %c0_24 = arith.constant 0 : index
    %c0_25 = arith.constant 0 : index
    %64 = vector.load %arg5[%c0_23, %c0_24, %c0_25] : memref<1x8x128xf32, #tpu.memory_space<vmem>>, vector<1x8x128xf32>
    %65 = vector.shape_cast %64 : vector<1x8x128xf32> to vector<8x128xf32>
    %66 = vector.shape_cast %63 : vector<8x128xf32> to vector<1x8x128xf32>
    tpu.vector_store %arg5[%c0_23, %c0_24, %c0_25], %66 {strides = array<i32>} : memref<1x8x128xf32, #tpu.memory_space<vmem>>, vector<1x8x128xf32>,
    %67 = vector.shape_cast %63 : vector<8x128xf32> to vector<2x4x128xf32>
    %cst_26 = arith.constant 9.99999997E-7 : f32
    %68 = vector.broadcast %cst_26 : f32 to vector<2x4x128xf32>
    %69 = arith.maximumf %67, %68 : vector<2x4x128xf32>
    %70 = math.log %69 : vector<2x4x128xf32>
    %71 = vector.broadcast %1 : f32 to vector<2x4x128xf32>
    %72 = arith.mulf %71, %70 : vector<2x4x128xf32>
    %73 = math.exp %72 : vector<2x4x128xf32>
    %cst_27 = arith.constant dense<0.000000e+00> : vector<2x128xf32>
    %74 = vector.multi_reduction <add>, %73, %cst_27 [1] : vector<2x4x128xf32> to vector<2x128xf32>
    %cst_28 = arith.constant 4.000000e+00 : f32
    %75 = vector.broadcast %cst_28 : f32 to vector<2x128xf32>
    %76 = arith.divf %74, %75 : vector<2x128xf32>
    %77 = math.log %76 : vector<2x128xf32>
    %78 = vector.broadcast %3 : f32 to vector<2x128xf32>
    %79 = arith.mulf %78, %77 : vector<2x128xf32>
    %80 = math.exp %79 : vector<2x128xf32>
    %c0_29 = arith.constant 0 : index
    %c0_30 = arith.constant 0 : index
    %c0_31 = arith.constant 0 : index
    %81 = vector.load %arg6[%c0_29, %c0_30, %c0_31] : memref<1x2x128xf32, #tpu.memory_space<vmem>>, vector<1x2x128xf32>
    %82 = vector.shape_cast %81 : vector<1x2x128xf32> to vector<2x128xf32>
    %83 = vector.shape_cast %80 : vector<2x128xf32> to vector<1x2x128xf32>
    tpu.vector_store %arg6[%c0_29, %c0_30, %c0_31], %83 {strides = array<i32>} : memref<1x2x128xf32, #tpu.memory_space<vmem>>, vector<1x2x128xf32>,
    return
  }
  func.func @transform_0(%arg0: i32) -> i32 {
    %c0_i32 = arith.constant 0 : i32
    %c0_i32_0 = arith.constant 0 : i32
    return %c0_i32 : i32
  }
  func.func @transform_1(%arg0: i32) -> (i32, i32, i32) {
    %c0_i32 = arith.constant 0 : i32
    %c0_i32_0 = arith.constant 0 : i32
    %c0_i32_1 = arith.constant 0 : i32
    return %arg0, %c0_i32, %c0_i32_0 : i32, i32, i32
  }
  func.func @transform_2(%arg0: i32) -> (i32, i32) {
    %c0_i32 = arith.constant 0 : i32
    %c0_i32_0 = arith.constant 0 : i32
    %c0_i32_1 = arith.constant 0 : i32
    return %c0_i32, %c0_i32_0 : i32, i32
  }
  func.func @transform_3(%arg0: i32) -> (i32, i32) {
    %c0_i32 = arith.constant 0 : i32
    %c0_i32_0 = arith.constant 0 : i32
    %c0_i32_1 = arith.constant 0 : i32
    return %c0_i32, %c0_i32_0 : i32, i32
  }
  func.func @transform_4(%arg0: i32) -> (i32, i32, i32) {
    %c0_i32 = arith.constant 0 : i32
    %c0_i32_0 = arith.constant 0 : i32
    %c0_i32_1 = arith.constant 0 : i32
    return %arg0, %c0_i32, %c0_i32_0 : i32, i32, i32
  }
  func.func @transform_5(%arg0: i32) -> (i32, i32, i32) {
    %c0_i32 = arith.constant 0 : i32
    %c0_i32_0 = arith.constant 0 : i32
    %c0_i32_1 = arith.constant 0 : i32
    return %arg0, %c0_i32, %c0_i32_0 : i32, i32, i32
  }
}

module attributes {stable_mosaic.version = 11 : i64} {
  func.func @_fused_kernel(%arg0: i32, %arg1: memref<2xf32, #tpu.memory_space<smem>>, %arg2: memref<8x64x256xf32, #tpu.memory_space<vmem>>, %arg3: memref<256x128xf32, #tpu.memory_space<vmem>>, %arg4: memref<1x128xf32, #tpu.memory_space<vmem>>, %arg5: memref<1x8x128xf32, #tpu.memory_space<vmem>>, %arg6: memref<1x2x128xf32, #tpu.memory_space<vmem>>) attributes {dimension_semantics = [#tpu.dimension_semantics<parallel>], iteration_bounds = array<i64: 4>, scalar_prefetch = 0 : i64, scratch_operands = 0 : i64, tpu.core_type = #tpu.core_type<tc>, window_params = [{transform_indices = @transform_0, window_bounds = array<i64: 2>}, {transform_indices = @transform_1, window_bounds = array<i64: 8, 64, 256>}, {pipeline_mode = #tpu.pipeline_mode<synchronous>, transform_indices = @transform_2, window_bounds = array<i64: 256, 128>}, {pipeline_mode = #tpu.pipeline_mode<synchronous>, transform_indices = @transform_3, window_bounds = array<i64: 1, 128>}, {transform_indices = @transform_4, window_bounds = array<i64: 1, 8, 128>}, {transform_indices = @transform_5, window_bounds = array<i64: 1, 2, 128>}]} {
    %c0 = arith.constant 0 : index
    %0 = memref.load %arg1[%c0] : memref<2xf32, #tpu.memory_space<smem>>
    %c1 = arith.constant 1 : index
    %1 = memref.load %arg1[%c1] : memref<2xf32, #tpu.memory_space<smem>>
    %cst = arith.constant 1.000000e+00 : f32
    %2 = arith.divf %cst, %0 : f32
    %cst_0 = arith.constant 1.000000e+00 : f32
    %3 = arith.divf %cst_0, %1 : f32
    %cst_1 = arith.constant 0.000000e+00 : f32
    %4 = vector.broadcast %cst_1 : f32 to vector<8x256xf32>
    %c0_i32 = arith.constant 0 : i32
    %c32_i32 = arith.constant 32 : i32
    %5 = arith.muli %c0_i32, %c32_i32 : i32
    %6 = tpu.assume_multiple %5, 32 : i32
    %c0_2 = arith.constant 0 : index
    %7 = arith.index_cast %6 : i32 to index
    %c0_3 = arith.constant 0 : index
    %8 = vector.load %arg2[%c0_2, %7, %c0_3] : memref<8x64x256xf32, #tpu.memory_space<vmem>>, vector<8x32x256xf32>
    %9 = arith.mulf %8, %8 : vector<8x32x256xf32>
    %cst_4 = arith.constant dense<0.000000e+00> : vector<8x32xf32>
    %10 = vector.multi_reduction <add>, %9, %cst_4 [2] : vector<8x32x256xf32> to vector<8x32xf32>
    %11 = vector.shape_cast %10 : vector<8x32xf32> to vector<8x32x1xf32>
    %cst_5 = arith.constant 1.000000e-24 : f32
    %12 = vector.broadcast %cst_5 : f32 to vector<8x32x1xf32>
    %13 = arith.maximumf %11, %12 : vector<8x32x1xf32>
    %14 = math.rsqrt %13 : vector<8x32x1xf32>
    %15 = vector.broadcast %14 : vector<8x32x1xf32> to vector<8x32x256xf32>
    %16 = arith.mulf %8, %15 : vector<8x32x256xf32>
    %cst_6 = arith.constant 9.99999997E-7 : f32
    %17 = vector.broadcast %cst_6 : f32 to vector<8x32x256xf32>
    %18 = arith.maximumf %16, %17 : vector<8x32x256xf32>
    %19 = math.log %18 : vector<8x32x256xf32>
    %20 = vector.broadcast %0 : f32 to vector<8x32x256xf32>
    %21 = arith.mulf %20, %19 : vector<8x32x256xf32>
    %22 = math.exp %21 : vector<8x32x256xf32>
    %cst_7 = arith.constant dense<0.000000e+00> : vector<8x256xf32>
    %23 = vector.multi_reduction <add>, %22, %cst_7 [1] : vector<8x32x256xf32> to vector<8x256xf32>
    %24 = arith.addf %4, %23 : vector<8x256xf32>
    %c1_i32 = arith.constant 1 : i32
    %c32_i32_8 = arith.constant 32 : i32
    %25 = arith.muli %c1_i32, %c32_i32_8 : i32
    %26 = tpu.assume_multiple %25, 32 : i32
    %c0_9 = arith.constant 0 : index
    %27 = arith.index_cast %26 : i32 to index
    %c0_10 = arith.constant 0 : index
    %28 = vector.load %arg2[%c0_9, %27, %c0_10] : memref<8x64x256xf32, #tpu.memory_space<vmem>>, vector<8x32x256xf32>
    %29 = arith.mulf %28, %28 : vector<8x32x256xf32>
    %cst_11 = arith.constant dense<0.000000e+00> : vector<8x32xf32>
    %30 = vector.multi_reduction <add>, %29, %cst_11 [2] : vector<8x32x256xf32> to vector<8x32xf32>
    %31 = vector.shape_cast %30 : vector<8x32xf32> to vector<8x32x1xf32>
    %cst_12 = arith.constant 1.000000e-24 : f32
    %32 = vector.broadcast %cst_12 : f32 to vector<8x32x1xf32>
    %33 = arith.maximumf %31, %32 : vector<8x32x1xf32>
    %34 = math.rsqrt %33 : vector<8x32x1xf32>
    %35 = vector.broadcast %34 : vector<8x32x1xf32> to vector<8x32x256xf32>
    %36 = arith.mulf %28, %35 : vector<8x32x256xf32>
    %cst_13 = arith.constant 9.99999997E-7 : f32
    %37 = vector.broadcast %cst_13 : f32 to vector<8x32x256xf32>
    %38 = arith.maximumf %36, %37 : vector<8x32x256xf32>
    %39 = math.log %38 : vector<8x32x256xf32>
    %40 = vector.broadcast %0 : f32 to vector<8x32x256xf32>
    %41 = arith.mulf %40, %39 : vector<8x32x256xf32>
    %42 = math.exp %41 : vector<8x32x256xf32>
    %cst_14 = arith.constant dense<0.000000e+00> : vector<8x256xf32>
    %43 = vector.multi_reduction <add>, %42, %cst_14 [1] : vector<8x32x256xf32> to vector<8x256xf32>
    %44 = arith.addf %24, %43 : vector<8x256xf32>
    %c2_i32 = arith.constant 2 : i32
    %cst_15 = arith.constant 1.562500e-02 : f32
    %45 = vector.broadcast %cst_15 : f32 to vector<8x256xf32>
    %46 = arith.mulf %44, %45 : vector<8x256xf32>
    %47 = math.log %46 : vector<8x256xf32>
    %48 = vector.broadcast %2 : f32 to vector<8x256xf32>
    %49 = arith.mulf %48, %47 : vector<8x256xf32>
    %50 = math.exp %49 : vector<8x256xf32>
    %c0_16 = arith.constant 0 : index
    %c0_17 = arith.constant 0 : index
    %51 = vector.load %arg3[%c0_16, %c0_17] : memref<256x128xf32, #tpu.memory_space<vmem>>, vector<256x128xf32>
    %cst_18 = arith.constant dense<0.000000e+00> : vector<8x128xf32>
    %52 = tpu.matmul %50, %51, %cst_18 {dimension_numbers = #tpu.dot_dimension_numbers<[1], [0], [0], [1], [0, 0, 1, 1], [], []>} : vector<8x256xf32>, vector<256x128xf32>, vector<8x128xf32> -> vector<8x128xf32>
    %c0_19 = arith.constant 0 : index
    %c0_20 = arith.constant 0 : index
    %53 = vector.load %arg4[%c0_19, %c0_20] : memref<1x128xf32, #tpu.memory_space<vmem>>, vector<1x128xf32>
    %54 = vector.broadcast %53 : vector<1x128xf32> to vector<8x128xf32>
    %55 = arith.addf %52, %54 : vector<8x128xf32>
    %56 = arith.mulf %55, %55 : vector<8x128xf32>
    %cst_21 = arith.constant dense<0.000000e+00> : vector<8xf32>
    %57 = vector.multi_reduction <add>, %56, %cst_21 [1] : vector<8x128xf32> to vector<8xf32>
    %58 = vector.shape_cast %57 : vector<8xf32> to vector<8x1xf32>
    %cst_22 = arith.constant 1.000000e-24 : f32
    %59 = vector.broadcast %cst_22 : f32 to vector<8x1xf32>
    %60 = arith.maximumf %58, %59 : vector<8x1xf32>
    %61 = math.rsqrt %60 : vector<8x1xf32>
    %62 = vector.broadcast %61 : vector<8x1xf32> to vector<8x128xf32>
    %63 = arith.mulf %55, %62 : vector<8x128xf32>
    %c0_23 = arith.constant 0 : index
    %c0_24 = arith.constant 0 : index
    %c0_25 = arith.constant 0 : index
    %64 = vector.load %arg5[%c0_23, %c0_24, %c0_25] : memref<1x8x128xf32, #tpu.memory_space<vmem>>, vector<1x8x128xf32>
    %65 = vector.shape_cast %64 : vector<1x8x128xf32> to vector<8x128xf32>
    %66 = vector.shape_cast %63 : vector<8x128xf32> to vector<1x8x128xf32>
    tpu.vector_store %arg5[%c0_23, %c0_24, %c0_25], %66 {strides = array<i32>} : memref<1x8x128xf32, #tpu.memory_space<vmem>>, vector<1x8x128xf32>,
    %67 = vector.shape_cast %63 : vector<8x128xf32> to vector<2x4x128xf32>
    %cst_26 = arith.constant 9.99999997E-7 : f32
    %68 = vector.broadcast %cst_26 : f32 to vector<2x4x128xf32>
    %69 = arith.maximumf %67, %68 : vector<2x4x128xf32>
    %70 = math.log %69 : vector<2x4x128xf32>
    %71 = vector.broadcast %1 : f32 to vector<2x4x128xf32>
    %72 = arith.mulf %71, %70 : vector<2x4x128xf32>
    %73 = math.exp %72 : vector<2x4x128xf32>
    %cst_27 = arith.constant dense<0.000000e+00> : vector<2x128xf32>
    %74 = vector.multi_reduction <add>, %73, %cst_27 [1] : vector<2x4x128xf32> to vector<2x128xf32>
    %cst_28 = arith.constant 4.000000e+00 : f32
    %75 = vector.broadcast %cst_28 : f32 to vector<2x128xf32>
    %76 = arith.divf %74, %75 : vector<2x128xf32>
    %77 = math.log %76 : vector<2x128xf32>
    %78 = vector.broadcast %3 : f32 to vector<2x128xf32>
    %79 = arith.mulf %78, %77 : vector<2x128xf32>
    %80 = math.exp %79 : vector<2x128xf32>
    %c0_29 = arith.constant 0 : index
    %c0_30 = arith.constant 0 : index
    %c0_31 = arith.constant 0 : index
    %81 = vector.load %arg6[%c0_29, %c0_30, %c0_31] : memref<1x2x128xf32, #tpu.memory_space<vmem>>, vector<1x2x128xf32>
    %82 = vector.shape_cast %81 : vector<1x2x128xf32> to vector<2x128xf32>
    %83 = vector.shape_cast %80 : vector<2x128xf32> to vector<1x2x128xf32>
    tpu.vector_store %arg6[%c0_29, %c0_30, %c0_31], %83 {strides = array<i32>} : memref<1x2x128xf32, #tpu.memory_space<vmem>>, vector<1x2x128xf32>,
    return
  }
  func.func @transform_0(%arg0: i32) -> i32 {
    %c0_i32 = arith.constant 0 : i32
    %c0_i32_0 = arith.constant 0 : i32
    return %c0_i32 : i32
  }
  func.func @transform_1(%arg0: i32) -> (i32, i32, i32) {
    %c0_i32 = arith.constant 0 : i32
    %c0_i32_0 = arith.constant 0 : i32
    %c0_i32_1 = arith.constant 0 : i32
    return %arg0, %c0_i32, %c0_i32_0 : i32, i32, i32
  }
  func.func @transform_2(%arg0: i32) -> (i32, i32) {
    %c0_i32 = arith.constant 0 : i32
    %c0_i32_0 = arith.constant 0 : i32
    %c0_i32_1 = arith.constant 0 : i32
    return %c0_i32, %c0_i32_0 : i32, i32
  }
  func.func @transform_3(%arg0: i32) -> (i32, i32) {
    %c0_i32 = arith.constant 0 : i32
    %c0_i32_0 = arith.constant 0 : i32
    %c0_i32_1 = arith.constant 0 : i32
    return %c0_i32, %c0_i32_0 : i32, i32
  }
  func.func @transform_4(%arg0: i32) -> (i32, i32, i32) {
    %c0_i32 = arith.constant 0 : i32
    %c0_i32_0 = arith.constant 0 : i32
    %c0_i32_1 = arith.constant 0 : i32
    return %arg0, %c0_i32, %c0_i32_0 : i32, i32, i32
  }
  func.func @transform_5(%arg0: i32) -> (i32, i32, i32) {
    %c0_i32 = arith.constant 0 : i32
    %c0_i32_0 = arith.constant 0 : i32
    %c0_i32_1 = arith.constant 0 : i32
    return %arg0, %c0_i32, %c0_i32_0 : i32, i32, i32
  }
}

</mosaic_0001>

<bundles_post_ra>
// kernel: tpu_custom_call.1
= control target key start
LH: loop header
LB: loop body
LE: loop exit
PB: predicated region body
PF: predicated region fallthrough
CT: control target
= control target key end

     0   :  { %11 = vsyncpa [#allocation5], 0  ;;  %s5261_s0 = inlined_call_operand.hbm [shape: f32[2], index: 0, kind: input, shape index: {}]   ;;  %s5262_s1 = inlined_call_operand.hbm [shape: f32[32,64,256], index: 1, kind: input, shape index: {}]   ;;  %s5263_s2 = inlined_call_operand.hbm [shape: f32[256,128], index: 2, kind: input, shape index: {}]   ;;  %s5264_s3 = inlined_call_operand.hbm [shape: f32[1,128], index: 3, kind: input, shape index: {}]   ;;  %s5265_s4 = inlined_call_operand.hbm [shape: f32[4,8,128], index: 4, kind: output, shape index: {0}]   ;;  %s5266_s5 = inlined_call_operand.hbm [shape: f32[4,2,128], index: 5, kind: output, shape index: {1}]  }
   0x1   :  { %12 = vsyncpa [#allocation3], 0 }
   0x2   :  { %14 = vsyncpa [#allocation3 + $0x1], 0 }
   0x3   :  { %15 = vsyncpa [#allocation8], 0 }
   0x4   :  { %16 = vsyncpa [#allocation4], 0 }
   0x5   :  { %18 = vsyncpa [#allocation4 + $0x1], 0 }
   0x6   :  { %19 = vsyncpa [#allocation12], 0 }
   0x7   :  { %21 = vsyncpa [#allocation12 + $0x1], 0  ;;  %s3901_s18 = smov 0   ;;  %s3903_s19 = smov 0  }
   0x8   :  { %s3905_s20 = smov 0   ;;  %s3907_s21 = smov 0  }
   0x9 LB: > { %s3922_s22 = sadd.s32 4294967295, %s3859_s21   ;;  %s2570_s23 = sadd.s32 4294967294, %s3859_s21   ;;  %s3859_s21 = sphi %s3907_s21, %s5318_s21   ;;  %s3855_s20 = sphi %s3905_s20, %s5317_s20   ;;  %s3851_s19 = sphi %s3903_s19, %s5316_s19   ;;  %s3847_s18 = sphi %s3901_s18, %s5315_s18  }
   0xa   : > { %p68_p0 = scmp.ne.s32.totalorder %s3851_s19, %s3847_s18  ;;  %p5267_p1 = scmp.eq.s32.totalorder %s3922_s22, 0 }
   0xb   : > { %p140_p3 = scmp.eq.s32.totalorder %s2570_s23, 3  ;;  %p2571_p5 = scmp.ge.s32.totalorder %s3859_s21, 1 }
   0xc   : > { %p3931_p4 = por %p5267_p1, %p68_p0  ;;  %p173_p7 = scmp.lt.s32.totalorder %s3859_s21, 5 }
   0xd   : > { %p3936_p6 = por %p140_p3, %p68_p0  ;;  %s3861_s27 = smov [#allocation7]  }
   0xe   : > { %s5273_s24 = scalar_select %p3931_p4, 1, 0 }
   0xf   : > { %s5274_s25 = scalar_select %p3936_p6, 1, 0 }
  0x10   : > { %p3941_p8 = pnand %p2571_p5, %p173_p7  ;;  %s194_s28 = sshll.u32 %s3861_s27, 4  ;;  %s195_s28 = int_to_ptr.vmem [resolvable:$true] %s194_s28 }
  0x11   : > { %s3862_s30 = smov [#allocation9]   ;;  %s3654_s9 = scalar_lea.hbm %s5263_s2, 4096 }
  0x12   : > { %s5275_s26 = scalar_select %p3941_p8, 1, 0 }
  0x13   : > { %p2750_p9 = pneg %p3941_p8  ;;  %s208_s6 = sshll.u32 %s3862_s30, 4  ;;  %s3953_s6 = int_to_ptr.vmem [resolvable:$true] %s208_s6 }
  0x14   : > { %p3655_p11 = scmp.ne.s32.totalorder %s5263_s2, %s3654_s9  ;;  %p3661_p3 = scmp.lt.u32.totalorder %s3654_s9, %s5263_s2 }
  0x15   : > { %p3949_p10 = pnand %p2750_p9, %p5267_p1 }
  0x17   : > { %p3963_p12 = pneg %p3949_p10 }
  0x19   : > { %p3657_p13 = pnand %p3963_p12, %p3655_p11 }
  0x1b   : > { %p3658_p0 = pneg %p3657_p13 }
  0x1d   : > { %p3663_p5 = pnand %p3661_p3, %p3658_p0 }
  0x1f   : > { %3666 = shalt.err (!%p3663_p5)
}
  0x20   : > { %s3667_s15 = scalar_lea.vmem %s195_s28, 4096  ;;  %p3675_p2 = scmp.lt.s32.totalorder %s195_s28, %s195_s28 }
  0x21   : > { %p3668_p7 = scmp.ne.s32.totalorder %s195_s28, %s3667_s15  ;;  %p3676_p6 = scmp.lt.s32.totalorder %s3667_s15, %s3667_s15 }
  0x23   : > { %p3670_p9 = pnand %p3668_p7, %p3963_p12  ;;  %p3677_p4 = por %p3676_p6, %p3675_p2 }
  0x25   : > { %p3671_p1 = pneg %p3670_p9 }
  0x27   : > { %p3678_p8 = pnand %p3677_p4, %p3671_p1 }
  0x29   : > { %3681 = shalt.err (!%p3678_p8)
}
  0x2a   : > { %s3863_s16 = smov 128   ;;  %s3864_s17 = smov 8  }
  0x2b   : > { %2756 = dma.hbm_to_vmem [thread:$0]  (!%p3949_p10), %s5263_s2, 4096, %s195_s28, [#allocation8], %s3863_s16, %s3863_s16, %s3864_s17  }
  0x2c   : > { %s3682_s8 = scalar_lea.hbm %s5261_s0, 16 }
  0x2d   : > { %p3683_p11 = scmp.ne.s32.totalorder %s5261_s0, %s3682_s8  ;;  %p3689_p4 = scmp.lt.u32.totalorder %s3682_s8, %s5261_s0 }
  0x2f   : > { %p3685_p1 = pnand %p3683_p11, %p3963_p12 }
  0x31   : > { %p3686_p2 = pneg %p3685_p1 }
  0x33   : > { %p3691_p6 = pnand %p3689_p4, %p3686_p2 }
  0x35   : > { %3694 = shalt.err (!%p3691_p6)
}
  0x36   : > { %s3865_s14 = smov [#allocation2]   ;;  %s3695_s23 = scalar_lea.hbm %s5264_s3, 16 }
  0x37   : > { %2753 = dma.hbm_to_smem (!%p3949_p10), %s5261_s0, 16, %s3865_s14, [#allocation5]  }
  0x38   : > { %p3696_p8 = scmp.ne.s32.totalorder %s5264_s3, %s3695_s23  ;;  %p3702_p3 = scmp.lt.u32.totalorder %s3695_s23, %s5264_s3 }
  0x3a   : > { %p3698_p13 = pnand %p3696_p8, %p3963_p12 }
  0x3c   : > { %p3699_p0 = pneg %p3698_p13 }
  0x3e   : > { %p3704_p5 = pnand %p3702_p3, %p3699_p0 }
  0x40   : > { %3707 = shalt.err (!%p3704_p5)
}
  0x41   : > { %s3708_s9 = scalar_lea.vmem %s3953_s6, 16  ;;  %s3715_s10 = scalar_lea.vmem %s3953_s6, 32 }
  0x42   : > { %p3709_p7 = scmp.ne.s32.totalorder %s3953_s6, %s3708_s9  ;;  %p3716_p1 = scmp.lt.s32.totalorder %s3953_s6, %s3953_s6 }
  0x43   : > { %p3717_p2 = scmp.lt.s32.totalorder %s3715_s10, %s3708_s9 }
  0x44   : > { %p3711_p9 = pnand %p3709_p7, %p3963_p12 }
  0x45   : > { %p3718_p4 = por %p3717_p2, %p3716_p1 }
  0x46   : > { %p3712_p11 = pneg %p3711_p9 }
  0x48   : > { %p3719_p6 = pnand %p3718_p4, %p3712_p11 }
  0x4a   : > { %3722 = shalt.err (!%p3719_p6)
}
  0x4b   : > { %2759 = dma.hbm_to_vmem [thread:$0]  (!%p3949_p10), %s5264_s3, 16, %s3953_s6, [#allocation8]  }
  0x4c   : > { %s4020_s12 = sadd.s32 1, %s3859_s21   ;;  %s55_s14 = sadd.s32 1, %s3855_s20 }
  0x4d   : > { %s52_s29 = ssub.s32 %s3859_s21, %s4020_s12  ;;  %p62_p8 = scmp.ne.s32.totalorder %s3855_s20, %s3851_s19 }
  0x4e   : > { %p53_p12 = scmp.eq.s32.totalorder %s52_s29, 0  ;;  %p63_p13 = scmp.eq.s32.totalorder %s3859_s21, 0 }
  0x4f   : > { %p2774_p0 = scmp.lt.s32.totalorder %s3859_s21, 4  ;;  %p5278_p5 = scmp.eq.s32.totalorder %s3922_s22, 3 }
  0x50   : > { %s4030_s28 = scalar_select %p53_p12, %s3855_s20, %s55_s14  }
  0x51   : > { %p64_p3 = por %p63_p13, %p62_p8  ;;  %p4034_p7 = por %p5278_p5, %p62_p8 }
  0x52   : > { %s219_s16 = sand.u32 1, %s3855_s20   ;;  %s2660_s17 = sshll.u32 %s3859_s21, 14 }
  0x53   : > { %s2576_s6 = sshll.u32 %s219_s16, 10  ;;  %s4043_s30 = scalar_lea.hbm %s5262_s1, %s2660_s17 }
  0x54   : > { %s223_s7 = scalar_lea.vmem [#allocation6], %s2576_s6  ;;  %p4045_p10 = pnand %p2774_p0, %p64_p3 }
  0x55   : > { %s231_s8 = sshll.u32 %s223_s7, 4  ;;  %s4051_s10 = scalar_lea.sflag [#allocation3], %s219_s16  ;;  %s4049_s8 = int_to_ptr.vmem [resolvable:$true] %s231_s8 }
  0x56   : > { %s3723_s11 = scalar_lea.hbm %s4043_s30, 16384  ;;  %p3725_p11 = pneg %p4045_p10 }
  0x57   : > { %p3724_p9 = scmp.ne.s32.totalorder %s4043_s30, %s3723_s11  ;;  %s3728_s14 = scalar_lea.hbm %s5262_s1, 65536 }
  0x58   : > { %p3729_p4 = scmp.lt.u32.totalorder %s4043_s30, %s5262_s1  ;;  %p3730_p6 = scmp.lt.u32.totalorder %s3728_s14, %s3723_s11 }
  0x59   : > { %p3726_p1 = pnand %p3725_p11, %p3724_p9  ;;  %p3732_p8 = scmp.lt.u32.totalorder %s3723_s11, %s4043_s30 }
  0x5a   : > { %p3731_p12 = por %p3730_p6, %p3729_p4 }
  0x5b   : > { %p3727_p2 = pneg %p3726_p1 }
  0x5c   : > { %p3733_p13 = por %p3732_p8, %p3731_p12 }
  0x5e   : > { %p3734_p0 = pnand %p3733_p13, %p3727_p2 }
  0x60   : > { %3737 = shalt.err (!%p3734_p0)
}
  0x61   : > { %s3738_s16 = scalar_lea.vmem %s4049_s8, 16384  ;;  %s3866_s23 = smov [#allocation6]  }
  0x62   : > { %p3739_p3 = scmp.ne.s32.totalorder %s4049_s8, %s3738_s16  ;;  %s3743_s27 = sshll.u32 %s3866_s23, 4  ;;  %s3744_s27 = int_to_ptr.vmem [resolvable:$false] %s3743_s27 }
  0x63   : > { %s3745_s7 = scalar_lea.vmem %s3744_s27, 32768  ;;  %p3746_p1 = scmp.lt.s32.totalorder %s4049_s8, %s3744_s27 }
  0x64   : > { %p3741_p5 = pnand %p3739_p3, %p3725_p11  ;;  %p3747_p4 = scmp.lt.s32.totalorder %s3745_s7, %s3738_s16 }
  0x66   : > { %p3742_p9 = pneg %p3741_p5  ;;  %p3748_p6 = por %p3747_p4, %p3746_p1 }
  0x68   : > { %p3749_p12 = pnand %p3748_p6, %p3742_p9 }
  0x6a   : > { %3752 = shalt.err (!%p3749_p12)
}
  0x6b   : > { %s3867_s11 = smov 256   ;;  %s3868_s13 = smov 16  }
  0x6c   : > { %2763 = dma.hbm_to_vmem [thread:$0]  (!%p4045_p10), %s4043_s30, 16384, %s4049_s8, %s4051_s10, %s3867_s11, %s3867_s11, %s3868_s13  }
  0x6d   : > { %p5281_p11 = scmp.ne.s32.totalorder %s5275_s26, 0 }
  0x6f   : > { %243 = sbr.rel (%p5281_p11) target bundleno = 1193 (0x4a9), region = 36 }
  0x76   : > { %p5282_p2 = scmp.eq.s32.totalorder %s3922_s22, 0 }
  0x78   : > { %3826 = dma.done.wait (%p5282_p2), [#allocation5], 16   ;;  %p5283_p8 = pmov %p5282_p2 }
  0x79   : > { %s4086_s29 = sand.u32 1, %s3851_s19   ;;  %p5284_p10 = scmp.ne.s32.totalorder %s5273_s24, 0 }
  0x7a   : > { %3828 = vsyncadd (%p5283_p8), [#allocation5], 4294967280  ;;  %s2582_s14 = sshll.u32 %s4086_s29, 10  ;;  %s250_s17 = scalar_lea.sflag [#allocation3], %s4086_s29 }
  0x7b   : > { %s4090_s6 = scalar_lea.vmem [#allocation6], %s2582_s14 }
  0x7c   : > { %3830 = dma.done.wait (%p5284_p10), %s250_s17, 16384  }
  0x7d   : > { %3832 = vsyncadd (%p5284_p10), %s250_s17, 4294950912  ;;  %p5285_p13 = pmov %p5282_p2 }
  0x7e   : > { %p5286_p0 = pmov %p5282_p2 }
  0x7f   : > { %3834 = dma.done.wait (%p5285_p13), [#allocation8], 4112  }
  0x80   : > { %3836 = vsyncadd (%p5286_p0), [#allocation8], 4294963184 }
  0x81   : > { %266 = sfence }
  0x82   : > { %v4101_v0 = vld [vmem:[%s4090_s6 + $0x80] sm:$0xff]  ;;  %v4104_v1 = vld [vmem:[%s4090_s6 + $0x88] sm:$0xff]  ;;  %v4119_v7 = vld [vmem:[%s4090_s6 + $0x90] sm:$0xff]  ;;  %s4308_s24 = sld [smem:[#allocation2]]  ;;  %vm2254_vm0 = vcmask 1041409   ;;  %vm2256_vm1 = vcmask 1042434  }
  0x83   : > { %v4107_v2 = vld [vmem:[%s4090_s6] sm:$0xff]  ;;  %v378_v3 = vmul.f32 %v4101_v0, %v4101_v0  ;;  %v379_v4 = vmul.f32 %v4104_v1, %v4104_v1  ;;  %v4114_v5 = vld [vmem:[%s4090_s6 + $0x8] sm:$0xff]  ;;  %v4122_v8 = vld [vmem:[%s4090_s6 + $0x98] sm:$0xff]  ;;  %v380_v10 = vmul.f32 %v4119_v7, %v4119_v7  ;;  %vm2258_vm2 = vcmask 1043459   ;;  %s2587_s30 = sld [smem:[#allocation2 + $0x1]]  ;;  %s2585_s8 = sshll.u32 %s4086_s29, 3 }
  0x84   : > { %v370_v6 = vmul.f32 %v4107_v2, %v4107_v2  ;;  %v371_v9 = vmul.f32 %v4114_v5, %v4114_v5  ;;  %v381_v11 = vmul.f32 %v4122_v8, %v4122_v8  ;;  %v4131_v12 = vld [vmem:[%s4090_s6 + $0x10] sm:$0xff]  ;;  %v4134_v13 = vld [vmem:[%s4090_s6 + $0x18] sm:$0xff]  ;;  %v4147_v19 = vld [vmem:[%s4090_s6 + $0x40] sm:$0xff]  ;;  %vm2260_vm3 = vcmask 1044484   ;;  %s2655_s9 = sshll.u32 %s3922_s22, 7  ;;  %s286_s10 = scalar_lea.vmem [#allocation10], %s2585_s8 }
  0x85   : > { %v4137_v14 = vld [vmem:[%s4090_s6 + $0x50] sm:$0xff]  ;;  %v446_v15 = vadd.f32 %v379_v4, %v378_v3  ;;  %v372_v16 = vmul.f32 %v4131_v12, %v4131_v12  ;;  %v373_v17 = vmul.f32 %v4134_v13, %v4134_v13  ;;  %v4144_v18 = vld [vmem:[%s4090_s6 + $0x58] sm:$0xff]  ;;  %v4150_v20 = vld [vmem:[%s4090_s6 + $0x48] sm:$0xff]  ;;  %v1270_v26 = vmul.f32 %v4147_v19, %v4147_v19  ;;  %s2423_s16 = sshll.u32 %s286_s10, 4  ;;  %s5186_s7 = scalar_lea.hbm %s5265_s4, %s2655_s9  ;;  %s5188_s16 = int_to_ptr.vmem [resolvable:$true] %s2423_s16 }
  0x86   : > { %v434_v21 = vadd.f32 %v371_v9, %v370_v6  ;;  %v449_v22 = vadd.f32 %v381_v11, %v380_v10  ;;  %v1272_v23 = vmul.f32 %v4137_v14, %v4137_v14  ;;  %v1273_v24 = vmul.f32 %v4144_v18, %v4144_v18  ;;  %v4161_v28 = vld [vmem:[%s4090_s6 + $0xd0] sm:$0xff]  ;;  %v4164_v29 = vld [vmem:[%s4090_s6 + $0xd8] sm:$0xff]  ;;  %v4167_v30 = vld [vmem:[%s4090_s6 + $0xc0] sm:$0xff]  ;;  %s2405_s11 = scalar_lea.sflag [#allocation4], %s4086_s29  ;;  %s3753_s13 = scalar_lea.vmem %s5188_s16, 128 }
  0x87   : > { %447 = vadd.xlane.f32.xlu1 %v446_v15  ;;  %v437_v25 = vadd.f32 %v373_v17, %v372_v16  ;;  %v1271_v27 = vmul.f32 %v4150_v20, %v4150_v20  ;;  %v4170_v31 = vld [vmem:[%s4090_s6 + $0xc8] sm:$0xff]  ;;  %v1280_v33 = vmul.f32 %v4161_v28, %v4161_v28  ;;  %v1281_v34 = vmul.f32 %v4164_v29, %v4164_v29  ;;  %v4181_v38 = vld [vmem:[%s4090_s6 + $0x110] sm:$0xff]  ;;  %v4184_v39 = vld [vmem:[%s4090_s6 + $0x118] sm:$0xff]  ;;  %p3754_p3 = scmp.ne.s32.totalorder %s5188_s16, %s3753_s13  ;;  %s3869_s14 = smov [#allocation10]  }
  0x88   : > { %435 = vadd.xlane.f32.xlu0 %v434_v21  ;;  %v1337_v32 = vadd.f32 %v1273_v24, %v1272_v23  ;;  %v1278_v36 = vmul.f32 %v4167_v30, %v4167_v30  ;;  %v1279_v37 = vmul.f32 %v4170_v31, %v4170_v31  ;;  %v322_v40 = vld [vmem:[%s4090_s6 + $0x100] sm:$0xff]  ;;  %v323_v41 = vld [vmem:[%s4090_s6 + $0x108] sm:$0xff]  ;;  %v388_v43 = vmul.f32 %v4181_v38, %v4181_v38  ;;  %v2606_v48 = vld [vmem:[%s4090_s6 + $0x150] sm:$0xff]  ;;  %s3757_s17 = sshll.u32 %s3869_s14, 4  ;;  %s3758_s17 = int_to_ptr.vmem [resolvable:$false] %s3757_s17 }
  0x89   : > { %v1334_v35 = vadd.f32 %v1271_v27, %v1270_v26  ;;  %v1349_v42 = vadd.f32 %v1281_v34, %v1280_v33  ;;  %v389_v44 = vmul.f32 %v4184_v39, %v4184_v39  ;;  %v386_v46 = vmul.f32 %v322_v40, %v322_v40  ;;  %v2607_v49 = vld [vmem:[%s4090_s6 + $0x158] sm:$0xff]  ;;  %v2604_v50 = vld [vmem:[%s4090_s6 + $0x140] sm:$0xff]  ;;  %v2605_v51 = vld [vmem:[%s4090_s6 + $0x148] sm:$0xff]  ;;  %p3755_p5 = pnand %p3754_p3, %p4034_p7  ;;  %p3760_p1 = scmp.lt.s32.totalorder %s5188_s16, %s3758_s17 }
  0x8a   : > { %v1346_v45 = vadd.f32 %v1279_v37, %v1278_v36  ;;  %v387_v47 = vmul.f32 %v323_v41, %v323_v41  ;;  %v1288_v53 = vmul.f32 %v2606_v48, %v2606_v48  ;;  %v1289_v54 = vmul.f32 %v2607_v49, %v2607_v49  ;;  %v318_v58 = vld [vmem:[%s4090_s6 + $0xa0] sm:$0xff]  ;;  %v319_v59 = vld [vmem:[%s4090_s6 + $0xa8] sm:$0xff]  ;;  %v332_v10 = vld [vmem:[%s4090_s6 + $0x190] sm:$0xff] }
  0x8b   : > { %450 = vadd.xlane.f32.xlu1 %v449_v22  ;;  %v461_v52 = vadd.f32 %v389_v44, %v388_v43  ;;  %v1286_v56 = vmul.f32 %v2604_v50, %v2604_v50  ;;  %v1287_v57 = vmul.f32 %v2605_v51, %v2605_v51  ;;  %v310_v60 = vld [vmem:[%s4090_s6 + $0x20] sm:$0xff]  ;;  %v311_v61 = vld [vmem:[%s4090_s6 + $0x28] sm:$0xff]  ;;  %v382_v63 = vmul.f32 %v318_v58, %v318_v58  ;;  %v333_v11 = vld [vmem:[%s4090_s6 + $0x198] sm:$0xff]  ;;  %p3756_p9 = pneg %p3755_p5 }
  0x8c   : > { %438 = vadd.xlane.f32.xlu0 %v437_v25  ;;  %v458_v55 = vadd.f32 %v387_v47, %v386_v46  ;;  %v1361_v62 = vadd.f32 %v1289_v54, %v1288_v53  ;;  %v383_v3 = vmul.f32 %v319_v59, %v319_v59  ;;  %v374_v6 = vmul.f32 %v310_v60, %v310_v60  ;;  %v330_v15 = vld [vmem:[%s4090_s6 + $0x180] sm:$0xff]  ;;  %v331_v16 = vld [vmem:[%s4090_s6 + $0x188] sm:$0xff]  ;;  %v2615_v43 = vld [vmem:[%s4090_s6 + $0x1d8] sm:$0xff] }
  0x8d   : > { %v1358_v4 = vadd.f32 %v1287_v57, %v1286_v56  ;;  %v375_v9 = vmul.f32 %v311_v61, %v311_v61  ;;  %v396_v21 = vmul.f32 %v332_v10, %v332_v10  ;;  %v397_v22 = vmul.f32 %v333_v11, %v333_v11  ;;  %v2600_v26 = vld [vmem:[%s4090_s6 + $0xe0] sm:$0xff]  ;;  %v2601_v27 = vld [vmem:[%s4090_s6 + $0xe8] sm:$0xff] }
  0x8e   : > { %v452_v17 = vadd.f32 %v383_v3, %v382_v63  ;;  %v394_v24 = vmul.f32 %v330_v15, %v330_v15  ;;  %v395_v25 = vmul.f32 %v331_v16, %v331_v16  ;;  %v2593_v33 = vld [vmem:[%s4090_s6 + $0x68] sm:$0xff]  ;;  %v1283_v36 = vmul.f32 %v2601_v27, %v2601_v27  ;;  %v2612_v44 = vld [vmem:[%s4090_s6 + $0x1c0] sm:$0xff]  ;;  %v340_v3 = vld [vmem:[%s4090_s6 + $0x210] sm:$0xff] }
  0x8f   : > { %1338 = vadd.xlane.f32.xlu1 %v1337_v32  ;;  %v440_v23 = vadd.f32 %v375_v9, %v374_v6  ;;  %v2592_v32 = vld [vmem:[%s4090_s6 + $0x60] sm:$0xff]  ;;  %v473_v34 = vadd.f32 %v397_v22, %v396_v21  ;;  %v1275_v41 = vmul.f32 %v2593_v33, %v2593_v33  ;;  %v1297_v48 = vmul.f32 %v2615_v43, %v2615_v43  ;;  %v339_v53 = vld [vmem:[%s4090_s6 + $0x208] sm:$0xff]  ;;  %v2623_v21 = vld [vmem:[%s4090_s6 + $0x258] sm:$0xff] }
  0x90   : > { %1335 = vadd.xlane.f32.xlu0 %v1334_v35  ;;  %v1282_v35 = vmul.f32 %v2600_v26, %v2600_v26  ;;  %v470_v37 = vadd.f32 %v395_v25, %v394_v24  ;;  %v1274_v40 = vmul.f32 %v2592_v32, %v2592_v32  ;;  %v1294_v50 = vmul.f32 %v2612_v44, %v2612_v44  ;;  %v326_v54 = vld [vmem:[%s4090_s6 + $0x120] sm:$0xff]  ;;  %v2609_v63 = vld [vmem:[%s4090_s6 + $0x168] sm:$0xff] }
  0x91   : > { %v403_v58 = vmul.f32 %v339_v53, %v339_v53  ;;  %v390_v60 = vmul.f32 %v326_v54, %v326_v54  ;;  %v1291_v10 = vmul.f32 %v2609_v63, %v2609_v63  ;;  %v404_v15 = vmul.f32 %v340_v3, %v340_v3  ;;  %v2620_v22 = vld [vmem:[%s4090_s6 + $0x240] sm:$0xff] }
  0x92   : > { %v1352_v46 = vadd.f32 %v1283_v36, %v1282_v35  ;;  %v1340_v49 = vadd.f32 %v1275_v41, %v1274_v40  ;;  %v1305_v26 = vmul.f32 %v2623_v21, %v2623_v21  ;;  %v1302_v32 = vmul.f32 %v2620_v22, %v2620_v22  ;;  %v321_v35 = vld [vmem:[%s4090_s6 + $0xb8] sm:$0xff]  ;;  %v312_v36 = vld [vmem:[%s4090_s6 + $0x30] sm:$0xff] }
  0x93   : > { %1350 = vadd.xlane.f32.xlu1 %v1349_v42  ;;  %v2614_v42 = vld [vmem:[%s4090_s6 + $0x1d0] sm:$0xff]  ;;  %v376_v44 = vmul.f32 %v312_v36, %v312_v36  ;;  %vm2262_vm4 = vcmask 1045509   ;;  %vm2264_vm5 = vcmask 1046534   ;;  %vm2266_vm6 = vcmask 1047559  }
  0x94   : > { %1347 = vadd.xlane.f32.xlu0 %v1346_v45  ;;  %v2613_v45 = vld [vmem:[%s4090_s6 + $0x1c8] sm:$0xff]  ;;  %v1296_v47 = vmul.f32 %v2614_v42, %v2614_v42  ;;  %v385_v42 = vmul.f32 %v321_v35, %v321_v35 }
  0x95   : > { %v1295_v51 = vmul.f32 %v2613_v45, %v2613_v45 }
  0x96   : > { %v1373_v56 = vadd.f32 %v1297_v48, %v1296_v47  ;;  %v347_v47 = vld [vmem:[%s4090_s6 + $0x288] sm:$0xff]  ;;  %v334_v48 = vld [vmem:[%s4090_s6 + $0x1a0] sm:$0xff] }
  0x97   : > { %462 = vadd.xlane.f32.xlu1 %v461_v52  ;;  %v338_v52 = vld [vmem:[%s4090_s6 + $0x200] sm:$0xff]  ;;  %v1370_v59 = vadd.f32 %v1295_v51, %v1294_v50  ;;  %v398_v54 = vmul.f32 %v334_v48, %v334_v48 }
  0x98   : > { %459 = vadd.xlane.f32.xlu0 %v458_v55  ;;  %v327_v55 = vld [vmem:[%s4090_s6 + $0x128] sm:$0xff]  ;;  %v402_v57 = vmul.f32 %v338_v52, %v338_v52  ;;  %v411_v52 = vmul.f32 %v347_v47, %v347_v47 }
  0x99   : > { %v391_v61 = vmul.f32 %v327_v55, %v327_v55 }
  0x9a   : > { %v482_v6 = vadd.f32 %v403_v58, %v402_v57  ;;  %v2595_v57 = vld [vmem:[%s4090_s6 + $0x78] sm:$0xff]  ;;  %v348_v58 = vld [vmem:[%s4090_s6 + $0x290] sm:$0xff] }
  0x9b   : > { %1362 = vadd.xlane.f32.xlu1 %v1361_v62  ;;  %v2608_v62 = vld [vmem:[%s4090_s6 + $0x160] sm:$0xff]  ;;  %v464_v11 = vadd.f32 %v391_v61, %v390_v60  ;;  %v412_v3 = vmul.f32 %v348_v58, %v348_v58 }
  0x9c   : > { %1359 = vadd.xlane.f32.xlu0 %v1358_v4  ;;  %v341_v4 = vld [vmem:[%s4090_s6 + $0x218] sm:$0xff]  ;;  %v1290_v9 = vmul.f32 %v2608_v62, %v2608_v62  ;;  %v1277_v62 = vmul.f32 %v2595_v57, %v2595_v57 }
  0x9d   : > { %v405_v16 = vmul.f32 %v341_v4, %v341_v4 }
  0x9e   : > { %v1364_v24 = vadd.f32 %v1291_v10, %v1290_v9  ;;  %v2617_v9 = vld [vmem:[%s4090_s6 + $0x1e8] sm:$0xff]  ;;  %v2602_v10 = vld [vmem:[%s4090_s6 + $0xf0] sm:$0xff] }
  0x9f   : > { %453 = vadd.xlane.f32.xlu1 %v452_v17  ;;  %v2622_v17 = vld [vmem:[%s4090_s6 + $0x250] sm:$0xff]  ;;  %v485_v27 = vadd.f32 %v405_v16, %v404_v15  ;;  %v1284_v22 = vmul.f32 %v2602_v10, %v2602_v10 }
  0xa0   : > { %441 = vadd.xlane.f32.xlu0 %v440_v23  ;;  %v2621_v23 = vld [vmem:[%s4090_s6 + $0x248] sm:$0xff]  ;;  %v1304_v25 = vmul.f32 %v2622_v17, %v2622_v17  ;;  %v1299_v17 = vmul.f32 %v2617_v9, %v2617_v9 }
  0xa1   : > { %v1303_v33 = vmul.f32 %v2621_v23, %v2621_v23 }
  0xa2   : > { %v1385_v40 = vadd.f32 %v1305_v26, %v1304_v25  ;;  %v2631_v25 = vld [vmem:[%s4090_s6 + $0x2d8] sm:$0xff]  ;;  %v2628_v26 = vld [vmem:[%s4090_s6 + $0x2c0] sm:$0xff] }
  0xa3   : > { %474 = vadd.xlane.f32.xlu1 %v473_v34  ;;  %v320_v34 = vld [vmem:[%s4090_s6 + $0xb0] sm:$0xff]  ;;  %v1382_v43 = vadd.f32 %v1303_v33, %v1302_v32  ;;  %v1310_v36 = vmul.f32 %v2628_v26, %v2628_v26 }
  0xa4   : > { %471 = vadd.xlane.f32.xlu0 %v470_v37  ;;  %v313_v37 = vld [vmem:[%s4090_s6 + $0x38] sm:$0xff]  ;;  %v384_v41 = vmul.f32 %v320_v34, %v320_v34  ;;  %v1313_v34 = vmul.f32 %v2631_v25, %v2631_v25 }
  0xa5   : > { %v377_v45 = vmul.f32 %v313_v37, %v313_v37 }
  0xa6   : > { %v455_v50 = vadd.f32 %v385_v42, %v384_v41  ;;  %v343_v41 = vld [vmem:[%s4090_s6 + $0x228] sm:$0xff]  ;;  %v328_v42 = vld [vmem:[%s4090_s6 + $0x130] sm:$0xff] }
  0xa7   : > { %1353 = vadd.xlane.f32.xlu1 %v1352_v46  ;;  %v346_v46 = vld [vmem:[%s4090_s6 + $0x280] sm:$0xff]  ;;  %v443_v53 = vadd.f32 %v377_v45, %v376_v44  ;;  %v392_v48 = vmul.f32 %v328_v42, %v328_v42 }
  0xa8   : > { %1341 = vadd.xlane.f32.xlu0 %v1340_v49  ;;  %v335_v49 = vld [vmem:[%s4090_s6 + $0x1a8] sm:$0xff]  ;;  %v410_v51 = vmul.f32 %v346_v46, %v346_v46  ;;  %v407_v46 = vmul.f32 %v343_v41, %v343_v41 }
  0xa9   : > { %v399_v55 = vmul.f32 %v335_v49, %v335_v49 }
  0xaa   : > { %v494_v60 = vadd.f32 %v411_v52, %v410_v51  ;;  %v357_v51 = vld [vmem:[%s4090_s6 + $0x318] sm:$0xff]  ;;  %v354_v52 = vld [vmem:[%s4090_s6 + $0x300] sm:$0xff] }
  0xab   : > { %1374 = vadd.xlane.f32.xlu1 %v1373_v56  ;;  %v2594_v56 = vld [vmem:[%s4090_s6 + $0x70] sm:$0xff]  ;;  %v476_v63 = vadd.f32 %v399_v55, %v398_v54  ;;  %v418_v58 = vmul.f32 %v354_v52, %v354_v52 }
  0xac   : > { %1371 = vadd.xlane.f32.xlu0 %v1370_v59  ;;  %v349_v59 = vld [vmem:[%s4090_s6 + $0x298] sm:$0xff]  ;;  %v1276_v61 = vmul.f32 %v2594_v56, %v2594_v56  ;;  %v421_v56 = vmul.f32 %v357_v51, %v357_v51 }
  0xad   : > { %v413_v4 = vmul.f32 %v349_v59, %v349_v59 }
  0xae   : > { %v1343_v15 = vadd.f32 %v1277_v62, %v1276_v61  ;;  %v2625_v61 = vld [vmem:[%s4090_s6 + $0x268] sm:$0xff]  ;;  %v2610_v62 = vld [vmem:[%s4090_s6 + $0x170] sm:$0xff] }
  0xaf   : > { %483 = vadd.xlane.f32.xlu1 %v482_v6  ;;  %v2616_v6 = vld [vmem:[%s4090_s6 + $0x1e0] sm:$0xff]  ;;  %v497_v21 = vadd.f32 %v413_v4, %v412_v3  ;;  %v1292_v10 = vmul.f32 %v2610_v62, %v2610_v62 }
  0xb0   : > { %465 = vadd.xlane.f32.xlu0 %v464_v11  ;;  %v2603_v11 = vld [vmem:[%s4090_s6 + $0xf8] sm:$0xff]  ;;  %v1298_v16 = vmul.f32 %v2616_v6, %v2616_v6  ;;  %v1307_v6 = vmul.f32 %v2625_v61, %v2625_v61 }
  0xb1   : > { %v1285_v23 = vmul.f32 %v2603_v11, %v2603_v11 }
  0xb2   : > { %v1376_v32 = vadd.f32 %v1299_v17, %v1298_v16  ;;  %v2639_v16 = vld [vmem:[%s4090_s6 + $0x358] sm:$0xff]  ;;  %v2636_v17 = vld [vmem:[%s4090_s6 + $0x340] sm:$0xff] }
  0xb3   : > { %1365 = vadd.xlane.f32.xlu1 %v1364_v24  ;;  %v2630_v24 = vld [vmem:[%s4090_s6 + $0x2d0] sm:$0xff]  ;;  %v1355_v35 = vadd.f32 %v1285_v23, %v1284_v22  ;;  %v1318_v26 = vmul.f32 %v2636_v17, %v2636_v17 }
  0xb4   : > { %486 = vadd.xlane.f32.xlu0 %v485_v27  ;;  %v2629_v27 = vld [vmem:[%s4090_s6 + $0x2c8] sm:$0xff]  ;;  %v1312_v33 = vmul.f32 %v2630_v24, %v2630_v24  ;;  %v1321_v24 = vmul.f32 %v2639_v16, %v2639_v16 }
  0xb5   : > { %v1311_v37 = vmul.f32 %v2629_v27, %v2629_v27 }
  0xb6   : > { %v1397_v44 = vadd.f32 %v1313_v34, %v1312_v33  ;;  %v351_v33 = vld [vmem:[%s4090_s6 + $0x2a8] sm:$0xff]  ;;  %v336_v34 = vld [vmem:[%s4090_s6 + $0x1b0] sm:$0xff] }
  0xb7   : > { %1386 = vadd.xlane.f32.xlu1 %v1385_v40  ;;  %v342_v40 = vld [vmem:[%s4090_s6 + $0x220] sm:$0xff]  ;;  %v1394_v47 = vadd.f32 %v1311_v37, %v1310_v36  ;;  %v400_v42 = vmul.f32 %v336_v34, %v336_v34 }
  0xb8   : > { %1383 = vadd.xlane.f32.xlu0 %v1382_v43  ;;  %v329_v43 = vld [vmem:[%s4090_s6 + $0x138] sm:$0xff]  ;;  %v406_v45 = vmul.f32 %v342_v40, %v342_v40  ;;  %v415_v40 = vmul.f32 %v351_v33, %v351_v33 }
  0xb9   : > { %v393_v49 = vmul.f32 %v329_v43, %v329_v43 }
  0xba   : > { %v488_v54 = vadd.f32 %v407_v46, %v406_v45  ;;  %v365_v45 = vld [vmem:[%s4090_s6 + $0x398] sm:$0xff]  ;;  %v362_v46 = vld [vmem:[%s4090_s6 + $0x380] sm:$0xff] }
  0xbb   : > { %456 = vadd.xlane.f32.xlu1 %v455_v50  ;;  %v356_v50 = vld [vmem:[%s4090_s6 + $0x310] sm:$0xff]  ;;  %v467_v57 = vadd.f32 %v393_v49, %v392_v48  ;;  %v426_v52 = vmul.f32 %v362_v46, %v362_v46 }
  0xbc   : > { %444 = vadd.xlane.f32.xlu0 %v443_v53  ;;  %v355_v53 = vld [vmem:[%s4090_s6 + $0x308] sm:$0xff]  ;;  %v420_v55 = vmul.f32 %v356_v50, %v356_v50  ;;  %v429_v50 = vmul.f32 %v365_v45, %v365_v45 }
  0xbd   : > { %v419_v59 = vmul.f32 %v355_v53, %v355_v53 }
  0xbe   : > { %v509_v3 = vadd.f32 %v421_v56, %v420_v55  ;;  %v2633_v55 = vld [vmem:[%s4090_s6 + $0x2e8] sm:$0xff]  ;;  %v2618_v56 = vld [vmem:[%s4090_s6 + $0x1f0] sm:$0xff] }
  0xbf   : > { %495 = vadd.xlane.f32.xlu1 %v494_v60  ;;  %v2624_v60 = vld [vmem:[%s4090_s6 + $0x260] sm:$0xff]  ;;  %v506_v9 = vadd.f32 %v419_v59, %v418_v58  ;;  %v1300_v62 = vmul.f32 %v2618_v56, %v2618_v56 }
  0xc0   : > { %477 = vadd.xlane.f32.xlu0 %v476_v63  ;;  %v2611_v63 = vld [vmem:[%s4090_s6 + $0x178] sm:$0xff]  ;;  %v1306_v4 = vmul.f32 %v2624_v60, %v2624_v60  ;;  %v1315_v60 = vmul.f32 %v2633_v55, %v2633_v55 }
  0xc1   : > { %v1293_v11 = vmul.f32 %v2611_v63, %v2611_v63 }
  0xc2   : > { %v1388_v22 = vadd.f32 %v1307_v6, %v1306_v4  ;;  %v2647_v4 = vld [vmem:[%s4090_s6 + $0x3d8] sm:$0xff]  ;;  %v2644_v6 = vld [vmem:[%s4090_s6 + $0x3c0] sm:$0xff] }
  0xc3   : > { %1344 = vadd.xlane.f32.xlu1 %v1343_v15  ;;  %v2638_v15 = vld [vmem:[%s4090_s6 + $0x350] sm:$0xff]  ;;  %v1367_v25 = vadd.f32 %v1293_v11, %v1292_v10  ;;  %v1326_v17 = vmul.f32 %v2644_v6, %v2644_v6 }
  0xc4   : > { %498 = vadd.xlane.f32.xlu0 %v497_v21  ;;  %v2637_v21 = vld [vmem:[%s4090_s6 + $0x348] sm:$0xff]  ;;  %v1320_v23 = vmul.f32 %v2638_v15, %v2638_v15  ;;  %v1329_v15 = vmul.f32 %v2647_v4, %v2647_v4 }
  0xc5   : > { %v1319_v27 = vmul.f32 %v2637_v21, %v2637_v21 }
  0xc6   : > { %v1409_v36 = vadd.f32 %v1321_v24, %v1320_v23  ;;  %v359_v23 = vld [vmem:[%s4090_s6 + $0x328] sm:$0xff]  ;;  %v344_v24 = vld [vmem:[%s4090_s6 + $0x230] sm:$0xff] }
  0xc7   : > { %1377 = vadd.xlane.f32.xlu1 %v1376_v32  ;;  %v350_v32 = vld [vmem:[%s4090_s6 + $0x2a0] sm:$0xff]  ;;  %v1406_v41 = vadd.f32 %v1319_v27, %v1318_v26  ;;  %v408_v34 = vmul.f32 %v344_v24, %v344_v24 }
  0xc8   : > { %1356 = vadd.xlane.f32.xlu0 %v1355_v35  ;;  %v337_v35 = vld [vmem:[%s4090_s6 + $0x1b8] sm:$0xff]  ;;  %v414_v37 = vmul.f32 %v350_v32, %v350_v32  ;;  %v423_v32 = vmul.f32 %v359_v23, %v359_v23 }
  0xc9   : > { %v401_v43 = vmul.f32 %v337_v35, %v337_v35 }
  0xca   : > { %v500_v48 = vadd.f32 %v415_v40, %v414_v37  ;;  %v2641_v37 = vld [vmem:[%s4090_s6 + $0x368] sm:$0xff]  ;;  %v2626_v40 = vld [vmem:[%s4090_s6 + $0x270] sm:$0xff] }
  0xcb   : > { %1398 = vadd.xlane.f32.xlu1 %v1397_v44  ;;  %v364_v44 = vld [vmem:[%s4090_s6 + $0x390] sm:$0xff]  ;;  %v479_v51 = vadd.f32 %v401_v43, %v400_v42  ;;  %v1308_v46 = vmul.f32 %v2626_v40, %v2626_v40 }
  0xcc   : > { %1395 = vadd.xlane.f32.xlu0 %v1394_v47  ;;  %v363_v47 = vld [vmem:[%s4090_s6 + $0x388] sm:$0xff]  ;;  %v428_v49 = vmul.f32 %v364_v44, %v364_v44  ;;  %v1323_v44 = vmul.f32 %v2641_v37, %v2641_v37 }
  0xcd   : > { %v427_v53 = vmul.f32 %v363_v47, %v363_v47 }
  0xce   : > { %v521_v58 = vadd.f32 %v429_v50, %v428_v49  ;;  %v367_v49 = vld [vmem:[%s4090_s6 + $0x3a8] sm:$0xff]  ;;  %v352_v50 = vld [vmem:[%s4090_s6 + $0x2b0] sm:$0xff] }
  0xcf   : > { %489 = vadd.xlane.f32.xlu1 %v488_v54  ;;  %v2632_v54 = vld [vmem:[%s4090_s6 + $0x2e0] sm:$0xff]  ;;  %v518_v61 = vadd.f32 %v427_v53, %v426_v52  ;;  %v416_v56 = vmul.f32 %v352_v50, %v352_v50 }
  0xd0   : > { %468 = vadd.xlane.f32.xlu0 %v467_v57  ;;  %v2619_v57 = vld [vmem:[%s4090_s6 + $0x1f8] sm:$0xff]  ;;  %v1314_v59 = vmul.f32 %v2632_v54, %v2632_v54  ;;  %v431_v54 = vmul.f32 %v367_v49, %v367_v49 }
  0xd1   : > { %v1301_v63 = vmul.f32 %v2619_v57, %v2619_v57 }
  0xd2   : > { %v1400_v10 = vadd.f32 %v1315_v60, %v1314_v59  ;;  %v2649_v59 = vld [vmem:[%s4090_s6 + $0x3e8] sm:$0xff]  ;;  %v2634_v60 = vld [vmem:[%s4090_s6 + $0x2f0] sm:$0xff] }
  0xd3   : > { %510 = vadd.xlane.f32.xlu1 %v509_v3  ;;  %v2646_v3 = vld [vmem:[%s4090_s6 + $0x3d0] sm:$0xff]  ;;  %v1379_v16 = vadd.f32 %v1301_v63, %v1300_v62  ;;  %v1316_v6 = vmul.f32 %v2634_v60, %v2634_v60 }
  0xd4   : > { %507 = vadd.xlane.f32.xlu0 %v506_v9  ;;  %v2645_v9 = vld [vmem:[%s4090_s6 + $0x3c8] sm:$0xff]  ;;  %v1328_v11 = vmul.f32 %v2646_v3, %v2646_v3  ;;  %v1331_v3 = vmul.f32 %v2649_v59, %v2649_v59 }
  0xd5   : > { %v1327_v21 = vmul.f32 %v2645_v9, %v2645_v9 }
  0xd6   : > { %v1421_v26 = vadd.f32 %v1329_v15, %v1328_v11  ;;  %v2643_v11 = vld [vmem:[%s4090_s6 + $0x378] sm:$0xff]  ;;  %v360_v15 = vld [vmem:[%s4090_s6 + $0x330] sm:$0xff] }
  0xd7   : > { %1389 = vadd.xlane.f32.xlu1 %v1388_v22  ;;  %v358_v22 = vld [vmem:[%s4090_s6 + $0x320] sm:$0xff]  ;;  %v1418_v33 = vadd.f32 %v1327_v21, %v1326_v17  ;;  %v424_v24 = vmul.f32 %v360_v15, %v360_v15 }
  0xd8   : > { %1368 = vadd.xlane.f32.xlu0 %v1367_v25  ;;  %v345_v25 = vld [vmem:[%s4090_s6 + $0x238] sm:$0xff]  ;;  %v422_v27 = vmul.f32 %v358_v22, %v358_v22  ;;  %v1325_v22 = vmul.f32 %v2643_v11, %v2643_v11 }
  0xd9   : > { %v409_v35 = vmul.f32 %v345_v25, %v345_v25 }
  0xda   : > { %v512_v42 = vadd.f32 %v423_v32, %v422_v27  ;;  %v2651_v27 = vld [vmem:[%s4090_s6 + $0x3f8] sm:$0xff]  ;;  %v368_v32 = vld [vmem:[%s4090_s6 + $0x3b0] sm:$0xff] }
  0xdb   : > { %1410 = vadd.xlane.f32.xlu1 %v1409_v36  ;;  %v2640_v36 = vld [vmem:[%s4090_s6 + $0x360] sm:$0xff]  ;;  %v491_v45 = vadd.f32 %v409_v35, %v408_v34  ;;  %v432_v40 = vmul.f32 %v368_v32, %v368_v32 }
  0xdc   : > { %1407 = vadd.xlane.f32.xlu0 %v1406_v41  ;;  %v2627_v41 = vld [vmem:[%s4090_s6 + $0x278] sm:$0xff]  ;;  %v1322_v43 = vmul.f32 %v2640_v36, %v2640_v36  ;;  %v1333_v36 = vmul.f32 %v2651_v27, %v2651_v27 }
  0xdd   : > { %v1309_v47 = vmul.f32 %v2627_v41, %v2627_v41 }
  0xde   : > { %v1412_v52 = vadd.f32 %v1323_v44, %v1322_v43 }
  0xdf   : > { %501 = vadd.xlane.f32.xlu1 %v500_v48  ;;  %v366_v48 = vld [vmem:[%s4090_s6 + $0x3a0] sm:$0xff]  ;;  %v1391_v55 = vadd.f32 %v1309_v47, %v1308_v46 }
  0xe0   : > { %480 = vadd.xlane.f32.xlu0 %v479_v51  ;;  %v353_v51 = vld [vmem:[%s4090_s6 + $0x2b8] sm:$0xff]  ;;  %v430_v53 = vmul.f32 %v366_v48, %v366_v48 }
  0xe1   : > { %v417_v57 = vmul.f32 %v353_v51, %v353_v51 }
  0xe2   : > { %v524_v62 = vadd.f32 %v431_v54, %v430_v53 }
  0xe3   : > { %522 = vadd.xlane.f32.xlu1 %v521_v58  ;;  %v2648_v58 = vld [vmem:[%s4090_s6 + $0x3e0] sm:$0xff]  ;;  %v503_v4 = vadd.f32 %v417_v57, %v416_v56 }
  0xe4   : > { %519 = vadd.xlane.f32.xlu0 %v518_v61  ;;  %v2635_v61 = vld [vmem:[%s4090_s6 + $0x2f8] sm:$0xff]  ;;  %v1330_v63 = vmul.f32 %v2648_v58, %v2648_v58 }
  0xe5   : > { %v1317_v9 = vmul.f32 %v2635_v61, %v2635_v61 }
  0xe6   : > { %v1424_v17 = vadd.f32 %v1331_v3, %v1330_v63 }
  0xe7   : > { %1401 = vadd.xlane.f32.xlu1 %v1400_v10  ;;  %v2642_v10 = vld [vmem:[%s4090_s6 + $0x370] sm:$0xff]  ;;  %v1403_v23 = vadd.f32 %v1317_v9, %v1316_v6 }
  0xe8   : > { %1380 = vadd.xlane.f32.xlu0 %v1379_v16  ;;  %v361_v16 = vld [vmem:[%s4090_s6 + $0x338] sm:$0xff]  ;;  %v1324_v21 = vmul.f32 %v2642_v10, %v2642_v10 }
  0xe9   : > { %v425_v25 = vmul.f32 %v361_v16, %v361_v16 }
  0xea   : > { %v1415_v34 = vadd.f32 %v1325_v22, %v1324_v21 }
  0xeb   : > { %1422 = vadd.xlane.f32.xlu1 %v1421_v26  ;;  %v2650_v26 = vld [vmem:[%s4090_s6 + $0x3f0] sm:$0xff]  ;;  %v515_v37 = vadd.f32 %v425_v25, %v424_v24 }
  0xec   : > { %1419 = vadd.xlane.f32.xlu0 %v1418_v33  ;;  %v369_v33 = vld [vmem:[%s4090_s6 + $0x3b8] sm:$0xff]  ;;  %v1332_v35 = vmul.f32 %v2650_v26, %v2650_v26 }
  0xed   : > { %v433_v41 = vmul.f32 %v369_v33, %v369_v33 }
  0xef   : > { %513 = vadd.xlane.f32.xlu1 %v512_v42  ;;  %v1427_v42 = vadd.f32 %v1333_v36, %v1332_v35  ;;  %v527_v43 = vadd.f32 %v433_v41, %v432_v40  ;;  %v4321_v41 = vstv %s4308_s24 }
  0xf0   : > { %492 = vadd.xlane.f32.xlu0 %v491_v45 }
  0xf3   : > { %1413 = vadd.xlane.f32.xlu1 %v1412_v52 }
  0xf4   : > { %1392 = vadd.xlane.f32.xlu0 %v1391_v55 }
  0xf7   : > { %525 = vadd.xlane.f32.xlu1 %v524_v62 }
  0xf8   : > { %504 = vadd.xlane.f32.xlu0 %v503_v4 }
  0xfb   : > { %1425 = vadd.xlane.f32.xlu1 %v1424_v17 }
  0xfc   : > { %1404 = vadd.xlane.f32.xlu0 %v1403_v23 }
  0xff   : > { %1416 = vadd.xlane.f32.xlu1 %v1415_v34 }
 0x100   : > { %516 = vadd.xlane.f32.xlu0 %v515_v37 }
 0x103   : > { %1428 = vadd.xlane.f32.xlu1 %v1427_v42 }
 0x104   : > { %528 = vadd.xlane.f32.xlu0 %v527_v43 }
 0x114   : > { %v448_v44 = vpop.xlane.xlu1 %447 }
 0x115   : > { %v534_v45 = vmax.f32 %v448_v44, 1e-24  ;;  %v436_v46 = vpop.xlane.xlu0 %435 }
 0x116   : > { %v530_v47 = vmax.f32 %v436_v46, 1e-24 }
 0x117   : > { %2818 = vrsqrt.f32 %v534_v45 }
 0x118   : > { %2820 = vrsqrt.f32 %v530_v47  ;;  %v451_v48 = vpop.xlane.xlu1 %450 }
 0x119   : > { %v535_v49 = vmax.f32 %v451_v48, 1e-24  ;;  %v439_v50 = vpop.xlane.xlu0 %438 }
 0x11a   : > { %v531_v51 = vmax.f32 %v439_v50, 1e-24 }
 0x11b   : > { %2822 = vrsqrt.f32 %v535_v49 }
 0x11c   : > { %2824 = vrsqrt.f32 %v531_v51  ;;  %v1339_v52 = vpop.xlane.xlu1 %1338 }
 0x11d   : > { %v1431_v53 = vmax.f32 %v1339_v52, 1e-24  ;;  %v1336_v54 = vpop.xlane.xlu0 %1335 }
 0x11e   : > { %v1430_v55 = vmax.f32 %v1336_v54, 1e-24 }
 0x11f   : > { %2826 = vrsqrt.f32 %v1431_v53 }
 0x120   : > { %2828 = vrsqrt.f32 %v1430_v55  ;;  %v1351_v56 = vpop.xlane.xlu1 %1350 }
 0x121   : > { %v2819_v57 = vpop.eup %2818  ;;  %v1435_v58 = vmax.f32 %v1351_v56, 1e-24  ;;  %v1348_v59 = vpop.xlane.xlu0 %1347 }
 0x122   : > { %v2821_v60 = vpop.eup %2820  ;;  %v602_v61 = vmul.f32 %v2819_v57, %v4101_v0  ;;  %v603_v62 = vmul.f32 %v2819_v57, %v4104_v1  ;;  %v1434_v63 = vmax.f32 %v1348_v59, 1e-24 }
 0x123   : > { %v594_v3 = vmul.f32 %v2821_v60, %v4107_v2  ;;  %v595_v4 = vmul.f32 %v2821_v60, %v4114_v5  ;;  %2830 = vrsqrt.f32 %v1435_v58 }
 0x124   : > { %v666_v6 = vmax.f32 %v602_v61, 1e-06  ;;  %v667_v9 = vmax.f32 %v603_v62, 1e-06  ;;  %2832 = vrsqrt.f32 %v1434_v63  ;;  %v463_v26 = vpop.xlane.xlu1 %462 }
 0x125   : > { %v2823_v10 = vpop.eup %2822  ;;  %v658_v11 = vmax.f32 %v594_v3, 1e-06  ;;  %v659_v15 = vmax.f32 %v595_v4, 1e-06  ;;  %v4314_v33 = vpop.xlane.xlu0 %459  ;;  %v539_v49 = vmax.f32 %v463_v26, 1e-24 }
 0x126   : > { %v2825_v16 = vpop.eup %2824  ;;  %2834 = vlog2.f32 %v666_v6  ;;  %v604_v17 = vmul.f32 %v2823_v10, %v4119_v7  ;;  %v605_v0 = vmul.f32 %v2823_v10, %v4122_v8 }
 0x127   : > { %2836 = vlog2.f32 %v667_v9  ;;  %v596_v1 = vmul.f32 %v2825_v16, %v4131_v12  ;;  %v597_v2 = vmul.f32 %v2825_v16, %v4134_v13 }
 0x128   : > { %2838 = vlog2.f32 %v658_v11  ;;  %v668_v5 = vmax.f32 %v604_v17, 1e-06  ;;  %v669_v21 = vmax.f32 %v605_v0, 1e-06  ;;  %v4323_v48 = vpop.xlane.xlu1 %1362 }
 0x129   : > { %v2827_v22 = vpop.eup %2826  ;;  %2840 = vlog2.f32 %v659_v15  ;;  %v660_v23 = vmax.f32 %v596_v1, 1e-06  ;;  %v661_v24 = vmax.f32 %v597_v2, 1e-06 }
 0x12a   : > { %v2829_v25 = vpop.eup %2828  ;;  %2842 = vlog2.f32 %v668_v5  ;;  %v1496_v7 = vmul.f32 %v2827_v22, %v4137_v14  ;;  %v1497_v8 = vmul.f32 %v2827_v22, %v4144_v18 }
 0x12b   : > { %2844 = vlog2.f32 %v669_v21  ;;  %v1494_v12 = vmul.f32 %v2829_v25, %v4147_v19  ;;  %v1495_v13 = vmul.f32 %v2829_v25, %v4150_v20 }
 0x12c   : > { %2846 = vlog2.f32 %v660_v23  ;;  %v1560_v27 = vmax.f32 %v1496_v7, 1e-06  ;;  %v1561_v32 = vmax.f32 %v1497_v8, 1e-06  ;;  %v4332_v9 = vpop.xlane.xlu1 %453 }
 0x12d   : > { %v2831_v34 = vpop.eup %2830  ;;  %2848 = vlog2.f32 %v661_v24  ;;  %v1558_v35 = vmax.f32 %v1494_v12, 1e-06  ;;  %v1559_v36 = vmax.f32 %v1495_v13, 1e-06 }
 0x12e   : > { %v2833_v37 = vpop.eup %2832  ;;  %2850 = vlog2.f32 %v1560_v27  ;;  %v1504_v14 = vmul.f32 %v2831_v34, %v4161_v28  ;;  %v1505_v18 = vmul.f32 %v2831_v34, %v4164_v29 }
 0x12f   : > { %2852 = vlog2.f32 %v1561_v32  ;;  %v1502_v19 = vmul.f32 %v2833_v37, %v4167_v30  ;;  %v1503_v20 = vmul.f32 %v2833_v37, %v4170_v31  ;;  %v4325_v30 = vpop.xlane.xlu0 %1359 }
 0x130   : > { %v2835_v40 = vpop.eup %2834  ;;  %2854 = vlog2.f32 %v1558_v35  ;;  %v1568_v42 = vmax.f32 %v1504_v14, 1e-06  ;;  %v1569_v43 = vmax.f32 %v1505_v18, 1e-06  ;;  %v4342_v14 = vpop.xlane.xlu1 %474 }
 0x131   : > { %v2837_v44 = vpop.eup %2836  ;;  %v739_v45 = vmul.f32 0.6931472, %v2835_v40  ;;  %2856 = vlog2.f32 %v1559_v36  ;;  %v1566_v46 = vmax.f32 %v1502_v19, 1e-06  ;;  %v1567_v47 = vmax.f32 %v1503_v20, 1e-06 }
 0x132   : > { %v2839_v28 = vpop.eup %2838  ;;  %v741_v29 = vmul.f32 0.6931472, %v2837_v44  ;;  %2858 = vlog2.f32 %v1568_v42 }
 0x133   : > { %v2841_v31 = vpop.eup %2840  ;;  %v859_v50 = vmul.f32 %v739_v45, %v4321_v41  ;;  %v723_v51 = vmul.f32 0.6931472, %v2839_v28  ;;  %2860 = vlog2.f32 %v1569_v43  ;;  %v4335_v17 = vpop.xlane.xlu0 %441 }
 0x134   : > { %v2843_v52 = vpop.eup %2842  ;;  %v860_v53 = vmul.f32 %v741_v29, %v4321_v41  ;;  %v725_v54 = vmul.f32 0.6931472, %v2841_v31  ;;  %2862 = vlog2.f32 %v1566_v46 }
 0x135   : > { %v2845_v55 = vpop.eup %2844  ;;  %v931_v56 = vmul.f32 1.442695, %v859_v50  ;;  %v851_v57 = vmul.f32 %v723_v51, %v4321_v41  ;;  %v743_v58 = vmul.f32 0.6931472, %v2843_v52  ;;  %2864 = vlog2.f32 %v1567_v47 }
 0x136   : > { %v2847_v59 = vpop.eup %2846  ;;  %v933_v60 = vmul.f32 1.442695, %v860_v53  ;;  %v852_v61 = vmul.f32 %v725_v54, %v4321_v41  ;;  %v745_v62 = vmul.f32 0.6931472, %v2845_v55  ;;  %2866 = vrsqrt.f32 %v539_v49 }
 0x137   : > { %v2849_v63 = vpop.eup %2848  ;;  %2868 = vpow2.f32 %v931_v56  ;;  %v915_v3 = vmul.f32 1.442695, %v851_v57  ;;  %v861_v4 = vmul.f32 %v743_v58, %v4321_v41  ;;  %v727_v6 = vmul.f32 0.6931472, %v2847_v59  ;;  %v4345_v42 = vpop.xlane.xlu0 %471 }
 0x138   : > { %v2851_v10 = vpop.eup %2850  ;;  %2870 = vpow2.f32 %v933_v60  ;;  %v917_v11 = vmul.f32 1.442695, %v852_v61  ;;  %v862_v15 = vmul.f32 %v745_v62, %v4321_v41  ;;  %v729_v16 = vmul.f32 0.6931472, %v2849_v63  ;;  %v1354_v60 = vpop.xlane.xlu1 %1353 }
 0x139   : > { %v2853_v0 = vpop.eup %2852  ;;  %2872 = vpow2.f32 %v915_v3  ;;  %v935_v1 = vmul.f32 1.442695, %v861_v4  ;;  %v853_v2 = vmul.f32 %v727_v6, %v4321_v41  ;;  %v1627_v5 = vmul.f32 0.6931472, %v2851_v10 }
 0x13a   : > { %v2855_v21 = vpop.eup %2854  ;;  %2874 = vpow2.f32 %v917_v11  ;;  %v937_v22 = vmul.f32 1.442695, %v862_v15  ;;  %v854_v23 = vmul.f32 %v729_v16, %v4321_v41  ;;  %v1629_v24 = vmul.f32 0.6931472, %v2853_v0 }
 0x13b   : > { %v2857_v25 = vpop.eup %2856  ;;  %2876 = vpow2.f32 %v935_v1  ;;  %v919_v7 = vmul.f32 1.442695, %v853_v2  ;;  %v1752_v8 = vmul.f32 %v1627_v5, %v4321_v41  ;;  %v1623_v12 = vmul.f32 0.6931472, %v2855_v21  ;;  %v1342_v3 = vpop.xlane.xlu0 %1341 }
 0x13c   : > { %v2859_v13 = vpop.eup %2858  ;;  %2878 = vpow2.f32 %v937_v22  ;;  %v921_v26 = vmul.f32 1.442695, %v854_v23  ;;  %v1753_v27 = vmul.f32 %v1629_v24, %v4321_v41  ;;  %v1625_v32 = vmul.f32 0.6931472, %v2857_v25  ;;  %v1375_v22 = vpop.xlane.xlu1 %1374 }
 0x13d   : > { %v2861_v34 = vpop.eup %2860  ;;  %2880 = vpow2.f32 %v919_v7  ;;  %v1818_v35 = vmul.f32 1.442695, %v1752_v8  ;;  %v1750_v36 = vmul.f32 %v1623_v12, %v4321_v41  ;;  %v1643_v37 = vmul.f32 0.6931472, %v2859_v13 }
 0x13e   : > { %v2863_v18 = vpop.eup %2862  ;;  %2882 = vpow2.f32 %v921_v26  ;;  %v1820_v19 = vmul.f32 1.442695, %v1753_v27  ;;  %v1751_v20 = vmul.f32 %v1625_v32, %v4321_v41  ;;  %v1645_v40 = vmul.f32 0.6931472, %v2861_v34 }
 0x13f   : > { %v2865_v43 = vpop.eup %2864  ;;  %2884 = vpow2.f32 %v1818_v35  ;;  %v1814_v44 = vmul.f32 1.442695, %v1750_v36  ;;  %v1760_v45 = vmul.f32 %v1643_v37, %v4321_v41  ;;  %v1639_v46 = vmul.f32 0.6931472, %v2863_v18  ;;  %v1372_v23 = vpop.xlane.xlu0 %1371 }
 0x140   : > { %v2867_v47 = vpop.eup %2866  ;;  %2886 = vpow2.f32 %v1820_v19  ;;  %v1816_v28 = vmul.f32 1.442695, %v1751_v20  ;;  %v1761_v29 = vmul.f32 %v1645_v40, %v4321_v41  ;;  %v1641_v49 = vmul.f32 0.6931472, %v2865_v43  ;;  %v484_v32 = vpop.xlane.xlu1 %483 }
 0x141   : > { %v2869_v31 = vpop.eup %2868  ;;  %2888 = vpow2.f32 %v1814_v44  ;;  %v1834_v50 = vmul.f32 1.442695, %v1760_v45  ;;  %v1758_v51 = vmul.f32 %v1639_v46, %v4321_v41  ;;  %v612_v52 = vmul.f32 %v2867_v47, %v4181_v38 }
 0x142   : > { %v2871_v53 = vpop.eup %2870  ;;  %2890 = vpow2.f32 %v1816_v28  ;;  %v1836_v54 = vmul.f32 1.442695, %v1761_v29  ;;  %v1759_v55 = vmul.f32 %v1641_v49, %v4321_v41  ;;  %v613_v56 = vmul.f32 %v2867_v47, %v4184_v39  ;;  %v3544_v28 = vld [vmem:[%s4090_s6 + $0x100] sm:$0xff]  ;;  %v3545_v49 = vld [vmem:[%s4090_s6 + $0x108] sm:$0xff] }
 0x143   : > { %v2873_v57 = vpop.eup %2872  ;;  %2892 = vpow2.f32 %v1834_v50  ;;  %v1830_v58 = vmul.f32 1.442695, %v1758_v51  ;;  %v676_v59 = vmax.f32 %v612_v52, 1e-06  ;;  %v538_v38 = vmax.f32 %v4314_v33, 1e-24  ;;  %v466_v37 = vpop.xlane.xlu0 %465 }
 0x144   : > { %v2875_v61 = vpop.eup %2874  ;;  %2894 = vpow2.f32 %v1836_v54  ;;  %v1832_v62 = vmul.f32 1.442695, %v1759_v55  ;;  %v677_v63 = vmax.f32 %v613_v56, 1e-06  ;;  %v1439_v39 = vmax.f32 %v4323_v48, 1e-24 }
 0x145   : > { %v2877_v4 = vpop.eup %2876  ;;  %2896 = vpow2.f32 %v1830_v58  ;;  %v1438_v16 = vmax.f32 %v4325_v30, 1e-24  ;;  %v536_v2 = vmax.f32 %v4332_v9, 1e-24  ;;  %v532_v21 = vmax.f32 %v4335_v17, 1e-24 }
 0x146   : > { %v2879_v6 = vpop.eup %2878  ;;  %v4354_v10 = vadd.f32 %v2877_v4, %v2869_v31  ;;  %2898 = vpow2.f32 %v1832_v62  ;;  %v543_v30 = vmax.f32 %v4342_v14, 1e-24  ;;  %v542_v12 = vmax.f32 %v4345_v42, 1e-24  ;;  %v3546_v52 = vld [vmem:[%s4090_s6 + $0x150] sm:$0xff]  ;;  %v3547_v54 = vld [vmem:[%s4090_s6 + $0x158] sm:$0xff] }
 0x147   : > { %v2881_v11 = vpop.eup %2880  ;;  %v4357_v15 = vadd.f32 %v2879_v6, %v2871_v53  ;;  %2900 = vlog2.f32 %v676_v59  ;;  %v1436_v17 = vmax.f32 %v1354_v60, 1e-24  ;;  %v1432_v27 = vmax.f32 %v1342_v3, 1e-24  ;;  %v3548_v59 = vld [vmem:[%s4090_s6 + $0x140] sm:$0xff]  ;;  %v3549_v3 = vld [vmem:[%s4090_s6 + $0x148] sm:$0xff] }
 0x148   : > { %v2883_v0 = vpop.eup %2882  ;;  %v4360_v1 = vadd.f32 %v2881_v11, %v2873_v57  ;;  %2902 = vlog2.f32 %v677_v63  ;;  %v1443_v36 = vmax.f32 %v1375_v22, 1e-24  ;;  %v1442_v19 = vmax.f32 %v1372_v23, 1e-24  ;;  %v3550_v6 = vld [vmem:[%s4090_s6 + $0xa0] sm:$0xff] }
 0x149   : > { %v2885_v5 = vpop.eup %2884  ;;  %v4363_v33 = vadd.f32 %v2883_v0, %v2875_v61  ;;  %2904 = vrsqrt.f32 %v538_v38  ;;  %v546_v42 = vmax.f32 %v484_v32, 1e-24  ;;  %v540_v45 = vmax.f32 %v466_v37, 1e-24  ;;  %v3551_v0 = vld [vmem:[%s4090_s6 + $0xa8] sm:$0xff]  ;;  %v3556_v37 = vld [vmem:[%s4090_s6 + $0x180] sm:$0xff] }
 0x14a   : > { %v2887_v48 = vpop.eup %2886  ;;  %2906 = vrsqrt.f32 %v1439_v39 }
 0x14b   : > { %v2889_v24 = vpop.eup %2888  ;;  %2908 = vrsqrt.f32 %v1438_v16 }
 0x14c   : > { %v2891_v25 = vpop.eup %2890  ;;  %v4367_v7 = vadd.f32 %v2889_v24, %v2885_v5  ;;  %2910 = vrsqrt.f32 %v536_v2  ;;  %v3553_v24 = vld [vmem:[%s4090_s6 + $0x28] sm:$0xff] }
 0x14d   : > { %v2893_v8 = vpop.eup %2892  ;;  %v4369_v9 = vadd.f32 %v2891_v25, %v2887_v48  ;;  %2912 = vrsqrt.f32 %v532_v21  ;;  %v3552_v21 = vld [vmem:[%s4090_s6 + $0x20] sm:$0xff] }
 0x14e   : > { %v2895_v13 = vpop.eup %2894  ;;  %2914 = vrsqrt.f32 %v543_v30 }
 0x14f   : > { %v2897_v26 = vpop.eup %2896  ;;  %2916 = vrsqrt.f32 %v542_v12  ;;  %v3554_v12 = vld [vmem:[%s4090_s6 + $0x190] sm:$0xff] }
 0x150   : > { %v2899_v34 = vpop.eup %2898  ;;  %v4372_v35 = vadd.f32 %v2897_v26, %v2893_v8  ;;  %2918 = vrsqrt.f32 %v1436_v17 }
 0x151   : > { %v2901_v14 = vpop.eup %2900  ;;  %v4374_v18 = vadd.f32 %v2899_v34, %v2895_v13  ;;  %2920 = vrsqrt.f32 %v1432_v27  ;;  %v3555_v27 = vld [vmem:[%s4090_s6 + $0x198] sm:$0xff] }
 0x152   : > { %v2903_v20 = vpop.eup %2902  ;;  %v759_v40 = vmul.f32 0.6931472, %v2901_v14  ;;  %2922 = vrsqrt.f32 %v1443_v36 }
 0x153   : > { %v2905_v43 = vpop.eup %2904  ;;  %v761_v44 = vmul.f32 0.6931472, %v2903_v20  ;;  %2924 = vrsqrt.f32 %v1442_v19 }
 0x154   : > { %v2907_v46 = vpop.eup %2906  ;;  %v869_v47 = vmul.f32 %v759_v40, %v4321_v41  ;;  %v610_v29 = vmul.f32 %v3544_v28, %v2905_v43  ;;  %v611_v31 = vmul.f32 %v3545_v49, %v2905_v43  ;;  %2926 = vrsqrt.f32 %v546_v42  ;;  %v3557_v40 = vld [vmem:[%s4090_s6 + $0x188] sm:$0xff] }
 0x155   : > { %v2909_v50 = vpop.eup %2908  ;;  %v870_v51 = vmul.f32 %v761_v44, %v4321_v41  ;;  %v1512_v53 = vmul.f32 %v3546_v52, %v2907_v46  ;;  %v1513_v55 = vmul.f32 %v3547_v54, %v2907_v46  ;;  %2928 = vrsqrt.f32 %v540_v45  ;;  %v3558_v45 = vld [vmem:[%s4090_s6 + $0xe0] sm:$0xff] }
 0x156   : > { %v2911_v56 = vpop.eup %2910  ;;  %v951_v57 = vmul.f32 1.442695, %v869_v47  ;;  %v674_v58 = vmax.f32 %v610_v29, 1e-06  ;;  %v1510_v60 = vmul.f32 %v3548_v59, %v2909_v50  ;;  %v675_v63 = vmax.f32 %v611_v31, 1e-06 }
 0x157   : > { %v2913_v61 = vpop.eup %2912  ;;  %v953_v62 = vmul.f32 1.442695, %v870_v51  ;;  %v1511_v4 = vmul.f32 %v3549_v3, %v2909_v50  ;;  %v1576_v38 = vmax.f32 %v1512_v53, 1e-06  ;;  %v606_v39 = vmul.f32 %v3550_v6, %v2911_v56  ;;  %v3559_v29 = vld [vmem:[%s4090_s6 + $0xe8] sm:$0xff]  ;;  %v3560_v31 = vld [vmem:[%s4090_s6 + $0x60] sm:$0xff] }
 0x158   : > { %2930 = vpow2.f32 %v951_v57  ;;  %v2915_v11 = vpop.eup %2914  ;;  %v1577_v16 = vmax.f32 %v1513_v55, 1e-06  ;;  %v607_v2 = vmul.f32 %v3551_v0, %v2911_v56  ;;  %v1574_v5 = vmax.f32 %v1510_v60, 1e-06  ;;  %v3561_v55 = vld [vmem:[%s4090_s6 + $0x68] sm:$0xff]  ;;  %v3563_v6 = vld [vmem:[%s4090_s6 + $0x1d8] sm:$0xff] }
 0x159   : > { %2932 = vpow2.f32 %v953_v62  ;;  %v598_v22 = vmul.f32 %v3552_v21, %v2913_v61  ;;  %v2917_v48 = vpop.eup %2916  ;;  %v1575_v23 = vmax.f32 %v1511_v4, 1e-06  ;;  %v599_v30 = vmul.f32 %v3553_v24, %v2913_v61  ;;  %v3562_v4 = vld [vmem:[%s4090_s6 + $0x1d0] sm:$0xff] }
 0x15a   : > { %2934 = vlog2.f32 %v674_v58  ;;  %v2919_v25 = vpop.eup %2918  ;;  %v670_v8 = vmax.f32 %v606_v39, 1e-06  ;;  %v620_v13 = vmul.f32 %v3554_v12, %v2915_v11  ;;  %v671_v26 = vmax.f32 %v607_v2, 1e-06 }
 0x15b   : > { %2936 = vlog2.f32 %v675_v63  ;;  %v2921_v17 = vpop.eup %2920  ;;  %v621_v32 = vmul.f32 %v3555_v27, %v2915_v11  ;;  %v662_v36 = vmax.f32 %v598_v22, 1e-06  ;;  %v618_v14 = vmul.f32 %v3556_v37, %v2917_v48 }
 0x15c   : > { %2938 = vlog2.f32 %v1576_v38  ;;  %v2923_v34 = vpop.eup %2922  ;;  %v663_v20 = vmax.f32 %v599_v30, 1e-06  ;;  %v619_v42 = vmul.f32 %v3557_v40, %v2917_v48  ;;  %v684_v44 = vmax.f32 %v620_v13, 1e-06  ;;  %v3564_v48 = vld [vmem:[%s4090_s6 + $0x1c0] sm:$0xff] }
 0x15d   : > { %2940 = vlog2.f32 %v1577_v16  ;;  %v4391_v19 = vpop.eup %2924  ;;  %v1506_v46 = vmul.f32 %v3558_v45, %v2919_v25  ;;  %v685_v28 = vmax.f32 %v621_v32, 1e-06  ;;  %v1507_v49 = vmul.f32 %v3559_v29, %v2919_v25 }
 0x15e   : > { %2942 = vlog2.f32 %v1574_v5  ;;  %v4394_v43 = vpop.eup %2926  ;;  %v1498_v50 = vmul.f32 %v3560_v31, %v2921_v17  ;;  %v682_v52 = vmax.f32 %v618_v14, 1e-06  ;;  %v683_v54 = vmax.f32 %v619_v42, 1e-06 }
 0x15f   : > { %2944 = vlog2.f32 %v1575_v23  ;;  %v4397_v47 = vpop.eup %2928  ;;  %v4406_v56 = vmul.f32 %v3561_v55, %v2921_v17  ;;  %v1570_v58 = vmax.f32 %v1506_v46, 1e-06  ;;  %v1571_v61 = vmax.f32 %v1507_v49, 1e-06 }
 0x160   : > { %2946 = vlog2.f32 %v670_v8  ;;  %v1562_v62 = vmax.f32 %v1498_v50, 1e-06  ;;  %v4409_v38 = vmul.f32 %v3562_v4, %v2923_v34  ;;  %v4412_v39 = vmul.f32 %v3563_v6, %v2923_v34 }
 0x161   : > { %2948 = vlog2.f32 %v671_v26  ;;  %v1563_v2 = vmax.f32 %v4406_v56, 1e-06  ;;  %v4419_v23 = vmul.f32 %v3564_v48, %v4391_v19 }
 0x162   : > { %v4401_v51 = vpop.eup %2930  ;;  %2950 = vlog2.f32 %v662_v36 }
 0x163   : > { %v4403_v53 = vpop.eup %2932  ;;  %2952 = vlog2.f32 %v663_v20 }
 0x164   : > { %v2935_v57 = vpop.eup %2934  ;;  %2954 = vlog2.f32 %v684_v44 }
 0x165   : > { %v2937_v59 = vpop.eup %2936  ;;  %v755_v60 = vmul.f32 0.6931472, %v2935_v57  ;;  %2956 = vlog2.f32 %v685_v28 }
 0x166   : > { %v2939_v63 = vpop.eup %2938  ;;  %v757_v3 = vmul.f32 0.6931472, %v2937_v59  ;;  %2958 = vlog2.f32 %v682_v52 }
 0x167   : > { %v2941_v11 = vpop.eup %2940  ;;  %v867_v16 = vmul.f32 %v755_v60, %v4321_v41  ;;  %v1659_v0 = vmul.f32 0.6931472, %v2939_v63  ;;  %2960 = vlog2.f32 %v683_v54 }
 0x168   : > { %v2943_v5 = vpop.eup %2942  ;;  %v868_v21 = vmul.f32 %v757_v3, %v4321_v41  ;;  %v1661_v22 = vmul.f32 0.6931472, %v2941_v11  ;;  %2962 = vlog2.f32 %v1570_v58 }
 0x169   : > { %v2945_v24 = vpop.eup %2944  ;;  %v947_v30 = vmul.f32 1.442695, %v867_v16  ;;  %v1768_v25 = vmul.f32 %v1659_v0, %v4321_v41  ;;  %v1655_v8 = vmul.f32 0.6931472, %v2943_v5  ;;  %2964 = vlog2.f32 %v1571_v61 }
 0x16a   : > { %v2947_v12 = vpop.eup %2946  ;;  %v949_v13 = vmul.f32 1.442695, %v868_v21  ;;  %v1769_v17 = vmul.f32 %v1661_v22, %v4321_v41  ;;  %v1657_v26 = vmul.f32 0.6931472, %v2945_v24  ;;  %2966 = vlog2.f32 %v1562_v62 }
 0x16b   : > { %v2949_v27 = vpop.eup %2948  ;;  %2968 = vpow2.f32 %v947_v30  ;;  %v1850_v32 = vmul.f32 1.442695, %v1768_v25  ;;  %v1766_v34 = vmul.f32 %v1655_v8, %v4321_v41  ;;  %v747_v36 = vmul.f32 0.6931472, %v2947_v12  ;;  %v4433_v8 = vpop.xlane.xlu1 %1365 }
 0x16c   : > { %v2951_v37 = vpop.eup %2950  ;;  %2970 = vpow2.f32 %v949_v13  ;;  %v1852_v14 = vmul.f32 1.442695, %v1769_v17  ;;  %v1767_v20 = vmul.f32 %v1657_v26, %v4321_v41  ;;  %v749_v40 = vmul.f32 0.6931472, %v2949_v27 }
 0x16d   : > { %v2953_v42 = vpop.eup %2952  ;;  %2972 = vpow2.f32 %v1850_v32  ;;  %v1846_v44 = vmul.f32 1.442695, %v1766_v34  ;;  %v863_v45 = vmul.f32 %v747_v36, %v4321_v41  ;;  %v731_v46 = vmul.f32 0.6931472, %v2951_v37 }
 0x16e   : > { %v2955_v28 = vpop.eup %2954  ;;  %2974 = vpow2.f32 %v1852_v14  ;;  %v1848_v29 = vmul.f32 1.442695, %v1767_v20  ;;  %v864_v49 = vmul.f32 %v749_v40, %v4321_v41  ;;  %v733_v31 = vmul.f32 0.6931472, %v2953_v42 }
 0x16f   : > { %v2957_v50 = vpop.eup %2956  ;;  %2976 = vpow2.f32 %v1846_v44  ;;  %v939_v52 = vmul.f32 1.442695, %v863_v45  ;;  %v855_v54 = vmul.f32 %v731_v46, %v4321_v41  ;;  %v775_v55 = vmul.f32 0.6931472, %v2955_v28  ;;  %v3565_v45 = vld [vmem:[%s4090_s6 + $0x1c8] sm:$0xff]  ;;  %v4446_v46 = vpop.xlane.xlu0 %486 }
 0x170   : > { %v2959_v57 = vpop.eup %2958  ;;  %2978 = vpow2.f32 %v1848_v29  ;;  %v941_v58 = vmul.f32 1.442695, %v864_v49  ;;  %v856_v59 = vmul.f32 %v733_v31, %v4321_v41  ;;  %v777_v60 = vmul.f32 0.6931472, %v2957_v50 }
 0x171   : > { %v2961_v61 = vpop.eup %2960  ;;  %2980 = vpow2.f32 %v939_v52  ;;  %v923_v62 = vmul.f32 1.442695, %v855_v54  ;;  %v877_v63 = vmul.f32 %v775_v55, %v4321_v41  ;;  %v771_v3 = vmul.f32 0.6931472, %v2959_v57  ;;  %v3566_v52 = vld [vmem:[%s4090_s6 + $0x200] sm:$0xff]  ;;  %v1387_v55 = vpop.xlane.xlu1 %1386 }
 0x172   : > { %v2963_v4 = vpop.eup %2962  ;;  %2982 = vpow2.f32 %v941_v58  ;;  %v925_v6 = vmul.f32 1.442695, %v856_v59  ;;  %v878_v11 = vmul.f32 %v777_v60, %v4321_v41  ;;  %v773_v16 = vmul.f32 0.6931472, %v2961_v61 }
 0x173   : > { %v2965_v0 = vpop.eup %2964  ;;  %2984 = vpow2.f32 %v923_v62  ;;  %v967_v5 = vmul.f32 1.442695, %v877_v63  ;;  %v875_v21 = vmul.f32 %v771_v3, %v4321_v41  ;;  %v1647_v22 = vmul.f32 0.6931472, %v2963_v4  ;;  %v3568_v62 = vld [vmem:[%s4090_s6 + $0x128] sm:$0xff] }
 0x174   : > { %v2967_v48 = vpop.eup %2966  ;;  %2986 = vpow2.f32 %v925_v6  ;;  %v969_v24 = vmul.f32 1.442695, %v878_v11  ;;  %v876_v30 = vmul.f32 %v773_v16, %v4321_v41  ;;  %v1649_v25 = vmul.f32 0.6931472, %v2965_v0  ;;  %v1384_v6 = vpop.xlane.xlu0 %1383 }
 0x175   : > { %v2969_v12 = vpop.eup %2968  ;;  %2988 = vpow2.f32 %v967_v5  ;;  %v963_v13 = vmul.f32 1.442695, %v875_v21  ;;  %v1762_v17 = vmul.f32 %v1647_v22, %v4321_v41  ;;  %v1631_v26 = vmul.f32 0.6931472, %v2967_v48  ;;  %v3569_v48 = vld [vmem:[%s4090_s6 + $0x208] sm:$0xff] }
 0x176   : > { %v2971_v27 = vpop.eup %2970  ;;  %v4437_v32 = vadd.f32 %v2969_v12, %v4401_v51  ;;  %2990 = vpow2.f32 %v969_v24  ;;  %v965_v34 = vmul.f32 1.442695, %v876_v30  ;;  %v1763_v36 = vmul.f32 %v1649_v25, %v4321_v41 }
 0x177   : > { %v2973_v37 = vpop.eup %2972  ;;  %v4441_v14 = vadd.f32 %v2971_v27, %v4403_v53  ;;  %2992 = vpow2.f32 %v963_v13  ;;  %v1838_v20 = vmul.f32 1.442695, %v1762_v17  ;;  %v1754_v40 = vmul.f32 %v1631_v26, %v4321_v41 }
 0x178   : > { %v2975_v42 = vpop.eup %2974  ;;  %2994 = vpow2.f32 %v965_v34  ;;  %v1840_v44 = vmul.f32 1.442695, %v1763_v36  ;;  %v1519_v51 = vmul.f32 %v3565_v45, %v4391_v19  ;;  %v1584_v53 = vmax.f32 %v4409_v38, 1e-06  ;;  %v3567_v38 = vld [vmem:[%s4090_s6 + $0x120] sm:$0xff]  ;;  %v445_v26 = vpop.xlane.xlu0 %444 }
 0x179   : > { %v2977_v28 = vpop.eup %2976  ;;  %2996 = vpow2.f32 %v1838_v20  ;;  %v1822_v29 = vmul.f32 1.442695, %v1754_v40  ;;  %v1585_v50 = vmax.f32 %v4412_v39, 1e-06  ;;  %v626_v54 = vmul.f32 %v3566_v52, %v4394_v43 }
 0x17a   : > { %v2979_v49 = vpop.eup %2978  ;;  %v4449_v31 = vadd.f32 %v2977_v28, %v2973_v37  ;;  %2998 = vpow2.f32 %v1840_v44  ;;  %v1582_v58 = vmax.f32 %v4419_v23, 1e-06  ;;  %v614_v59 = vmul.f32 %v3567_v38, %v4397_v47 }
 0x17b   : > { %v2981_v19 = vpop.eup %2980  ;;  %v4454_v57 = vadd.f32 %v2979_v49, %v2975_v42  ;;  %3000 = vlog2.f32 %v1563_v2  ;;  %v1583_v39 = vmax.f32 %v1519_v51, 1e-06  ;;  %v615_v63 = vmul.f32 %v3568_v62, %v4397_v47 }
 0x17c   : > { %v2983_v60 = vpop.eup %2982  ;;  %v4462_v61 = vadd.f32 %v2981_v19, %v4354_v10  ;;  %3002 = vpow2.f32 %v1822_v29  ;;  %v690_v23 = vmax.f32 %v626_v54, 1e-06  ;;  %v678_v16 = vmax.f32 %v614_v59, 1e-06 }
 0x17d   : > { %v2985_v3 = vpop.eup %2984  ;;  %v4467_v4 = vadd.f32 %v2983_v60, %v4357_v15  ;;  %3004 = vlog2.f32 %v1584_v53  ;;  %v679_v0 = vmax.f32 %v615_v63, 1e-06  ;;  %v457_v15 = vpop.xlane.xlu1 %456  ;;  %v1440_v21 = vmax.f32 %v4433_v8, 1e-24 }
 0x17e   : > { %v2987_v56 = vpop.eup %2986  ;;  %v4470_v2 = vadd.f32 %v2985_v3, %v4360_v1  ;;  %3006 = vlog2.f32 %v1585_v50  ;;  %v627_v24 = vmul.f32 %v3569_v48, %v4394_v43  ;;  %v547_v30 = vmax.f32 %v4446_v46, 1e-24 }
 0x17f   : > { %v2989_v10 = vpop.eup %2988  ;;  %v4473_v11 = vadd.f32 %v2987_v56, %v4363_v33  ;;  %3008 = vlog2.f32 %v1582_v58  ;;  %v1447_v12 = vmax.f32 %v1387_v55, 1e-24  ;;  %v1446_v8 = vmax.f32 %v1384_v6, 1e-24 }
 0x180   : > { %v2991_v47 = vpop.eup %2990  ;;  %3010 = vlog2.f32 %v1583_v39  ;;  %v537_v43 = vmax.f32 %v457_v15, 1e-24  ;;  %v691_v20 = vmax.f32 %v627_v24, 1e-06 }
 0x181   : > { %v2993_v5 = vpop.eup %2992  ;;  %3012 = vlog2.f32 %v690_v23  ;;  %v496_v40 = vpop.xlane.xlu1 %495 }
 0x182   : > { %v2995_v22 = vpop.eup %2994  ;;  %v4476_v1 = vadd.f32 %v2993_v5, %v2989_v10  ;;  %3014 = vlog2.f32 %v678_v16  ;;  %v550_v29 = vmax.f32 %v496_v40, 1e-24  ;;  %v3570_v16 = vld [vmem:[%s4090_s6 + $0x160] sm:$0xff]  ;;  %v3571_v5 = vld [vmem:[%s4090_s6 + $0x168] sm:$0xff]  ;;  %v3575_v40 = vld [vmem:[%s4090_s6 + $0x258] sm:$0xff] }
 0x183   : > { %v2997_v33 = vpop.eup %2996  ;;  %v4481_v25 = vadd.f32 %v2995_v22, %v2991_v47  ;;  %3016 = vlog2.f32 %v679_v0 }
 0x184   : > { %v2999_v13 = vpop.eup %2998  ;;  %v4484_v17 = vadd.f32 %v2997_v33, %v4372_v35  ;;  %3018 = vrsqrt.f32 %v1440_v21  ;;  %v533_v35 = vmax.f32 %v445_v26, 1e-24  ;;  %v3573_v26 = vld [vmem:[%s4090_s6 + $0x218] sm:$0xff] }
 0x185   : > { %v3001_v27 = vpop.eup %3000  ;;  %v4487_v34 = vadd.f32 %v2999_v13, %v4374_v18  ;;  %3020 = vrsqrt.f32 %v547_v30  ;;  %v3572_v30 = vld [vmem:[%s4090_s6 + $0x210] sm:$0xff] }
 0x186   : > { %v3003_v36 = vpop.eup %3002  ;;  %v1633_v37 = vmul.f32 0.6931472, %v3001_v27  ;;  %3022 = vrsqrt.f32 %v1447_v12 }
 0x187   : > { %v3005_v42 = vpop.eup %3004  ;;  %v4490_v44 = vadd.f32 %v3003_v36, %v4367_v7  ;;  %3024 = vrsqrt.f32 %v1446_v8 }
 0x188   : > { %v3007_v45 = vpop.eup %3006  ;;  %v1755_v51 = vmul.f32 %v1633_v37, %v4321_v41  ;;  %v1675_v46 = vmul.f32 0.6931472, %v3005_v42  ;;  %3026 = vrsqrt.f32 %v537_v43  ;;  %v3574_v37 = vld [vmem:[%s4090_s6 + $0x250] sm:$0xff] }
 0x189   : > { %v3009_v18 = vpop.eup %3008  ;;  %v1677_v28 = vmul.f32 0.6931472, %v3007_v45  ;;  %3028 = vlog2.f32 %v691_v20 }
 0x18a   : > { %v3011_v53 = vpop.eup %3010  ;;  %v1824_v49 = vmul.f32 1.442695, %v1755_v51  ;;  %v1776_v50 = vmul.f32 %v1675_v46, %v4321_v41  ;;  %v1671_v52 = vmul.f32 0.6931472, %v3009_v18  ;;  %3030 = vrsqrt.f32 %v533_v35  ;;  %v3576_v51 = vld [vmem:[%s4090_s6 + $0x240] sm:$0xff]  ;;  %v3577_v18 = vld [vmem:[%s4090_s6 + $0x248] sm:$0xff] }
 0x18b   : > { %v1777_v7 = vmul.f32 %v1677_v28, %v4321_v41  ;;  %v1673_v54 = vmul.f32 0.6931472, %v3011_v53  ;;  %v3013_v55 = vpop.eup %3012 }
 0x18c   : > { %3032 = vpow2.f32 %v1824_v49  ;;  %v1866_v19 = vmul.f32 1.442695, %v1776_v50  ;;  %v1774_v58 = vmul.f32 %v1671_v52, %v4321_v41  ;;  %v3015_v38 = vpop.eup %3014  ;;  %v787_v53 = vmul.f32 0.6931472, %v3013_v55  ;;  %v3578_v50 = vld [vmem:[%s4090_s6 + $0xb0] sm:$0xff] }
 0x18d   : > { %v1868_v59 = vmul.f32 1.442695, %v1777_v7  ;;  %v1775_v60 = vmul.f32 %v1673_v54, %v4321_v41  ;;  %3034 = vrsqrt.f32 %v550_v29  ;;  %v3017_v39 = vpop.eup %3016  ;;  %v763_v63 = vmul.f32 0.6931472, %v3015_v38 }
 0x18e   : > { %3036 = vpow2.f32 %v1866_v19  ;;  %v1862_v62 = vmul.f32 1.442695, %v1774_v58  ;;  %v3019_v3 = vpop.eup %3018  ;;  %v765_v23 = vmul.f32 0.6931472, %v3017_v39 }
 0x18f   : > { %3038 = vpow2.f32 %v1868_v59  ;;  %v1864_v56 = vmul.f32 1.442695, %v1775_v60  ;;  %v3021_v6 = vpop.eup %3020  ;;  %v871_v10 = vmul.f32 %v763_v63, %v4321_v41  ;;  %v1514_v47 = vmul.f32 %v3570_v16, %v3019_v3  ;;  %v3579_v60 = vld [vmem:[%s4090_s6 + $0xb8] sm:$0xff] }
 0x190   : > { %3040 = vpow2.f32 %v1862_v62  ;;  %v3023_v0 = vpop.eup %3022  ;;  %v872_v15 = vmul.f32 %v765_v23, %v4321_v41  ;;  %v1515_v21 = vmul.f32 %v3571_v5, %v3019_v3  ;;  %v628_v33 = vmul.f32 %v3572_v30, %v3021_v6  ;;  %v3580_v62 = vld [vmem:[%s4090_s6 + $0x30] sm:$0xff] }
 0x191   : > { %3042 = vpow2.f32 %v1864_v56  ;;  %v3025_v22 = vpop.eup %3024  ;;  %v955_v48 = vmul.f32 1.442695, %v871_v10  ;;  %v1578_v24 = vmax.f32 %v1514_v47, 1e-06  ;;  %v629_v27 = vmul.f32 %v3573_v26, %v3021_v6  ;;  %v3581_v56 = vld [vmem:[%s4090_s6 + $0x38] sm:$0xff] }
 0x192   : > { %v3027_v12 = vpop.eup %3026  ;;  %v957_v13 = vmul.f32 1.442695, %v872_v15  ;;  %v1579_v8 = vmax.f32 %v1515_v21, 1e-06  ;;  %v692_v36 = vmax.f32 %v628_v33, 1e-06  ;;  %v1528_v20 = vmul.f32 %v3574_v37, %v3023_v0  ;;  %v478_v15 = vpop.xlane.xlu0 %477 }
 0x193   : > { %v3029_v43 = vpop.eup %3028  ;;  %3044 = vpow2.f32 %v955_v48  ;;  %v1529_v42 = vmul.f32 %v3575_v40, %v3023_v0  ;;  %v693_v45 = vmax.f32 %v629_v27, 1e-06  ;;  %v1526_v46 = vmul.f32 %v3576_v51, %v3025_v22  ;;  %v1345_v27 = vpop.xlane.xlu1 %1344 }
 0x194   : > { %v3031_v35 = vpop.eup %3030  ;;  %3046 = vpow2.f32 %v957_v13  ;;  %v1527_v28 = vmul.f32 %v3577_v18, %v3025_v22  ;;  %v1592_v49 = vmax.f32 %v1528_v20, 1e-06  ;;  %v608_v52 = vmul.f32 %v3578_v50, %v3027_v12 }
 0x195   : > { %3048 = vlog2.f32 %v1578_v24  ;;  %v789_v19 = vmul.f32 0.6931472, %v3029_v43  ;;  %v1593_v58 = vmax.f32 %v1529_v42, 1e-06  ;;  %v1590_v59 = vmax.f32 %v1526_v46, 1e-06 }
 0x196   : > { %v3033_v29 = vpop.eup %3032  ;;  %3050 = vlog2.f32 %v1579_v8  ;;  %v609_v39 = vmul.f32 %v3579_v60, %v3027_v12  ;;  %v600_v55 = vmul.f32 %v3580_v62, %v3031_v35  ;;  %v1591_v3 = vmax.f32 %v1527_v28, 1e-06  ;;  %v3582_v24 = vld [vmem:[%s4090_s6 + $0x280] sm:$0xff] }
 0x197   : > { %v4508_v7 = vpop.eup %3034  ;;  %v4511_v54 = vadd.f32 %v3033_v29, %v4369_v9  ;;  %3052 = vlog2.f32 %v692_v36  ;;  %v601_v23 = vmul.f32 %v3581_v56, %v3031_v35  ;;  %v672_v9 = vmax.f32 %v608_v52, 1e-06 }
 0x198   : > { %v3037_v38 = vpop.eup %3036  ;;  %3054 = vlog2.f32 %v693_v45  ;;  %v883_v47 = vmul.f32 %v787_v53, %v4321_v41  ;;  %v673_v0 = vmax.f32 %v609_v39, 1e-06  ;;  %v884_v21 = vmul.f32 %v789_v19, %v4321_v41  ;;  %v3583_v53 = vld [vmem:[%s4090_s6 + $0x288] sm:$0xff] }
 0x199   : > { %v3039_v63 = vpop.eup %3038  ;;  %3056 = vlog2.f32 %v1592_v49  ;;  %v664_v22 = vmax.f32 %v600_v55, 1e-06  ;;  %v665_v48 = vmax.f32 %v601_v23, 1e-06  ;;  %v634_v30 = vmul.f32 %v3582_v24, %v4508_v7  ;;  %v4542_v24 = vpop.xlane.xlu0 %498 }
 0x19a   : > { %v3041_v6 = vpop.eup %3040  ;;  %3058 = vlog2.f32 %v1593_v58  ;;  %v544_v12 = vmax.f32 %v478_v15, 1e-24  ;;  %v979_v8 = vmul.f32 1.442695, %v883_v47  ;;  %v981_v36 = vmul.f32 1.442695, %v884_v21 }
 0x19b   : > { %v3043_v10 = vpop.eup %3042  ;;  %v4516_v16 = vadd.f32 %v3041_v6, %v3037_v38  ;;  %3060 = vlog2.f32 %v1590_v59  ;;  %v698_v42 = vmax.f32 %v634_v30, 1e-06  ;;  %v1433_v51 = vmax.f32 %v1345_v27, 1e-24 }
 0x19c   : > { %v4519_v5 = vadd.f32 %v3043_v10, %v3039_v63  ;;  %3062 = vlog2.f32 %v1591_v3  ;;  %v4534_v49 = vmul.f32 %v3583_v53, %v4508_v7 }
 0x19d   : > { %v3045_v33 = vpop.eup %3044  ;;  %3064 = vlog2.f32 %v672_v9 }
 0x19e   : > { %v3047_v13 = vpop.eup %3046  ;;  %v4525_v26 = vadd.f32 %v3045_v33, %v4437_v32  ;;  %3066 = vlog2.f32 %v673_v0 }
 0x19f   : > { %v3049_v43 = vpop.eup %3048  ;;  %v4528_v37 = vadd.f32 %v3047_v13, %v4441_v14  ;;  %3068 = vlog2.f32 %v664_v22 }
 0x1a0   : > { %v3051_v20 = vpop.eup %3050  ;;  %v1663_v40 = vmul.f32 0.6931472, %v3049_v43  ;;  %3070 = vlog2.f32 %v665_v48 }
 0x1a1   : > { %v3053_v35 = vpop.eup %3052  ;;  %v1665_v45 = vmul.f32 0.6931472, %v3051_v20  ;;  %3072 = vrsqrt.f32 %v544_v12 }
 0x1a2   : > { %v3055_v46 = vpop.eup %3054  ;;  %3074 = vpow2.f32 %v979_v8  ;;  %v1770_v32 = vmul.f32 %v1663_v40, %v4321_v41  ;;  %v791_v18 = vmul.f32 0.6931472, %v3053_v35 }
 0x1a3   : > { %v3057_v28 = vpop.eup %3056  ;;  %3076 = vpow2.f32 %v981_v36  ;;  %v1771_v14 = vmul.f32 %v1665_v45, %v4321_v41  ;;  %v793_v29 = vmul.f32 0.6931472, %v3055_v46 }
 0x1a4   : > { %v3059_v50 = vpop.eup %3058  ;;  %v1854_v52 = vmul.f32 1.442695, %v1770_v32  ;;  %v885_v19 = vmul.f32 %v791_v18, %v4321_v41  ;;  %v1691_v58 = vmul.f32 0.6931472, %v3057_v28  ;;  %3078 = vlog2.f32 %v698_v42 }
 0x1a5   : > { %v3061_v38 = vpop.eup %3060  ;;  %v1856_v59 = vmul.f32 1.442695, %v1771_v14  ;;  %v886_v60 = vmul.f32 %v793_v29, %v4321_v41  ;;  %v1693_v39 = vmul.f32 0.6931472, %v3059_v50  ;;  %3080 = vrsqrt.f32 %v1433_v51  ;;  %v1357_v29 = vpop.xlane.xlu0 %1356  ;;  %v3584_v50 = vld [vmem:[%s4090_s6 + $0x70] sm:$0xff] }
 0x1a6   : > { %v3063_v62 = vpop.eup %3062  ;;  %3082 = vpow2.f32 %v1854_v52  ;;  %v983_v55 = vmul.f32 1.442695, %v885_v19  ;;  %v1784_v63 = vmul.f32 %v1691_v58, %v4321_v41  ;;  %v1687_v3 = vmul.f32 0.6931472, %v3061_v38 }
 0x1a7   : > { %v3065_v7 = vpop.eup %3064  ;;  %3084 = vpow2.f32 %v1856_v59  ;;  %v985_v56 = vmul.f32 1.442695, %v886_v60  ;;  %v1785_v23 = vmul.f32 %v1693_v39, %v4321_v41  ;;  %v1689_v6 = vmul.f32 0.6931472, %v3063_v62  ;;  %v1378_v39 = vpop.xlane.xlu1 %1377 }
 0x1a8   : > { %v3067_v9 = vpop.eup %3066  ;;  %3086 = vpow2.f32 %v983_v55  ;;  %v1882_v10 = vmul.f32 1.442695, %v1784_v63  ;;  %v1782_v47 = vmul.f32 %v1687_v3, %v4321_v41  ;;  %v751_v0 = vmul.f32 0.6931472, %v3065_v7 }
 0x1a9   : > { %v3069_v15 = vpop.eup %3068  ;;  %3088 = vpow2.f32 %v985_v56  ;;  %v1884_v21 = vmul.f32 1.442695, %v1785_v23  ;;  %v1783_v22 = vmul.f32 %v1689_v6, %v4321_v41  ;;  %v753_v48 = vmul.f32 0.6931472, %v3067_v9  ;;  %v3586_v56 = vld [vmem:[%s4090_s6 + $0x1a0] sm:$0xff]  ;;  %v4562_v9 = vpop.xlane.xlu0 %1395 }
 0x1aa   : > { %v3071_v30 = vpop.eup %3070  ;;  %3090 = vpow2.f32 %v1882_v10  ;;  %v1878_v33 = vmul.f32 1.442695, %v1782_v47  ;;  %v865_v12 = vmul.f32 %v751_v0, %v4321_v41  ;;  %v735_v13 = vmul.f32 0.6931472, %v3069_v15 }
 0x1ab   : > { %v3073_v8 = vpop.eup %3072  ;;  %3092 = vpow2.f32 %v1884_v21  ;;  %v1880_v27 = vmul.f32 1.442695, %v1783_v22  ;;  %v866_v43 = vmul.f32 %v753_v48, %v4321_v41  ;;  %v737_v36 = vmul.f32 0.6931472, %v3071_v30  ;;  %v1399_v30 = vpop.xlane.xlu1 %1398 }
 0x1ac   : > { %v3075_v20 = vpop.eup %3074  ;;  %3094 = vpow2.f32 %v1878_v33  ;;  %v943_v40 = vmul.f32 1.442695, %v865_v12  ;;  %v857_v42 = vmul.f32 %v735_v13, %v4321_v41  ;;  %v699_v18 = vmax.f32 %v4534_v49, 1e-06  ;;  %v3585_v49 = vld [vmem:[%s4090_s6 + $0x78] sm:$0xff]  ;;  %v3587_v13 = vld [vmem:[%s4090_s6 + $0x1a8] sm:$0xff] }
 0x1ad   : > { %v3077_v35 = vpop.eup %3076  ;;  %3096 = vpow2.f32 %v1880_v27  ;;  %v945_v45 = vmul.f32 1.442695, %v866_v43  ;;  %v858_v51 = vmul.f32 %v737_v36, %v4321_v41  ;;  %v622_v23 = vmul.f32 %v3586_v56, %v3073_v8 }
 0x1ae   : > { %v3079_v46 = vpop.eup %3078  ;;  %3098 = vpow2.f32 %v943_v40  ;;  %v927_v32 = vmul.f32 1.442695, %v857_v42  ;;  %v551_v10 = vmax.f32 %v4542_v24, 1e-24  ;;  %v1437_v15 = vmax.f32 %v1357_v29, 1e-24 }
 0x1af   : > { %v3081_v28 = vpop.eup %3080  ;;  %3100 = vpow2.f32 %v945_v45  ;;  %v929_v14 = vmul.f32 1.442695, %v858_v51  ;;  %v686_v48 = vmax.f32 %v622_v23, 1e-06  ;;  %v623_v27 = vmul.f32 %v3587_v13, %v3073_v8 }
 0x1b0   : > { %v3083_v53 = vpop.eup %3082  ;;  %3102 = vpow2.f32 %v927_v32  ;;  %v1500_v52 = vmul.f32 %v3584_v50, %v3081_v28  ;;  %v1501_v60 = vmul.f32 %v3585_v49, %v3081_v28  ;;  %v1444_v43 = vmax.f32 %v1378_v39, 1e-24 }
 0x1b1   : > { %v3085_v19 = vpop.eup %3084  ;;  %v4551_v58 = vadd.f32 %v3083_v53, %v4449_v31  ;;  %3104 = vpow2.f32 %v929_v14  ;;  %v1451_v42 = vmax.f32 %v1399_v30, 1e-24  ;;  %v687_v32 = vmax.f32 %v623_v27, 1e-06  ;;  %v490_v53 = vpop.xlane.xlu1 %489  ;;  %v3592_v27 = vld [vmem:[%s4090_s6 + $0x1e0] sm:$0xff] }
 0x1b2   : > { %v3087_v38 = vpop.eup %3086  ;;  %v4554_v59 = vadd.f32 %v3085_v19, %v4454_v57  ;;  %3106 = vlog2.f32 %v699_v18  ;;  %v1564_v63 = vmax.f32 %v1500_v52, 1e-06  ;;  %v1565_v31 = vmax.f32 %v1501_v60, 1e-06 }
 0x1b3   : > { %v3089_v62 = vpop.eup %3088  ;;  %v4557_v55 = vadd.f32 %v3087_v38, %v3075_v20  ;;  %v548_v23 = vmax.f32 %v490_v53, 1e-24  ;;  %v3595_v53 = vld [vmem:[%s4090_s6 + $0x2d8] sm:$0xff] }
 0x1b4   : > { %v3091_v3 = vpop.eup %3090  ;;  %v4559_v7 = vadd.f32 %v3089_v62, %v3077_v35  ;;  %3108 = vlog2.f32 %v1564_v63  ;;  %v469_v35 = vpop.xlane.xlu0 %468  ;;  %v1450_v62 = vmax.f32 %v4562_v9, 1e-24 }
 0x1b5   : > { %v3093_v6 = vpop.eup %3092  ;;  %3110 = vlog2.f32 %v1565_v31  ;;  %v541_v8 = vmax.f32 %v469_v35, 1e-24  ;;  %v3588_v31 = vld [vmem:[%s4090_s6 + $0x290] sm:$0xff] }
 0x1b6   : > { %v3095_v57 = vpop.eup %3094  ;;  %3112 = vrsqrt.f32 %v551_v10 }
 0x1b7   : > { %v3097_v47 = vpop.eup %3096  ;;  %v4565_v0 = vadd.f32 %v3095_v57, %v3091_v3  ;;  %3114 = vrsqrt.f32 %v1437_v15  ;;  %v3589_v57 = vld [vmem:[%s4090_s6 + $0xf0] sm:$0xff] }
 0x1b8   : > { %v3099_v21 = vpop.eup %3098  ;;  %v4567_v22 = vadd.f32 %v3097_v47, %v3093_v6  ;;  %3116 = vlog2.f32 %v686_v48  ;;  %v3590_v47 = vld [vmem:[%s4090_s6 + $0xf8] sm:$0xff] }
 0x1b9   : > { %v3101_v33 = vpop.eup %3100  ;;  %v4570_v12 = vadd.f32 %v3099_v21, %v4462_v61  ;;  %v803_v61 = vmul.f32 0.6931472, %v3079_v46  ;;  %3118 = vrsqrt.f32 %v1444_v43  ;;  %v511_v21 = vpop.xlane.xlu1 %510 }
 0x1ba   : > { %5287 = vst [vmem:[#allocation18_spill] sm:$0xff] %v4567_v22  ;;  %v3103_v36 = vpop.eup %3102  ;;  %v4574_v24 = vadd.f32 %v3101_v33, %v4467_v4  ;;  %3120 = vrsqrt.f32 %v1451_v42  ;;  %v3591_v33 = vld [vmem:[%s4090_s6 + $0x298] sm:$0xff] }
 0x1bb   : > { %v3105_v20 = vpop.eup %3104  ;;  %v1045_v40 = vadd.f32 %v3103_v36, %v4470_v2  ;;  %v891_v14 = vmul.f32 %v803_v61, %v4321_v41  ;;  %3122 = vlog2.f32 %v687_v32  ;;  %v555_v32 = vmax.f32 %v511_v21, 1e-24 }
 0x1bc   : > { %v3107_v45 = vpop.eup %3106  ;;  %v1054_v51 = vadd.f32 %v3105_v20, %v4473_v11  ;;  %3124 = vrsqrt.f32 %v541_v8 }
 0x1bd   : > { %v805_v18 = vmul.f32 0.6931472, %v3107_v45  ;;  %v995_v38 = vmul.f32 1.442695, %v891_v14  ;;  %v1046_v3 = vrot.slane %v1045_v40, 4  ;;  %v3593_v45 = vld [vmem:[%s4090_s6 + $0x1e8] sm:$0xff]  ;;  %v4590_v14 = vpop.xlane.xlu0 %507 }
 0x1be   : > { %v3109_v28 = vpop.eup %3108  ;;  %v1055_v30 = vrot.slane %v1054_v51, 4 }
 0x1bf   : > { %v3111_v4 = vpop.eup %3110  ;;  %v1635_v29 = vmul.f32 0.6931472, %v3109_v28  ;;  %v892_v50 = vmul.f32 %v805_v18, %v4321_v41  ;;  %v1047_v35 = vadd.f32 %v1046_v3, %v1045_v40  ;;  %v3594_v28 = vld [vmem:[%s4090_s6 + $0x2d0] sm:$0xff] }
 0x1c0   : > { %v1637_v2 = vmul.f32 0.6931472, %v3111_v4  ;;  %v3113_v46 = vpop.eup %3112 }
 0x1c1   : > { %v1756_v11 = vmul.f32 %v1635_v29, %v4321_v41  ;;  %v3115_v19 = vpop.eup %3114  ;;  %v997_v56 = vmul.f32 1.442695, %v892_v50  ;;  %v636_v6 = vmul.f32 %v3588_v31, %v3113_v46  ;;  %v637_v13 = vmul.f32 %v3591_v33, %v3113_v46 }
 0x1c2   : > { %v1757_v52 = vmul.f32 %v1637_v2, %v4321_v41  ;;  %v3117_v60 = vpop.eup %3116  ;;  %v1508_v10 = vmul.f32 %v3589_v57, %v3115_v19  ;;  %v1509_v15 = vmul.f32 %v3590_v47, %v3115_v19  ;;  %v1056_v29 = vadd.f32 %v1055_v30, %v1054_v51  ;;  %v1369_v57 = vpop.xlane.xlu0 %1368 }
 0x1c3   : > { %v1826_v49 = vmul.f32 1.442695, %v1756_v11  ;;  %v3119_v63 = vpop.eup %3118  ;;  %v779_v9 = vmul.f32 0.6931472, %v3117_v60  ;;  %v700_v18 = vmax.f32 %v636_v6, 1e-06 }
 0x1c4   : > { %v1828_v39 = vmul.f32 1.442695, %v1757_v52  ;;  %v3121_v48 = vpop.eup %3120  ;;  %v1522_v43 = vmul.f32 %v3592_v27, %v3119_v63  ;;  %v1572_v36 = vmax.f32 %v1508_v10, 1e-06  ;;  %v1573_v20 = vmax.f32 %v1509_v15, 1e-06 }
 0x1c5   : > { %3126 = vpow2.f32 %v1826_v49  ;;  %v3123_v42 = vpop.eup %3122  ;;  %v1523_v61 = vmul.f32 %v3593_v45, %v3119_v63  ;;  %v1536_v4 = vmul.f32 %v3594_v28, %v3121_v48  ;;  %v701_v2 = vmax.f32 %v637_v13, 1e-06 }
 0x1c6   : > { %3128 = vpow2.f32 %v1828_v39  ;;  %v3125_v8 = vpop.eup %3124  ;;  %v1537_v50 = vmul.f32 %v3595_v53, %v3121_v48  ;;  %v781_v11 = vmul.f32 0.6931472, %v3123_v42  ;;  %v879_v40 = vmul.f32 %v779_v9, %v4321_v41  ;;  %v3597_v39 = vld [vmem:[%s4090_s6 + $0x138] sm:$0xff] }
 0x1c7   : > { %3130 = vpow2.f32 %v995_v38  ;;  %v1586_v46 = vmax.f32 %v1522_v43, 1e-06  ;;  %v1048_v52 = vrot.slane %v1047_v35, 2  ;;  %v1587_v19 = vmax.f32 %v1523_v61, 1e-06  ;;  %v3596_v38 = vld [vmem:[%s4090_s6 + $0x130] sm:$0xff]  ;;  %v4604_v43 = vpop.xlane.xlu1 %1389 }
 0x1c8   : > { %3132 = vrsqrt.f32 %v1450_v62  ;;  %v616_v49 = vmul.f32 %v3596_v38, %v3125_v8  ;;  %v1600_v60 = vmax.f32 %v1536_v4, 1e-06  ;;  %v617_v62 = vmul.f32 %v3597_v39, %v3125_v8  ;;  %v3598_v8 = vld [vmem:[%s4090_s6 + $0x2c0] sm:$0xff] }
 0x1c9   : > { %3134 = vpow2.f32 %v997_v56  ;;  %v1057_v63 = vrot.slane %v1056_v29, 2  ;;  %v1601_v3 = vmax.f32 %v1537_v50, 1e-06  ;;  %v971_v31 = vmul.f32 1.442695, %v879_v40 }
 0x1ca   : > { %3136 = vrsqrt.f32 %v548_v23  ;;  %v880_v23 = vmul.f32 %v781_v11, %v4321_v41  ;;  %v1049_v47 = vadd.f32 %v1048_v52, %v1047_v35  ;;  %v680_v21 = vmax.f32 %v616_v49, 1e-06 }
 0x1cb   : > { %3138 = vlog2.f32 %v1572_v36  ;;  %v681_v9 = vmax.f32 %v617_v62, 1e-06  ;;  %v554_v33 = vmax.f32 %v4590_v14, 1e-24  ;;  %v1058_v27 = vadd.f32 %v1057_v63, %v1056_v29 }
 0x1cc   : > { %3140 = vlog2.f32 %v1573_v20  ;;  %v1441_v36 = vmax.f32 %v1369_v57, 1e-24  ;;  %v4607_v42 = vmul.f32 1.442695, %v880_v23  ;;  %v1050_v61 = vrot.slane %v1049_v47, 1  ;;  %v4620_v23 = vpop.xlane.xlu1 %1410 }
 0x1cd   : > { %3142 = vrsqrt.f32 %v555_v32  ;;  %v1073_v11 = vrot.slane %v4574_v24, 4  ;;  %v1059_v40 = vrot.slane %v1058_v27, 1 }
 0x1ce   : > { %3144 = vlog2.f32 %v700_v18 }
 0x1cf   : > { %v3127_v51 = vpop.eup %3126  ;;  %3146 = vlog2.f32 %v701_v2  ;;  %v3599_v2 = vld [vmem:[%s4090_s6 + $0x2c8] sm:$0xff] }
 0x1d0   : > { %v3129_v56 = vpop.eup %3128  ;;  %v1944_v6 = vadd.f32 %v3127_v51, %v4490_v44  ;;  %3148 = vlog2.f32 %v1586_v46 }
 0x1d1   : > { %v4598_v10 = vpop.eup %3130  ;;  %v1953_v15 = vadd.f32 %v3129_v56, %v4511_v54  ;;  %3150 = vlog2.f32 %v1587_v19  ;;  %v1064_v54 = vrot.slane %v4570_v12, 4 }
 0x1d2   : > { %v3133_v48 = vpop.eup %3132  ;;  %v1945_v30 = vrot.slane %v1944_v6, 4  ;;  %3152 = vlog2.f32 %v1600_v60 }
 0x1d3   : > { %v4602_v13 = vpop.eup %3134  ;;  %v1954_v44 = vrot.slane %v1953_v15, 4  ;;  %3154 = vlog2.f32 %v1601_v3  ;;  %v1534_v18 = vmul.f32 %v3598_v8, %v3133_v48  ;;  %v1535_v53 = vmul.f32 %v3599_v2, %v3133_v48  ;;  %v3600_v3 = vld [vmem:[%s4090_s6 + $0x220] sm:$0xff]  ;;  %v3602_v2 = vld [vmem:[%s4090_s6 + $0x310] sm:$0xff] }
 0x1d4   : > { %v3137_v20 = vpop.eup %3136  ;;  %3156 = vpow2.f32 %v971_v31  ;;  %v1946_v35 = vadd.f32 %v1945_v30, %v1944_v6  ;;  %v4615_v38 = vadd.f32 %v1064_v54, %v4570_v12  ;;  %v1051_v6 = vadd.f32 %v1050_v61, %v1049_v47  ;;  %v4623_v61 = vpop.xlane.xlu0 %1407 }
 0x1d5   : > { %v3139_v45 = vpop.eup %3138  ;;  %v1955_v32 = vadd.f32 %v1954_v44, %v1953_v15  ;;  %3158 = vlog2.f32 %v680_v21  ;;  %v1598_v63 = vmax.f32 %v1534_v18, 1e-06  ;;  %v630_v56 = vmul.f32 %v3600_v3, %v3137_v20 }
 0x1d6   : > { %v3141_v28 = vpop.eup %3140  ;;  %v1947_v4 = vrot.slane %v1946_v35, 2  ;;  %v1651_v29 = vmul.f32 0.6931472, %v3139_v45  ;;  %3160 = vlog2.f32 %v681_v9  ;;  %v1599_v12 = vmax.f32 %v1535_v53, 1e-06  ;;  %v3601_v45 = vld [vmem:[%s4090_s6 + $0x228] sm:$0xff] }
 0x1d7   : > { %v4611_v50 = vpop.eup %3142  ;;  %v1956_v46 = vrot.slane %v1955_v32, 2  ;;  %v1653_v52 = vmul.f32 0.6931472, %v3141_v28  ;;  %3162 = vrsqrt.f32 %v1441_v36  ;;  %v1060_v48 = vadd.f32 %v1059_v40, %v1058_v27 }
 0x1d8   : > { %v3145_v19 = vpop.eup %3144  ;;  %v1948_v49 = vadd.f32 %v1947_v4, %v1946_v35  ;;  %v1764_v60 = vmul.f32 %v1651_v29, %v4321_v41  ;;  %v694_v47 = vmax.f32 %v630_v56, 1e-06  ;;  %v644_v53 = vmul.f32 %v3602_v2, %v4611_v50  ;;  %v3603_v2 = vld [vmem:[%s4090_s6 + $0x170] sm:$0xff] }
 0x1d9   : > { %v3147_v39 = vpop.eup %3146  ;;  %v1957_v62 = vadd.f32 %v1956_v46, %v1955_v32  ;;  %v1765_v51 = vmul.f32 %v1653_v52, %v4321_v41  ;;  %v807_v9 = vmul.f32 0.6931472, %v3145_v19  ;;  %v631_v32 = vmul.f32 %v3601_v45, %v3137_v20  ;;  %v4632_v19 = vpop.xlane.xlu1 %501 }
 0x1da   : > { %v3149_v31 = vpop.eup %3148  ;;  %v1949_v57 = vrot.slane %v1948_v49, 1  ;;  %v1842_v15 = vmul.f32 1.442695, %v1764_v60  ;;  %v809_v35 = vmul.f32 0.6931472, %v3147_v39 }
 0x1db   : > { %v3151_v21 = vpop.eup %3150  ;;  %v1958_v30 = vrot.slane %v1957_v62, 1  ;;  %v1844_v44 = vmul.f32 1.442695, %v1765_v51  ;;  %v1679_v28 = vmul.f32 0.6931472, %v3149_v31  ;;  %v893_v20 = vmul.f32 %v807_v9, %v4321_v41 }
 0x1dc   : > { %v3153_v36 = vpop.eup %3152  ;;  %v1950_v54 = vadd.f32 %v1949_v57, %v1948_v49  ;;  %3164 = vpow2.f32 %v1842_v15  ;;  %v1681_v29 = vmul.f32 0.6931472, %v3151_v21  ;;  %v894_v60 = vmul.f32 %v809_v35, %v4321_v41  ;;  %v4644_v21 = vpop.xlane.xlu0 %480 }
 0x1dd   : > { %v3155_v8 = vpop.eup %3154  ;;  %v1959_v18 = vadd.f32 %v1958_v30, %v1957_v62  ;;  %3166 = vpow2.f32 %v1844_v44  ;;  %v1707_v52 = vmul.f32 0.6931472, %v3153_v36  ;;  %v1448_v62 = vmax.f32 %v4604_v43, 1e-24  ;;  %v4649_v14 = vpop.xlane.xlu1 %522 }
 0x1de   : > { %v4625_v4 = vpop.eup %3156  ;;  %v2086_v27 = vadd.f32 %v1950_v54, %v1051_v6  ;;  %3168 = vlog2.f32 %v1598_v63  ;;  %v1709_v39 = vmul.f32 0.6931472, %v3155_v8  ;;  %v1066_v51 = vrot.slane %v4615_v38, 2 }
 0x1df   : > { %v3159_v40 = vpop.eup %3158  ;;  %v4629_v46 = vadd.f32 %v1959_v18, %v1060_v48  ;;  %3170 = vlog2.f32 %v1599_v12  ;;  %v1074_v63 = vadd.f32 %v1073_v11, %v4574_v24  ;;  %v1778_v3 = vmul.f32 %v1679_v28, %v4321_v41 }
 0x1e0   : > { %v3161_v49 = vpop.eup %3160  ;;  %3172 = vpow2.f32 %v4607_v42  ;;  %v695_v56 = vmax.f32 %v631_v32, 1e-06  ;;  %v1779_v6 = vmul.f32 %v1681_v29, %v4321_v41  ;;  %v767_v57 = vmul.f32 0.6931472, %v3159_v40 }
 0x1e1   : > { %v3163_v31 = vpop.eup %3162  ;;  %v708_v15 = vmax.f32 %v644_v53, 1e-06  ;;  %3174 = vrsqrt.f32 %v554_v33  ;;  %v999_v42 = vmul.f32 1.442695, %v893_v20  ;;  %v1792_v12 = vmul.f32 %v1707_v52, %v4321_v41  ;;  %v3604_v52 = vld [vmem:[%s4090_s6 + $0x178] sm:$0xff] }
 0x1e2   : > { %3176 = vlog2.f32 %v694_v47  ;;  %v769_v43 = vmul.f32 0.6931472, %v3161_v49  ;;  %v1001_v48 = vmul.f32 1.442695, %v894_v60  ;;  %v1793_v24 = vmul.f32 %v1709_v39, %v4321_v41  ;;  %v4658_v60 = vpop.xlane.xlu0 %519 }
 0x1e3   : > { %3178 = vrsqrt.f32 %v1448_v62  ;;  %v1455_v11 = vmax.f32 %v4620_v23, 1e-24  ;;  %v1075_v30 = vrot.slane %v1074_v63, 2  ;;  %v1870_v9 = vmul.f32 1.442695, %v1778_v3 }
 0x1e4   : > { %3180 = vlog2.f32 %v695_v56  ;;  %v1454_v44 = vmax.f32 %v4623_v61, 1e-24  ;;  %v1067_v36 = vadd.f32 %v1066_v51, %v4615_v38  ;;  %v1872_v54 = vmul.f32 1.442695, %v1779_v6  ;;  %v4662_v6 = vpop.xlane.xlu1 %1401 }
 0x1e5   : > { %v873_v35 = vmul.f32 %v767_v57, %v4321_v41  ;;  %3182 = vlog2.f32 %v708_v15  ;;  %v1898_v8 = vmul.f32 1.442695, %v1792_v12  ;;  %v874_v18 = vmul.f32 %v769_v43, %v4321_v41 }
 0x1e6   : > { %v3165_v33 = vpop.eup %3164  ;;  %3184 = vpow2.f32 %v999_v42  ;;  %v1900_v29 = vmul.f32 1.442695, %v1793_v24  ;;  %v1516_v53 = vmul.f32 %v3603_v2, %v3163_v31  ;;  %v2102_v40 = vmul.f32 0.015625, %v2086_v27 }
 0x1e7   : > { %v3167_v45 = vpop.eup %3166  ;;  %v1962_v32 = vadd.f32 %v3165_v33, %v4484_v17  ;;  %3186 = vpow2.f32 %v1001_v48  ;;  %v1517_v49 = vmul.f32 %v3604_v52, %v3163_v31  ;;  %v1076_v17 = vadd.f32 %v1075_v30, %v1074_v63  ;;  %v3605_v52 = vld [vmem:[%s4090_s6 + $0x318] sm:$0xff] }
 0x1e8   : > { %v3169_v28 = vpop.eup %3168  ;;  %v1971_v47 = vadd.f32 %v3167_v45, %v4487_v34  ;;  %3188 = vpow2.f32 %v1870_v9  ;;  %v959_v51 = vmul.f32 1.442695, %v873_v35  ;;  %v961_v56 = vmul.f32 1.442695, %v874_v18 }
 0x1e9   : > { %v3171_v38 = vpop.eup %3170  ;;  %v1963_v20 = vrot.slane %v1962_v32, 4  ;;  %3190 = vpow2.f32 %v1872_v54  ;;  %v1703_v34 = vmul.f32 0.6931472, %v3169_v28  ;;  %v1580_v42 = vmax.f32 %v1516_v53, 1e-06 }
 0x1ea   : > { %v4660_v39 = vpop.eup %3172  ;;  %v1972_v62 = vrot.slane %v1971_v47, 4  ;;  %3192 = vpow2.f32 %v1898_v8  ;;  %v1705_v15 = vmul.f32 0.6931472, %v3171_v38  ;;  %v1068_v12 = vrot.slane %v1067_v36, 1  ;;  %v4673_v38 = vpop.xlane.xlu1 %1422 }
 0x1eb   : > { %v1964_v3 = vadd.f32 %v1963_v20, %v1962_v32  ;;  %v3175_v57 = vpop.eup %3174  ;;  %3194 = vpow2.f32 %v1900_v29  ;;  %v1581_v48 = vmax.f32 %v1517_v49, 1e-06  ;;  %v1077_v24 = vrot.slane %v1076_v17, 1  ;;  %v4667_v32 = vpop.xlane.xlu0 %1380 }
 0x1ec   : > { %v1973_v27 = vadd.f32 %v1972_v62, %v1971_v47  ;;  %v3177_v31 = vpop.eup %3176  ;;  %3196 = vlog2.f32 %v2102_v40  ;;  %v552_v9 = vmax.f32 %v4632_v19, 1e-24  ;;  %v1790_v35 = vmul.f32 %v1703_v34, %v4321_v41 }
 0x1ed   : > { %v1965_v43 = vrot.slane %v1964_v3, 2  ;;  %v3179_v63 = vpop.eup %3178  ;;  %3198 = vpow2.f32 %v959_v51  ;;  %v545_v45 = vmax.f32 %v4644_v21, 1e-24  ;;  %v1791_v28 = vmul.f32 %v1705_v15, %v4321_v41  ;;  %v3607_v15 = vld [vmem:[%s4090_s6 + $0x308] sm:$0xff] }
 0x1ee   : > { %v1974_v30 = vrot.slane %v1973_v27, 2  ;;  %v3181_v33 = vpop.eup %3180  ;;  %3200 = vpow2.f32 %v961_v56  ;;  %v795_v47 = vmul.f32 0.6931472, %v3177_v31  ;;  %v1069_v19 = vadd.f32 %v1068_v12, %v1067_v36 }
 0x1ef   : > { %v1966_v54 = vadd.f32 %v1965_v43, %v1964_v3  ;;  %v3183_v8 = vpop.eup %3182  ;;  %3202 = vlog2.f32 %v1580_v42  ;;  %v2103_v2 = vmul.f32 0.015625, %v4629_v46  ;;  %v1078_v40 = vadd.f32 %v1077_v24, %v1076_v17  ;;  %v3606_v46 = vld [vmem:[%s4090_s6 + $0x300] sm:$0xff]  ;;  %v4695_v61 = vpop.xlane.xlu0 %1419 }
 0x1f0   : > { %v1975_v18 = vadd.f32 %v1974_v30, %v1973_v27  ;;  %v4670_v29 = vpop.eup %3184  ;;  %3204 = vlog2.f32 %v1581_v48  ;;  %v645_v49 = vmul.f32 %v3605_v52, %v4611_v50  ;;  %v1894_v51 = vmul.f32 1.442695, %v1790_v35  ;;  %v3608_v43 = vld [vmem:[%s4090_s6 + $0x260] sm:$0xff]  ;;  %v4704_v35 = vpop.xlane.xlu1 %513 }
 0x1f1   : > { %v1967_v53 = vrot.slane %v1966_v54, 1  ;;  %v4675_v21 = vpop.eup %3186  ;;  %3206 = vrsqrt.f32 %v1455_v11  ;;  %v642_v3 = vmul.f32 %v3606_v46, %v3175_v57  ;;  %v1896_v56 = vmul.f32 1.442695, %v1791_v28 }
 0x1f2   : > { %v1976_v20 = vrot.slane %v1975_v18, 1  ;;  %v4681_v62 = vpop.eup %3188  ;;  %3208 = vrsqrt.f32 %v1454_v44  ;;  %v887_v50 = vmul.f32 %v795_v47, %v4321_v41  ;;  %v797_v27 = vmul.f32 0.6931472, %v3181_v33 }
 0x1f3   : > { %v1968_v36 = vadd.f32 %v1967_v53, %v1966_v54  ;;  %v4686_v34 = vpop.eup %3190  ;;  %3210 = vrcp.f32 %v4321_v41  ;;  %v643_v42 = vmul.f32 %v3607_v15, %v3175_v57  ;;  %v709_v12 = vmax.f32 %v645_v49, 1e-06  ;;  %v4711_v49 = vpop.xlane.xlu0 %492  ;;  %v3615_v15 = vld [vmem:[%s4090_s6 + $0x1b8] sm:$0xff] }
 0x1f4   : > { %v1977_v17 = vadd.f32 %v1976_v20, %v1975_v18  ;;  %v4690_v23 = vpop.eup %3192  ;;  %3212 = vlog2.f32 %v2103_v2  ;;  %v1530_v48 = vmul.f32 %v3608_v43, %v3179_v63  ;;  %v823_v30 = vmul.f32 0.6931472, %v3183_v8  ;;  %v3609_v18 = vld [vmem:[%s4090_s6 + $0x268] sm:$0xff] }
 0x1f5   : > { %v4692_v11 = vadd.f32 %v1968_v36, %v1069_v19  ;;  %v4697_v44 = vpop.eup %3194  ;;  %3214 = vrsqrt.f32 %v545_v45  ;;  %v706_v54 = vmax.f32 %v642_v3, 1e-06  ;;  %v987_v57 = vmul.f32 1.442695, %v887_v50  ;;  %v4715_v50 = vpop.xlane.xlu1 %1413 }
 0x1f6   : > { %v4699_v31 = vadd.f32 %v1977_v17, %v1078_v40  ;;  %v4702_v24 = vpop.eup %3196  ;;  %3216 = vpow2.f32 %v1894_v51  ;;  %v1531_v28 = vmul.f32 %v3609_v18, %v3179_v63  ;;  %v888_v19 = vmul.f32 %v797_v27, %v4321_v41 }
 0x1f7   : > { %v3199_v33 = vpop.eup %3198  ;;  %3218 = vpow2.f32 %v1896_v56  ;;  %v707_v2 = vmax.f32 %v643_v42, 1e-06  ;;  %v1594_v45 = vmax.f32 %v1530_v48, 1e-06  ;;  %v901_v20 = vmul.f32 %v823_v30, %v4321_v41 }
 0x1f8   : > { %v3201_v47 = vpop.eup %3200  ;;  %3220 = vrsqrt.f32 %v552_v9  ;;  %v559_v8 = vmax.f32 %v4649_v14, 1e-24  ;;  %v1595_v63 = vmax.f32 %v1531_v28, 1e-06  ;;  %v989_v3 = vmul.f32 1.442695, %v888_v19 }
 0x1f9   : > { %v3203_v53 = vpop.eup %3202  ;;  %3222 = vlog2.f32 %v709_v12  ;;  %v1081_v43 = vadd.f32 %v3199_v33, %v4525_v26  ;;  %v1015_v48 = vmul.f32 1.442695, %v901_v20  ;;  %v1090_v28 = vadd.f32 %v3201_v47, %v4528_v37  ;;  %v4731_v20 = vpop.xlane.xlu0 %1392  ;;  %v3614_v47 = vld [vmem:[%s4090_s6 + $0x348] sm:$0xff] }
 0x1fa   : > { %v3205_v40 = vpop.eup %3204  ;;  %3224 = vlog2.f32 %v706_v54  ;;  %v1667_v51 = vmul.f32 0.6931472, %v3203_v53  ;;  %v3610_v54 = vld [vmem:[%s4090_s6 + $0x350] sm:$0xff]  ;;  %v2104_v33 = vmul.f32 0.015625, %v4692_v11 }
 0x1fb   : > { %v3207_v36 = vpop.eup %3206  ;;  %3226 = vpow2.f32 %v987_v57  ;;  %v1669_v17 = vmul.f32 0.6931472, %v3205_v40 }
 0x1fc   : > { %v3209_v9 = vpop.eup %3208  ;;  %3228 = vlog2.f32 %v707_v2  ;;  %v1772_v27 = vmul.f32 %v1667_v51, %v4321_v41  ;;  %v1544_v57 = vmul.f32 %v3610_v54, %v3207_v36  ;;  %v3611_v2 = vld [vmem:[%s4090_s6 + $0x358] sm:$0xff]  ;;  %v3612_v51 = vld [vmem:[%s4090_s6 + $0x340] sm:$0xff]  ;;  %v4738_v54 = vpop.xlane.xlu1 %525 }
 0x1fd   : > { %v3211_v14 = vpop.eup %3210  ;;  %3230 = vlog2.f32 %v1594_v45  ;;  %v1773_v30 = vmul.f32 %v1669_v17, %v4321_v41  ;;  %v1545_v53 = vmul.f32 %v3611_v2, %v3207_v36  ;;  %v1542_v26 = vmul.f32 %v3612_v51, %v3209_v9 }
 0x1fe   : > { %v4720_v12 = vpop.eup %3212  ;;  %2728 = vpush %v3211_v14  ;;  %3232 = vlog2.f32 %v1595_v63  ;;  %v1858_v19 = vmul.f32 1.442695, %v1772_v27  ;;  %v1608_v14 = vmax.f32 %v1544_v57, 1e-06  ;;  %v1082_v63 = vrot.slane %v1081_v43, 4  ;;  %v3613_v27 = vld [vmem:[%s4090_s6 + $0x1b0] sm:$0xff] }
 0x1ff   : > { %v3215_v18 = vpop.eup %3214  ;;  %3234 = vpow2.f32 %v989_v3  ;;  %v1860_v40 = vmul.f32 1.442695, %v1773_v30  ;;  %v1609_v3 = vmax.f32 %v1545_v53, 1e-06  ;;  %v1091_v51 = vrot.slane %v1090_v28, 4 }
 0x200   : > { %v4727_v45 = vpop.eup %3216  ;;  %3236 = vpow2.f32 %v1858_v19  ;;  %v624_v30 = vmul.f32 %v3613_v27, %v3215_v18  ;;  %v1606_v19 = vmax.f32 %v1542_v26, 1e-06  ;;  %v1543_v42 = vmul.f32 %v3614_v47, %v3209_v9 }
 0x201   : > { %v4733_v17 = vpop.eup %3218  ;;  %3238 = vpow2.f32 %v1860_v40  ;;  %v625_v56 = vmul.f32 %v3615_v15, %v3215_v18  ;;  %v3616_v40 = vld [vmem:[%s4090_s6 + $0x2a0] sm:$0xff]  ;;  %v1083_v52 = vadd.f32 %v1082_v63, %v1081_v43  ;;  %v2105_v9 = vmul.f32 0.015625, %v4699_v31 }
 0x202   : > { %v3221_v36 = vpop.eup %3220  ;;  %3240 = vpow2.f32 %v1015_v48  ;;  %v688_v46 = vmax.f32 %v624_v30, 1e-06  ;;  %v4752_v18 = vadd.f32 %v4625_v4, %v4476_v1  ;;  %v1607_v30 = vmax.f32 %v1543_v42, 1e-06 }
 0x203   : > { %v3223_v2 = vpop.eup %3222  ;;  %3242 = vrsqrt.f32 %v559_v8  ;;  %v638_v27 = vmul.f32 %v3616_v40, %v3221_v36  ;;  %v689_v22 = vmax.f32 %v625_v56, 1e-06  ;;  %v3617_v8 = vld [vmem:[%s4090_s6 + $0x2a8] sm:$0xff]  ;;  %v4756_v43 = vadd.f32 %v4660_v39, %v4481_v25 }
 0x204   : > { %v3225_v37 = vpop.eup %3224  ;;  %3244 = vlog2.f32 %v1608_v14  ;;  %v825_v57 = vmul.f32 0.6931472, %v3223_v2  ;;  %v639_v15 = vmul.f32 %v3617_v8, %v3221_v36  ;;  %v1092_v14 = vadd.f32 %v1091_v51, %v1090_v28 }
 0x205   : > { %v4744_v53 = vpop.eup %3226  ;;  %3246 = vlog2.f32 %v1609_v3  ;;  %v819_v47 = vmul.f32 0.6931472, %v3225_v37  ;;  %v702_v63 = vmax.f32 %v638_v27, 1e-06  ;;  %v4762_v37 = vadd.f32 %v4670_v29, %v4598_v10 }
 0x206   : > { %v3229_v26 = vpop.eup %3228  ;;  %3248 = vlog2.f32 %v1606_v19  ;;  %v902_v1 = vmul.f32 %v825_v57, %v4321_v41  ;;  %v1084_v42 = vrot.slane %v1083_v52, 2  ;;  %v703_v25 = vmax.f32 %v639_v15, 1e-06 }
 0x207   : > { %v3231_v11 = vpop.eup %3230  ;;  %3250 = vlog2.f32 %v2104_v33  ;;  %v821_v56 = vmul.f32 0.6931472, %v3229_v26  ;;  %v899_v33 = vmul.f32 %v819_v47, %v4321_v41  ;;  %v1093_v36 = vrot.slane %v1092_v14, 2 }
 0x208   : > { %v3233_v40 = vpop.eup %3232  ;;  %3252 = vlog2.f32 %v688_v46  ;;  %v1695_v4 = vmul.f32 0.6931472, %v3231_v11  ;;  %v4771_v10 = vadd.f32 %v4675_v21, %v4602_v13  ;;  %v1017_v19 = vmul.f32 1.442695, %v902_v1 }
 0x209   : > { %v4758_v31 = vpop.eup %3234  ;;  %3254 = vlog2.f32 %v689_v22  ;;  %v1697_v3 = vmul.f32 0.6931472, %v3233_v40  ;;  %v900_v22 = vmul.f32 %v821_v56, %v4321_v41  ;;  %v5288_v26 = vmax.f32 %v4658_v60, 1e-24 }
 0x20a   : > { %v3237_v28 = vpop.eup %3236  ;;  %3256 = vlog2.f32 %v2105_v9  ;;  %v1786_v57 = vmul.f32 %v1695_v4, %v4321_v41  ;;  %v1085_v9 = vadd.f32 %v1084_v42, %v1083_v52  ;;  %v1011_v13 = vmul.f32 1.442695, %v899_v33 }
 0x20b   : > { %v3239_v39 = vpop.eup %3238  ;;  %v1980_v46 = vadd.f32 %v3237_v28, %v4551_v58  ;;  %3258 = vlog2.f32 %v1607_v30  ;;  %v4778_v58 = vpop.xlane.xlu0 %504  ;;  %v1094_v8 = vadd.f32 %v1093_v36, %v1092_v14  ;;  %v5289_v30 = vmax.f32 %v4662_v6, 1e-24  ;;  %v3619_v36 = vld [vmem:[%s4090_s6 + $0x398] sm:$0xff] }
 0x20c   : > { %v4767_v2 = vpop.eup %3240  ;;  %v1989_v29 = vadd.f32 %v3239_v39, %v4554_v59  ;;  %3260 = vlog2.f32 %v702_v63  ;;  %v1787_v59 = vmul.f32 %v1697_v3, %v4321_v41  ;;  %v1013_v60 = vmul.f32 1.442695, %v900_v22  ;;  %v3618_v63 = vld [vmem:[%s4090_s6 + $0x390] sm:$0xff] }
 0x20d   : > { %v3243_v51 = vpop.eup %3242  ;;  %v1981_v27 = vrot.slane %v1980_v46, 4  ;;  %3262 = vrsqrt.f32 %v5288_v26  ;;  %v5290_v4 = vmax.f32 %v4667_v32, 1e-24  ;;  %v1886_v28 = vmul.f32 1.442695, %v1786_v57  ;;  %v4789_v26 = vpop.xlane.xlu1 %1425 }
 0x20e   : > { %v3245_v11 = vpop.eup %3244  ;;  %v1990_v21 = vrot.slane %v1989_v29, 4  ;;  %3264 = vlog2.f32 %v703_v25  ;;  %v652_v1 = vmul.f32 %v3618_v63, %v3243_v51  ;;  %v1086_v25 = vrot.slane %v1085_v9, 1  ;;  %5291 = vst [vmem:[#allocation19_spill] sm:$0xff] %v4789_v26 }
 0x20f   : > { %v3247_v47 = vpop.eup %3246  ;;  %v1982_v15 = vadd.f32 %v1981_v27, %v1980_v46  ;;  %3266 = vrsqrt.f32 %v5289_v30  ;;  %v1723_v42 = vmul.f32 0.6931472, %v3245_v11  ;;  %v653_v3 = vmul.f32 %v3619_v36, %v3243_v51  ;;  %v4791_v32 = vpop.xlane.xlu0 %1404 }
 0x210   : > { %v3249_v40 = vpop.eup %3248  ;;  %v1991_v56 = vadd.f32 %v1990_v21, %v1989_v29  ;;  %3268 = vrsqrt.f32 %v5290_v4  ;;  %v1725_v6 = vmul.f32 0.6931472, %v3247_v47  ;;  %v1888_v22 = vmul.f32 1.442695, %v1787_v59 }
 0x211   : > { %v4786_v52 = vpop.eup %3250  ;;  %3270 = vpow2.f32 %v1017_v19  ;;  %v1983_v14 = vrot.slane %v1982_v15, 2  ;;  %v1719_v27 = vmul.f32 0.6931472, %v3249_v40  ;;  %v1095_v19 = vrot.slane %v1094_v8, 1 }
 0x212   : > { %v3253_v33 = vpop.eup %3252  ;;  %v1992_v39 = vrot.slane %v1991_v56, 2  ;;  %3272 = vpow2.f32 %v1011_v13  ;;  %v716_v11 = vmax.f32 %v652_v1, 1e-06  ;;  %v1800_v51 = vmul.f32 %v1723_v42, %v4321_v41 }
 0x213   : > { %v3255_v46 = vpop.eup %3254  ;;  %v1984_v29 = vadd.f32 %v1983_v14, %v1982_v15  ;;  %3274 = vpow2.f32 %v1013_v60  ;;  %v783_v63 = vmul.f32 0.6931472, %v3253_v33  ;;  %v1801_v15 = vmul.f32 %v1725_v6, %v4321_v41 }
 0x214   : > { %v4793_v21 = vpop.eup %3256  ;;  %v1993_v57 = vadd.f32 %v1992_v39, %v1991_v56  ;;  %3276 = vpow2.f32 %v1886_v28  ;;  %v785_v40 = vmul.f32 0.6931472, %v3255_v46  ;;  %v717_v4 = vmax.f32 %v653_v3, 1e-06  ;;  %v4808_v46 = vpop.xlane.xlu0 %516 }
 0x215   : > { %v3259_v30 = vpop.eup %3258  ;;  %v1985_v47 = vrot.slane %v1984_v29, 1  ;;  %v1087_v36 = vadd.f32 %v1086_v25, %v1085_v9  ;;  %3278 = vpow2.f32 %v1888_v22  ;;  %v1798_v60 = vmul.f32 %v1719_v27, %v4321_v41  ;;  %v4806_v25 = vpop.xlane.xlu1 %1416  ;;  %v3620_v27 = vld [vmem:[%s4090_s6 + $0x380] sm:$0xff] }
 0x216   : > { %v3261_v13 = vpop.eup %3260  ;;  %v1994_v59 = vrot.slane %v1993_v57, 1  ;;  %v1096_v1 = vadd.f32 %v1095_v19, %v1094_v8  ;;  %v881_v39 = vmul.f32 %v783_v63, %v4321_v41  ;;  %3280 = vlog2.f32 %v716_v11 }
 0x217   : > { %v3263_v14 = vpop.eup %3262  ;;  %v1986_v48 = vadd.f32 %v1985_v47, %v1984_v29  ;;  %v1914_v6 = vmul.f32 1.442695, %v1800_v51  ;;  %v882_v3 = vmul.f32 %v785_v40, %v4321_v41  ;;  %v5292_v9 = vmax.f32 %v4673_v38, 1e-24  ;;  %v3621_v38 = vld [vmem:[%s4090_s6 + $0x388] sm:$0xff] }
 0x218   : > { %v3265_v56 = vpop.eup %3264  ;;  %v1995_v28 = vadd.f32 %v1994_v59, %v1993_v57  ;;  %v1916_v29 = vmul.f32 1.442695, %v1801_v15  ;;  %v1721_v57 = vmul.f32 0.6931472, %v3259_v30  ;;  %v1910_v11 = vmul.f32 1.442695, %v1798_v60 }
 0x219   : > { %v4799_v42 = vpop.eup %3266  ;;  %v4801_v33 = vadd.f32 %v1986_v48, %v1087_v36  ;;  %3282 = vrsqrt.f32 %v5292_v9  ;;  %v650_v48 = vmul.f32 %v3620_v27, %v3263_v14  ;;  %v811_v47 = vmul.f32 0.6931472, %v3261_v13  ;;  %v3623_v30 = vld [vmem:[%s4090_s6 + $0x1f0] sm:$0xff] }
 0x21a   : > { %v3269_v8 = vpop.eup %3268  ;;  %v4810_v22 = vadd.f32 %v1995_v28, %v1096_v1  ;;  %3284 = vlog2.f32 %v717_v4  ;;  %v651_v51 = vmul.f32 %v3621_v38, %v3263_v14  ;;  %v813_v63 = vmul.f32 0.6931472, %v3265_v56  ;;  %v3622_v1 = vld [vmem:[%s4090_s6 + $0x2e0] sm:$0xff]  ;;  %v3624_v56 = vld [vmem:[%s4090_s6 + $0x1f8] sm:$0xff]  ;;  %v4832_v38 = vpop.xlane.xlu1 %1428 }
 0x21b   : > { %v4813_v19 = vpop.eup %3270  ;;  %v975_v59 = vmul.f32 1.442695, %v881_v39  ;;  %v5293_v40 = vmax.f32 %v4695_v61, 1e-24  ;;  %v977_v36 = vmul.f32 1.442695, %v882_v3  ;;  %v1538_v28 = vmul.f32 %v3622_v1, %v4799_v42 }
 0x21c   : > { %v4819_v4 = vpop.eup %3272  ;;  %v1524_v60 = vmul.f32 %v3623_v30, %v3269_v8  ;;  %v714_v14 = vmax.f32 %v650_v48, 1e-06  ;;  %v1525_v39 = vmul.f32 %v3624_v56, %v3269_v8  ;;  %v1799_v27 = vmul.f32 %v1721_v57, %v4321_v41  ;;  %5294 = vst [vmem:[#allocation20_spill] sm:$0xff] %v4832_v38  ;;  %v2216_v56 = vld [vmem:[#allocation7 + $0x88] sm:$0xff]  ;;  %v2219_v38 = vld [vmem:[#allocation7 + $0xa0] sm:$0xff] }
 0x21d   : > { %3286 = vrsqrt.f32 %v5293_v40  ;;  %v4824_v13 = vpop.eup %3274  ;;  %v715_v3 = vmax.f32 %v651_v51, 1e-06  ;;  %v4834_v40 = vpop.xlane.xlu0 %528  ;;  %v896_v1 = vmul.f32 %v813_v63, %v4321_v41  ;;  %v2215_v63 = vld [vmem:[#allocation7 + $0x80] sm:$0xff]  ;;  %v2200_v57 = vld [vmem:[#allocation7 + $0x8] sm:$0xff] }
 0x21e   : > { %3288 = vpow2.f32 %v1914_v6  ;;  %v4828_v9 = vpop.eup %3276  ;;  %v895_v6 = vmul.f32 %v811_v47, %v4321_v41  ;;  %5295 = vst [vmem:[#allocation21_spill] sm:$0xff] %v4834_v40  ;;  %v1588_v30 = vmax.f32 %v1524_v60, 1e-06  ;;  %v1589_v51 = vmax.f32 %v1525_v39, 1e-06  ;;  %v2202_v40 = vld [vmem:[#allocation7 + $0x18] sm:$0xff] }
 0x21f   : > { %3290 = vpow2.f32 %v1916_v29  ;;  %v1602_v29 = vmax.f32 %v1538_v28, 1e-06  ;;  %v4838_v48 = vpop.eup %3278  ;;  %v4845_v28 = vmul.f32 0.6931472, %v4702_v24  ;;  %v1912_v61 = vmul.f32 1.442695, %v1799_v27 }
 0x220   : > { %3292 = vpow2.f32 %v1910_v11  ;;  %v3281_v47 = vpop.eup %3280  ;;  %v1003_v8 = vmul.f32 1.442695, %v895_v6  ;;  %v4849_v60 = vadd.f32 %v4681_v62, %v4516_v16  ;;  %v1005_v39 = vmul.f32 1.442695, %v896_v1  ;;  %v2199_v11 = vld [vmem:[#allocation7] sm:$0xff]  ;;  %v3625_v27 = vld [vmem:[%s4090_s6 + $0x2e8] sm:$0xff] }
 0x221   : > { %3294 = vpow2.f32 %v975_v59  ;;  %5296 = vst [vmem:[#allocation22_spill] sm:$0xff] %v4845_v28  ;;  %v2106_v24 = vmul.f32 0.015625, %v4801_v33  ;;  %v1539_v6 = vmul.f32 %v3625_v27, %v4799_v42  ;;  %v2217_v16 = vld [vmem:[#allocation7 + $0x90] sm:$0xff]  ;;  %v2218_v62 = vld [vmem:[#allocation7 + $0x98] sm:$0xff]  ;;  %v2698_v1 = vpack.c.bf16 %v2200_v57, %v2199_v11 }
 0x222   : > { %3296 = vpow2.f32 %v977_v36  ;;  %v2201_v28 = vld [vmem:[#allocation7 + $0x10] sm:$0xff]  ;;  %v4865_v42 = vadd.f32 %v4727_v45, %v4690_v23  ;;  %v4869_v33 = vadd.f32 %v4733_v17, %v4697_v44  ;;  %v4874_v57 = vmul.f32 0.6931472, %v4786_v52 }
 0x223   : > { %3298 = vlog2.f32 %v714_v14  ;;  %v3283_v59 = vpop.eup %3282  ;;  %v4853_v14 = vadd.f32 %v4686_v34, %v4519_v5  ;;  %v3626_v5 = vld [vmem:[%s4090_s6 + $0x3d0] sm:$0xff]  ;;  %v4878_v11 = vadd.f32 %v4744_v53, %v4557_v55  ;;  %v2702_v23 = vpack.c.bf16 %v2202_v40, %v2201_v28  ;;  %v2222_v28 = vld [vmem:[#allocation7 + $0xb8] sm:$0xff] }
 0x224   : > { %3300 = vlog2.f32 %v715_v3  ;;  %v3285_v36 = vpop.eup %3284  ;;  %v2696_v3 = vpack.c.bf16 %v2216_v56, %v2215_v63  ;;  %v1552_v34 = vmul.f32 %v3626_v5, %v3283_v59  ;;  %v1603_v44 = vmax.f32 %v1539_v6, 1e-06  ;;  %v2206_v5 = vld [vmem:[#allocation7 + $0x38] sm:$0xff] }
 0x225   : > { %3302 = vlog2.f32 %v1602_v29  ;;  %v2700_v29 = vpack.c.bf16 %v2218_v62, %v2217_v16  ;;  %v4883_v63 = vmul.f32 0.6931472, %v4720_v12  ;;  %v4887_v55 = vadd.f32 %v4758_v31, %v4559_v7  ;;  %v3628_v31 = vld [vmem:[%s4090_s6 + $0x3c0] sm:$0xff] }
 0x226   : > { %3304 = vlog2.f32 %v1588_v30  ;;  %v839_v30 = vmul.f32 0.6931472, %v3281_v47  ;;  %2697 = vmatprep.subr.bf16.mxu0 %v2696_v3  ;;  %v2204_v47 = vld [vmem:[#allocation7 + $0x28] sm:$0xff]  ;;  %v841_v53 = vmul.f32 0.6931472, %v3285_v36  ;;  %v4898_v7 = vadd.f32 %v4819_v4, %v4767_v2  ;;  %v2205_v4 = vld [vmem:[#allocation7 + $0x30] sm:$0xff] }
 0x227   : > { %v4858_v15 = vpop.eup %3286  ;;  %3306 = vlog2.f32 %v1589_v51  ;;  %v2220_v51 = vld [vmem:[#allocation7 + $0xa8] sm:$0xff]  ;;  %2699 = vmatpush3.bf16.msra.mxu0 %v2698_v1  ;;  %v1616_v40 = vmax.f32 %v1552_v34, 1e-06  ;;  %v5297_v3 = vmax.f32 %v4704_v35, 1e-24  ;;  %v4906_v35 = vadd.f32 %v4824_v13, %v4813_v19 }
 0x228   : > { %v4861_v26 = vpop.eup %3288  ;;  %3308 = vpow2.f32 %v1912_v61  ;;  %2701 = vmatprep.subr.bf16.mxu0 %v2700_v29  ;;  %v2704_v17 = vpack.c.bf16 %v2220_v51, %v2219_v38  ;;  %v2203_v61 = vld [vmem:[#allocation7 + $0x20] sm:$0xff]  ;;  %v909_v27 = vmul.f32 %v839_v30, %v4321_v41  ;;  %v3627_v38 = vld [vmem:[%s4090_s6 + $0x3d8] sm:$0xff]  ;;  %v4894_v12 = vmul.f32 0.6931472, %v4793_v21  ;;  %v2224_v51 = vld [vmem:[#allocation7 + $0xc8] sm:$0xff] }
 0x229   : > { %v4871_v56 = vpop.eup %3290  ;;  %3310 = vpow2.f32 %v1003_v8  ;;  %v2221_v8 = vld [vmem:[#allocation7 + $0xb0] sm:$0xff]  ;;  %v1553_v6 = vmul.f32 %v3627_v38, %v3283_v59  ;;  %v1550_v36 = vmul.f32 %v3628_v31, %v4858_v15  ;;  %v2706_v62 = vpack.c.bf16 %v2204_v47, %v2203_v61  ;;  %v2223_v30 = vld [vmem:[#allocation7 + $0xc0] sm:$0xff]  ;;  %v2226_v31 = vld [vmem:[#allocation7 + $0xd8] sm:$0xff] }
 0x22a   : > { %v4880_v45 = vpop.eup %3292  ;;  %3312 = vpow2.f32 %v1005_v39  ;;  %v2107_v21 = vmul.f32 0.015625, %v4810_v22  ;;  %v2708_v2 = vpack.c.bf16 %v2222_v28, %v2221_v8  ;;  %v910_v29 = vmul.f32 %v841_v53, %v4321_v41  ;;  %v3629_v22 = vld [vmem:[%s4090_s6 + $0x3c8] sm:$0xff] }
 0x22b   : > { %v3295_v52 = vpop.eup %3294  ;;  %3314 = vlog2.f32 %v2106_v24  ;;  %v5298_v24 = vmax.f32 %v4711_v49, 1e-24  ;;  %2703 = vmatpush3.bf16.msra.mxu0 %v2702_v23  ;;  %v1031_v13 = vmul.f32 1.442695, %v909_v27  ;;  %v1617_v23 = vmax.f32 %v1553_v6, 1e-06 }
 0x22c   : > { %v3297_v39 = vpop.eup %3296  ;;  %3316 = vrsqrt.f32 %v5297_v3  ;;  %2705 = vmatprep.subr.bf16.mxu0 %v2704_v17  ;;  %v1099_v1 = vadd.f32 %v3295_v52, %v4752_v18  ;;  %v5299_v17 = vmax.f32 %v4731_v20, 1e-24  ;;  %v1614_v52 = vmax.f32 %v1550_v36, 1e-06  ;;  %v2208_v27 = vld [vmem:[#allocation7 + $0x48] sm:$0xff] }
 0x22d   : > { %v3299_v16 = vpop.eup %3298  ;;  %3318 = vrsqrt.f32 %v5298_v24  ;;  %v1108_v49 = vadd.f32 %v3297_v39, %v4756_v43  ;;  %v2710_v43 = vpack.c.bf16 %v2206_v5, %v2205_v4  ;;  %v2712_v28 = vpack.c.bf16 %v2224_v51, %v2223_v30  ;;  %v2207_v39 = vld [vmem:[#allocation7 + $0x40] sm:$0xff] }
 0x22e   : > { %v3301_v59 = vpop.eup %3300  ;;  %3320 = vlog2.f32 %v1603_v44  ;;  %v4914_v44 = vmul.f32 %v3629_v22, %v4858_v15  ;;  %v835_v47 = vmul.f32 0.6931472, %v3299_v16  ;;  %v1100_v38 = vrot.slane %v1099_v1, 4  ;;  %v2225_v16 = vld [vmem:[#allocation7 + $0xd0] sm:$0xff]  ;;  %v2210_v22 = vld [vmem:[#allocation7 + $0x58] sm:$0xff] }
 0x22f   : > { %v3303_v34 = vpop.eup %3302  ;;  %3322 = vlog2.f32 %v1616_v40  ;;  %2707 = vmatpush3.bf16.msra.mxu0 %v2706_v62  ;;  %v837_v40 = vmul.f32 0.6931472, %v3301_v59  ;;  %v1109_v20 = vrot.slane %v1108_v49, 4  ;;  %v1033_v24 = vmul.f32 1.442695, %v910_v29  ;;  %s2729_s26 = spop %2728 }
 0x230   : > { %v3305_v19 = vpop.eup %3304  ;;  %3324 = vrsqrt.f32 %v5299_v17  ;;  %2709 = vmatprep.subr.bf16.mxu0 %v2708_v2  ;;  %v1711_v6 = vmul.f32 0.6931472, %v3303_v34  ;;  %v1615_v59 = vmax.f32 %v4914_v44, 1e-06  ;;  %v907_v2 = vmul.f32 %v835_v47, %v4321_v41 }
 0x231   : > { %v3307_v61 = vpop.eup %3306  ;;  %v1683_v18 = vmul.f32 0.6931472, %v3305_v19  ;;  %3326 = vlog2.f32 %v2107_v21  ;;  %v2714_v5 = vpack.c.bf16 %v2208_v27, %v2207_v39  ;;  %v908_v30 = vmul.f32 %v837_v40, %v4321_v41  ;;  %v3630_v40 = vld [vmem:[%s4090_s6 + $0x320] sm:$0xff] }
 0x232   : > { %v4918_v53 = vpop.eup %3308  ;;  %v1685_v8 = vmul.f32 0.6931472, %v3307_v61  ;;  %3328 = vlog2.f32 %v1617_v23  ;;  %v5300_v29 = vmax.f32 %v4715_v50, 1e-24  ;;  %v2716_v19 = vpack.c.bf16 %v2226_v31, %v2225_v16  ;;  %v2209_v23 = vld [vmem:[#allocation7 + $0x50] sm:$0xff] }
 0x233   : > { %v4920_v15 = vpop.eup %3310  ;;  %v1780_v3 = vmul.f32 %v1683_v18, %v4321_v41  ;;  %3330 = vlog2.f32 %v1614_v52  ;;  %2711 = vmatpush3.bf16.msra.mxu0 %v2710_v43  ;;  %v1101_v17 = vadd.f32 %v1100_v38, %v1099_v1  ;;  %v1110_v61 = vadd.f32 %v1109_v20, %v1108_v49  ;;  %v5301_v43 = vld [vmem:[#allocation18_spill] sm:$0xff] }
 0x234   : > { %v4923_v36 = vpop.eup %3312  ;;  %v1781_v62 = vmul.f32 %v1685_v8, %v4321_v41  ;;  %3332 = vrsqrt.f32 %v5300_v29  ;;  %2713 = vmatprep.subr.bf16.mxu0 %v2712_v28  ;;  %v1794_v47 = vmul.f32 %v1711_v6, %v4321_v41  ;;  %v4936_v52 = vadd.f32 %v4828_v9, %v4565_v0  ;;  %v3631_v49 = vld [vmem:[%s4090_s6 + $0x230] sm:$0xff]  ;;  %v2228_v29 = vld [vmem:[#allocation7 + $0xe8] sm:$0xff] }
 0x235   : > { %v4927_v21 = vpop.eup %3314  ;;  %v1874_v4 = vmul.f32 1.442695, %v1780_v3  ;;  %v4940_v50 = vadd.f32 %v4838_v48, %v5301_v43  ;;  %v1027_v1 = vmul.f32 1.442695, %v907_v2  ;;  %v2718_v27 = vpack.c.bf16 %v2210_v22, %v2209_v23  ;;  %v3632_v48 = vld [vmem:[%s4090_s6 + $0x238] sm:$0xff] }
 0x236   : > { %v3317_v34 = vpop.eup %3316  ;;  %v1876_v51 = vmul.f32 1.442695, %v1781_v62  ;;  %v4946_v0 = vadd.f32 %v4880_v45, %v4861_v26  ;;  %v1029_v9 = vmul.f32 1.442695, %v908_v30  ;;  %v1102_v6 = vrot.slane %v1101_v17, 2  ;;  %v3633_v62 = vld [vmem:[%s4090_s6 + $0x328] sm:$0xff] }
 0x237   : > { %v3319_v44 = vpop.eup %3318  ;;  %3334 = vpow2.f32 %v1874_v4  ;;  %v646_v8 = vmul.f32 %v3630_v40, %v3317_v34  ;;  %2715 = vmatpush3.bf16.msra.mxu0 %v2714_v5  ;;  %v1111_v3 = vrot.slane %v1110_v61, 2  ;;  %v647_v2 = vmul.f32 %v3633_v62, %v3317_v34  ;;  %v3634_v5 = vld [vmem:[%s4090_s6 + $0x270] sm:$0xff]  ;;  %v3635_v34 = vld [vmem:[%s4090_s6 + $0x278] sm:$0xff] }
 0x238   : > { %v3321_v18 = vpop.eup %3320  ;;  %3336 = vpow2.f32 %v1876_v51  ;;  %v632_v39 = vmul.f32 %v3631_v49, %v3319_v44  ;;  %v633_v20 = vmul.f32 %v3632_v48, %v3319_v44  ;;  %2717 = vmatprep.subr.bf16.mxu0 %v2716_v19  ;;  %v5302_v26 = vmax.f32 %v4738_v54, 1e-24  ;;  %v2227_v51 = vld [vmem:[#allocation7 + $0xe0] sm:$0xff]  ;;  %v2212_v54 = vld [vmem:[#allocation7 + $0x68] sm:$0xff] }
 0x239   : > { %v3323_v28 = vpop.eup %3322  ;;  %3338 = vpow2.f32 %v1031_v13  ;;  %v1902_v13 = vmul.f32 1.442695, %v1794_v47  ;;  %v1713_v31 = vmul.f32 0.6931472, %v3321_v18  ;;  %v710_v4 = vmax.f32 %v646_v8, 1e-06 }
 0x23a   : > { %v3325_v38 = vpop.eup %3324  ;;  %3340 = vlog2.f32 %v1615_v59  ;;  %v1739_v45 = vmul.f32 0.6931472, %v3323_v28  ;;  %v696_v59 = vmax.f32 %v632_v39, 1e-06  ;;  %v4957_v19 = vadd.f32 %v4918_v53, %v4871_v56  ;;  %v2211_v44 = vld [vmem:[#allocation7 + $0x60] sm:$0xff]  ;;  %v2229_v8 = vld [vmem:[#allocation7 + $0xf0] sm:$0xff] }
 0x23b   : > { %3342 = vpow2.f32 %v1033_v24  ;;  %v4949_v16 = vpop.eup %3326  ;;  %v1532_v30 = vmul.f32 %v3634_v5, %v3325_v38  ;;  %2719 = vmatpush3.bf16.msra.mxu0 %v2718_v27  ;;  %v697_v23 = vmax.f32 %v633_v20, 1e-06  ;;  %v1533_v22 = vmul.f32 %v3635_v34, %v3325_v38  ;;  %v2230_v28 = vld [vmem:[#allocation7 + $0xf8] sm:$0xff]  ;;  %v2213_v39 = vld [vmem:[#allocation7 + $0x70] sm:$0xff] }
 0x23c   : > { %3344 = vrsqrt.f32 %v5302_v26  ;;  %v3329_v24 = vpop.eup %3328  ;;  %v4962_v18 = vadd.f32 %v4920_v15, %v4762_v37  ;;  %v1103_v43 = vadd.f32 %v1102_v6, %v1101_v17  ;;  %v4964_v40 = vadd.f32 %v1111_v3, %v1110_v61  ;;  %v2214_v27 = vld [vmem:[#allocation7 + $0x78] sm:$0xff] }
 0x23d   : > { %3346 = vpow2.f32 %v1027_v1  ;;  %v3331_v47 = vpop.eup %3330  ;;  %v1795_v56 = vmul.f32 %v1713_v31, %v4321_v41  ;;  %v711_v53 = vmax.f32 %v647_v2, 1e-06  ;;  %v2720_v49 = vpack.c.bf16 %v2228_v29, %v2227_v51  ;;  %v3636_v31 = vld [vmem:[%s4090_s6 + $0x360] sm:$0xff] }
 0x23e   : > { %3348 = vpow2.f32 %v1029_v9  ;;  %v3333_v1 = vpop.eup %3332  ;;  %v1808_v9 = vmul.f32 %v1739_v45, %v4321_v41  ;;  %v1596_v37 = vmax.f32 %v1532_v30, 1e-06  ;;  %v2722_v15 = vpack.c.bf16 %v2212_v54, %v2211_v44 }
 0x23f   : > { %3350 = vpow2.f32 %v1902_v13  ;;  %v1597_v48 = vmax.f32 %v1533_v22, 1e-06  ;;  %2721 = vmatprep.subr.bf16.mxu0 %v2720_v49  ;;  %v2724_v20 = vpack.c.bf16 %v2230_v28, %v2229_v8  ;;  %v1741_v13 = vmul.f32 0.6931472, %v3329_v24 }
 0x240   : > { %3352 = vlog2.f32 %v710_v4  ;;  %v1546_v62 = vmul.f32 %v3636_v31, %v3333_v1  ;;  %2723 = vmatpush3.bf16.msra.mxu0 %v2722_v15  ;;  %v2726_v2 = vpack.c.bf16 %v2214_v27, %v2213_v39  ;;  %v1904_v26 = vmul.f32 1.442695, %v1795_v56 }
 0x241   : > { %v3335_v38 = vpop.eup %3334  ;;  %3354 = vlog2.f32 %v696_v59  ;;  %v1735_v59 = vmul.f32 0.6931472, %v3331_v47  ;;  %2725 = vmatprep.subr.bf16.mxu0 %v2724_v20  ;;  %v1104_v5 = vrot.slane %v1103_v43, 1  ;;  %v1113_v30 = vrot.slane %v4964_v40, 1 }
 0x242   : > { %v3337_v17 = vpop.eup %3336  ;;  %v1998_v61 = vadd.f32 %v3335_v38, %v4849_v60  ;;  %3356 = vlog2.f32 %v697_v23  ;;  %v1930_v24 = vmul.f32 1.442695, %v1808_v9  ;;  %v3637_v23 = vld [vmem:[%s4090_s6 + $0x368] sm:$0xff]  ;;  %v1809_v54 = vmul.f32 %v1741_v13, %v4321_v41 }
 0x243   : > { %v4969_v6 = vpop.eup %3338  ;;  %v2007_v3 = vadd.f32 %v3337_v17, %v4853_v14  ;;  %3358 = vlog2.f32 %v711_v53  ;;  %v1547_v34 = vmul.f32 %v3637_v23, %v3333_v1  ;;  %v1610_v8 = vmax.f32 %v1546_v62, 1e-06  ;;  %v3638_v62 = vld [vmem:[%s4090_s6 + $0x3a0] sm:$0xff] }
 0x244   : > { %v3341_v4 = vpop.eup %3340  ;;  %v1999_v45 = vrot.slane %v1998_v61, 4  ;;  %3360 = vlog2.f32 %v1596_v37  ;;  %2727 = vmatpush3.bf16.msra.mxu0 %v2726_v2  ;;  %v4984_v56 = vadd.f32 %v4923_v36, %v4771_v10  ;;  %v1806_v49 = vmul.f32 %v1735_v59, %v4321_v41 }
 0x245   : > { %v4973_v60 = vpop.eup %3342  ;;  %v2008_v51 = vrot.slane %v2007_v3, 4  ;;  %3362 = vlog2.f32 %v1597_v48  ;;  %v1737_v47 = vmul.f32 0.6931472, %v3341_v4  ;;  %v1105_v39 = vadd.f32 %v1104_v5, %v1103_v43  ;;  %v3639_v5 = vld [vmem:[%s4090_s6 + $0x3a8] sm:$0xff] }
 0x246   : > { %v3345_v14 = vpop.eup %3344  ;;  %v2000_v29 = vadd.f32 %v1999_v45, %v1998_v61  ;;  %3364 = vpow2.f32 %v1904_v26  ;;  %v5303_v38 = vmax.f32 %v4778_v58, 1e-24  ;;  %v4992_v9 = vmul.f32 0.6931472, %v4949_v16 }
 0x247   : > { %v4977_v22 = vpop.eup %3346  ;;  %v2009_v44 = vadd.f32 %v2008_v51, %v2007_v3  ;;  %v1114_v15 = vadd.f32 %v1113_v30, %v4964_v40  ;;  %v1611_v36 = vmax.f32 %v1547_v34, 1e-06  ;;  %v1932_v48 = vmul.f32 1.442695, %v1809_v54 }
 0x248   : > { %v4980_v28 = vpop.eup %3348  ;;  %v2001_v53 = vrot.slane %v2000_v29, 2  ;;  %3366 = vrsqrt.f32 %v5303_v38  ;;  %v1807_v20 = vmul.f32 %v1737_v47, %v4321_v41  ;;  %v1926_v3 = vmul.f32 1.442695, %v1806_v49 }
 0x249   : > { %v4987_v1 = vpop.eup %3350  ;;  %v2010_v27 = vrot.slane %v2009_v44, 2  ;;  %3368 = vpow2.f32 %v1930_v24  ;;  %v5304_v16 = vmax.f32 %v4791_v32, 1e-24  ;;  %v654_v2 = vmul.f32 %v3638_v62, %v3345_v14 }
 0x24a   : > { %v3353_v37 = vpop.eup %3352  ;;  %v2002_v10 = vadd.f32 %v2001_v53, %v2000_v29  ;;  %3370 = vlog2.f32 %v1610_v8  ;;  %v5305_v4 = vmax.f32 %v4806_v25, 1e-24  ;;  %v655_v30 = vmul.f32 %v3639_v5, %v3345_v14 }
 0x24b   : > { %v3355_v17 = vpop.eup %3354  ;;  %v2011_v61 = vadd.f32 %v2010_v27, %v2009_v44  ;;  %3372 = vrsqrt.f32 %v5304_v16  ;;  %v827_v24 = vmul.f32 0.6931472, %v3353_v37  ;;  %v1928_v44 = vmul.f32 1.442695, %v1807_v20 }
 0x24c   : > { %v3357_v43 = vpop.eup %3356  ;;  %v2003_v58 = vrot.slane %v2002_v10, 1  ;;  %v799_v13 = vmul.f32 0.6931472, %v3355_v17  ;;  %3374 = vrsqrt.f32 %v5305_v4  ;;  %v5306_v25 = vmax.f32 %v4808_v46, 1e-24  ;;  %v5307_v4 = vld [vmem:[#allocation19_spill] sm:$0xff] }
 0x24d   : > { %v2012_v31 = vrot.slane %v2011_v61, 1  ;;  %v801_v40 = vmul.f32 0.6931472, %v3357_v43  ;;  %v3359_v26 = vpop.eup %3358  ;;  %3376 = vlog2.f32 %v1611_v36  ;;  %v718_v53 = vmax.f32 %v654_v2, 1e-06  ;;  %v3640_v43 = vld [vmem:[%s4090_s6 + $0x2b0] sm:$0xff] }
 0x24e   : > { %v2004_v45 = vadd.f32 %v2003_v58, %v2002_v10  ;;  %v889_v59 = vmul.f32 %v799_v13, %v4321_v41  ;;  %v3361_v51 = vpop.eup %3360  ;;  %3378 = vpow2.f32 %v1932_v48  ;;  %v829_v49 = vmul.f32 0.6931472, %v3359_v26 }
 0x24f   : > { %v2013_v29 = vadd.f32 %v2012_v31, %v2011_v61  ;;  %v890_v32 = vmul.f32 %v801_v40, %v4321_v41  ;;  %v3363_v23 = vpop.eup %3362  ;;  %3380 = vrsqrt.f32 %v5306_v25  ;;  %v1699_v27 = vmul.f32 0.6931472, %v3361_v51 }
 0x250   : > { %v2092_v34 = vadd.f32 %v2004_v45, %v1105_v39  ;;  %v991_v54 = vmul.f32 1.442695, %v889_v59  ;;  %3382 = vpow2.f32 %v1926_v3  ;;  %v3365_v14 = vpop.eup %3364  ;;  %v719_v38 = vmax.f32 %v655_v30, 1e-06  ;;  %v3641_v3 = vld [vmem:[%s4090_s6 + $0x2b8] sm:$0xff] }
 0x251   : > { %v5006_v47 = vadd.f32 %v2013_v29, %v1114_v15  ;;  %v993_v8 = vmul.f32 1.442695, %v890_v32  ;;  %v903_v39 = vmul.f32 %v827_v24, %v4321_v41  ;;  %v1701_v10 = vmul.f32 0.6931472, %v3363_v23  ;;  %v3643_v29 = vld [vmem:[%s4090_s6 + $0x2f8] sm:$0xff] }
 0x252   : > { %3384 = vpow2.f32 %v991_v54  ;;  %v3367_v37 = vpop.eup %3366  ;;  %v5010_v46 = vmul.f32 0.6931472, %v4927_v21  ;;  %v5016_v36 = vadd.f32 %v4977_v22, %v4969_v6  ;;  %v1788_v17 = vmul.f32 %v1699_v27, %v4321_v41 }
 0x253   : > { %3386 = vpow2.f32 %v993_v8  ;;  %v5012_v15 = vpop.eup %3368  ;;  %v5019_v61 = vstv %s2729_s26  ;;  %v1789_v20 = vmul.f32 %v1701_v10, %v4321_v41  ;;  %v640_v58 = vmul.f32 %v3640_v43, %v3367_v37 }
 0x254   : > { %3388 = vpow2.f32 %v1928_v44  ;;  %v3371_v48 = vpop.eup %3370  ;;  %v641_v21 = vmul.f32 %v3641_v3, %v3367_v37  ;;  %v5026_v16 = vadd.f32 %v4987_v1, %v4865_v42  ;;  %v904_v6 = vmul.f32 %v829_v49, %v4321_v41  ;;  %v3644_v44 = vld [vmem:[%s4090_s6 + $0x370] sm:$0xff]  ;;  %v3645_v49 = vld [vmem:[%s4090_s6 + $0x378] sm:$0xff] }
 0x255   : > { %3390 = vlog2.f32 %v718_v53  ;;  %v3373_v13 = vpop.eup %3372  ;;  %v1890_v22 = vmul.f32 1.442695, %v1788_v17  ;;  %v5030_v40 = vadd.f32 %v3365_v14, %v4869_v33  ;;  %v1019_v62 = vmul.f32 1.442695, %v903_v39  ;;  %v3642_v33 = vld [vmem:[%s4090_s6 + $0x2f0] sm:$0xff]  ;;  %v3647_v3 = vld [vmem:[%s4090_s6 + $0x338] sm:$0xff] }
 0x256   : > { %3392 = vlog2.f32 %v719_v38  ;;  %v3375_v31 = vpop.eup %3374  ;;  %v1892_v2 = vmul.f32 1.442695, %v1789_v20  ;;  %v5308_v26 = vmax.f32 %v5307_v4, 1e-24  ;;  %v1727_v59 = vmul.f32 0.6931472, %v3371_v48 }
 0x257   : > { %v3377_v45 = vpop.eup %3376  ;;  %v704_v42 = vmax.f32 %v640_v58, 1e-06  ;;  %v2152_v1 = vmul.f32 %v5019_v61, %v4883_v63  ;;  %v705_v30 = vmax.f32 %v641_v21, 1e-06  ;;  %v1540_v51 = vmul.f32 %v3642_v33, %v3373_v13  ;;  %v3646_v48 = vld [vmem:[%s4090_s6 + $0x330] sm:$0xff] }
 0x258   : > { %3394 = vrsqrt.f32 %v5308_v26  ;;  %v5036_v5 = vpop.eup %3378  ;;  %v1541_v24 = vmul.f32 %v3643_v29, %v3373_v13  ;;  %v1021_v23 = vmul.f32 1.442695, %v904_v6  ;;  %v1548_v54 = vmul.f32 %v3644_v44, %v3375_v31 }
 0x259   : > { %3396 = vpow2.f32 %v1890_v22  ;;  %v3381_v32 = vpop.eup %3380  ;;  %v2154_v25 = vmul.f32 %v5019_v61, %v4894_v12  ;;  %v2156_v8 = vmul.f32 %v5019_v61, %v4992_v9  ;;  %v2108_v53 = vmul.f32 0.015625, %v2092_v34 }
 0x25a   : > { %3398 = vpow2.f32 %v1892_v2  ;;  %v5045_v63 = vpop.eup %3382  ;;  %v1729_v14 = vmul.f32 0.6931472, %v3377_v45  ;;  %v1549_v27 = vmul.f32 %v3645_v49, %v3375_v31  ;;  %v1802_v37 = vmul.f32 %v1727_v59, %v4321_v41 }
 0x25b   : > { %3400 = vpow2.f32 %v1019_v62  ;;  %v1604_v39 = vmax.f32 %v1540_v51, 1e-06  ;;  %v5049_v10 = vmul.f32 1.442695, %v2152_v1  ;;  %v1605_v9 = vmax.f32 %v1541_v24, 1e-06 }
 0x25c   : > { %v3385_v38 = vpop.eup %3384  ;;  %3402 = vlog2.f32 %v704_v42  ;;  %v648_v20 = vmul.f32 %v3646_v48, %v3381_v32  ;;  %v1612_v58 = vmax.f32 %v1548_v54, 1e-06  ;;  %v649_v21 = vmul.f32 %v3647_v3, %v3381_v32  ;;  %v3648_v54 = vld [vmem:[%s4090_s6 + $0x3e0] sm:$0xff] }
 0x25d   : > { %v3387_v12 = vpop.eup %3386  ;;  %v1117_v17 = vadd.f32 %v3385_v38, %v4878_v11  ;;  %3404 = vlog2.f32 %v705_v30  ;;  %v1803_v22 = vmul.f32 %v1729_v14, %v4321_v41  ;;  %v1613_v31 = vmax.f32 %v1549_v27, 1e-06  ;;  %v3649_v14 = vld [vmem:[%s4090_s6 + $0x3e8] sm:$0xff] }
 0x25e   : > { %v5053_v34 = vpop.eup %3388  ;;  %3406 = vpow2.f32 %v1021_v23  ;;  %v1126_v43 = vadd.f32 %v3387_v12, %v4887_v55  ;;  %v712_v2 = vmax.f32 %v648_v20, 1e-06  ;;  %v5058_v4 = vmul.f32 1.442695, %v2154_v25 }
 0x25f   : > { %v3391_v13 = vpop.eup %3390  ;;  %3408 = vlog2.f32 %v2108_v53  ;;  %v1118_v6 = vrot.slane %v1117_v17, 4  ;;  %v713_v55 = vmax.f32 %v649_v21, 1e-06  ;;  %v5060_v59 = vmul.f32 1.442695, %v2156_v8  ;;  %v5311_v21 = vld [vmem:[#allocation21_spill] sm:$0xff] }
 0x260   : > { %v3393_v62 = vpop.eup %3392  ;;  %v1127_v11 = vrot.slane %v1126_v43, 4  ;;  %3410 = vlog2.f32 %v1604_v39  ;;  %v2109_v1 = vmul.f32 0.015625, %v5006_v47  ;;  %v1918_v33 = vmul.f32 1.442695, %v1802_v37 }
 0x261   : > { %v1119_v45 = vadd.f32 %v1118_v6, %v1117_v17  ;;  %3412 = vlog2.f32 %v1605_v9  ;;  %v5063_v24 = vmul.f32 1.442695, %v1803_v22  ;;  %v843_v53 = vmul.f32 0.6931472, %v3391_v13 }
 0x262   : > { %v3395_v26 = vpop.eup %3394  ;;  %v1128_v30 = vadd.f32 %v1127_v11, %v1126_v43  ;;  %3414 = vlog2.f32 %v1612_v58  ;;  %v5071_v39 = vmul.f32 0.6931472, %v3393_v62  ;;  %v5312_v13 = vmax.f32 %v5311_v21, 1e-24 }
 0x263   : > { %v3397_v42 = vpop.eup %3396  ;;  %v1120_v29 = vrot.slane %v1119_v45, 2  ;;  %3416 = vlog2.f32 %v1613_v31  ;;  %v1554_v25 = vmul.f32 %v3648_v54, %v3395_v26  ;;  %v1555_v49 = vmul.f32 %v3649_v14, %v3395_v26 }
 0x264   : > { %v3399_v51 = vpop.eup %3398  ;;  %v2016_v32 = vadd.f32 %v3397_v42, %v4936_v52  ;;  %v1129_v23 = vrot.slane %v1128_v30, 2  ;;  %3418 = vlog2.f32 %v712_v2  ;;  %v5309_v52 = vld [vmem:[#allocation20_spill] sm:$0xff]  ;;  %v911_v31 = vmul.f32 %v843_v53, %v4321_v41 }
 0x265   : > { %v2025_v44 = vadd.f32 %v3399_v51, %v4940_v50  ;;  %v5068_v8 = vpop.eup %3400  ;;  %3420 = vlog2.f32 %v713_v55  ;;  %v1121_v38 = vadd.f32 %v1120_v29, %v1119_v45  ;;  %v5310_v12 = vmax.f32 %v5309_v52, 1e-24 }
 0x266   : > { %v2017_v47 = vrot.slane %v2016_v32, 4  ;;  %v3403_v27 = vpop.eup %3402  ;;  %v1130_v50 = vadd.f32 %v1129_v23, %v1128_v30  ;;  %v1618_v3 = vmax.f32 %v1554_v25, 1e-06  ;;  %v1619_v11 = vmax.f32 %v1555_v49, 1e-06 }
 0x267   : > { %v2026_v37 = vrot.slane %v2025_v44, 4  ;;  %3422 = vrsqrt.f32 %v5310_v12  ;;  %v3405_v17 = vpop.eup %3404  ;;  %v815_v48 = vmul.f32 0.6931472, %v3403_v27  ;;  %v1122_v26 = vrot.slane %v1121_v38, 1 }
 0x268   : > { %3424 = vlog2.f32 %v2109_v1  ;;  %v2018_v9 = vadd.f32 %v2017_v47, %v2016_v32  ;;  %v5075_v20 = vpop.eup %3406  ;;  %v817_v58 = vmul.f32 0.6931472, %v3405_v17  ;;  %v1131_v1 = vrot.slane %v1130_v50, 1 }
 0x269   : > { %v2027_v43 = vadd.f32 %v2026_v37, %v2025_v44  ;;  %3426 = vrsqrt.f32 %v5312_v13  ;;  %v5079_v6 = vpop.eup %3408  ;;  %v897_v62 = vmul.f32 %v815_v48, %v4321_v41  ;;  %v1035_v53 = vmul.f32 1.442695, %v911_v31 }
 0x26a   : > { %v2019_v22 = vrot.slane %v2018_v9, 2  ;;  %v3411_v2 = vpop.eup %3410  ;;  %3428 = vpow2.f32 %v1918_v33  ;;  %v898_v55 = vmul.f32 %v817_v58, %v4321_v41  ;;  %v1123_v49 = vadd.f32 %v1122_v26, %v1121_v38 }
 0x26b   : > { %v2028_v45 = vrot.slane %v2027_v43, 2  ;;  %v3413_v42 = vpop.eup %3412  ;;  %v1007_v51 = vmul.f32 1.442695, %v897_v62  ;;  %v1715_v29 = vmul.f32 0.6931472, %v3411_v2  ;;  %3430 = vlog2.f32 %v1618_v3 }
 0x26c   : > { %v2020_v30 = vadd.f32 %v2019_v22, %v2018_v9  ;;  %v3415_v32 = vpop.eup %3414  ;;  %v1009_v44 = vmul.f32 1.442695, %v898_v55  ;;  %v1717_v54 = vmul.f32 0.6931472, %v3413_v42  ;;  %3432 = vlog2.f32 %v1619_v11  ;;  %v3650_v55 = vld [vmem:[%s4090_s6 + $0x3f0] sm:$0xff] }
 0x26d   : > { %v2029_v23 = vadd.f32 %v2028_v45, %v2027_v43  ;;  %v3417_v25 = vpop.eup %3416  ;;  %v1796_v14 = vmul.f32 %v1715_v29, %v4321_v41  ;;  %3434 = vpow2.f32 %v1007_v51  ;;  %v1132_v12 = vadd.f32 %v1131_v1, %v1130_v50 }
 0x26e   : > { %v2021_v47 = vrot.slane %v2020_v30, 1  ;;  %v3419_v33 = vpop.eup %3418  ;;  %v1797_v37 = vmul.f32 %v1717_v54, %v4321_v41  ;;  %v1731_v48 = vmul.f32 0.6931472, %v3415_v32  ;;  %3436 = vpow2.f32 %v1009_v44  ;;  %v3651_v32 = vld [vmem:[%s4090_s6 + $0x3f8] sm:$0xff]  ;;  %v3652_v54 = vld [vmem:[%s4090_s6 + $0x3b0] sm:$0xff] }
 0x26f   : > { %v2030_v27 = vrot.slane %v2029_v23, 1  ;;  %v3421_v52 = vpop.eup %3420  ;;  %v1906_v9 = vmul.f32 1.442695, %v1796_v14  ;;  %v1733_v21 = vmul.f32 0.6931472, %v3417_v25  ;;  %v5097_v44 = vadd.f32 %v5045_v63, %v5012_v15 }
 0x270   : > { %v2022_v17 = vadd.f32 %v2021_v47, %v2020_v30  ;;  %v1908_v3 = vmul.f32 1.442695, %v1797_v37  ;;  %v1804_v38 = vmul.f32 %v1731_v48, %v4321_v41  ;;  %v831_v31 = vmul.f32 0.6931472, %v3419_v33 }
 0x271   : > { %v3423_v43 = vpop.eup %3422  ;;  %v2031_v58 = vadd.f32 %v2030_v27, %v2029_v23  ;;  %3438 = vpow2.f32 %v1906_v9  ;;  %v1805_v50 = vmul.f32 %v1733_v21, %v4321_v41  ;;  %v833_v2 = vmul.f32 0.6931472, %v3421_v52 }
 0x272   : > { %v3425_v13 = vpop.eup %3424  ;;  %v2094_v22 = vadd.f32 %v2022_v17, %v1123_v49  ;;  %3440 = vpow2.f32 %v1908_v3  ;;  %v1922_v26 = vmul.f32 1.442695, %v1804_v38  ;;  %v905_v45 = vmul.f32 %v831_v31, %v4321_v41  ;;  %v3653_v49 = vld [vmem:[%s4090_s6 + $0x3b8] sm:$0xff]  ;;  %s3759_s6 = scalar_lea.vmem %s3758_s17, 256 }
 0x273   : > { %v3427_v62 = vpop.eup %3426  ;;  %v2095_v11 = vadd.f32 %v2031_v58, %v1132_v12  ;;  %3442 = vpow2.f32 %v5063_v24  ;;  %v1556_v42 = vmul.f32 %v3650_v55, %v3423_v43  ;;  %v912_v30 = vmul.f32 %v5071_v39, %v4321_v41  ;;  %v5313_v12 = vld [vmem:[#allocation22_spill] sm:$0xff]  ;;  %p3761_p4 = scmp.lt.s32.totalorder %s3759_s6, %s3753_s13 }
 0x274   : > { %v3429_v1 = vpop.eup %3428  ;;  %v1924_v51 = vmul.f32 1.442695, %v1805_v50  ;;  %v906_v29 = vmul.f32 %v833_v2, %v4321_v41  ;;  %v1557_v23 = vmul.f32 %v3651_v32, %v3423_v43  ;;  %3444 = vpow2.f32 %v1035_v53 }
 0x275   : > { %v1023_v24 = vmul.f32 1.442695, %v905_v45  ;;  %v656_v25 = vmul.f32 %v3652_v54, %v3427_v62  ;;  %v3431_v47 = vpop.eup %3430  ;;  %3446 = vpow2.f32 %v1922_v26  ;;  %v1620_v33 = vmax.f32 %v1556_v42, 1e-06  ;;  %p3762_p6 = por %p3761_p4, %p3760_p1 }
 0x276   : > { %v1025_v14 = vmul.f32 1.442695, %v906_v29  ;;  %v657_v27 = vmul.f32 %v3653_v49, %v3427_v62  ;;  %v3433_v39 = vpop.eup %3432  ;;  %v5103_v37 = vadd.f32 %v5053_v34, %v5036_v5  ;;  %3448 = vpow2.f32 %v1924_v51 }
 0x277   : > { %v1621_v52 = vmax.f32 %v1557_v23, 1e-06  ;;  %v2151_v15 = vmul.f32 %v5019_v61, %v5313_v12  ;;  %v3435_v63 = vpop.eup %3434  ;;  %v1037_v53 = vmul.f32 1.442695, %v912_v30  ;;  %3450 = vpow2.f32 %v1023_v24  ;;  %p3763_p12 = pnand %p3762_p6, %p3756_p9 }
 0x278   : > { %v2133_v17 = vmul.f32 0.6931472, %v3425_v13  ;;  %v5109_v9 = vmul.f32 %v5019_v61, %v4874_v57  ;;  %v1152_v48 = vadd.f32 %v5068_v8, %v4898_v7  ;;  %3452 = vpow2.f32 %v1025_v14  ;;  %v3437_v34 = vpop.eup %3436 }
 0x279   : > { %v720_v43 = vmax.f32 %v656_v25, 1e-06  ;;  %v5115_v5 = vmul.f32 %v5019_v61, %v5010_v46  ;;  %v1743_v58 = vmul.f32 0.6931472, %v3431_v47  ;;  %v1745_v3 = vmul.f32 0.6931472, %v3433_v39 }
 0x27a   : > { %3454 = vlog2.f32 %v1620_v33  ;;  %v721_v21 = vmax.f32 %v657_v27, 1e-06  ;;  %v2110_v13 = vmul.f32 0.015625, %v2094_v22  ;;  %v1135_v31 = vadd.f32 %v3435_v63, %v4962_v18 }
 0x27b   : > { %v3439_v38 = vpop.eup %3438  ;;  %3456 = vlog2.f32 %v1621_v52  ;;  %v2131_v57 = vmul.f32 0.6931472, %v5079_v6  ;;  %v1161_v7 = vadd.f32 %v5075_v20, %v4906_v35  ;;  %v2111_v8 = vmul.f32 0.015625, %v2095_v11 }
 0x27c   : > { %v3441_v62 = vpop.eup %3440  ;;  %3458 = vpow2.f32 %v1037_v53  ;;  %v2158_v46 = vmul.f32 %v5019_v61, %v2133_v17  ;;  %v1144_v2 = vadd.f32 %v3437_v34, %v4984_v56  ;;  %v2034_v26 = vadd.f32 %v3439_v38, %v5026_v16 }
 0x27d   : > { %v3443_v50 = vpop.eup %3442  ;;  %v2043_v22 = vadd.f32 %v3441_v62, %v5030_v40  ;;  %3460 = vlog2.f32 %v720_v43  ;;  %v1810_v18 = vmul.f32 %v1743_v58, %v4321_v41  ;;  %v1811_v6 = vmul.f32 %v1745_v3, %v4321_v41 }
 0x27e   : > { %3462 = vlog2.f32 %v721_v21  ;;  %v5127_v45 = vmul.f32 1.442695, %v2151_v15  ;;  %v5129_v35 = vpop.eup %3444  ;;  %v2051_v20 = vadd.f32 %v3429_v1, %v4946_v0  ;;  %v1136_v11 = vrot.slane %v1135_v31, 4 }
 0x27f   : > { %3464 = vlog2.f32 %v2110_v13  ;;  %v5133_v56 = vmul.f32 %v5019_v61, %v2131_v57  ;;  %v3447_v16 = vpop.eup %3446  ;;  %v2060_v40 = vadd.f32 %v3443_v50, %v4957_v19  ;;  %v2044_v55 = vrot.slane %v2043_v22, 4 }
 0x280   : > { %3466 = vpow2.f32 %v5049_v10  ;;  %v2181_v42 = vmul.f32 1.442695, %v2158_v46  ;;  %v3449_v30 = vpop.eup %3448  ;;  %v1145_v51 = vrot.slane %v1144_v2, 4  ;;  %v2035_v29 = vrot.slane %v2034_v26, 4 }
 0x281   : > { %v2052_v32 = vadd.f32 %v3447_v16, %v2051_v20  ;;  %3468 = vlog2.f32 %v2111_v8  ;;  %v3451_v23 = vpop.eup %3450  ;;  %v1934_v24 = vmul.f32 1.442695, %v1810_v18  ;;  %v1936_v0 = vmul.f32 1.442695, %v1811_v6 }
 0x282   : > { %v2061_v1 = vadd.f32 %v3449_v30, %v2060_v40  ;;  %3470 = vpow2.f32 %v5058_v4  ;;  %v3453_v54 = vpop.eup %3452  ;;  %v1137_v25 = vadd.f32 %v1136_v11, %v1135_v31  ;;  %v1153_v14 = vadd.f32 %v3451_v23, %v1152_v48 }
 0x283   : > { %v2053_v47 = vrot.slane %v2052_v32, 4  ;;  %3472 = vpow2.f32 %v5060_v59  ;;  %v2045_v10 = vadd.f32 %v2044_v55, %v2043_v22  ;;  %v1162_v49 = vadd.f32 %v3453_v54, %v1161_v7 }
 0x284   : > { %v3455_v19 = vpop.eup %3454  ;;  %v2062_v33 = vrot.slane %v2061_v1, 4  ;;  %3474 = vpow2.f32 %v2181_v42  ;;  %v1146_v39 = vadd.f32 %v1145_v51, %v1144_v2  ;;  %v2036_v52 = vadd.f32 %v2035_v29, %v2034_v26 }
 0x285   : > { %v3457_v27 = vpop.eup %3456  ;;  %v2054_v12 = vadd.f32 %v2053_v47, %v2052_v32  ;;  %v1154_v15 = vrot.slane %v1153_v14, 4  ;;  %v1163_v53 = vrot.slane %v1162_v49, 4  ;;  %v1747_v17 = vmul.f32 0.6931472, %v3455_v19 }
 0x286   : > { %v5139_v63 = vpop.eup %3458  ;;  %v2063_v4 = vadd.f32 %v2062_v33, %v2061_v1  ;;  %v5142_v59 = vmul.f32 1.442695, %v5109_v9  ;;  %v1138_v43 = vrot.slane %v1137_v25, 2  ;;  %3476 = vpow2.f32 %v1934_v24 }
 0x287   : > { %v3461_v48 = vpop.eup %3460  ;;  %v1155_v34 = vadd.f32 %v1154_v15, %v1153_v14  ;;  %v1749_v58 = vmul.f32 0.6931472, %v3457_v27  ;;  %3478 = vpow2.f32 %v1936_v0  ;;  %v2046_v21 = vrot.slane %v2045_v10, 2 }
 0x288   : > { %v3463_v3 = vpop.eup %3462  ;;  %v1164_v38 = vadd.f32 %v1163_v53, %v1162_v49  ;;  %v1812_v13 = vmul.f32 %v1747_v17, %v4321_v41  ;;  %v1147_v57 = vrot.slane %v1146_v39, 2  ;;  %v2037_v62 = vrot.slane %v2036_v52, 2 }
 0x289   : > { %v3465_v31 = vpop.eup %3464  ;;  %v2055_v7 = vrot.slane %v2054_v12, 2  ;;  %v1813_v8 = vmul.f32 %v1749_v58, %v4321_v41  ;;  %v2064_v9 = vrot.slane %v2063_v4, 2  ;;  %v1156_v50 = vrot.slane %v1155_v34, 2 }
 0x28a   : > { %v3467_v46 = vpop.eup %3466  ;;  %v1938_v2 = vmul.f32 1.442695, %v1812_v13  ;;  %v847_v26 = vmul.f32 0.6931472, %v3461_v48  ;;  %v1139_v18 = vadd.f32 %v1138_v43, %v1137_v25  ;;  %v1165_v6 = vrot.slane %v1164_v38, 2 }
 0x28b   : > { %v3469_v22 = vpop.eup %3468  ;;  %v1940_v20 = vmul.f32 1.442695, %v1813_v8  ;;  %v849_v11 = vmul.f32 0.6931472, %v3463_v3  ;;  %v2047_v40 = vadd.f32 %v2046_v21, %v2045_v10  ;;  %v2135_v42 = vmul.f32 0.6931472, %v3465_v31 }
 0x28c   : > { %v3471_v16 = vpop.eup %3470  ;;  %3480 = vpow2.f32 %v1938_v2  ;;  %v913_v55 = vmul.f32 %v847_v26, %v4321_v41  ;;  %v1148_v51 = vadd.f32 %v1147_v57, %v1146_v39  ;;  %v2038_v29 = vadd.f32 %v2037_v62, %v2036_v52 }
 0x28d   : > { %v3473_v30 = vpop.eup %3472  ;;  %3482 = vpow2.f32 %v1940_v20  ;;  %v914_v32 = vmul.f32 %v849_v11, %v4321_v41  ;;  %v2056_v24 = vadd.f32 %v2055_v7, %v2054_v12  ;;  %v2065_v0 = vadd.f32 %v2064_v9, %v2063_v4 }
 0x28e   : > { %v3475_v23 = vpop.eup %3474  ;;  %v1157_v1 = vadd.f32 %v1156_v50, %v1155_v34  ;;  %v1039_v54 = vmul.f32 1.442695, %v913_v55  ;;  %v1166_v25 = vadd.f32 %v1165_v6, %v1164_v38  ;;  %v2137_v14 = vmul.f32 0.6931472, %v3469_v22 }
 0x28f   : > { %v1041_v47 = vmul.f32 1.442695, %v914_v32  ;;  %v2268_v19 = vsel %vm2254_vm0, %v3471_v16, %v3467_v46  ;;  %v1140_v10 = vrot.slane %v1139_v18, 1  ;;  %v2048_v33 = vrot.slane %v2047_v40, 1 }
 0x290   : > { %3484 = vpow2.f32 %v1039_v54  ;;  %v2269_v49 = vsel %vm2256_vm1, %v3473_v30, %v2268_v19  ;;  %v3477_v27 = vpop.eup %3476  ;;  %v2039_v39 = vrot.slane %v2038_v29, 1  ;;  %v2160_v41 = vmul.f32 %v5019_v61, %v2137_v14 }
 0x291   : > { %3486 = vpow2.f32 %v1041_v47  ;;  %v5152_v52 = vsel %vm2258_vm2, %v3475_v23, %v2269_v49  ;;  %v3479_v12 = vpop.eup %3478  ;;  %v1149_v15 = vrot.slane %v1148_v51, 1  ;;  %v2057_v4 = vrot.slane %v2056_v24, 1 }
 0x292   : > { %v1158_v53 = vrot.slane %v1157_v1, 1  ;;  %v2159_v17 = vmul.f32 %v5019_v61, %v2135_v42  ;;  %v2066_v48 = vrot.slane %v2065_v0, 1  ;;  %v1167_v43 = vrot.slane %v1166_v25, 1 }
 0x293   : > { %v2185_v34 = vmul.f32 1.442695, %v2160_v41  ;;  %3488 = vpow2.f32 %v5127_v45  ;;  %v2049_v58 = vadd.f32 %v2048_v33, %v2047_v40  ;;  %v2175_v3 = vmul.f32 1.442695, %v5115_v5 }
 0x294   : > { %3490 = vpow2.f32 %v5142_v59  ;;  %v2179_v21 = vmul.f32 1.442695, %v5133_v56  ;;  %v2069_v38 = vadd.f32 %v3477_v27, %v5097_v44  ;;  %v2078_v13 = vadd.f32 %v3479_v12, %v5103_v37 }
 0x295   : > { %v2040_v31 = vadd.f32 %v2039_v39, %v2038_v29  ;;  %3492 = vpow2.f32 %v2185_v34  ;;  %v1141_v62 = vadd.f32 %v1140_v10, %v1139_v18  ;;  %v1150_v7 = vadd.f32 %v1149_v15, %v1148_v51 }
 0x296   : > { %v3481_v57 = vpop.eup %3480  ;;  %v2058_v8 = vadd.f32 %v2057_v4, %v2056_v24  ;;  %v1159_v46 = vadd.f32 %v1158_v53, %v1157_v1  ;;  %v1168_v50 = vadd.f32 %v1167_v43, %v1166_v25  ;;  %v2067_v2 = vadd.f32 %v2066_v48, %v2065_v0 }
 0x297   : > { %v3483_v9 = vpop.eup %3482  ;;  %v2070_v45 = vadd.f32 %v3481_v57, %v2069_v38  ;;  %v2183_v59 = vmul.f32 1.442695, %v2159_v17  ;;  %v1178_v5 = vadd.f32 %v4980_v28, %v4973_v60  ;;  %v2097_v26 = vadd.f32 %v2049_v58, %v1150_v7 }
 0x298   : > { %v2079_v56 = vadd.f32 %v3483_v9, %v2078_v13  ;;  %v1170_v44 = vadd.f32 %v5129_v35, %v5016_v36  ;;  %v2096_v22 = vadd.f32 %v2040_v31, %v1141_v62  ;;  %3494 = vpow2.f32 %v2175_v3 }
 0x299   : > { %v2071_v37 = vrot.slane %v2070_v45, 4  ;;  %v1179_v6 = vadd.f32 %v5139_v63, %v1178_v5  ;;  %v2098_v11 = vadd.f32 %v2058_v8, %v1159_v46  ;;  %3496 = vpow2.f32 %v2179_v21 }
 0x29a   : > { %v3485_v18 = vpop.eup %3484  ;;  %v2080_v20 = vrot.slane %v2079_v56, 4  ;;  %v2099_v42 = vadd.f32 %v2067_v2, %v1168_v50  ;;  %3498 = vpow2.f32 %v2183_v59  ;;  %v2113_v30 = vmul.f32 0.015625, %v2097_v26 }
 0x29b   : > { %v3487_v16 = vpop.eup %3486  ;;  %v2072_v40 = vadd.f32 %v2071_v37, %v2070_v45  ;;  %v1171_v55 = vadd.f32 %v3485_v18, %v1170_v44  ;;  %v2112_v35 = vmul.f32 0.015625, %v2096_v22  ;;  %v2114_v63 = vmul.f32 0.015625, %v2098_v11 }
 0x29c   : > { %v2081_v60 = vadd.f32 %v2080_v20, %v2079_v56  ;;  %v1180_v28 = vadd.f32 %v3487_v16, %v1179_v6  ;;  %v2115_v25 = vmul.f32 0.015625, %v2099_v42  ;;  %3500 = vlog2.f32 %v2113_v30 }
 0x29d   : > { %v3489_v51 = vpop.eup %3488  ;;  %v2073_v29 = vrot.slane %v2072_v40, 2  ;;  %v1172_v36 = vrot.slane %v1171_v55, 4  ;;  %3502 = vlog2.f32 %v2112_v35 }
 0x29e   : > { %v3491_v32 = vpop.eup %3490  ;;  %v2082_v23 = vrot.slane %v2081_v60, 2  ;;  %v1181_v24 = vrot.slane %v1180_v28, 4  ;;  %3504 = vlog2.f32 %v2114_v63 }
 0x29f   : > { %v3493_v0 = vpop.eup %3492  ;;  %v2074_v1 = vadd.f32 %v2073_v29, %v2072_v40  ;;  %v1173_v54 = vadd.f32 %v1172_v36, %v1171_v55  ;;  %v2255_v47 = vsel %vm2254_vm0, %v3491_v32, %v3489_v51  ;;  %3506 = vlog2.f32 %v2115_v25  ;;  %v2652_v25 = vld [vmem:[#allocation9] ss:$0 sm:$0xff] }
 0x2a0   : > { %v2083_v14 = vadd.f32 %v2082_v23, %v2081_v60  ;;  %v1182_v19 = vadd.f32 %v1181_v24, %v1180_v28  ;;  %v5169_v10 = vsel %vm2260_vm3, %v3493_v0, %v5152_v52 }
 0x2a1   : > { %v2075_v33 = vrot.slane %v2074_v1, 1  ;;  %v1174_v49 = vrot.slane %v1173_v54, 2 }
 0x2a2   : > { %v2084_v27 = vrot.slane %v2083_v14, 1  ;;  %v1183_v39 = vrot.slane %v1182_v19, 2  ;;  %v3495_v41 = vpop.eup %3494 }
 0x2a3   : > { %v1175_v12 = vadd.f32 %v1174_v49, %v1173_v54  ;;  %v3497_v15 = vpop.eup %3496  ;;  %v2076_v17 = vadd.f32 %v2075_v33, %v2074_v1  ;;  %v2257_v43 = vsel %vm2256_vm1, %v3495_v41, %v2255_v47  ;;  %v300_v49 = vstv %s2587_s30 }
 0x2a4   : > { %v1184_v4 = vadd.f32 %v1183_v39, %v1182_v19  ;;  %v3499_v53 = vpop.eup %3498  ;;  %v2085_v58 = vadd.f32 %v2084_v27, %v2083_v14  ;;  %v2259_v52 = vsel %vm2258_vm2, %v3497_v15, %v2257_v43 }
 0x2a5   : > { %v1176_v48 = vrot.slane %v1175_v12, 1  ;;  %v2261_v21 = vsel %vm2260_vm3, %v3499_v53, %v2259_v52 }
 0x2a6   : > { %v1185_v34 = vrot.slane %v1184_v4, 1  ;;  %v3501_v31 = vpop.eup %3500 }
 0x2a7   : > { %v1177_v3 = vadd.f32 %v1176_v48, %v1175_v12  ;;  %v3503_v62 = vpop.eup %3502  ;;  %v2141_v45 = vmul.f32 0.6931472, %v3501_v31 }
 0x2a8   : > { %v1186_v38 = vadd.f32 %v1185_v34, %v1184_v4  ;;  %v3505_v8 = vpop.eup %3504  ;;  %v2139_v50 = vmul.f32 0.6931472, %v3503_v62 }
 0x2a9   : > { %v2100_v13 = vadd.f32 %v2076_v17, %v1177_v3  ;;  %v3507_v9 = vpop.eup %3506  ;;  %v2143_v2 = vmul.f32 0.6931472, %v3505_v8  ;;  %v2162_v5 = vmul.f32 %v5019_v61, %v2141_v45 }
 0x2aa   : > { %v2101_v57 = vadd.f32 %v2085_v58, %v1186_v38  ;;  %v2145_v59 = vmul.f32 0.6931472, %v3507_v9  ;;  %v2161_v56 = vmul.f32 %v5019_v61, %v2139_v50 }
 0x2ab   : > { %v2116_v7 = vmul.f32 0.015625, %v2100_v13  ;;  %v2163_v26 = vmul.f32 %v5019_v61, %v2143_v2  ;;  %v2189_v37 = vmul.f32 1.442695, %v2162_v5 }
 0x2ac   : > { %v2117_v46 = vmul.f32 0.015625, %v2101_v57  ;;  %v2164_v44 = vmul.f32 %v5019_v61, %v2145_v59  ;;  %v2187_v22 = vmul.f32 1.442695, %v2161_v56 }
 0x2ad   : > { %3508 = vlog2.f32 %v2116_v7  ;;  %v2191_v6 = vmul.f32 1.442695, %v2163_v26 }
 0x2ae   : > { %3510 = vlog2.f32 %v2117_v46  ;;  %v2193_v11 = vmul.f32 1.442695, %v2164_v44 }
 0x2af   : > { %3512 = vpow2.f32 %v2189_v37 }
 0x2b0   : > { %3514 = vpow2.f32 %v2187_v22 }
 0x2b1   : > { %3516 = vpow2.f32 %v2191_v6 }
 0x2b2   : > { %3518 = vpow2.f32 %v2193_v11 }
 0x2b7   : > { %v3509_v18 = vpop.eup %3508 }
 0x2b8   : > { %v3511_v20 = vpop.eup %3510  ;;  %v2147_v16 = vmul.f32 0.6931472, %v3509_v18 }
 0x2b9   : > { %v2149_v40 = vmul.f32 0.6931472, %v3511_v20  ;;  %v3513_v30 = vpop.eup %3512 }
 0x2ba   : > { %v2165_v55 = vmul.f32 %v5019_v61, %v2147_v16  ;;  %v3515_v51 = vpop.eup %3514  ;;  %v2272_v23 = vsel %vm2262_vm4, %v3513_v30, %v5169_v10 }
 0x2bb   : > { %v2166_v42 = vmul.f32 %v5019_v61, %v2149_v40  ;;  %v3517_v29 = vpop.eup %3516  ;;  %v2263_v35 = vsel %vm2262_vm4, %v3515_v51, %v2261_v21 }
 0x2bc   : > { %v2195_v60 = vmul.f32 1.442695, %v2165_v55  ;;  %v3519_v36 = vpop.eup %3518  ;;  %v2265_v24 = vsel %vm2264_vm5, %v3517_v29, %v2263_v35 }
 0x2bd   : > { %v2197_v28 = vmul.f32 1.442695, %v2166_v42  ;;  %v2273_v61 = vsel %vm2264_vm5, %v3519_v36, %v2272_v23 }
 0x2be   : > { %3520 = vpow2.f32 %v2195_v60 }
 0x2bf   : > { %3522 = vpow2.f32 %v2197_v28 }
 0x2c0   : > { %3524 = vrcp.f32 %v300_v49 }
 0x2c8   : > { %v3521_v32 = vpop.eup %3520 }
 0x2c9   : > { %v3523_v63 = vpop.eup %3522  ;;  %v2267_v0 = vsel %vm2266_vm6, %v3521_v32, %v2265_v24 }
 0x2ca   : > { %v2274_v1 = vsel %vm2266_vm6, %v3523_v63, %v2273_v61  ;;  %v3525_v10 = vpop.eup %3524 }
 0x2cb   : > { %2341 = vmatprep.mubr.f32.mxu0 %v2274_v1  ;;  %2730 = vpush %v3525_v10 }
 0x2cc   : > { %2342 = vmatmul.mubr.f32.vlgmr.msra.gmra.mrb[0].mxu0 %v2267_v0 }
 0x39f   : > { %v2693_v54 = vpop.f32.mrb[0].mxu0 }
 0x3a0   : > { %v2694_v47 = vpop.f32.mrb[1].mxu0 }
 0x3a1   : > { %v2695_v14 = vadd.f32 %v2694_v47, %v2693_v54 }
 0x3a3   : > { %v2344_v19 = vadd.f32 %v2695_v14, %v2652_v25 }
 0x3a5   : > { %v2347_v33 = vmul.f32 %v2344_v19, %v2344_v19 }
 0x3a7   : > { %2348 = vadd.xlane.f32.xlu0 %v2347_v33 }
 0x434   : > { %v2349_v27 = vpop.xlane.xlu0 %2348 }
 0x435   : > { %v2350_v39 = vmax.f32 %v2349_v27, 1e-24 }
 0x437   : > { %3526 = vrsqrt.f32 %v2350_v39 }
 0x441   : > { %v3527_v41 = vpop.eup %3526 }
 0x442   : > { %v2352_v12 = vmul.f32 %v3527_v41, %v2344_v19 }
 0x444   : > { %v2355_v15 = vcombine.high %v2352_v12, %v2352_v12  ;;  %v2357_v4 = vmax.f32 %v2352_v12, 1e-06  ;;  %2353 = vst [vmem:[%s286_s10] sm:$0xff] %v2352_v12 }
 0x445   : > { %3766 = shalt.err (!%p3763_p12)
}
 0x446   : > { %s3767_s24 = scalar_lea.hbm %s5186_s7, 128  ;;  %s3771_s8 = scalar_lea.hbm %s5265_s4, 512 }
 0x447   : > { %p3768_p11 = scmp.ne.s32.totalorder %s5186_s7, %s3767_s24  ;;  %p3772_p10 = scmp.lt.u32.totalorder %s5186_s7, %s5265_s4 }
 0x448   : > { %p3773_p13 = scmp.lt.u32.totalorder %s3771_s8, %s3767_s24  ;;  %p3775_p3 = scmp.lt.u32.totalorder %s3767_s24, %s5186_s7 }
 0x449   : > { %p3769_p2 = pnand %p3768_p11, %p4034_p7 }
 0x44a   : > { %p3774_p0 = por %p3773_p13, %p3772_p10 }
 0x44b   : > { %p3770_p8 = pneg %p3769_p2 }
 0x44c   : > { %p3776_p5 = por %p3775_p3, %p3774_p0 }
 0x44e   : > { %p3777_p9 = pnand %p3776_p5, %p3770_p8 }
 0x450   : > { %3780 = shalt.err (!%p3777_p9)
}
 0x451   : > { %2746 = dma.vmem_to_hbm [thread:$0]  (%p4034_p7), %s5188_s16, 128, %s5186_s7, %s2405_s11   ;;  %v2358_v53 = vmax.f32 %v2355_v15, 1e-06  ;;  %3528 = vlog2.f32 %v2357_v4  ;;  %vm2370_vm7 = vcmask 1043456  }
 0x452   : > { %s2731_s16 = spop %2730  ;;  %s2586_s23 = sshll.u32 %s4086_s29, 1 }
 0x453   : > { %3530 = vlog2.f32 %v2358_v53  ;;  %v2392_v18 = vstv %s2731_s16  ;;  %s2656_s27 = sshll.u32 %s3922_s22, 5  ;;  %s293_s7 = scalar_lea.vmem [#allocation11], %s2586_s23 }
 0x454   : > { %s2436_s11 = sshll.u32 %s293_s7, 4  ;;  %s5217_s17 = scalar_lea.hbm %s5266_s5, %s2656_s27  ;;  %s5219_s11 = int_to_ptr.vmem [resolvable:$true] %s2436_s11 }
 0x455   : > { %s2410_s6 = scalar_lea.sflag [#allocation12], %s4086_s29  ;;  %s3781_s24 = scalar_lea.vmem %s5219_s11, 32 }
 0x456   : > { %p3782_p1 = scmp.ne.s32.totalorder %s5219_s11, %s3781_s24  ;;  %s3870_s22 = smov [#allocation11]  }
 0x457   : > { %s3785_s26 = sshll.u32 %s3870_s22, 4  ;;  %s3786_s26 = int_to_ptr.vmem [resolvable:$false] %s3785_s26 }
 0x458   : > { %p3783_p4 = pnand %p3782_p1, %p4034_p7  ;;  %s3787_s30 = scalar_lea.vmem %s3786_s26, 64 }
 0x459   : > { %p3788_p12 = scmp.lt.s32.totalorder %s5219_s11, %s3786_s26  ;;  %p3789_p11 = scmp.lt.s32.totalorder %s3787_s30, %s3781_s24 }
 0x45a   : > { %p3784_p6 = pneg %p3783_p4 }
 0x45b   : > { %v3529_v17 = vpop.eup %3528  ;;  %p3790_p2 = por %p3789_p11, %p3788_p12 }
 0x45c   : > { %v2360_v48 = vmul.f32 0.6931472, %v3529_v17 }
 0x45d   : > { %v3531_v43 = vpop.eup %3530  ;;  %p3791_p8 = pnand %p3790_p2, %p3784_p6 }
 0x45e   : > { %v2362_v34 = vmul.f32 0.6931472, %v3531_v43  ;;  %v2364_v58 = vmul.f32 %v2360_v48, %v300_v49 }
 0x460   : > { %v2365_v52 = vmul.f32 %v2362_v34, %v300_v49  ;;  %v2366_v3 = vmul.f32 1.442695, %v2364_v58 }
 0x462   : > { %3532 = vpow2.f32 %v2366_v3  ;;  %v2368_v21 = vmul.f32 1.442695, %v2365_v52 }
 0x464   : > { %3534 = vpow2.f32 %v2368_v21 }
 0x46c   : > { %v3533_v38 = vpop.eup %3532 }
 0x46d   : > { %v2371_v13 = vsel %vm2370_vm7, %v3533_v38, 0.0 }
 0x46e   : > { %v3535_v31 = vpop.eup %3534  ;;  %v2372_v57 = vrot.slane %v2371_v13, 4 }
 0x46f   : > { %v2378_v62 = vsel %vm2370_vm7, %v3535_v31, 0.0 }
 0x470   : > { %v2373_v7 = vadd.f32 %v2372_v57, %v2371_v13  ;;  %v2379_v8 = vrot.slane %v2378_v62, 4 }
 0x472   : > { %v2374_v46 = vrot.slane %v2373_v7, 2  ;;  %v2380_v9 = vadd.f32 %v2379_v8, %v2378_v62 }
 0x474   : > { %v2375_v45 = vadd.f32 %v2374_v46, %v2373_v7  ;;  %v2381_v50 = vrot.slane %v2380_v9, 2 }
 0x476   : > { %v2376_v2 = vrot.slane %v2375_v45, 1  ;;  %v2382_v59 = vadd.f32 %v2381_v50, %v2380_v9 }
 0x478   : > { %v2377_v5 = vadd.f32 %v2376_v2, %v2375_v45  ;;  %v2383_v56 = vrot.slane %v2382_v59, 1 }
 0x47a   : > { %v2384_v26 = vadd.f32 %v2383_v56, %v2382_v59  ;;  %v2386_v44 = vmul.f32 0.25, %v2377_v5 }
 0x47c   : > { %v2387_v37 = vmul.f32 0.25, %v2384_v26  ;;  %3536 = vlog2.f32 %v2386_v44 }
 0x47e   : > { %3538 = vlog2.f32 %v2387_v37 }
 0x486   : > { %v3537_v22 = vpop.eup %3536 }
 0x487   : > { %v2389_v6 = vmul.f32 0.6931472, %v3537_v22 }
 0x488   : > { %v3539_v20 = vpop.eup %3538 }
 0x489   : > { %v2391_v11 = vmul.f32 0.6931472, %v3539_v20  ;;  %v2393_v16 = vmul.f32 %v2392_v18, %v2389_v6 }
 0x48b   : > { %v2394_v40 = vmul.f32 %v2392_v18, %v2391_v11  ;;  %v2395_v55 = vmul.f32 1.442695, %v2393_v16 }
 0x48d   : > { %v2397_v42 = vmul.f32 1.442695, %v2394_v40  ;;  %3540 = vpow2.f32 %v2395_v55 }
 0x48f   : > { %3542 = vpow2.f32 %v2397_v42 }
 0x497   : > { %v3541_v60 = vpop.eup %3540 }
 0x499   : > { %v3543_v28 = vpop.eup %3542 }
 0x49a   : > { %v2401_v30 = vsel %vm2254_vm0, %v3543_v28, %v3541_v60 }
 0x49b   : > { %2403 = vst [vmem:[%s293_s7] sm:$0x3] %v2401_v30 }
 0x49c   : > { %3794 = shalt.err (!%p3791_p8)
}
 0x49d   : > { %s3795_s29 = scalar_lea.hbm %s5217_s17, 32  ;;  %s3799_s10 = scalar_lea.hbm %s5266_s5, 128 }
 0x49e   : > { %p3796_p10 = scmp.ne.s32.totalorder %s5217_s17, %s3795_s29  ;;  %p3800_p3 = scmp.lt.u32.totalorder %s5217_s17, %s5266_s5 }
 0x49f   : > { %p3801_p5 = scmp.lt.u32.totalorder %s3799_s10, %s3795_s29  ;;  %p3803_p1 = scmp.lt.u32.totalorder %s3795_s29, %s5217_s17 }
 0x4a0   : > { %p3797_p13 = pnand %p3796_p10, %p4034_p7 }
 0x4a1   : > { %p3802_p9 = por %p3801_p5, %p3800_p3 }
 0x4a2   : > { %p3798_p0 = pneg %p3797_p13 }
 0x4a3   : > { %p3804_p4 = por %p3803_p1, %p3802_p9 }
 0x4a5   : > { %p3805_p6 = pnand %p3804_p4, %p3798_p0 }
 0x4a7   : > { %3808 = shalt.err (!%p3805_p6)
}
 0x4a8   : > { %2747 = dma.vmem_to_hbm [thread:$0]  (%p4034_p7), %s5219_s11, 32, %s5217_s17, %s2410_s6  }
 0x4a9 PF: > { %p2778_p12 = scmp.ge.s32.totalorder %s3859_s21, 2  ;;  %s2448_s27 = sand.u32 1, %s3847_s18  }
 0x4aa   : > { %p5314_p11 = scmp.ne.s32.totalorder %s5274_s25, 0  ;;  %s2449_s7 = scalar_lea.sflag [#allocation4], %s2448_s27 }
 0x4ac   : > { %p2765_p2 = pnand %p2778_p12, %p5314_p11 }
 0x4ae   : > { %3838 = dma.done.wait (!%p2765_p2), %s2449_s7, 128  }
 0x4af   : > { %3840 = vsyncadd (!%p2765_p2), %s2449_s7, 4294967168  ;;  %s2458_s13 = scalar_lea.sflag [#allocation12], %s2448_s27 }
 0x4b0   : > { %3842 = dma.done.wait (!%p2765_p2), %s2458_s13, 32  }
 0x4b1   : > { %3844 = vsyncadd (!%p2765_p2), %s2458_s13, 4294967264  ;;  %p24_p7 = scmp.ge.s32.totalorder %s4020_s12, 6   ;;  %s5315_s18 = smov %s3851_s19 }
 0x4b2   : > { %s5316_s19 = smov %s3855_s20  ;;  %s5317_s20 = smov %s4030_s28 }
 0x4b3   : > { %s5318_s21 = smov %s4020_s12  ;;  %26 = sbr.rel (!%p24_p7) target bundleno = 9 (0x9), region = 113 }
 0x4ba   :  { %2463 = vsyncpa [#allocation3], 1 }
 0x4bb   :  { %2465 = vsyncpa [#allocation3 + $0x1], 1 }
 0x4bc   :  { %2466 = vsyncpa [#allocation8], 1 }
 0x4bd   :  { %2467 = vsyncpa [#allocation4], 1 }
 0x4be   :  { %2469 = vsyncpa [#allocation4 + $0x1], 1 }
 0x4bf   :  { %2470 = vsyncpa [#allocation12], 1 }
 0x4c0   :  { %2472 = vsyncpa [#allocation12 + $0x1], 1 }
 0x4c1   :  { %2473 = vsyncpa [#allocation5], 1 }
 0x4c2   :  { %2475 = vsyncpa [#allocation5 + $0x1], 1 }

// kernel: tpu_custom_call.1
= control target key start
LH: loop header
LB: loop body
LE: loop exit
PB: predicated region body
PF: predicated region fallthrough
CT: control target
= control target key end

     0   :  { %11 = vsyncpa [#allocation5], 0  ;;  %s5261_s0 = inlined_call_operand.hbm [shape: f32[2], index: 0, kind: input, shape index: {}]   ;;  %s5262_s1 = inlined_call_operand.hbm [shape: f32[32,64,256], index: 1, kind: input, shape index: {}]   ;;  %s5263_s2 = inlined_call_operand.hbm [shape: f32[256,128], index: 2, kind: input, shape index: {}]   ;;  %s5264_s3 = inlined_call_operand.hbm [shape: f32[1,128], index: 3, kind: input, shape index: {}]   ;;  %s5265_s4 = inlined_call_operand.hbm [shape: f32[4,8,128], index: 4, kind: output, shape index: {0}]   ;;  %s5266_s5 = inlined_call_operand.hbm [shape: f32[4,2,128], index: 5, kind: output, shape index: {1}]  }
   0x1   :  { %12 = vsyncpa [#allocation3], 0 }
   0x2   :  { %14 = vsyncpa [#allocation3 + $0x1], 0 }
   0x3   :  { %15 = vsyncpa [#allocation8], 0 }
   0x4   :  { %16 = vsyncpa [#allocation4], 0 }
   0x5   :  { %18 = vsyncpa [#allocation4 + $0x1], 0 }
   0x6   :  { %19 = vsyncpa [#allocation12], 0 }
   0x7   :  { %21 = vsyncpa [#allocation12 + $0x1], 0  ;;  %s3901_s18 = smov 0   ;;  %s3903_s19 = smov 0  }
   0x8   :  { %s3905_s20 = smov 0   ;;  %s3907_s21 = smov 0  }
   0x9 LB: > { %s3922_s22 = sadd.s32 4294967295, %s3859_s21   ;;  %s2570_s23 = sadd.s32 4294967294, %s3859_s21   ;;  %s3859_s21 = sphi %s3907_s21, %s5318_s21   ;;  %s3855_s20 = sphi %s3905_s20, %s5317_s20   ;;  %s3851_s19 = sphi %s3903_s19, %s5316_s19   ;;  %s3847_s18 = sphi %s3901_s18, %s5315_s18  }
   0xa   : > { %p68_p0 = scmp.ne.s32.totalorder %s3851_s19, %s3847_s18  ;;  %p5267_p1 = scmp.eq.s32.totalorder %s3922_s22, 0 }
   0xb   : > { %p140_p3 = scmp.eq.s32.totalorder %s2570_s23, 3  ;;  %p2571_p5 = scmp.ge.s32.totalorder %s3859_s21, 1 }
   0xc   : > { %p3931_p4 = por %p5267_p1, %p68_p0  ;;  %p173_p7 = scmp.lt.s32.totalorder %s3859_s21, 5 }
   0xd   : > { %p3936_p6 = por %p140_p3, %p68_p0  ;;  %s3861_s27 = smov [#allocation7]  }
   0xe   : > { %s5273_s24 = scalar_select %p3931_p4, 1, 0 }
   0xf   : > { %s5274_s25 = scalar_select %p3936_p6, 1, 0 }
  0x10   : > { %p3941_p8 = pnand %p2571_p5, %p173_p7  ;;  %s194_s28 = sshll.u32 %s3861_s27, 4  ;;  %s195_s28 = int_to_ptr.vmem [resolvable:$true] %s194_s28 }
  0x11   : > { %s3862_s30 = smov [#allocation9]   ;;  %s3654_s9 = scalar_lea.hbm %s5263_s2, 4096 }
  0x12   : > { %s5275_s26 = scalar_select %p3941_p8, 1, 0 }
  0x13   : > { %p2750_p9 = pneg %p3941_p8  ;;  %s208_s6 = sshll.u32 %s3862_s30, 4  ;;  %s3953_s6 = int_to_ptr.vmem [resolvable:$true] %s208_s6 }
  0x14   : > { %p3655_p11 = scmp.ne.s32.totalorder %s5263_s2, %s3654_s9  ;;  %p3661_p3 = scmp.lt.u32.totalorder %s3654_s9, %s5263_s2 }
  0x15   : > { %p3949_p10 = pnand %p2750_p9, %p5267_p1 }
  0x17   : > { %p3963_p12 = pneg %p3949_p10 }
  0x19   : > { %p3657_p13 = pnand %p3963_p12, %p3655_p11 }
  0x1b   : > { %p3658_p0 = pneg %p3657_p13 }
  0x1d   : > { %p3663_p5 = pnand %p3661_p3, %p3658_p0 }
  0x1f   : > { %3666 = shalt.err (!%p3663_p5)
}
  0x20   : > { %s3667_s15 = scalar_lea.vmem %s195_s28, 4096  ;;  %p3675_p2 = scmp.lt.s32.totalorder %s195_s28, %s195_s28 }
  0x21   : > { %p3668_p7 = scmp.ne.s32.totalorder %s195_s28, %s3667_s15  ;;  %p3676_p6 = scmp.lt.s32.totalorder %s3667_s15, %s3667_s15 }
  0x23   : > { %p3670_p9 = pnand %p3668_p7, %p3963_p12  ;;  %p3677_p4 = por %p3676_p6, %p3675_p2 }
  0x25   : > { %p3671_p1 = pneg %p3670_p9 }
  0x27   : > { %p3678_p8 = pnand %p3677_p4, %p3671_p1 }
  0x29   : > { %3681 = shalt.err (!%p3678_p8)
}
  0x2a   : > { %s3863_s16 = smov 128   ;;  %s3864_s17 = smov 8  }
  0x2b   : > { %2756 = dma.hbm_to_vmem [thread:$0]  (!%p3949_p10), %s5263_s2, 4096, %s195_s28, [#allocation8], %s3863_s16, %s3863_s16, %s3864_s17  }
  0x2c   : > { %s3682_s8 = scalar_lea.hbm %s5261_s0, 16 }
  0x2d   : > { %p3683_p11 = scmp.ne.s32.totalorder %s5261_s0, %s3682_s8  ;;  %p3689_p4 = scmp.lt.u32.totalorder %s3682_s8, %s5261_s0 }
  0x2f   : > { %p3685_p1 = pnand %p3683_p11, %p3963_p12 }
  0x31   : > { %p3686_p2 = pneg %p3685_p1 }
  0x33   : > { %p3691_p6 = pnand %p3689_p4, %p3686_p2 }
  0x35   : > { %3694 = shalt.err (!%p3691_p6)
}
  0x36   : > { %s3865_s14 = smov [#allocation2]   ;;  %s3695_s23 = scalar_lea.hbm %s5264_s3, 16 }
  0x37   : > { %2753 = dma.hbm_to_smem (!%p3949_p10), %s5261_s0, 16, %s3865_s14, [#allocation5]  }
  0x38   : > { %p3696_p8 = scmp.ne.s32.totalorder %s5264_s3, %s3695_s23  ;;  %p3702_p3 = scmp.lt.u32.totalorder %s3695_s23, %s5264_s3 }
  0x3a   : > { %p3698_p13 = pnand %p3696_p8, %p3963_p12 }
  0x3c   : > { %p3699_p0 = pneg %p3698_p13 }
  0x3e   : > { %p3704_p5 = pnand %p3702_p3, %p3699_p0 }
  0x40   : > { %3707 = shalt.err (!%p3704_p5)
}
  0x41   : > { %s3708_s9 = scalar_lea.vmem %s3953_s6, 16  ;;  %s3715_s10 = scalar_lea.vmem %s3953_s6, 32 }
  0x42   : > { %p3709_p7 = scmp.ne.s32.totalorder %s3953_s6, %s3708_s9  ;;  %p3716_p1 = scmp.lt.s32.totalorder %s3953_s6, %s3953_s6 }
  0x43   : > { %p3717_p2 = scmp.lt.s32.totalorder %s3715_s10, %s3708_s9 }
  0x44   : > { %p3711_p9 = pnand %p3709_p7, %p3963_p12 }
  0x45   : > { %p3718_p4 = por %p3717_p2, %p3716_p1 }
  0x46   : > { %p3712_p11 = pneg %p3711_p9 }
  0x48   : > { %p3719_p6 = pnand %p3718_p4, %p3712_p11 }
  0x4a   : > { %3722 = shalt.err (!%p3719_p6)
}
  0x4b   : > { %2759 = dma.hbm_to_vmem [thread:$0]  (!%p3949_p10), %s5264_s3, 16, %s3953_s6, [#allocation8]  }
  0x4c   : > { %s4020_s12 = sadd.s32 1, %s3859_s21   ;;  %s55_s14 = sadd.s32 1, %s3855_s20 }
  0x4d   : > { %s52_s29 = ssub.s32 %s3859_s21, %s4020_s12  ;;  %p62_p8 = scmp.ne.s32.totalorder %s3855_s20, %s3851_s19 }
  0x4e   : > { %p53_p12 = scmp.eq.s32.totalorder %s52_s29, 0  ;;  %p63_p13 = scmp.eq.s32.totalorder %s3859_s21, 0 }
  0x4f   : > { %p2774_p0 = scmp.lt.s32.totalorder %s3859_s21, 4  ;;  %p5278_p5 = scmp.eq.s32.totalorder %s3922_s22, 3 }
  0x50   : > { %s4030_s28 = scalar_select %p53_p12, %s3855_s20, %s55_s14  }
  0x51   : > { %p64_p3 = por %p63_p13, %p62_p8  ;;  %p4034_p7 = por %p5278_p5, %p62_p8 }
  0x52   : > { %s219_s16 = sand.u32 1, %s3855_s20   ;;  %s2660_s17 = sshll.u32 %s3859_s21, 14 }
  0x53   : > { %s2576_s6 = sshll.u32 %s219_s16, 10  ;;  %s4043_s30 = scalar_lea.hbm %s5262_s1, %s2660_s17 }
  0x54   : > { %s223_s7 = scalar_lea.vmem [#allocation6], %s2576_s6  ;;  %p4045_p10 = pnand %p2774_p0, %p64_p3 }
  0x55   : > { %s231_s8 = sshll.u32 %s223_s7, 4  ;;  %s4051_s10 = scalar_lea.sflag [#allocation3], %s219_s16  ;;  %s4049_s8 = int_to_ptr.vmem [resolvable:$true] %s231_s8 }
  0x56   : > { %s3723_s11 = scalar_lea.hbm %s4043_s30, 16384  ;;  %p3725_p11 = pneg %p4045_p10 }
  0x57   : > { %p3724_p9 = scmp.ne.s32.totalorder %s4043_s30, %s3723_s11  ;;  %s3728_s14 = scalar_lea.hbm %s5262_s1, 65536 }
  0x58   : > { %p3729_p4 = scmp.lt.u32.totalorder %s4043_s30, %s5262_s1  ;;  %p3730_p6 = scmp.lt.u32.totalorder %s3728_s14, %s3723_s11 }
  0x59   : > { %p3726_p1 = pnand %p3725_p11, %p3724_p9  ;;  %p3732_p8 = scmp.lt.u32.totalorder %s3723_s11, %s4043_s30 }
  0x5a   : > { %p3731_p12 = por %p3730_p6, %p3729_p4 }
  0x5b   : > { %p3727_p2 = pneg %p3726_p1 }
  0x5c   : > { %p3733_p13 = por %p3732_p8, %p3731_p12 }
  0x5e   : > { %p3734_p0 = pnand %p3733_p13, %p3727_p2 }
  0x60   : > { %3737 = shalt.err (!%p3734_p0)
}
  0x61   : > { %s3738_s16 = scalar_lea.vmem %s4049_s8, 16384  ;;  %s3866_s23 = smov [#allocation6]  }
  0x62   : > { %p3739_p3 = scmp.ne.s32.totalorder %s4049_s8, %s3738_s16  ;;  %s3743_s27 = sshll.u32 %s3866_s23, 4  ;;  %s3744_s27 = int_to_ptr.vmem [resolvable:$false] %s3743_s27 }
  0x63   : > { %s3745_s7 = scalar_lea.vmem %s3744_s27, 32768  ;;  %p3746_p1 = scmp.lt.s32.totalorder %s4049_s8, %s3744_s27 }
  0x64   : > { %p3741_p5 = pnand %p3739_p3, %p3725_p11  ;;  %p3747_p4 = scmp.lt.s32.totalorder %s3745_s7, %s3738_s16 }
  0x66   : > { %p3742_p9 = pneg %p3741_p5  ;;  %p3748_p6 = por %p3747_p4, %p3746_p1 }
  0x68   : > { %p3749_p12 = pnand %p3748_p6, %p3742_p9 }
  0x6a   : > { %3752 = shalt.err (!%p3749_p12)
}
  0x6b   : > { %s3867_s11 = smov 256   ;;  %s3868_s13 = smov 16  }
  0x6c   : > { %2763 = dma.hbm_to_vmem [thread:$0]  (!%p4045_p10), %s4043_s30, 16384, %s4049_s8, %s4051_s10, %s3867_s11, %s3867_s11, %s3868_s13  }
  0x6d   : > { %p5281_p11 = scmp.ne.s32.totalorder %s5275_s26, 0 }
  0x6f   : > { %243 = sbr.rel (%p5281_p11) target bundleno = 1193 (0x4a9), region = 36 }
  0x76   : > { %p5282_p2 = scmp.eq.s32.totalorder %s3922_s22, 0 }
  0x78   : > { %3826 = dma.done.wait (%p5282_p2), [#allocation5], 16   ;;  %p5283_p8 = pmov %p5282_p2 }
  0x79   : > { %s4086_s29 = sand.u32 1, %s3851_s19   ;;  %p5284_p10 = scmp.ne.s32.totalorder %s5273_s24, 0 }
  0x7a   : > { %3828 = vsyncadd (%p5283_p8), [#allocation5], 4294967280  ;;  %s2582_s14 = sshll.u32 %s4086_s29, 10  ;;  %s250_s17 = scalar_lea.sflag [#allocation3], %s4086_s29 }
  0x7b   : > { %s4090_s6 = scalar_lea.vmem [#allocation6], %s2582_s14 }
  0x7c   : > { %3830 = dma.done.wait (%p5284_p10), %s250_s17, 16384  }
  0x7d   : > { %3832 = vsyncadd (%p5284_p10), %s250_s17, 4294950912  ;;  %p5285_p13 = pmov %p5282_p2 }
  0x7e   : > { %p5286_p0 = pmov %p5282_p2 }
  0x7f   : > { %3834 = dma.done.wait (%p5285_p13), [#allocation8], 4112  }
  0x80   : > { %3836 = vsyncadd (%p5286_p0), [#allocation8], 4294963184 }
  0x81   : > { %266 = sfence }
  0x82   : > { %v4101_v0 = vld [vmem:[%s4090_s6 + $0x80] sm:$0xff]  ;;  %v4104_v1 = vld [vmem:[%s4090_s6 + $0x88] sm:$0xff]  ;;  %v4119_v7 = vld [vmem:[%s4090_s6 + $0x90] sm:$0xff]  ;;  %s4308_s24 = sld [smem:[#allocation2]]  ;;  %vm2254_vm0 = vcmask 1041409   ;;  %vm2256_vm1 = vcmask 1042434  }
  0x83   : > { %v4107_v2 = vld [vmem:[%s4090_s6] sm:$0xff]  ;;  %v378_v3 = vmul.f32 %v4101_v0, %v4101_v0  ;;  %v379_v4 = vmul.f32 %v4104_v1, %v4104_v1  ;;  %v4114_v5 = vld [vmem:[%s4090_s6 + $0x8] sm:$0xff]  ;;  %v4122_v8 = vld [vmem:[%s4090_s6 + $0x98] sm:$0xff]  ;;  %v380_v10 = vmul.f32 %v4119_v7, %v4119_v7  ;;  %vm2258_vm2 = vcmask 1043459   ;;  %s2587_s30 = sld [smem:[#allocation2 + $0x1]]  ;;  %s2585_s8 = sshll.u32 %s4086_s29, 3 }
  0x84   : > { %v370_v6 = vmul.f32 %v4107_v2, %v4107_v2  ;;  %v371_v9 = vmul.f32 %v4114_v5, %v4114_v5  ;;  %v381_v11 = vmul.f32 %v4122_v8, %v4122_v8  ;;  %v4131_v12 = vld [vmem:[%s4090_s6 + $0x10] sm:$0xff]  ;;  %v4134_v13 = vld [vmem:[%s4090_s6 + $0x18] sm:$0xff]  ;;  %v4147_v19 = vld [vmem:[%s4090_s6 + $0x40] sm:$0xff]  ;;  %vm2260_vm3 = vcmask 1044484   ;;  %s2655_s9 = sshll.u32 %s3922_s22, 7  ;;  %s286_s10 = scalar_lea.vmem [#allocation10], %s2585_s8 }
  0x85   : > { %v4137_v14 = vld [vmem:[%s4090_s6 + $0x50] sm:$0xff]  ;;  %v446_v15 = vadd.f32 %v379_v4, %v378_v3  ;;  %v372_v16 = vmul.f32 %v4131_v12, %v4131_v12  ;;  %v373_v17 = vmul.f32 %v4134_v13, %v4134_v13  ;;  %v4144_v18 = vld [vmem:[%s4090_s6 + $0x58] sm:$0xff]  ;;  %v4150_v20 = vld [vmem:[%s4090_s6 + $0x48] sm:$0xff]  ;;  %v1270_v26 = vmul.f32 %v4147_v19, %v4147_v19  ;;  %s2423_s16 = sshll.u32 %s286_s10, 4  ;;  %s5186_s7 = scalar_lea.hbm %s5265_s4, %s2655_s9  ;;  %s5188_s16 = int_to_ptr.vmem [resolvable:$true] %s2423_s16 }
  0x86   : > { %v434_v21 = vadd.f32 %v371_v9, %v370_v6  ;;  %v449_v22 = vadd.f32 %v381_v11, %v380_v10  ;;  %v1272_v23 = vmul.f32 %v4137_v14, %v4137_v14  ;;  %v1273_v24 = vmul.f32 %v4144_v18, %v4144_v18  ;;  %v4161_v28 = vld [vmem:[%s4090_s6 + $0xd0] sm:$0xff]  ;;  %v4164_v29 = vld [vmem:[%s4090_s6 + $0xd8] sm:$0xff]  ;;  %v4167_v30 = vld [vmem:[%s4090_s6 + $0xc0] sm:$0xff]  ;;  %s2405_s11 = scalar_lea.sflag [#allocation4], %s4086_s29  ;;  %s3753_s13 = scalar_lea.vmem %s5188_s16, 128 }
  0x87   : > { %447 = vadd.xlane.f32.xlu1 %v446_v15  ;;  %v437_v25 = vadd.f32 %v373_v17, %v372_v16  ;;  %v1271_v27 = vmul.f32 %v4150_v20, %v4150_v20  ;;  %v4170_v31 = vld [vmem:[%s4090_s6 + $0xc8] sm:$0xff]  ;;  %v1280_v33 = vmul.f32 %v4161_v28, %v4161_v28  ;;  %v1281_v34 = vmul.f32 %v4164_v29, %v4164_v29  ;;  %v4181_v38 = vld [vmem:[%s4090_s6 + $0x110] sm:$0xff]  ;;  %v4184_v39 = vld [vmem:[%s4090_s6 + $0x118] sm:$0xff]  ;;  %p3754_p3 = scmp.ne.s32.totalorder %s5188_s16, %s3753_s13  ;;  %s3869_s14 = smov [#allocation10]  }
  0x88   : > { %435 = vadd.xlane.f32.xlu0 %v434_v21  ;;  %v1337_v32 = vadd.f32 %v1273_v24, %v1272_v23  ;;  %v1278_v36 = vmul.f32 %v4167_v30, %v4167_v30  ;;  %v1279_v37 = vmul.f32 %v4170_v31, %v4170_v31  ;;  %v322_v40 = vld [vmem:[%s4090_s6 + $0x100] sm:$0xff]  ;;  %v323_v41 = vld [vmem:[%s4090_s6 + $0x108] sm:$0xff]  ;;  %v388_v43 = vmul.f32 %v4181_v38, %v4181_v38  ;;  %v2606_v48 = vld [vmem:[%s4090_s6 + $0x150] sm:$0xff]  ;;  %s3757_s17 = sshll.u32 %s3869_s14, 4  ;;  %s3758_s17 = int_to_ptr.vmem [resolvable:$false] %s3757_s17 }
  0x89   : > { %v1334_v35 = vadd.f32 %v1271_v27, %v1270_v26  ;;  %v1349_v42 = vadd.f32 %v1281_v34, %v1280_v33  ;;  %v389_v44 = vmul.f32 %v4184_v39, %v4184_v39  ;;  %v386_v46 = vmul.f32 %v322_v40, %v322_v40  ;;  %v2607_v49 = vld [vmem:[%s4090_s6 + $0x158] sm:$0xff]  ;;  %v2604_v50 = vld [vmem:[%s4090_s6 + $0x140] sm:$0xff]  ;;  %v2605_v51 = vld [vmem:[%s4090_s6 + $0x148] sm:$0xff]  ;;  %p3755_p5 = pnand %p3754_p3, %p4034_p7  ;;  %p3760_p1 = scmp.lt.s32.totalorder %s5188_s16, %s3758_s17 }
  0x8a   : > { %v1346_v45 = vadd.f32 %v1279_v37, %v1278_v36  ;;  %v387_v47 = vmul.f32 %v323_v41, %v323_v41  ;;  %v1288_v53 = vmul.f32 %v2606_v48, %v2606_v48  ;;  %v1289_v54 = vmul.f32 %v2607_v49, %v2607_v49  ;;  %v318_v58 = vld [vmem:[%s4090_s6 + $0xa0] sm:$0xff]  ;;  %v319_v59 = vld [vmem:[%s4090_s6 + $0xa8] sm:$0xff]  ;;  %v332_v10 = vld [vmem:[%s4090_s6 + $0x190] sm:$0xff] }
  0x8b   : > { %450 = vadd.xlane.f32.xlu1 %v449_v22  ;;  %v461_v52 = vadd.f32 %v389_v44, %v388_v43  ;;  %v1286_v56 = vmul.f32 %v2604_v50, %v2604_v50  ;;  %v1287_v57 = vmul.f32 %v2605_v51, %v2605_v51  ;;  %v310_v60 = vld [vmem:[%s4090_s6 + $0x20] sm:$0xff]  ;;  %v311_v61 = vld [vmem:[%s4090_s6 + $0x28] sm:$0xff]  ;;  %v382_v63 = vmul.f32 %v318_v58, %v318_v58  ;;  %v333_v11 = vld [vmem:[%s4090_s6 + $0x198] sm:$0xff]  ;;  %p3756_p9 = pneg %p3755_p5 }
  0x8c   : > { %438 = vadd.xlane.f32.xlu0 %v437_v25  ;;  %v458_v55 = vadd.f32 %v387_v47, %v386_v46  ;;  %v1361_v62 = vadd.f32 %v1289_v54, %v1288_v53  ;;  %v383_v3 = vmul.f32 %v319_v59, %v319_v59  ;;  %v374_v6 = vmul.f32 %v310_v60, %v310_v60  ;;  %v330_v15 = vld [vmem:[%s4090_s6 + $0x180] sm:$0xff]  ;;  %v331_v16 = vld [vmem:[%s4090_s6 + $0x188] sm:$0xff]  ;;  %v2615_v43 = vld [vmem:[%s4090_s6 + $0x1d8] sm:$0xff] }
  0x8d   : > { %v1358_v4 = vadd.f32 %v1287_v57, %v1286_v56  ;;  %v375_v9 = vmul.f32 %v311_v61, %v311_v61  ;;  %v396_v21 = vmul.f32 %v332_v10, %v332_v10  ;;  %v397_v22 = vmul.f32 %v333_v11, %v333_v11  ;;  %v2600_v26 = vld [vmem:[%s4090_s6 + $0xe0] sm:$0xff]  ;;  %v2601_v27 = vld [vmem:[%s4090_s6 + $0xe8] sm:$0xff] }
  0x8e   : > { %v452_v17 = vadd.f32 %v383_v3, %v382_v63  ;;  %v394_v24 = vmul.f32 %v330_v15, %v330_v15  ;;  %v395_v25 = vmul.f32 %v331_v16, %v331_v16  ;;  %v2593_v33 = vld [vmem:[%s4090_s6 + $0x68] sm:$0xff]  ;;  %v1283_v36 = vmul.f32 %v2601_v27, %v2601_v27  ;;  %v2612_v44 = vld [vmem:[%s4090_s6 + $0x1c0] sm:$0xff]  ;;  %v340_v3 = vld [vmem:[%s4090_s6 + $0x210] sm:$0xff] }
  0x8f   : > { %1338 = vadd.xlane.f32.xlu1 %v1337_v32  ;;  %v440_v23 = vadd.f32 %v375_v9, %v374_v6  ;;  %v2592_v32 = vld [vmem:[%s4090_s6 + $0x60] sm:$0xff]  ;;  %v473_v34 = vadd.f32 %v397_v22, %v396_v21  ;;  %v1275_v41 = vmul.f32 %v2593_v33, %v2593_v33  ;;  %v1297_v48 = vmul.f32 %v2615_v43, %v2615_v43  ;;  %v339_v53 = vld [vmem:[%s4090_s6 + $0x208] sm:$0xff]  ;;  %v2623_v21 = vld [vmem:[%s4090_s6 + $0x258] sm:$0xff] }
  0x90   : > { %1335 = vadd.xlane.f32.xlu0 %v1334_v35  ;;  %v1282_v35 = vmul.f32 %v2600_v26, %v2600_v26  ;;  %v470_v37 = vadd.f32 %v395_v25, %v394_v24  ;;  %v1274_v40 = vmul.f32 %v2592_v32, %v2592_v32  ;;  %v1294_v50 = vmul.f32 %v2612_v44, %v2612_v44  ;;  %v326_v54 = vld [vmem:[%s4090_s6 + $0x120] sm:$0xff]  ;;  %v2609_v63 = vld [vmem:[%s4090_s6 + $0x168] sm:$0xff] }
  0x91   : > { %v403_v58 = vmul.f32 %v339_v53, %v339_v53  ;;  %v390_v60 = vmul.f32 %v326_v54, %v326_v54  ;;  %v1291_v10 = vmul.f32 %v2609_v63, %v2609_v63  ;;  %v404_v15 = vmul.f32 %v340_v3, %v340_v3  ;;  %v2620_v22 = vld [vmem:[%s4090_s6 + $0x240] sm:$0xff] }
  0x92   : > { %v1352_v46 = vadd.f32 %v1283_v36, %v1282_v35  ;;  %v1340_v49 = vadd.f32 %v1275_v41, %v1274_v40  ;;  %v1305_v26 = vmul.f32 %v2623_v21, %v2623_v21  ;;  %v1302_v32 = vmul.f32 %v2620_v22, %v2620_v22  ;;  %v321_v35 = vld [vmem:[%s4090_s6 + $0xb8] sm:$0xff]  ;;  %v312_v36 = vld [vmem:[%s4090_s6 + $0x30] sm:$0xff] }
  0x93   : > { %1350 = vadd.xlane.f32.xlu1 %v1349_v42  ;;  %v2614_v42 = vld [vmem:[%s4090_s6 + $0x1d0] sm:$0xff]  ;;  %v376_v44 = vmul.f32 %v312_v36, %v312_v36  ;;  %vm2262_vm4 = vcmask 1045509   ;;  %vm2264_vm5 = vcmask 1046534   ;;  %vm2266_vm6 = vcmask 1047559  }
  0x94   : > { %1347 = vadd.xlane.f32.xlu0 %v1346_v45  ;;  %v2613_v45 = vld [vmem:[%s4090_s6 + $0x1c8] sm:$0xff]  ;;  %v1296_v47 = vmul.f32 %v2614_v42, %v2614_v42  ;;  %v385_v42 = vmul.f32 %v321_v35, %v321_v35 }
  0x95   : > { %v1295_v51 = vmul.f32 %v2613_v45, %v2613_v45 }
  0x96   : > { %v1373_v56 = vadd.f32 %v1297_v48, %v1296_v47  ;;  %v347_v47 = vld [vmem:[%s4090_s6 + $0x288] sm:$0xff]  ;;  %v334_v48 = vld [vmem:[%s4090_s6 + $0x1a0] sm:$0xff] }
  0x97   : > { %462 = vadd.xlane.f32.xlu1 %v461_v52  ;;  %v338_v52 = vld [vmem:[%s4090_s6 + $0x200] sm:$0xff]  ;;  %v1370_v59 = vadd.f32 %v1295_v51, %v1294_v50  ;;  %v398_v54 = vmul.f32 %v334_v48, %v334_v48 }
  0x98   : > { %459 = vadd.xlane.f32.xlu0 %v458_v55  ;;  %v327_v55 = vld [vmem:[%s4090_s6 + $0x128] sm:$0xff]  ;;  %v402_v57 = vmul.f32 %v338_v52, %v338_v52  ;;  %v411_v52 = vmul.f32 %v347_v47, %v347_v47 }
  0x99   : > { %v391_v61 = vmul.f32 %v327_v55, %v327_v55 }
  0x9a   : > { %v482_v6 = vadd.f32 %v403_v58, %v402_v57  ;;  %v2595_v57 = vld [vmem:[%s4090_s6 + $0x78] sm:$0xff]  ;;  %v348_v58 = vld [vmem:[%s4090_s6 + $0x290] sm:$0xff] }
  0x9b   : > { %1362 = vadd.xlane.f32.xlu1 %v1361_v62  ;;  %v2608_v62 = vld [vmem:[%s4090_s6 + $0x160] sm:$0xff]  ;;  %v464_v11 = vadd.f32 %v391_v61, %v390_v60  ;;  %v412_v3 = vmul.f32 %v348_v58, %v348_v58 }
  0x9c   : > { %1359 = vadd.xlane.f32.xlu0 %v1358_v4  ;;  %v341_v4 = vld [vmem:[%s4090_s6 + $0x218] sm:$0xff]  ;;  %v1290_v9 = vmul.f32 %v2608_v62, %v2608_v62  ;;  %v1277_v62 = vmul.f32 %v2595_v57, %v2595_v57 }
  0x9d   : > { %v405_v16 = vmul.f32 %v341_v4, %v341_v4 }
  0x9e   : > { %v1364_v24 = vadd.f32 %v1291_v10, %v1290_v9  ;;  %v2617_v9 = vld [vmem:[%s4090_s6 + $0x1e8] sm:$0xff]  ;;  %v2602_v10 = vld [vmem:[%s4090_s6 + $0xf0] sm:$0xff] }
  0x9f   : > { %453 = vadd.xlane.f32.xlu1 %v452_v17  ;;  %v2622_v17 = vld [vmem:[%s4090_s6 + $0x250] sm:$0xff]  ;;  %v485_v27 = vadd.f32 %v405_v16, %v404_v15  ;;  %v1284_v22 = vmul.f32 %v2602_v10, %v2602_v10 }
  0xa0   : > { %441 = vadd.xlane.f32.xlu0 %v440_v23  ;;  %v2621_v23 = vld [vmem:[%s4090_s6 + $0x248] sm:$0xff]  ;;  %v1304_v25 = vmul.f32 %v2622_v17, %v2622_v17  ;;  %v1299_v17 = vmul.f32 %v2617_v9, %v2617_v9 }
  0xa1   : > { %v1303_v33 = vmul.f32 %v2621_v23, %v2621_v23 }
  0xa2   : > { %v1385_v40 = vadd.f32 %v1305_v26, %v1304_v25  ;;  %v2631_v25 = vld [vmem:[%s4090_s6 + $0x2d8] sm:$0xff]  ;;  %v2628_v26 = vld [vmem:[%s4090_s6 + $0x2c0] sm:$0xff] }
  0xa3   : > { %474 = vadd.xlane.f32.xlu1 %v473_v34  ;;  %v320_v34 = vld [vmem:[%s4090_s6 + $0xb0] sm:$0xff]  ;;  %v1382_v43 = vadd.f32 %v1303_v33, %v1302_v32  ;;  %v1310_v36 = vmul.f32 %v2628_v26, %v2628_v26 }
  0xa4   : > { %471 = vadd.xlane.f32.xlu0 %v470_v37  ;;  %v313_v37 = vld [vmem:[%s4090_s6 + $0x38] sm:$0xff]  ;;  %v384_v41 = vmul.f32 %v320_v34, %v320_v34  ;;  %v1313_v34 = vmul.f32 %v2631_v25, %v2631_v25 }
  0xa5   : > { %v377_v45 = vmul.f32 %v313_v37, %v313_v37 }
  0xa6   : > { %v455_v50 = vadd.f32 %v385_v42, %v384_v41  ;;  %v343_v41 = vld [vmem:[%s4090_s6 + $0x228] sm:$0xff]  ;;  %v328_v42 = vld [vmem:[%s4090_s6 + $0x130] sm:$0xff] }
  0xa7   : > { %1353 = vadd.xlane.f32.xlu1 %v1352_v46  ;;  %v346_v46 = vld [vmem:[%s4090_s6 + $0x280] sm:$0xff]  ;;  %v443_v53 = vadd.f32 %v377_v45, %v376_v44  ;;  %v392_v48 = vmul.f32 %v328_v42, %v328_v42 }
  0xa8   : > { %1341 = vadd.xlane.f32.xlu0 %v1340_v49  ;;  %v335_v49 = vld [vmem:[%s4090_s6 + $0x1a8] sm:$0xff]  ;;  %v410_v51 = vmul.f32 %v346_v46, %v346_v46  ;;  %v407_v46 = vmul.f32 %v343_v41, %v343_v41 }
  0xa9   : > { %v399_v55 = vmul.f32 %v335_v49, %v335_v49 }
  0xaa   : > { %v494_v60 = vadd.f32 %v411_v52, %v410_v51  ;;  %v357_v51 = vld [vmem:[%s4090_s6 + $0x318] sm:$0xff]  ;;  %v354_v52 = vld [vmem:[%s4090_s6 + $0x300] sm:$0xff] }
  0xab   : > { %1374 = vadd.xlane.f32.xlu1 %v1373_v56  ;;  %v2594_v56 = vld [vmem:[%s4090_s6 + $0x70] sm:$0xff]  ;;  %v476_v63 = vadd.f32 %v399_v55, %v398_v54  ;;  %v418_v58 = vmul.f32 %v354_v52, %v354_v52 }
  0xac   : > { %1371 = vadd.xlane.f32.xlu0 %v1370_v59  ;;  %v349_v59 = vld [vmem:[%s4090_s6 + $0x298] sm:$0xff]  ;;  %v1276_v61 = vmul.f32 %v2594_v56, %v2594_v56  ;;  %v421_v56 = vmul.f32 %v357_v51, %v357_v51 }
  0xad   : > { %v413_v4 = vmul.f32 %v349_v59, %v349_v59 }
  0xae   : > { %v1343_v15 = vadd.f32 %v1277_v62, %v1276_v61  ;;  %v2625_v61 = vld [vmem:[%s4090_s6 + $0x268] sm:$0xff]  ;;  %v2610_v62 = vld [vmem:[%s4090_s6 + $0x170] sm:$0xff] }
  0xaf   : > { %483 = vadd.xlane.f32.xlu1 %v482_v6  ;;  %v2616_v6 = vld [vmem:[%s4090_s6 + $0x1e0] sm:$0xff]  ;;  %v497_v21 = vadd.f32 %v413_v4, %v412_v3  ;;  %v1292_v10 = vmul.f32 %v2610_v62, %v2610_v62 }
  0xb0   : > { %465 = vadd.xlane.f32.xlu0 %v464_v11  ;;  %v2603_v11 = vld [vmem:[%s4090_s6 + $0xf8] sm:$0xff]  ;;  %v1298_v16 = vmul.f32 %v2616_v6, %v2616_v6  ;;  %v1307_v6 = vmul.f32 %v2625_v61, %v2625_v61 }
  0xb1   : > { %v1285_v23 = vmul.f32 %v2603_v11, %v2603_v11 }
  0xb2   : > { %v1376_v32 = vadd.f32 %v1299_v17, %v1298_v16  ;;  %v2639_v16 = vld [vmem:[%s4090_s6 + $0x358] sm:$0xff]  ;;  %v2636_v17 = vld [vmem:[%s4090_s6 + $0x340] sm:$0xff] }
  0xb3   : > { %1365 = vadd.xlane.f32.xlu1 %v1364_v24  ;;  %v2630_v24 = vld [vmem:[%s4090_s6 + $0x2d0] sm:$0xff]  ;;  %v1355_v35 = vadd.f32 %v1285_v23, %v1284_v22  ;;  %v1318_v26 = vmul.f32 %v2636_v17, %v2636_v17 }
  0xb4   : > { %486 = vadd.xlane.f32.xlu0 %v485_v27  ;;  %v2629_v27 = vld [vmem:[%s4090_s6 + $0x2c8] sm:$0xff]  ;;  %v1312_v33 = vmul.f32 %v2630_v24, %v2630_v24  ;;  %v1321_v24 = vmul.f32 %v2639_v16, %v2639_v16 }
  0xb5   : > { %v1311_v37 = vmul.f32 %v2629_v27, %v2629_v27 }
  0xb6   : > { %v1397_v44 = vadd.f32 %v1313_v34, %v1312_v33  ;;  %v351_v33 = vld [vmem:[%s4090_s6 + $0x2a8] sm:$0xff]  ;;  %v336_v34 = vld [vmem:[%s4090_s6 + $0x1b0] sm:$0xff] }
  0xb7   : > { %1386 = vadd.xlane.f32.xlu1 %v1385_v40  ;;  %v342_v40 = vld [vmem:[%s4090_s6 + $0x220] sm:$0xff]  ;;  %v1394_v47 = vadd.f32 %v1311_v37, %v1310_v36  ;;  %v400_v42 = vmul.f32 %v336_v34, %v336_v34 }
  0xb8   : > { %1383 = vadd.xlane.f32.xlu0 %v1382_v43  ;;  %v329_v43 = vld [vmem:[%s4090_s6 + $0x138] sm:$0xff]  ;;  %v406_v45 = vmul.f32 %v342_v40, %v342_v40  ;;  %v415_v40 = vmul.f32 %v351_v33, %v351_v33 }
  0xb9   : > { %v393_v49 = vmul.f32 %v329_v43, %v329_v43 }
  0xba   : > { %v488_v54 = vadd.f32 %v407_v46, %v406_v45  ;;  %v365_v45 = vld [vmem:[%s4090_s6 + $0x398] sm:$0xff]  ;;  %v362_v46 = vld [vmem:[%s4090_s6 + $0x380] sm:$0xff] }
  0xbb   : > { %456 = vadd.xlane.f32.xlu1 %v455_v50  ;;  %v356_v50 = vld [vmem:[%s4090_s6 + $0x310] sm:$0xff]  ;;  %v467_v57 = vadd.f32 %v393_v49, %v392_v48  ;;  %v426_v52 = vmul.f32 %v362_v46, %v362_v46 }
  0xbc   : > { %444 = vadd.xlane.f32.xlu0 %v443_v53  ;;  %v355_v53 = vld [vmem:[%s4090_s6 + $0x308] sm:$0xff]  ;;  %v420_v55 = vmul.f32 %v356_v50, %v356_v50  ;;  %v429_v50 = vmul.f32 %v365_v45, %v365_v45 }
  0xbd   : > { %v419_v59 = vmul.f32 %v355_v53, %v355_v53 }
  0xbe   : > { %v509_v3 = vadd.f32 %v421_v56, %v420_v55  ;;  %v2633_v55 = vld [vmem:[%s4090_s6 + $0x2e8] sm:$0xff]  ;;  %v2618_v56 = vld [vmem:[%s4090_s6 + $0x1f0] sm:$0xff] }
  0xbf   : > { %495 = vadd.xlane.f32.xlu1 %v494_v60  ;;  %v2624_v60 = vld [vmem:[%s4090_s6 + $0x260] sm:$0xff]  ;;  %v506_v9 = vadd.f32 %v419_v59, %v418_v58  ;;  %v1300_v62 = vmul.f32 %v2618_v56, %v2618_v56 }
  0xc0   : > { %477 = vadd.xlane.f32.xlu0 %v476_v63  ;;  %v2611_v63 = vld [vmem:[%s4090_s6 + $0x178] sm:$0xff]  ;;  %v1306_v4 = vmul.f32 %v2624_v60, %v2624_v60  ;;  %v1315_v60 = vmul.f32 %v2633_v55, %v2633_v55 }
  0xc1   : > { %v1293_v11 = vmul.f32 %v2611_v63, %v2611_v63 }
  0xc2   : > { %v1388_v22 = vadd.f32 %v1307_v6, %v1306_v4  ;;  %v2647_v4 = vld [vmem:[%s4090_s6 + $0x3d8] sm:$0xff]  ;;  %v2644_v6 = vld [vmem:[%s4090_s6 + $0x3c0] sm:$0xff] }
  0xc3   : > { %1344 = vadd.xlane.f32.xlu1 %v1343_v15  ;;  %v2638_v15 = vld [vmem:[%s4090_s6 + $0x350] sm:$0xff]  ;;  %v1367_v25 = vadd.f32 %v1293_v11, %v1292_v10  ;;  %v1326_v17 = vmul.f32 %v2644_v6, %v2644_v6 }
  0xc4   : > { %498 = vadd.xlane.f32.xlu0 %v497_v21  ;;  %v2637_v21 = vld [vmem:[%s4090_s6 + $0x348] sm:$0xff]  ;;  %v1320_v23 = vmul.f32 %v2638_v15, %v2638_v15  ;;  %v1329_v15 = vmul.f32 %v2647_v4, %v2647_v4 }
  0xc5   : > { %v1319_v27 = vmul.f32 %v2637_v21, %v2637_v21 }
  0xc6   : > { %v1409_v36 = vadd.f32 %v1321_v24, %v1320_v23  ;;  %v359_v23 = vld [vmem:[%s4090_s6 + $0x328] sm:$0xff]  ;;  %v344_v24 = vld [vmem:[%s4090_s6 + $0x230] sm:$0xff] }
  0xc7   : > { %1377 = vadd.xlane.f32.xlu1 %v1376_v32  ;;  %v350_v32 = vld [vmem:[%s4090_s6 + $0x2a0] sm:$0xff]  ;;  %v1406_v41 = vadd.f32 %v1319_v27, %v1318_v26  ;;  %v408_v34 = vmul.f32 %v344_v24, %v344_v24 }
  0xc8   : > { %1356 = vadd.xlane.f32.xlu0 %v1355_v35  ;;  %v337_v35 = vld [vmem:[%s4090_s6 + $0x1b8] sm:$0xff]  ;;  %v414_v37 = vmul.f32 %v350_v32, %v350_v32  ;;  %v423_v32 = vmul.f32 %v359_v23, %v359_v23 }
  0xc9   : > { %v401_v43 = vmul.f32 %v337_v35, %v337_v35 }
  0xca   : > { %v500_v48 = vadd.f32 %v415_v40, %v414_v37  ;;  %v2641_v37 = vld [vmem:[%s4090_s6 + $0x368] sm:$0xff]  ;;  %v2626_v40 = vld [vmem:[%s4090_s6 + $0x270] sm:$0xff] }
  0xcb   : > { %1398 = vadd.xlane.f32.xlu1 %v1397_v44  ;;  %v364_v44 = vld [vmem:[%s4090_s6 + $0x390] sm:$0xff]  ;;  %v479_v51 = vadd.f32 %v401_v43, %v400_v42  ;;  %v1308_v46 = vmul.f32 %v2626_v40, %v2626_v40 }
  0xcc   : > { %1395 = vadd.xlane.f32.xlu0 %v1394_v47  ;;  %v363_v47 = vld [vmem:[%s4090_s6 + $0x388] sm:$0xff]  ;;  %v428_v49 = vmul.f32 %v364_v44, %v364_v44  ;;  %v1323_v44 = vmul.f32 %v2641_v37, %v2641_v37 }
  0xcd   : > { %v427_v53 = vmul.f32 %v363_v47, %v363_v47 }
  0xce   : > { %v521_v58 = vadd.f32 %v429_v50, %v428_v49  ;;  %v367_v49 = vld [vmem:[%s4090_s6 + $0x3a8] sm:$0xff]  ;;  %v352_v50 = vld [vmem:[%s4090_s6 + $0x2b0] sm:$0xff] }
  0xcf   : > { %489 = vadd.xlane.f32.xlu1 %v488_v54  ;;  %v2632_v54 = vld [vmem:[%s4090_s6 + $0x2e0] sm:$0xff]  ;;  %v518_v61 = vadd.f32 %v427_v53, %v426_v52  ;;  %v416_v56 = vmul.f32 %v352_v50, %v352_v50 }
  0xd0   : > { %468 = vadd.xlane.f32.xlu0 %v467_v57  ;;  %v2619_v57 = vld [vmem:[%s4090_s6 + $0x1f8] sm:$0xff]  ;;  %v1314_v59 = vmul.f32 %v2632_v54, %v2632_v54  ;;  %v431_v54 = vmul.f32 %v367_v49, %v367_v49 }
  0xd1   : > { %v1301_v63 = vmul.f32 %v2619_v57, %v2619_v57 }
  0xd2   : > { %v1400_v10 = vadd.f32 %v1315_v60, %v1314_v59  ;;  %v2649_v59 = vld [vmem:[%s4090_s6 + $0x3e8] sm:$0xff]  ;;  %v2634_v60 = vld [vmem:[%s4090_s6 + $0x2f0] sm:$0xff] }
  0xd3   : > { %510 = vadd.xlane.f32.xlu1 %v509_v3  ;;  %v2646_v3 = vld [vmem:[%s4090_s6 + $0x3d0] sm:$0xff]  ;;  %v1379_v16 = vadd.f32 %v1301_v63, %v1300_v62  ;;  %v1316_v6 = vmul.f32 %v2634_v60, %v2634_v60 }
  0xd4   : > { %507 = vadd.xlane.f32.xlu0 %v506_v9  ;;  %v2645_v9 = vld [vmem:[%s4090_s6 + $0x3c8] sm:$0xff]  ;;  %v1328_v11 = vmul.f32 %v2646_v3, %v2646_v3  ;;  %v1331_v3 = vmul.f32 %v2649_v59, %v2649_v59 }
  0xd5   : > { %v1327_v21 = vmul.f32 %v2645_v9, %v2645_v9 }
  0xd6   : > { %v1421_v26 = vadd.f32 %v1329_v15, %v1328_v11  ;;  %v2643_v11 = vld [vmem:[%s4090_s6 + $0x378] sm:$0xff]  ;;  %v360_v15 = vld [vmem:[%s4090_s6 + $0x330] sm:$0xff] }
  0xd7   : > { %1389 = vadd.xlane.f32.xlu1 %v1388_v22  ;;  %v358_v22 = vld [vmem:[%s4090_s6 + $0x320] sm:$0xff]  ;;  %v1418_v33 = vadd.f32 %v1327_v21, %v1326_v17  ;;  %v424_v24 = vmul.f32 %v360_v15, %v360_v15 }
  0xd8   : > { %1368 = vadd.xlane.f32.xlu0 %v1367_v25  ;;  %v345_v25 = vld [vmem:[%s4090_s6 + $0x238] sm:$0xff]  ;;  %v422_v27 = vmul.f32 %v358_v22, %v358_v22  ;;  %v1325_v22 = vmul.f32 %v2643_v11, %v2643_v11 }
  0xd9   : > { %v409_v35 = vmul.f32 %v345_v25, %v345_v25 }
  0xda   : > { %v512_v42 = vadd.f32 %v423_v32, %v422_v27  ;;  %v2651_v27 = vld [vmem:[%s4090_s6 + $0x3f8] sm:$0xff]  ;;  %v368_v32 = vld [vmem:[%s4090_s6 + $0x3b0] sm:$0xff] }
  0xdb   : > { %1410 = vadd.xlane.f32.xlu1 %v1409_v36  ;;  %v2640_v36 = vld [vmem:[%s4090_s6 + $0x360] sm:$0xff]  ;;  %v491_v45 = vadd.f32 %v409_v35, %v408_v34  ;;  %v432_v40 = vmul.f32 %v368_v32, %v368_v32 }
  0xdc   : > { %1407 = vadd.xlane.f32.xlu0 %v1406_v41  ;;  %v2627_v41 = vld [vmem:[%s4090_s6 + $0x278] sm:$0xff]  ;;  %v1322_v43 = vmul.f32 %v2640_v36, %v2640_v36  ;;  %v1333_v36 = vmul.f32 %v2651_v27, %v2651_v27 }
  0xdd   : > { %v1309_v47 = vmul.f32 %v2627_v41, %v2627_v41 }
  0xde   : > { %v1412_v52 = vadd.f32 %v1323_v44, %v1322_v43 }
  0xdf   : > { %501 = vadd.xlane.f32.xlu1 %v500_v48  ;;  %v366_v48 = vld [vmem:[%s4090_s6 + $0x3a0] sm:$0xff]  ;;  %v1391_v55 = vadd.f32 %v1309_v47, %v1308_v46 }
  0xe0   : > { %480 = vadd.xlane.f32.xlu0 %v479_v51  ;;  %v353_v51 = vld [vmem:[%s4090_s6 + $0x2b8] sm:$0xff]  ;;  %v430_v53 = vmul.f32 %v366_v48, %v366_v48 }
  0xe1   : > { %v417_v57 = vmul.f32 %v353_v51, %v353_v51 }
  0xe2   : > { %v524_v62 = vadd.f32 %v431_v54, %v430_v53 }
  0xe3   : > { %522 = vadd.xlane.f32.xlu1 %v521_v58  ;;  %v2648_v58 = vld [vmem:[%s4090_s6 + $0x3e0] sm:$0xff]  ;;  %v503_v4 = vadd.f32 %v417_v57, %v416_v56 }
  0xe4   : > { %519 = vadd.xlane.f32.xlu0 %v518_v61  ;;  %v2635_v61 = vld [vmem:[%s4090_s6 + $0x2f8] sm:$0xff]  ;;  %v1330_v63 = vmul.f32 %v2648_v58, %v2648_v58 }
  0xe5   : > { %v1317_v9 = vmul.f32 %v2635_v61, %v2635_v61 }
  0xe6   : > { %v1424_v17 = vadd.f32 %v1331_v3, %v1330_v63 }
  0xe7   : > { %1401 = vadd.xlane.f32.xlu1 %v1400_v10  ;;  %v2642_v10 = vld [vmem:[%s4090_s6 + $0x370] sm:$0xff]  ;;  %v1403_v23 = vadd.f32 %v1317_v9, %v1316_v6 }
  0xe8   : > { %1380 = vadd.xlane.f32.xlu0 %v1379_v16  ;;  %v361_v16 = vld [vmem:[%s4090_s6 + $0x338] sm:$0xff]  ;;  %v1324_v21 = vmul.f32 %v2642_v10, %v2642_v10 }
  0xe9   : > { %v425_v25 = vmul.f32 %v361_v16, %v361_v16 }
  0xea   : > { %v1415_v34 = vadd.f32 %v1325_v22, %v1324_v21 }
  0xeb   : > { %1422 = vadd.xlane.f32.xlu1 %v1421_v26  ;;  %v2650_v26 = vld [vmem:[%s4090_s6 + $0x3f0] sm:$0xff]  ;;  %v515_v37 = vadd.f32 %v425_v25, %v424_v24 }
  0xec   : > { %1419 = vadd.xlane.f32.xlu0 %v1418_v33  ;;  %v369_v33 = vld [vmem:[%s4090_s6 + $0x3b8] sm:$0xff]  ;;  %v1332_v35 = vmul.f32 %v2650_v26, %v2650_v26 }
  0xed   : > { %v433_v41 = vmul.f32 %v369_v33, %v369_v33 }
  0xef   : > { %513 = vadd.xlane.f32.xlu1 %v512_v42  ;;  %v1427_v42 = vadd.f32 %v1333_v36, %v1332_v35  ;;  %v527_v43 = vadd.f32 %v433_v41, %v432_v40  ;;  %v4321_v41 = vstv %s4308_s24 }
  0xf0   : > { %492 = vadd.xlane.f32.xlu0 %v491_v45 }
  0xf3   : > { %1413 = vadd.xlane.f32.xlu1 %v1412_v52 }
  0xf4   : > { %1392 = vadd.xlane.f32.xlu0 %v1391_v55 }
  0xf7   : > { %525 = vadd.xlane.f32.xlu1 %v524_v62 }
  0xf8   : > { %504 = vadd.xlane.f32.xlu0 %v503_v4 }
  0xfb   : > { %1425 = vadd.xlane.f32.xlu1 %v1424_v17 }
  0xfc   : > { %1404 = vadd.xlane.f32.xlu0 %v1403_v23 }
  0xff   : > { %1416 = vadd.xlane.f32.xlu1 %v1415_v34 }
 0x100   : > { %516 = vadd.xlane.f32.xlu0 %v515_v37 }
 0x103   : > { %1428 = vadd.xlane.f32.xlu1 %v1427_v42 }
 0x104   : > { %528 = vadd.xlane.f32.xlu0 %v527_v43 }
 0x114   : > { %v448_v44 = vpop.xlane.xlu1 %447 }
 0x115   : > { %v534_v45 = vmax.f32 %v448_v44, 1e-24  ;;  %v436_v46 = vpop.xlane.xlu0 %435 }
 0x116   : > { %v530_v47 = vmax.f32 %v436_v46, 1e-24 }
 0x117   : > { %2818 = vrsqrt.f32 %v534_v45 }
 0x118   : > { %2820 = vrsqrt.f32 %v530_v47  ;;  %v451_v48 = vpop.xlane.xlu1 %450 }
 0x119   : > { %v535_v49 = vmax.f32 %v451_v48, 1e-24  ;;  %v439_v50 = vpop.xlane.xlu0 %438 }
 0x11a   : > { %v531_v51 = vmax.f32 %v439_v50, 1e-24 }
 0x11b   : > { %2822 = vrsqrt.f32 %v535_v49 }
 0x11c   : > { %2824 = vrsqrt.f32 %v531_v51  ;;  %v1339_v52 = vpop.xlane.xlu1 %1338 }
 0x11d   : > { %v1431_v53 = vmax.f32 %v1339_v52, 1e-24  ;;  %v1336_v54 = vpop.xlane.xlu0 %1335 }
 0x11e   : > { %v1430_v55 = vmax.f32 %v1336_v54, 1e-24 }
 0x11f   : > { %2826 = vrsqrt.f32 %v1431_v53 }
 0x120   : > { %2828 = vrsqrt.f32 %v1430_v55  ;;  %v1351_v56 = vpop.xlane.xlu1 %1350 }
 0x121   : > { %v2819_v57 = vpop.eup %2818  ;;  %v1435_v58 = vmax.f32 %v1351_v56, 1e-24  ;;  %v1348_v59 = vpop.xlane.xlu0 %1347 }
 0x122   : > { %v2821_v60 = vpop.eup %2820  ;;  %v602_v61 = vmul.f32 %v2819_v57, %v4101_v0  ;;  %v603_v62 = vmul.f32 %v2819_v57, %v4104_v1  ;;  %v1434_v63 = vmax.f32 %v1348_v59, 1e-24 }
 0x123   : > { %v594_v3 = vmul.f32 %v2821_v60, %v4107_v2  ;;  %v595_v4 = vmul.f32 %v2821_v60, %v4114_v5  ;;  %2830 = vrsqrt.f32 %v1435_v58 }
 0x124   : > { %v666_v6 = vmax.f32 %v602_v61, 1e-06  ;;  %v667_v9 = vmax.f32 %v603_v62, 1e-06  ;;  %2832 = vrsqrt.f32 %v1434_v63  ;;  %v463_v26 = vpop.xlane.xlu1 %462 }
 0x125   : > { %v2823_v10 = vpop.eup %2822  ;;  %v658_v11 = vmax.f32 %v594_v3, 1e-06  ;;  %v659_v15 = vmax.f32 %v595_v4, 1e-06  ;;  %v4314_v33 = vpop.xlane.xlu0 %459  ;;  %v539_v49 = vmax.f32 %v463_v26, 1e-24 }
 0x126   : > { %v2825_v16 = vpop.eup %2824  ;;  %2834 = vlog2.f32 %v666_v6  ;;  %v604_v17 = vmul.f32 %v2823_v10, %v4119_v7  ;;  %v605_v0 = vmul.f32 %v2823_v10, %v4122_v8 }
 0x127   : > { %2836 = vlog2.f32 %v667_v9  ;;  %v596_v1 = vmul.f32 %v2825_v16, %v4131_v12  ;;  %v597_v2 = vmul.f32 %v2825_v16, %v4134_v13 }
 0x128   : > { %2838 = vlog2.f32 %v658_v11  ;;  %v668_v5 = vmax.f32 %v604_v17, 1e-06  ;;  %v669_v21 = vmax.f32 %v605_v0, 1e-06  ;;  %v4323_v48 = vpop.xlane.xlu1 %1362 }
 0x129   : > { %v2827_v22 = vpop.eup %2826  ;;  %2840 = vlog2.f32 %v659_v15  ;;  %v660_v23 = vmax.f32 %v596_v1, 1e-06  ;;  %v661_v24 = vmax.f32 %v597_v2, 1e-06 }
 0x12a   : > { %v2829_v25 = vpop.eup %2828  ;;  %2842 = vlog2.f32 %v668_v5  ;;  %v1496_v7 = vmul.f32 %v2827_v22, %v4137_v14  ;;  %v1497_v8 = vmul.f32 %v2827_v22, %v4144_v18 }
 0x12b   : > { %2844 = vlog2.f32 %v669_v21  ;;  %v1494_v12 = vmul.f32 %v2829_v25, %v4147_v19  ;;  %v1495_v13 = vmul.f32 %v2829_v25, %v4150_v20 }
 0x12c   : > { %2846 = vlog2.f32 %v660_v23  ;;  %v1560_v27 = vmax.f32 %v1496_v7, 1e-06  ;;  %v1561_v32 = vmax.f32 %v1497_v8, 1e-06  ;;  %v4332_v9 = vpop.xlane.xlu1 %453 }
 0x12d   : > { %v2831_v34 = vpop.eup %2830  ;;  %2848 = vlog2.f32 %v661_v24  ;;  %v1558_v35 = vmax.f32 %v1494_v12, 1e-06  ;;  %v1559_v36 = vmax.f32 %v1495_v13, 1e-06 }
 0x12e   : > { %v2833_v37 = vpop.eup %2832  ;;  %2850 = vlog2.f32 %v1560_v27  ;;  %v1504_v14 = vmul.f32 %v2831_v34, %v4161_v28  ;;  %v1505_v18 = vmul.f32 %v2831_v34, %v4164_v29 }
 0x12f   : > { %2852 = vlog2.f32 %v1561_v32  ;;  %v1502_v19 = vmul.f32 %v2833_v37, %v4167_v30  ;;  %v1503_v20 = vmul.f32 %v2833_v37, %v4170_v31  ;;  %v4325_v30 = vpop.xlane.xlu0 %1359 }
 0x130   : > { %v2835_v40 = vpop.eup %2834  ;;  %2854 = vlog2.f32 %v1558_v35  ;;  %v1568_v42 = vmax.f32 %v1504_v14, 1e-06  ;;  %v1569_v43 = vmax.f32 %v1505_v18, 1e-06  ;;  %v4342_v14 = vpop.xlane.xlu1 %474 }
 0x131   : > { %v2837_v44 = vpop.eup %2836  ;;  %v739_v45 = vmul.f32 0.6931472, %v2835_v40  ;;  %2856 = vlog2.f32 %v1559_v36  ;;  %v1566_v46 = vmax.f32 %v1502_v19, 1e-06  ;;  %v1567_v47 = vmax.f32 %v1503_v20, 1e-06 }
 0x132   : > { %v2839_v28 = vpop.eup %2838  ;;  %v741_v29 = vmul.f32 0.6931472, %v2837_v44  ;;  %2858 = vlog2.f32 %v1568_v42 }
 0x133   : > { %v2841_v31 = vpop.eup %2840  ;;  %v859_v50 = vmul.f32 %v739_v45, %v4321_v41  ;;  %v723_v51 = vmul.f32 0.6931472, %v2839_v28  ;;  %2860 = vlog2.f32 %v1569_v43  ;;  %v4335_v17 = vpop.xlane.xlu0 %441 }
 0x134   : > { %v2843_v52 = vpop.eup %2842  ;;  %v860_v53 = vmul.f32 %v741_v29, %v4321_v41  ;;  %v725_v54 = vmul.f32 0.6931472, %v2841_v31  ;;  %2862 = vlog2.f32 %v1566_v46 }
 0x135   : > { %v2845_v55 = vpop.eup %2844  ;;  %v931_v56 = vmul.f32 1.442695, %v859_v50  ;;  %v851_v57 = vmul.f32 %v723_v51, %v4321_v41  ;;  %v743_v58 = vmul.f32 0.6931472, %v2843_v52  ;;  %2864 = vlog2.f32 %v1567_v47 }
 0x136   : > { %v2847_v59 = vpop.eup %2846  ;;  %v933_v60 = vmul.f32 1.442695, %v860_v53  ;;  %v852_v61 = vmul.f32 %v725_v54, %v4321_v41  ;;  %v745_v62 = vmul.f32 0.6931472, %v2845_v55  ;;  %2866 = vrsqrt.f32 %v539_v49 }
 0x137   : > { %v2849_v63 = vpop.eup %2848  ;;  %2868 = vpow2.f32 %v931_v56  ;;  %v915_v3 = vmul.f32 1.442695, %v851_v57  ;;  %v861_v4 = vmul.f32 %v743_v58, %v4321_v41  ;;  %v727_v6 = vmul.f32 0.6931472, %v2847_v59  ;;  %v4345_v42 = vpop.xlane.xlu0 %471 }
 0x138   : > { %v2851_v10 = vpop.eup %2850  ;;  %2870 = vpow2.f32 %v933_v60  ;;  %v917_v11 = vmul.f32 1.442695, %v852_v61  ;;  %v862_v15 = vmul.f32 %v745_v62, %v4321_v41  ;;  %v729_v16 = vmul.f32 0.6931472, %v2849_v63  ;;  %v1354_v60 = vpop.xlane.xlu1 %1353 }
 0x139   : > { %v2853_v0 = vpop.eup %2852  ;;  %2872 = vpow2.f32 %v915_v3  ;;  %v935_v1 = vmul.f32 1.442695, %v861_v4  ;;  %v853_v2 = vmul.f32 %v727_v6, %v4321_v41  ;;  %v1627_v5 = vmul.f32 0.6931472, %v2851_v10 }
 0x13a   : > { %v2855_v21 = vpop.eup %2854  ;;  %2874 = vpow2.f32 %v917_v11  ;;  %v937_v22 = vmul.f32 1.442695, %v862_v15  ;;  %v854_v23 = vmul.f32 %v729_v16, %v4321_v41  ;;  %v1629_v24 = vmul.f32 0.6931472, %v2853_v0 }
 0x13b   : > { %v2857_v25 = vpop.eup %2856  ;;  %2876 = vpow2.f32 %v935_v1  ;;  %v919_v7 = vmul.f32 1.442695, %v853_v2  ;;  %v1752_v8 = vmul.f32 %v1627_v5, %v4321_v41  ;;  %v1623_v12 = vmul.f32 0.6931472, %v2855_v21  ;;  %v1342_v3 = vpop.xlane.xlu0 %1341 }
 0x13c   : > { %v2859_v13 = vpop.eup %2858  ;;  %2878 = vpow2.f32 %v937_v22  ;;  %v921_v26 = vmul.f32 1.442695, %v854_v23  ;;  %v1753_v27 = vmul.f32 %v1629_v24, %v4321_v41  ;;  %v1625_v32 = vmul.f32 0.6931472, %v2857_v25  ;;  %v1375_v22 = vpop.xlane.xlu1 %1374 }
 0x13d   : > { %v2861_v34 = vpop.eup %2860  ;;  %2880 = vpow2.f32 %v919_v7  ;;  %v1818_v35 = vmul.f32 1.442695, %v1752_v8  ;;  %v1750_v36 = vmul.f32 %v1623_v12, %v4321_v41  ;;  %v1643_v37 = vmul.f32 0.6931472, %v2859_v13 }
 0x13e   : > { %v2863_v18 = vpop.eup %2862  ;;  %2882 = vpow2.f32 %v921_v26  ;;  %v1820_v19 = vmul.f32 1.442695, %v1753_v27  ;;  %v1751_v20 = vmul.f32 %v1625_v32, %v4321_v41  ;;  %v1645_v40 = vmul.f32 0.6931472, %v2861_v34 }
 0x13f   : > { %v2865_v43 = vpop.eup %2864  ;;  %2884 = vpow2.f32 %v1818_v35  ;;  %v1814_v44 = vmul.f32 1.442695, %v1750_v36  ;;  %v1760_v45 = vmul.f32 %v1643_v37, %v4321_v41  ;;  %v1639_v46 = vmul.f32 0.6931472, %v2863_v18  ;;  %v1372_v23 = vpop.xlane.xlu0 %1371 }
 0x140   : > { %v2867_v47 = vpop.eup %2866  ;;  %2886 = vpow2.f32 %v1820_v19  ;;  %v1816_v28 = vmul.f32 1.442695, %v1751_v20  ;;  %v1761_v29 = vmul.f32 %v1645_v40, %v4321_v41  ;;  %v1641_v49 = vmul.f32 0.6931472, %v2865_v43  ;;  %v484_v32 = vpop.xlane.xlu1 %483 }
 0x141   : > { %v2869_v31 = vpop.eup %2868  ;;  %2888 = vpow2.f32 %v1814_v44  ;;  %v1834_v50 = vmul.f32 1.442695, %v1760_v45  ;;  %v1758_v51 = vmul.f32 %v1639_v46, %v4321_v41  ;;  %v612_v52 = vmul.f32 %v2867_v47, %v4181_v38 }
 0x142   : > { %v2871_v53 = vpop.eup %2870  ;;  %2890 = vpow2.f32 %v1816_v28  ;;  %v1836_v54 = vmul.f32 1.442695, %v1761_v29  ;;  %v1759_v55 = vmul.f32 %v1641_v49, %v4321_v41  ;;  %v613_v56 = vmul.f32 %v2867_v47, %v4184_v39  ;;  %v3544_v28 = vld [vmem:[%s4090_s6 + $0x100] sm:$0xff]  ;;  %v3545_v49 = vld [vmem:[%s4090_s6 + $0x108] sm:$0xff] }
 0x143   : > { %v2873_v57 = vpop.eup %2872  ;;  %2892 = vpow2.f32 %v1834_v50  ;;  %v1830_v58 = vmul.f32 1.442695, %v1758_v51  ;;  %v676_v59 = vmax.f32 %v612_v52, 1e-06  ;;  %v538_v38 = vmax.f32 %v4314_v33, 1e-24  ;;  %v466_v37 = vpop.xlane.xlu0 %465 }
 0x144   : > { %v2875_v61 = vpop.eup %2874  ;;  %2894 = vpow2.f32 %v1836_v54  ;;  %v1832_v62 = vmul.f32 1.442695, %v1759_v55  ;;  %v677_v63 = vmax.f32 %v613_v56, 1e-06  ;;  %v1439_v39 = vmax.f32 %v4323_v48, 1e-24 }
 0x145   : > { %v2877_v4 = vpop.eup %2876  ;;  %2896 = vpow2.f32 %v1830_v58  ;;  %v1438_v16 = vmax.f32 %v4325_v30, 1e-24  ;;  %v536_v2 = vmax.f32 %v4332_v9, 1e-24  ;;  %v532_v21 = vmax.f32 %v4335_v17, 1e-24 }
 0x146   : > { %v2879_v6 = vpop.eup %2878  ;;  %v4354_v10 = vadd.f32 %v2877_v4, %v2869_v31  ;;  %2898 = vpow2.f32 %v1832_v62  ;;  %v543_v30 = vmax.f32 %v4342_v14, 1e-24  ;;  %v542_v12 = vmax.f32 %v4345_v42, 1e-24  ;;  %v3546_v52 = vld [vmem:[%s4090_s6 + $0x150] sm:$0xff]  ;;  %v3547_v54 = vld [vmem:[%s4090_s6 + $0x158] sm:$0xff] }
 0x147   : > { %v2881_v11 = vpop.eup %2880  ;;  %v4357_v15 = vadd.f32 %v2879_v6, %v2871_v53  ;;  %2900 = vlog2.f32 %v676_v59  ;;  %v1436_v17 = vmax.f32 %v1354_v60, 1e-24  ;;  %v1432_v27 = vmax.f32 %v1342_v3, 1e-24  ;;  %v3548_v59 = vld [vmem:[%s4090_s6 + $0x140] sm:$0xff]  ;;  %v3549_v3 = vld [vmem:[%s4090_s6 + $0x148] sm:$0xff] }
 0x148   : > { %v2883_v0 = vpop.eup %2882  ;;  %v4360_v1 = vadd.f32 %v2881_v11, %v2873_v57  ;;  %2902 = vlog2.f32 %v677_v63  ;;  %v1443_v36 = vmax.f32 %v1375_v22, 1e-24  ;;  %v1442_v19 = vmax.f32 %v1372_v23, 1e-24  ;;  %v3550_v6 = vld [vmem:[%s4090_s6 + $0xa0] sm:$0xff] }
 0x149   : > { %v2885_v5 = vpop.eup %2884  ;;  %v4363_v33 = vadd.f32 %v2883_v0, %v2875_v61  ;;  %2904 = vrsqrt.f32 %v538_v38  ;;  %v546_v42 = vmax.f32 %v484_v32, 1e-24  ;;  %v540_v45 = vmax.f32 %v466_v37, 1e-24  ;;  %v3551_v0 = vld [vmem:[%s4090_s6 + $0xa8] sm:$0xff]  ;;  %v3556_v37 = vld [vmem:[%s4090_s6 + $0x180] sm:$0xff] }
 0x14a   : > { %v2887_v48 = vpop.eup %2886  ;;  %2906 = vrsqrt.f32 %v1439_v39 }
 0x14b   : > { %v2889_v24 = vpop.eup %2888  ;;  %2908 = vrsqrt.f32 %v1438_v16 }
 0x14c   : > { %v2891_v25 = vpop.eup %2890  ;;  %v4367_v7 = vadd.f32 %v2889_v24, %v2885_v5  ;;  %2910 = vrsqrt.f32 %v536_v2  ;;  %v3553_v24 = vld [vmem:[%s4090_s6 + $0x28] sm:$0xff] }
 0x14d   : > { %v2893_v8 = vpop.eup %2892  ;;  %v4369_v9 = vadd.f32 %v2891_v25, %v2887_v48  ;;  %2912 = vrsqrt.f32 %v532_v21  ;;  %v3552_v21 = vld [vmem:[%s4090_s6 + $0x20] sm:$0xff] }
 0x14e   : > { %v2895_v13 = vpop.eup %2894  ;;  %2914 = vrsqrt.f32 %v543_v30 }
 0x14f   : > { %v2897_v26 = vpop.eup %2896  ;;  %2916 = vrsqrt.f32 %v542_v12  ;;  %v3554_v12 = vld [vmem:[%s4090_s6 + $0x190] sm:$0xff] }
 0x150   : > { %v2899_v34 = vpop.eup %2898  ;;  %v4372_v35 = vadd.f32 %v2897_v26, %v2893_v8  ;;  %2918 = vrsqrt.f32 %v1436_v17 }
 0x151   : > { %v2901_v14 = vpop.eup %2900  ;;  %v4374_v18 = vadd.f32 %v2899_v34, %v2895_v13  ;;  %2920 = vrsqrt.f32 %v1432_v27  ;;  %v3555_v27 = vld [vmem:[%s4090_s6 + $0x198] sm:$0xff] }
 0x152   : > { %v2903_v20 = vpop.eup %2902  ;;  %v759_v40 = vmul.f32 0.6931472, %v2901_v14  ;;  %2922 = vrsqrt.f32 %v1443_v36 }
 0x153   : > { %v2905_v43 = vpop.eup %2904  ;;  %v761_v44 = vmul.f32 0.6931472, %v2903_v20  ;;  %2924 = vrsqrt.f32 %v1442_v19 }
 0x154   : > { %v2907_v46 = vpop.eup %2906  ;;  %v869_v47 = vmul.f32 %v759_v40, %v4321_v41  ;;  %v610_v29 = vmul.f32 %v3544_v28, %v2905_v43  ;;  %v611_v31 = vmul.f32 %v3545_v49, %v2905_v43  ;;  %2926 = vrsqrt.f32 %v546_v42  ;;  %v3557_v40 = vld [vmem:[%s4090_s6 + $0x188] sm:$0xff] }
 0x155   : > { %v2909_v50 = vpop.eup %2908  ;;  %v870_v51 = vmul.f32 %v761_v44, %v4321_v41  ;;  %v1512_v53 = vmul.f32 %v3546_v52, %v2907_v46  ;;  %v1513_v55 = vmul.f32 %v3547_v54, %v2907_v46  ;;  %2928 = vrsqrt.f32 %v540_v45  ;;  %v3558_v45 = vld [vmem:[%s4090_s6 + $0xe0] sm:$0xff] }
 0x156   : > { %v2911_v56 = vpop.eup %2910  ;;  %v951_v57 = vmul.f32 1.442695, %v869_v47  ;;  %v674_v58 = vmax.f32 %v610_v29, 1e-06  ;;  %v1510_v60 = vmul.f32 %v3548_v59, %v2909_v50  ;;  %v675_v63 = vmax.f32 %v611_v31, 1e-06 }
 0x157   : > { %v2913_v61 = vpop.eup %2912  ;;  %v953_v62 = vmul.f32 1.442695, %v870_v51  ;;  %v1511_v4 = vmul.f32 %v3549_v3, %v2909_v50  ;;  %v1576_v38 = vmax.f32 %v1512_v53, 1e-06  ;;  %v606_v39 = vmul.f32 %v3550_v6, %v2911_v56  ;;  %v3559_v29 = vld [vmem:[%s4090_s6 + $0xe8] sm:$0xff]  ;;  %v3560_v31 = vld [vmem:[%s4090_s6 + $0x60] sm:$0xff] }
 0x158   : > { %2930 = vpow2.f32 %v951_v57  ;;  %v2915_v11 = vpop.eup %2914  ;;  %v1577_v16 = vmax.f32 %v1513_v55, 1e-06  ;;  %v607_v2 = vmul.f32 %v3551_v0, %v2911_v56  ;;  %v1574_v5 = vmax.f32 %v1510_v60, 1e-06  ;;  %v3561_v55 = vld [vmem:[%s4090_s6 + $0x68] sm:$0xff]  ;;  %v3563_v6 = vld [vmem:[%s4090_s6 + $0x1d8] sm:$0xff] }
 0x159   : > { %2932 = vpow2.f32 %v953_v62  ;;  %v598_v22 = vmul.f32 %v3552_v21, %v2913_v61  ;;  %v2917_v48 = vpop.eup %2916  ;;  %v1575_v23 = vmax.f32 %v1511_v4, 1e-06  ;;  %v599_v30 = vmul.f32 %v3553_v24, %v2913_v61  ;;  %v3562_v4 = vld [vmem:[%s4090_s6 + $0x1d0] sm:$0xff] }
 0x15a   : > { %2934 = vlog2.f32 %v674_v58  ;;  %v2919_v25 = vpop.eup %2918  ;;  %v670_v8 = vmax.f32 %v606_v39, 1e-06  ;;  %v620_v13 = vmul.f32 %v3554_v12, %v2915_v11  ;;  %v671_v26 = vmax.f32 %v607_v2, 1e-06 }
 0x15b   : > { %2936 = vlog2.f32 %v675_v63  ;;  %v2921_v17 = vpop.eup %2920  ;;  %v621_v32 = vmul.f32 %v3555_v27, %v2915_v11  ;;  %v662_v36 = vmax.f32 %v598_v22, 1e-06  ;;  %v618_v14 = vmul.f32 %v3556_v37, %v2917_v48 }
 0x15c   : > { %2938 = vlog2.f32 %v1576_v38  ;;  %v2923_v34 = vpop.eup %2922  ;;  %v663_v20 = vmax.f32 %v599_v30, 1e-06  ;;  %v619_v42 = vmul.f32 %v3557_v40, %v2917_v48  ;;  %v684_v44 = vmax.f32 %v620_v13, 1e-06  ;;  %v3564_v48 = vld [vmem:[%s4090_s6 + $0x1c0] sm:$0xff] }
 0x15d   : > { %2940 = vlog2.f32 %v1577_v16  ;;  %v4391_v19 = vpop.eup %2924  ;;  %v1506_v46 = vmul.f32 %v3558_v45, %v2919_v25  ;;  %v685_v28 = vmax.f32 %v621_v32, 1e-06  ;;  %v1507_v49 = vmul.f32 %v3559_v29, %v2919_v25 }
 0x15e   : > { %2942 = vlog2.f32 %v1574_v5  ;;  %v4394_v43 = vpop.eup %2926  ;;  %v1498_v50 = vmul.f32 %v3560_v31, %v2921_v17  ;;  %v682_v52 = vmax.f32 %v618_v14, 1e-06  ;;  %v683_v54 = vmax.f32 %v619_v42, 1e-06 }
 0x15f   : > { %2944 = vlog2.f32 %v1575_v23  ;;  %v4397_v47 = vpop.eup %2928  ;;  %v4406_v56 = vmul.f32 %v3561_v55, %v2921_v17  ;;  %v1570_v58 = vmax.f32 %v1506_v46, 1e-06  ;;  %v1571_v61 = vmax.f32 %v1507_v49, 1e-06 }
 0x160   : > { %2946 = vlog2.f32 %v670_v8  ;;  %v1562_v62 = vmax.f32 %v1498_v50, 1e-06  ;;  %v4409_v38 = vmul.f32 %v3562_v4, %v2923_v34  ;;  %v4412_v39 = vmul.f32 %v3563_v6, %v2923_v34 }
 0x161   : > { %2948 = vlog2.f32 %v671_v26  ;;  %v1563_v2 = vmax.f32 %v4406_v56, 1e-06  ;;  %v4419_v23 = vmul.f32 %v3564_v48, %v4391_v19 }
 0x162   : > { %v4401_v51 = vpop.eup %2930  ;;  %2950 = vlog2.f32 %v662_v36 }
 0x163   : > { %v4403_v53 = vpop.eup %2932  ;;  %2952 = vlog2.f32 %v663_v20 }
 0x164   : > { %v2935_v57 = vpop.eup %2934  ;;  %2954 = vlog2.f32 %v684_v44 }
 0x165   : > { %v2937_v59 = vpop.eup %2936  ;;  %v755_v60 = vmul.f32 0.6931472, %v2935_v57  ;;  %2956 = vlog2.f32 %v685_v28 }
 0x166   : > { %v2939_v63 = vpop.eup %2938  ;;  %v757_v3 = vmul.f32 0.6931472, %v2937_v59  ;;  %2958 = vlog2.f32 %v682_v52 }
 0x167   : > { %v2941_v11 = vpop.eup %2940  ;;  %v867_v16 = vmul.f32 %v755_v60, %v4321_v41  ;;  %v1659_v0 = vmul.f32 0.6931472, %v2939_v63  ;;  %2960 = vlog2.f32 %v683_v54 }
 0x168   : > { %v2943_v5 = vpop.eup %2942  ;;  %v868_v21 = vmul.f32 %v757_v3, %v4321_v41  ;;  %v1661_v22 = vmul.f32 0.6931472, %v2941_v11  ;;  %2962 = vlog2.f32 %v1570_v58 }
 0x169   : > { %v2945_v24 = vpop.eup %2944  ;;  %v947_v30 = vmul.f32 1.442695, %v867_v16  ;;  %v1768_v25 = vmul.f32 %v1659_v0, %v4321_v41  ;;  %v1655_v8 = vmul.f32 0.6931472, %v2943_v5  ;;  %2964 = vlog2.f32 %v1571_v61 }
 0x16a   : > { %v2947_v12 = vpop.eup %2946  ;;  %v949_v13 = vmul.f32 1.442695, %v868_v21  ;;  %v1769_v17 = vmul.f32 %v1661_v22, %v4321_v41  ;;  %v1657_v26 = vmul.f32 0.6931472, %v2945_v24  ;;  %2966 = vlog2.f32 %v1562_v62 }
 0x16b   : > { %v2949_v27 = vpop.eup %2948  ;;  %2968 = vpow2.f32 %v947_v30  ;;  %v1850_v32 = vmul.f32 1.442695, %v1768_v25  ;;  %v1766_v34 = vmul.f32 %v1655_v8, %v4321_v41  ;;  %v747_v36 = vmul.f32 0.6931472, %v2947_v12  ;;  %v4433_v8 = vpop.xlane.xlu1 %1365 }
 0x16c   : > { %v2951_v37 = vpop.eup %2950  ;;  %2970 = vpow2.f32 %v949_v13  ;;  %v1852_v14 = vmul.f32 1.442695, %v1769_v17  ;;  %v1767_v20 = vmul.f32 %v1657_v26, %v4321_v41  ;;  %v749_v40 = vmul.f32 0.6931472, %v2949_v27 }
 0x16d   : > { %v2953_v42 = vpop.eup %2952  ;;  %2972 = vpow2.f32 %v1850_v32  ;;  %v1846_v44 = vmul.f32 1.442695, %v1766_v34  ;;  %v863_v45 = vmul.f32 %v747_v36, %v4321_v41  ;;  %v731_v46 = vmul.f32 0.6931472, %v2951_v37 }
 0x16e   : > { %v2955_v28 = vpop.eup %2954  ;;  %2974 = vpow2.f32 %v1852_v14  ;;  %v1848_v29 = vmul.f32 1.442695, %v1767_v20  ;;  %v864_v49 = vmul.f32 %v749_v40, %v4321_v41  ;;  %v733_v31 = vmul.f32 0.6931472, %v2953_v42 }
 0x16f   : > { %v2957_v50 = vpop.eup %2956  ;;  %2976 = vpow2.f32 %v1846_v44  ;;  %v939_v52 = vmul.f32 1.442695, %v863_v45  ;;  %v855_v54 = vmul.f32 %v731_v46, %v4321_v41  ;;  %v775_v55 = vmul.f32 0.6931472, %v2955_v28  ;;  %v3565_v45 = vld [vmem:[%s4090_s6 + $0x1c8] sm:$0xff]  ;;  %v4446_v46 = vpop.xlane.xlu0 %486 }
 0x170   : > { %v2959_v57 = vpop.eup %2958  ;;  %2978 = vpow2.f32 %v1848_v29  ;;  %v941_v58 = vmul.f32 1.442695, %v864_v49  ;;  %v856_v59 = vmul.f32 %v733_v31, %v4321_v41  ;;  %v777_v60 = vmul.f32 0.6931472, %v2957_v50 }
 0x171   : > { %v2961_v61 = vpop.eup %2960  ;;  %2980 = vpow2.f32 %v939_v52  ;;  %v923_v62 = vmul.f32 1.442695, %v855_v54  ;;  %v877_v63 = vmul.f32 %v775_v55, %v4321_v41  ;;  %v771_v3 = vmul.f32 0.6931472, %v2959_v57  ;;  %v3566_v52 = vld [vmem:[%s4090_s6 + $0x200] sm:$0xff]  ;;  %v1387_v55 = vpop.xlane.xlu1 %1386 }
 0x172   : > { %v2963_v4 = vpop.eup %2962  ;;  %2982 = vpow2.f32 %v941_v58  ;;  %v925_v6 = vmul.f32 1.442695, %v856_v59  ;;  %v878_v11 = vmul.f32 %v777_v60, %v4321_v41  ;;  %v773_v16 = vmul.f32 0.6931472, %v2961_v61 }
 0x173   : > { %v2965_v0 = vpop.eup %2964  ;;  %2984 = vpow2.f32 %v923_v62  ;;  %v967_v5 = vmul.f32 1.442695, %v877_v63  ;;  %v875_v21 = vmul.f32 %v771_v3, %v4321_v41  ;;  %v1647_v22 = vmul.f32 0.6931472, %v2963_v4  ;;  %v3568_v62 = vld [vmem:[%s4090_s6 + $0x128] sm:$0xff] }
 0x174   : > { %v2967_v48 = vpop.eup %2966  ;;  %2986 = vpow2.f32 %v925_v6  ;;  %v969_v24 = vmul.f32 1.442695, %v878_v11  ;;  %v876_v30 = vmul.f32 %v773_v16, %v4321_v41  ;;  %v1649_v25 = vmul.f32 0.6931472, %v2965_v0  ;;  %v1384_v6 = vpop.xlane.xlu0 %1383 }
 0x175   : > { %v2969_v12 = vpop.eup %2968  ;;  %2988 = vpow2.f32 %v967_v5  ;;  %v963_v13 = vmul.f32 1.442695, %v875_v21  ;;  %v1762_v17 = vmul.f32 %v1647_v22, %v4321_v41  ;;  %v1631_v26 = vmul.f32 0.6931472, %v2967_v48  ;;  %v3569_v48 = vld [vmem:[%s4090_s6 + $0x208] sm:$0xff] }
 0x176   : > { %v2971_v27 = vpop.eup %2970  ;;  %v4437_v32 = vadd.f32 %v2969_v12, %v4401_v51  ;;  %2990 = vpow2.f32 %v969_v24  ;;  %v965_v34 = vmul.f32 1.442695, %v876_v30  ;;  %v1763_v36 = vmul.f32 %v1649_v25, %v4321_v41 }
 0x177   : > { %v2973_v37 = vpop.eup %2972  ;;  %v4441_v14 = vadd.f32 %v2971_v27, %v4403_v53  ;;  %2992 = vpow2.f32 %v963_v13  ;;  %v1838_v20 = vmul.f32 1.442695, %v1762_v17  ;;  %v1754_v40 = vmul.f32 %v1631_v26, %v4321_v41 }
 0x178   : > { %v2975_v42 = vpop.eup %2974  ;;  %2994 = vpow2.f32 %v965_v34  ;;  %v1840_v44 = vmul.f32 1.442695, %v1763_v36  ;;  %v1519_v51 = vmul.f32 %v3565_v45, %v4391_v19  ;;  %v1584_v53 = vmax.f32 %v4409_v38, 1e-06  ;;  %v3567_v38 = vld [vmem:[%s4090_s6 + $0x120] sm:$0xff]  ;;  %v445_v26 = vpop.xlane.xlu0 %444 }
 0x179   : > { %v2977_v28 = vpop.eup %2976  ;;  %2996 = vpow2.f32 %v1838_v20  ;;  %v1822_v29 = vmul.f32 1.442695, %v1754_v40  ;;  %v1585_v50 = vmax.f32 %v4412_v39, 1e-06  ;;  %v626_v54 = vmul.f32 %v3566_v52, %v4394_v43 }
 0x17a   : > { %v2979_v49 = vpop.eup %2978  ;;  %v4449_v31 = vadd.f32 %v2977_v28, %v2973_v37  ;;  %2998 = vpow2.f32 %v1840_v44  ;;  %v1582_v58 = vmax.f32 %v4419_v23, 1e-06  ;;  %v614_v59 = vmul.f32 %v3567_v38, %v4397_v47 }
 0x17b   : > { %v2981_v19 = vpop.eup %2980  ;;  %v4454_v57 = vadd.f32 %v2979_v49, %v2975_v42  ;;  %3000 = vlog2.f32 %v1563_v2  ;;  %v1583_v39 = vmax.f32 %v1519_v51, 1e-06  ;;  %v615_v63 = vmul.f32 %v3568_v62, %v4397_v47 }
 0x17c   : > { %v2983_v60 = vpop.eup %2982  ;;  %v4462_v61 = vadd.f32 %v2981_v19, %v4354_v10  ;;  %3002 = vpow2.f32 %v1822_v29  ;;  %v690_v23 = vmax.f32 %v626_v54, 1e-06  ;;  %v678_v16 = vmax.f32 %v614_v59, 1e-06 }
 0x17d   : > { %v2985_v3 = vpop.eup %2984  ;;  %v4467_v4 = vadd.f32 %v2983_v60, %v4357_v15  ;;  %3004 = vlog2.f32 %v1584_v53  ;;  %v679_v0 = vmax.f32 %v615_v63, 1e-06  ;;  %v457_v15 = vpop.xlane.xlu1 %456  ;;  %v1440_v21 = vmax.f32 %v4433_v8, 1e-24 }
 0x17e   : > { %v2987_v56 = vpop.eup %2986  ;;  %v4470_v2 = vadd.f32 %v2985_v3, %v4360_v1  ;;  %3006 = vlog2.f32 %v1585_v50  ;;  %v627_v24 = vmul.f32 %v3569_v48, %v4394_v43  ;;  %v547_v30 = vmax.f32 %v4446_v46, 1e-24 }
 0x17f   : > { %v2989_v10 = vpop.eup %2988  ;;  %v4473_v11 = vadd.f32 %v2987_v56, %v4363_v33  ;;  %3008 = vlog2.f32 %v1582_v58  ;;  %v1447_v12 = vmax.f32 %v1387_v55, 1e-24  ;;  %v1446_v8 = vmax.f32 %v1384_v6, 1e-24 }
 0x180   : > { %v2991_v47 = vpop.eup %2990  ;;  %3010 = vlog2.f32 %v1583_v39  ;;  %v537_v43 = vmax.f32 %v457_v15, 1e-24  ;;  %v691_v20 = vmax.f32 %v627_v24, 1e-06 }
 0x181   : > { %v2993_v5 = vpop.eup %2992  ;;  %3012 = vlog2.f32 %v690_v23  ;;  %v496_v40 = vpop.xlane.xlu1 %495 }
 0x182   : > { %v2995_v22 = vpop.eup %2994  ;;  %v4476_v1 = vadd.f32 %v2993_v5, %v2989_v10  ;;  %3014 = vlog2.f32 %v678_v16  ;;  %v550_v29 = vmax.f32 %v496_v40, 1e-24  ;;  %v3570_v16 = vld [vmem:[%s4090_s6 + $0x160] sm:$0xff]  ;;  %v3571_v5 = vld [vmem:[%s4090_s6 + $0x168] sm:$0xff]  ;;  %v3575_v40 = vld [vmem:[%s4090_s6 + $0x258] sm:$0xff] }
 0x183   : > { %v2997_v33 = vpop.eup %2996  ;;  %v4481_v25 = vadd.f32 %v2995_v22, %v2991_v47  ;;  %3016 = vlog2.f32 %v679_v0 }
 0x184   : > { %v2999_v13 = vpop.eup %2998  ;;  %v4484_v17 = vadd.f32 %v2997_v33, %v4372_v35  ;;  %3018 = vrsqrt.f32 %v1440_v21  ;;  %v533_v35 = vmax.f32 %v445_v26, 1e-24  ;;  %v3573_v26 = vld [vmem:[%s4090_s6 + $0x218] sm:$0xff] }
 0x185   : > { %v3001_v27 = vpop.eup %3000  ;;  %v4487_v34 = vadd.f32 %v2999_v13, %v4374_v18  ;;  %3020 = vrsqrt.f32 %v547_v30  ;;  %v3572_v30 = vld [vmem:[%s4090_s6 + $0x210] sm:$0xff] }
 0x186   : > { %v3003_v36 = vpop.eup %3002  ;;  %v1633_v37 = vmul.f32 0.6931472, %v3001_v27  ;;  %3022 = vrsqrt.f32 %v1447_v12 }
 0x187   : > { %v3005_v42 = vpop.eup %3004  ;;  %v4490_v44 = vadd.f32 %v3003_v36, %v4367_v7  ;;  %3024 = vrsqrt.f32 %v1446_v8 }
 0x188   : > { %v3007_v45 = vpop.eup %3006  ;;  %v1755_v51 = vmul.f32 %v1633_v37, %v4321_v41  ;;  %v1675_v46 = vmul.f32 0.6931472, %v3005_v42  ;;  %3026 = vrsqrt.f32 %v537_v43  ;;  %v3574_v37 = vld [vmem:[%s4090_s6 + $0x250] sm:$0xff] }
 0x189   : > { %v3009_v18 = vpop.eup %3008  ;;  %v1677_v28 = vmul.f32 0.6931472, %v3007_v45  ;;  %3028 = vlog2.f32 %v691_v20 }
 0x18a   : > { %v3011_v53 = vpop.eup %3010  ;;  %v1824_v49 = vmul.f32 1.442695, %v1755_v51  ;;  %v1776_v50 = vmul.f32 %v1675_v46, %v4321_v41  ;;  %v1671_v52 = vmul.f32 0.6931472, %v3009_v18  ;;  %3030 = vrsqrt.f32 %v533_v35  ;;  %v3576_v51 = vld [vmem:[%s4090_s6 + $0x240] sm:$0xff]  ;;  %v3577_v18 = vld [vmem:[%s4090_s6 + $0x248] sm:$0xff] }
 0x18b   : > { %v1777_v7 = vmul.f32 %v1677_v28, %v4321_v41  ;;  %v1673_v54 = vmul.f32 0.6931472, %v3011_v53  ;;  %v3013_v55 = vpop.eup %3012 }
 0x18c   : > { %3032 = vpow2.f32 %v1824_v49  ;;  %v1866_v19 = vmul.f32 1.442695, %v1776_v50  ;;  %v1774_v58 = vmul.f32 %v1671_v52, %v4321_v41  ;;  %v3015_v38 = vpop.eup %3014  ;;  %v787_v53 = vmul.f32 0.6931472, %v3013_v55  ;;  %v3578_v50 = vld [vmem:[%s4090_s6 + $0xb0] sm:$0xff] }
 0x18d   : > { %v1868_v59 = vmul.f32 1.442695, %v1777_v7  ;;  %v1775_v60 = vmul.f32 %v1673_v54, %v4321_v41  ;;  %3034 = vrsqrt.f32 %v550_v29  ;;  %v3017_v39 = vpop.eup %3016  ;;  %v763_v63 = vmul.f32 0.6931472, %v3015_v38 }
 0x18e   : > { %3036 = vpow2.f32 %v1866_v19  ;;  %v1862_v62 = vmul.f32 1.442695, %v1774_v58  ;;  %v3019_v3 = vpop.eup %3018  ;;  %v765_v23 = vmul.f32 0.6931472, %v3017_v39 }
 0x18f   : > { %3038 = vpow2.f32 %v1868_v59  ;;  %v1864_v56 = vmul.f32 1.442695, %v1775_v60  ;;  %v3021_v6 = vpop.eup %3020  ;;  %v871_v10 = vmul.f32 %v763_v63, %v4321_v41  ;;  %v1514_v47 = vmul.f32 %v3570_v16, %v3019_v3  ;;  %v3579_v60 = vld [vmem:[%s4090_s6 + $0xb8] sm:$0xff] }
 0x190   : > { %3040 = vpow2.f32 %v1862_v62  ;;  %v3023_v0 = vpop.eup %3022  ;;  %v872_v15 = vmul.f32 %v765_v23, %v4321_v41  ;;  %v1515_v21 = vmul.f32 %v3571_v5, %v3019_v3  ;;  %v628_v33 = vmul.f32 %v3572_v30, %v3021_v6  ;;  %v3580_v62 = vld [vmem:[%s4090_s6 + $0x30] sm:$0xff] }
 0x191   : > { %3042 = vpow2.f32 %v1864_v56  ;;  %v3025_v22 = vpop.eup %3024  ;;  %v955_v48 = vmul.f32 1.442695, %v871_v10  ;;  %v1578_v24 = vmax.f32 %v1514_v47, 1e-06  ;;  %v629_v27 = vmul.f32 %v3573_v26, %v3021_v6  ;;  %v3581_v56 = vld [vmem:[%s4090_s6 + $0x38] sm:$0xff] }
 0x192   : > { %v3027_v12 = vpop.eup %3026  ;;  %v957_v13 = vmul.f32 1.442695, %v872_v15  ;;  %v1579_v8 = vmax.f32 %v1515_v21, 1e-06  ;;  %v692_v36 = vmax.f32 %v628_v33, 1e-06  ;;  %v1528_v20 = vmul.f32 %v3574_v37, %v3023_v0  ;;  %v478_v15 = vpop.xlane.xlu0 %477 }
 0x193   : > { %v3029_v43 = vpop.eup %3028  ;;  %3044 = vpow2.f32 %v955_v48  ;;  %v1529_v42 = vmul.f32 %v3575_v40, %v3023_v0  ;;  %v693_v45 = vmax.f32 %v629_v27, 1e-06  ;;  %v1526_v46 = vmul.f32 %v3576_v51, %v3025_v22  ;;  %v1345_v27 = vpop.xlane.xlu1 %1344 }
 0x194   : > { %v3031_v35 = vpop.eup %3030  ;;  %3046 = vpow2.f32 %v957_v13  ;;  %v1527_v28 = vmul.f32 %v3577_v18, %v3025_v22  ;;  %v1592_v49 = vmax.f32 %v1528_v20, 1e-06  ;;  %v608_v52 = vmul.f32 %v3578_v50, %v3027_v12 }
 0x195   : > { %3048 = vlog2.f32 %v1578_v24  ;;  %v789_v19 = vmul.f32 0.6931472, %v3029_v43  ;;  %v1593_v58 = vmax.f32 %v1529_v42, 1e-06  ;;  %v1590_v59 = vmax.f32 %v1526_v46, 1e-06 }
 0x196   : > { %v3033_v29 = vpop.eup %3032  ;;  %3050 = vlog2.f32 %v1579_v8  ;;  %v609_v39 = vmul.f32 %v3579_v60, %v3027_v12  ;;  %v600_v55 = vmul.f32 %v3580_v62, %v3031_v35  ;;  %v1591_v3 = vmax.f32 %v1527_v28, 1e-06  ;;  %v3582_v24 = vld [vmem:[%s4090_s6 + $0x280] sm:$0xff] }
 0x197   : > { %v4508_v7 = vpop.eup %3034  ;;  %v4511_v54 = vadd.f32 %v3033_v29, %v4369_v9  ;;  %3052 = vlog2.f32 %v692_v36  ;;  %v601_v23 = vmul.f32 %v3581_v56, %v3031_v35  ;;  %v672_v9 = vmax.f32 %v608_v52, 1e-06 }
 0x198   : > { %v3037_v38 = vpop.eup %3036  ;;  %3054 = vlog2.f32 %v693_v45  ;;  %v883_v47 = vmul.f32 %v787_v53, %v4321_v41  ;;  %v673_v0 = vmax.f32 %v609_v39, 1e-06  ;;  %v884_v21 = vmul.f32 %v789_v19, %v4321_v41  ;;  %v3583_v53 = vld [vmem:[%s4090_s6 + $0x288] sm:$0xff] }
 0x199   : > { %v3039_v63 = vpop.eup %3038  ;;  %3056 = vlog2.f32 %v1592_v49  ;;  %v664_v22 = vmax.f32 %v600_v55, 1e-06  ;;  %v665_v48 = vmax.f32 %v601_v23, 1e-06  ;;  %v634_v30 = vmul.f32 %v3582_v24, %v4508_v7  ;;  %v4542_v24 = vpop.xlane.xlu0 %498 }
 0x19a   : > { %v3041_v6 = vpop.eup %3040  ;;  %3058 = vlog2.f32 %v1593_v58  ;;  %v544_v12 = vmax.f32 %v478_v15, 1e-24  ;;  %v979_v8 = vmul.f32 1.442695, %v883_v47  ;;  %v981_v36 = vmul.f32 1.442695, %v884_v21 }
 0x19b   : > { %v3043_v10 = vpop.eup %3042  ;;  %v4516_v16 = vadd.f32 %v3041_v6, %v3037_v38  ;;  %3060 = vlog2.f32 %v1590_v59  ;;  %v698_v42 = vmax.f32 %v634_v30, 1e-06  ;;  %v1433_v51 = vmax.f32 %v1345_v27, 1e-24 }
 0x19c   : > { %v4519_v5 = vadd.f32 %v3043_v10, %v3039_v63  ;;  %3062 = vlog2.f32 %v1591_v3  ;;  %v4534_v49 = vmul.f32 %v3583_v53, %v4508_v7 }
 0x19d   : > { %v3045_v33 = vpop.eup %3044  ;;  %3064 = vlog2.f32 %v672_v9 }
 0x19e   : > { %v3047_v13 = vpop.eup %3046  ;;  %v4525_v26 = vadd.f32 %v3045_v33, %v4437_v32  ;;  %3066 = vlog2.f32 %v673_v0 }
 0x19f   : > { %v3049_v43 = vpop.eup %3048  ;;  %v4528_v37 = vadd.f32 %v3047_v13, %v4441_v14  ;;  %3068 = vlog2.f32 %v664_v22 }
 0x1a0   : > { %v3051_v20 = vpop.eup %3050  ;;  %v1663_v40 = vmul.f32 0.6931472, %v3049_v43  ;;  %3070 = vlog2.f32 %v665_v48 }
 0x1a1   : > { %v3053_v35 = vpop.eup %3052  ;;  %v1665_v45 = vmul.f32 0.6931472, %v3051_v20  ;;  %3072 = vrsqrt.f32 %v544_v12 }
 0x1a2   : > { %v3055_v46 = vpop.eup %3054  ;;  %3074 = vpow2.f32 %v979_v8  ;;  %v1770_v32 = vmul.f32 %v1663_v40, %v4321_v41  ;;  %v791_v18 = vmul.f32 0.6931472, %v3053_v35 }
 0x1a3   : > { %v3057_v28 = vpop.eup %3056  ;;  %3076 = vpow2.f32 %v981_v36  ;;  %v1771_v14 = vmul.f32 %v1665_v45, %v4321_v41  ;;  %v793_v29 = vmul.f32 0.6931472, %v3055_v46 }
 0x1a4   : > { %v3059_v50 = vpop.eup %3058  ;;  %v1854_v52 = vmul.f32 1.442695, %v1770_v32  ;;  %v885_v19 = vmul.f32 %v791_v18, %v4321_v41  ;;  %v1691_v58 = vmul.f32 0.6931472, %v3057_v28  ;;  %3078 = vlog2.f32 %v698_v42 }
 0x1a5   : > { %v3061_v38 = vpop.eup %3060  ;;  %v1856_v59 = vmul.f32 1.442695, %v1771_v14  ;;  %v886_v60 = vmul.f32 %v793_v29, %v4321_v41  ;;  %v1693_v39 = vmul.f32 0.6931472, %v3059_v50  ;;  %3080 = vrsqrt.f32 %v1433_v51  ;;  %v1357_v29 = vpop.xlane.xlu0 %1356  ;;  %v3584_v50 = vld [vmem:[%s4090_s6 + $0x70] sm:$0xff] }
 0x1a6   : > { %v3063_v62 = vpop.eup %3062  ;;  %3082 = vpow2.f32 %v1854_v52  ;;  %v983_v55 = vmul.f32 1.442695, %v885_v19  ;;  %v1784_v63 = vmul.f32 %v1691_v58, %v4321_v41  ;;  %v1687_v3 = vmul.f32 0.6931472, %v3061_v38 }
 0x1a7   : > { %v3065_v7 = vpop.eup %3064  ;;  %3084 = vpow2.f32 %v1856_v59  ;;  %v985_v56 = vmul.f32 1.442695, %v886_v60  ;;  %v1785_v23 = vmul.f32 %v1693_v39, %v4321_v41  ;;  %v1689_v6 = vmul.f32 0.6931472, %v3063_v62  ;;  %v1378_v39 = vpop.xlane.xlu1 %1377 }
 0x1a8   : > { %v3067_v9 = vpop.eup %3066  ;;  %3086 = vpow2.f32 %v983_v55  ;;  %v1882_v10 = vmul.f32 1.442695, %v1784_v63  ;;  %v1782_v47 = vmul.f32 %v1687_v3, %v4321_v41  ;;  %v751_v0 = vmul.f32 0.6931472, %v3065_v7 }
 0x1a9   : > { %v3069_v15 = vpop.eup %3068  ;;  %3088 = vpow2.f32 %v985_v56  ;;  %v1884_v21 = vmul.f32 1.442695, %v1785_v23  ;;  %v1783_v22 = vmul.f32 %v1689_v6, %v4321_v41  ;;  %v753_v48 = vmul.f32 0.6931472, %v3067_v9  ;;  %v3586_v56 = vld [vmem:[%s4090_s6 + $0x1a0] sm:$0xff]  ;;  %v4562_v9 = vpop.xlane.xlu0 %1395 }
 0x1aa   : > { %v3071_v30 = vpop.eup %3070  ;;  %3090 = vpow2.f32 %v1882_v10  ;;  %v1878_v33 = vmul.f32 1.442695, %v1782_v47  ;;  %v865_v12 = vmul.f32 %v751_v0, %v4321_v41  ;;  %v735_v13 = vmul.f32 0.6931472, %v3069_v15 }
 0x1ab   : > { %v3073_v8 = vpop.eup %3072  ;;  %3092 = vpow2.f32 %v1884_v21  ;;  %v1880_v27 = vmul.f32 1.442695, %v1783_v22  ;;  %v866_v43 = vmul.f32 %v753_v48, %v4321_v41  ;;  %v737_v36 = vmul.f32 0.6931472, %v3071_v30  ;;  %v1399_v30 = vpop.xlane.xlu1 %1398 }
 0x1ac   : > { %v3075_v20 = vpop.eup %3074  ;;  %3094 = vpow2.f32 %v1878_v33  ;;  %v943_v40 = vmul.f32 1.442695, %v865_v12  ;;  %v857_v42 = vmul.f32 %v735_v13, %v4321_v41  ;;  %v699_v18 = vmax.f32 %v4534_v49, 1e-06  ;;  %v3585_v49 = vld [vmem:[%s4090_s6 + $0x78] sm:$0xff]  ;;  %v3587_v13 = vld [vmem:[%s4090_s6 + $0x1a8] sm:$0xff] }
 0x1ad   : > { %v3077_v35 = vpop.eup %3076  ;;  %3096 = vpow2.f32 %v1880_v27  ;;  %v945_v45 = vmul.f32 1.442695, %v866_v43  ;;  %v858_v51 = vmul.f32 %v737_v36, %v4321_v41  ;;  %v622_v23 = vmul.f32 %v3586_v56, %v3073_v8 }
 0x1ae   : > { %v3079_v46 = vpop.eup %3078  ;;  %3098 = vpow2.f32 %v943_v40  ;;  %v927_v32 = vmul.f32 1.442695, %v857_v42  ;;  %v551_v10 = vmax.f32 %v4542_v24, 1e-24  ;;  %v1437_v15 = vmax.f32 %v1357_v29, 1e-24 }
 0x1af   : > { %v3081_v28 = vpop.eup %3080  ;;  %3100 = vpow2.f32 %v945_v45  ;;  %v929_v14 = vmul.f32 1.442695, %v858_v51  ;;  %v686_v48 = vmax.f32 %v622_v23, 1e-06  ;;  %v623_v27 = vmul.f32 %v3587_v13, %v3073_v8 }
 0x1b0   : > { %v3083_v53 = vpop.eup %3082  ;;  %3102 = vpow2.f32 %v927_v32  ;;  %v1500_v52 = vmul.f32 %v3584_v50, %v3081_v28  ;;  %v1501_v60 = vmul.f32 %v3585_v49, %v3081_v28  ;;  %v1444_v43 = vmax.f32 %v1378_v39, 1e-24 }
 0x1b1   : > { %v3085_v19 = vpop.eup %3084  ;;  %v4551_v58 = vadd.f32 %v3083_v53, %v4449_v31  ;;  %3104 = vpow2.f32 %v929_v14  ;;  %v1451_v42 = vmax.f32 %v1399_v30, 1e-24  ;;  %v687_v32 = vmax.f32 %v623_v27, 1e-06  ;;  %v490_v53 = vpop.xlane.xlu1 %489  ;;  %v3592_v27 = vld [vmem:[%s4090_s6 + $0x1e0] sm:$0xff] }
 0x1b2   : > { %v3087_v38 = vpop.eup %3086  ;;  %v4554_v59 = vadd.f32 %v3085_v19, %v4454_v57  ;;  %3106 = vlog2.f32 %v699_v18  ;;  %v1564_v63 = vmax.f32 %v1500_v52, 1e-06  ;;  %v1565_v31 = vmax.f32 %v1501_v60, 1e-06 }
 0x1b3   : > { %v3089_v62 = vpop.eup %3088  ;;  %v4557_v55 = vadd.f32 %v3087_v38, %v3075_v20  ;;  %v548_v23 = vmax.f32 %v490_v53, 1e-24  ;;  %v3595_v53 = vld [vmem:[%s4090_s6 + $0x2d8] sm:$0xff] }
 0x1b4   : > { %v3091_v3 = vpop.eup %3090  ;;  %v4559_v7 = vadd.f32 %v3089_v62, %v3077_v35  ;;  %3108 = vlog2.f32 %v1564_v63  ;;  %v469_v35 = vpop.xlane.xlu0 %468  ;;  %v1450_v62 = vmax.f32 %v4562_v9, 1e-24 }
 0x1b5   : > { %v3093_v6 = vpop.eup %3092  ;;  %3110 = vlog2.f32 %v1565_v31  ;;  %v541_v8 = vmax.f32 %v469_v35, 1e-24  ;;  %v3588_v31 = vld [vmem:[%s4090_s6 + $0x290] sm:$0xff] }
 0x1b6   : > { %v3095_v57 = vpop.eup %3094  ;;  %3112 = vrsqrt.f32 %v551_v10 }
 0x1b7   : > { %v3097_v47 = vpop.eup %3096  ;;  %v4565_v0 = vadd.f32 %v3095_v57, %v3091_v3  ;;  %3114 = vrsqrt.f32 %v1437_v15  ;;  %v3589_v57 = vld [vmem:[%s4090_s6 + $0xf0] sm:$0xff] }
 0x1b8   : > { %v3099_v21 = vpop.eup %3098  ;;  %v4567_v22 = vadd.f32 %v3097_v47, %v3093_v6  ;;  %3116 = vlog2.f32 %v686_v48  ;;  %v3590_v47 = vld [vmem:[%s4090_s6 + $0xf8] sm:$0xff] }
 0x1b9   : > { %v3101_v33 = vpop.eup %3100  ;;  %v4570_v12 = vadd.f32 %v3099_v21, %v4462_v61  ;;  %v803_v61 = vmul.f32 0.6931472, %v3079_v46  ;;  %3118 = vrsqrt.f32 %v1444_v43  ;;  %v511_v21 = vpop.xlane.xlu1 %510 }
 0x1ba   : > { %5287 = vst [vmem:[#allocation18_spill] sm:$0xff] %v4567_v22  ;;  %v3103_v36 = vpop.eup %3102  ;;  %v4574_v24 = vadd.f32 %v3101_v33, %v4467_v4  ;;  %3120 = vrsqrt.f32 %v1451_v42  ;;  %v3591_v33 = vld [vmem:[%s4090_s6 + $0x298] sm:$0xff] }
 0x1bb   : > { %v3105_v20 = vpop.eup %3104  ;;  %v1045_v40 = vadd.f32 %v3103_v36, %v4470_v2  ;;  %v891_v14 = vmul.f32 %v803_v61, %v4321_v41  ;;  %3122 = vlog2.f32 %v687_v32  ;;  %v555_v32 = vmax.f32 %v511_v21, 1e-24 }
 0x1bc   : > { %v3107_v45 = vpop.eup %3106  ;;  %v1054_v51 = vadd.f32 %v3105_v20, %v4473_v11  ;;  %3124 = vrsqrt.f32 %v541_v8 }
 0x1bd   : > { %v805_v18 = vmul.f32 0.6931472, %v3107_v45  ;;  %v995_v38 = vmul.f32 1.442695, %v891_v14  ;;  %v1046_v3 = vrot.slane %v1045_v40, 4  ;;  %v3593_v45 = vld [vmem:[%s4090_s6 + $0x1e8] sm:$0xff]  ;;  %v4590_v14 = vpop.xlane.xlu0 %507 }
 0x1be   : > { %v3109_v28 = vpop.eup %3108  ;;  %v1055_v30 = vrot.slane %v1054_v51, 4 }
 0x1bf   : > { %v3111_v4 = vpop.eup %3110  ;;  %v1635_v29 = vmul.f32 0.6931472, %v3109_v28  ;;  %v892_v50 = vmul.f32 %v805_v18, %v4321_v41  ;;  %v1047_v35 = vadd.f32 %v1046_v3, %v1045_v40  ;;  %v3594_v28 = vld [vmem:[%s4090_s6 + $0x2d0] sm:$0xff] }
 0x1c0   : > { %v1637_v2 = vmul.f32 0.6931472, %v3111_v4  ;;  %v3113_v46 = vpop.eup %3112 }
 0x1c1   : > { %v1756_v11 = vmul.f32 %v1635_v29, %v4321_v41  ;;  %v3115_v19 = vpop.eup %3114  ;;  %v997_v56 = vmul.f32 1.442695, %v892_v50  ;;  %v636_v6 = vmul.f32 %v3588_v31, %v3113_v46  ;;  %v637_v13 = vmul.f32 %v3591_v33, %v3113_v46 }
 0x1c2   : > { %v1757_v52 = vmul.f32 %v1637_v2, %v4321_v41  ;;  %v3117_v60 = vpop.eup %3116  ;;  %v1508_v10 = vmul.f32 %v3589_v57, %v3115_v19  ;;  %v1509_v15 = vmul.f32 %v3590_v47, %v3115_v19  ;;  %v1056_v29 = vadd.f32 %v1055_v30, %v1054_v51  ;;  %v1369_v57 = vpop.xlane.xlu0 %1368 }
 0x1c3   : > { %v1826_v49 = vmul.f32 1.442695, %v1756_v11  ;;  %v3119_v63 = vpop.eup %3118  ;;  %v779_v9 = vmul.f32 0.6931472, %v3117_v60  ;;  %v700_v18 = vmax.f32 %v636_v6, 1e-06 }
 0x1c4   : > { %v1828_v39 = vmul.f32 1.442695, %v1757_v52  ;;  %v3121_v48 = vpop.eup %3120  ;;  %v1522_v43 = vmul.f32 %v3592_v27, %v3119_v63  ;;  %v1572_v36 = vmax.f32 %v1508_v10, 1e-06  ;;  %v1573_v20 = vmax.f32 %v1509_v15, 1e-06 }
 0x1c5   : > { %3126 = vpow2.f32 %v1826_v49  ;;  %v3123_v42 = vpop.eup %3122  ;;  %v1523_v61 = vmul.f32 %v3593_v45, %v3119_v63  ;;  %v1536_v4 = vmul.f32 %v3594_v28, %v3121_v48  ;;  %v701_v2 = vmax.f32 %v637_v13, 1e-06 }
 0x1c6   : > { %3128 = vpow2.f32 %v1828_v39  ;;  %v3125_v8 = vpop.eup %3124  ;;  %v1537_v50 = vmul.f32 %v3595_v53, %v3121_v48  ;;  %v781_v11 = vmul.f32 0.6931472, %v3123_v42  ;;  %v879_v40 = vmul.f32 %v779_v9, %v4321_v41  ;;  %v3597_v39 = vld [vmem:[%s4090_s6 + $0x138] sm:$0xff] }
 0x1c7   : > { %3130 = vpow2.f32 %v995_v38  ;;  %v1586_v46 = vmax.f32 %v1522_v43, 1e-06  ;;  %v1048_v52 = vrot.slane %v1047_v35, 2  ;;  %v1587_v19 = vmax.f32 %v1523_v61, 1e-06  ;;  %v3596_v38 = vld [vmem:[%s4090_s6 + $0x130] sm:$0xff]  ;;  %v4604_v43 = vpop.xlane.xlu1 %1389 }
 0x1c8   : > { %3132 = vrsqrt.f32 %v1450_v62  ;;  %v616_v49 = vmul.f32 %v3596_v38, %v3125_v8  ;;  %v1600_v60 = vmax.f32 %v1536_v4, 1e-06  ;;  %v617_v62 = vmul.f32 %v3597_v39, %v3125_v8  ;;  %v3598_v8 = vld [vmem:[%s4090_s6 + $0x2c0] sm:$0xff] }
 0x1c9   : > { %3134 = vpow2.f32 %v997_v56  ;;  %v1057_v63 = vrot.slane %v1056_v29, 2  ;;  %v1601_v3 = vmax.f32 %v1537_v50, 1e-06  ;;  %v971_v31 = vmul.f32 1.442695, %v879_v40 }
 0x1ca   : > { %3136 = vrsqrt.f32 %v548_v23  ;;  %v880_v23 = vmul.f32 %v781_v11, %v4321_v41  ;;  %v1049_v47 = vadd.f32 %v1048_v52, %v1047_v35  ;;  %v680_v21 = vmax.f32 %v616_v49, 1e-06 }
 0x1cb   : > { %3138 = vlog2.f32 %v1572_v36  ;;  %v681_v9 = vmax.f32 %v617_v62, 1e-06  ;;  %v554_v33 = vmax.f32 %v4590_v14, 1e-24  ;;  %v1058_v27 = vadd.f32 %v1057_v63, %v1056_v29 }
 0x1cc   : > { %3140 = vlog2.f32 %v1573_v20  ;;  %v1441_v36 = vmax.f32 %v1369_v57, 1e-24  ;;  %v4607_v42 = vmul.f32 1.442695, %v880_v23  ;;  %v1050_v61 = vrot.slane %v1049_v47, 1  ;;  %v4620_v23 = vpop.xlane.xlu1 %1410 }
 0x1cd   : > { %3142 = vrsqrt.f32 %v555_v32  ;;  %v1073_v11 = vrot.slane %v4574_v24, 4  ;;  %v1059_v40 = vrot.slane %v1058_v27, 1 }
 0x1ce   : > { %3144 = vlog2.f32 %v700_v18 }
 0x1cf   : > { %v3127_v51 = vpop.eup %3126  ;;  %3146 = vlog2.f32 %v701_v2  ;;  %v3599_v2 = vld [vmem:[%s4090_s6 + $0x2c8] sm:$0xff] }
 0x1d0   : > { %v3129_v56 = vpop.eup %3128  ;;  %v1944_v6 = vadd.f32 %v3127_v51, %v4490_v44  ;;  %3148 = vlog2.f32 %v1586_v46 }
 0x1d1   : > { %v4598_v10 = vpop.eup %3130  ;;  %v1953_v15 = vadd.f32 %v3129_v56, %v4511_v54  ;;  %3150 = vlog2.f32 %v1587_v19  ;;  %v1064_v54 = vrot.slane %v4570_v12, 4 }
 0x1d2   : > { %v3133_v48 = vpop.eup %3132  ;;  %v1945_v30 = vrot.slane %v1944_v6, 4  ;;  %3152 = vlog2.f32 %v1600_v60 }
 0x1d3   : > { %v4602_v13 = vpop.eup %3134  ;;  %v1954_v44 = vrot.slane %v1953_v15, 4  ;;  %3154 = vlog2.f32 %v1601_v3  ;;  %v1534_v18 = vmul.f32 %v3598_v8, %v3133_v48  ;;  %v1535_v53 = vmul.f32 %v3599_v2, %v3133_v48  ;;  %v3600_v3 = vld [vmem:[%s4090_s6 + $0x220] sm:$0xff]  ;;  %v3602_v2 = vld [vmem:[%s4090_s6 + $0x310] sm:$0xff] }
 0x1d4   : > { %v3137_v20 = vpop.eup %3136  ;;  %3156 = vpow2.f32 %v971_v31  ;;  %v1946_v35 = vadd.f32 %v1945_v30, %v1944_v6  ;;  %v4615_v38 = vadd.f32 %v1064_v54, %v4570_v12  ;;  %v1051_v6 = vadd.f32 %v1050_v61, %v1049_v47  ;;  %v4623_v61 = vpop.xlane.xlu0 %1407 }
 0x1d5   : > { %v3139_v45 = vpop.eup %3138  ;;  %v1955_v32 = vadd.f32 %v1954_v44, %v1953_v15  ;;  %3158 = vlog2.f32 %v680_v21  ;;  %v1598_v63 = vmax.f32 %v1534_v18, 1e-06  ;;  %v630_v56 = vmul.f32 %v3600_v3, %v3137_v20 }
 0x1d6   : > { %v3141_v28 = vpop.eup %3140  ;;  %v1947_v4 = vrot.slane %v1946_v35, 2  ;;  %v1651_v29 = vmul.f32 0.6931472, %v3139_v45  ;;  %3160 = vlog2.f32 %v681_v9  ;;  %v1599_v12 = vmax.f32 %v1535_v53, 1e-06  ;;  %v3601_v45 = vld [vmem:[%s4090_s6 + $0x228] sm:$0xff] }
 0x1d7   : > { %v4611_v50 = vpop.eup %3142  ;;  %v1956_v46 = vrot.slane %v1955_v32, 2  ;;  %v1653_v52 = vmul.f32 0.6931472, %v3141_v28  ;;  %3162 = vrsqrt.f32 %v1441_v36  ;;  %v1060_v48 = vadd.f32 %v1059_v40, %v1058_v27 }
 0x1d8   : > { %v3145_v19 = vpop.eup %3144  ;;  %v1948_v49 = vadd.f32 %v1947_v4, %v1946_v35  ;;  %v1764_v60 = vmul.f32 %v1651_v29, %v4321_v41  ;;  %v694_v47 = vmax.f32 %v630_v56, 1e-06  ;;  %v644_v53 = vmul.f32 %v3602_v2, %v4611_v50  ;;  %v3603_v2 = vld [vmem:[%s4090_s6 + $0x170] sm:$0xff] }
 0x1d9   : > { %v3147_v39 = vpop.eup %3146  ;;  %v1957_v62 = vadd.f32 %v1956_v46, %v1955_v32  ;;  %v1765_v51 = vmul.f32 %v1653_v52, %v4321_v41  ;;  %v807_v9 = vmul.f32 0.6931472, %v3145_v19  ;;  %v631_v32 = vmul.f32 %v3601_v45, %v3137_v20  ;;  %v4632_v19 = vpop.xlane.xlu1 %501 }
 0x1da   : > { %v3149_v31 = vpop.eup %3148  ;;  %v1949_v57 = vrot.slane %v1948_v49, 1  ;;  %v1842_v15 = vmul.f32 1.442695, %v1764_v60  ;;  %v809_v35 = vmul.f32 0.6931472, %v3147_v39 }
 0x1db   : > { %v3151_v21 = vpop.eup %3150  ;;  %v1958_v30 = vrot.slane %v1957_v62, 1  ;;  %v1844_v44 = vmul.f32 1.442695, %v1765_v51  ;;  %v1679_v28 = vmul.f32 0.6931472, %v3149_v31  ;;  %v893_v20 = vmul.f32 %v807_v9, %v4321_v41 }
 0x1dc   : > { %v3153_v36 = vpop.eup %3152  ;;  %v1950_v54 = vadd.f32 %v1949_v57, %v1948_v49  ;;  %3164 = vpow2.f32 %v1842_v15  ;;  %v1681_v29 = vmul.f32 0.6931472, %v3151_v21  ;;  %v894_v60 = vmul.f32 %v809_v35, %v4321_v41  ;;  %v4644_v21 = vpop.xlane.xlu0 %480 }
 0x1dd   : > { %v3155_v8 = vpop.eup %3154  ;;  %v1959_v18 = vadd.f32 %v1958_v30, %v1957_v62  ;;  %3166 = vpow2.f32 %v1844_v44  ;;  %v1707_v52 = vmul.f32 0.6931472, %v3153_v36  ;;  %v1448_v62 = vmax.f32 %v4604_v43, 1e-24  ;;  %v4649_v14 = vpop.xlane.xlu1 %522 }
 0x1de   : > { %v4625_v4 = vpop.eup %3156  ;;  %v2086_v27 = vadd.f32 %v1950_v54, %v1051_v6  ;;  %3168 = vlog2.f32 %v1598_v63  ;;  %v1709_v39 = vmul.f32 0.6931472, %v3155_v8  ;;  %v1066_v51 = vrot.slane %v4615_v38, 2 }
 0x1df   : > { %v3159_v40 = vpop.eup %3158  ;;  %v4629_v46 = vadd.f32 %v1959_v18, %v1060_v48  ;;  %3170 = vlog2.f32 %v1599_v12  ;;  %v1074_v63 = vadd.f32 %v1073_v11, %v4574_v24  ;;  %v1778_v3 = vmul.f32 %v1679_v28, %v4321_v41 }
 0x1e0   : > { %v3161_v49 = vpop.eup %3160  ;;  %3172 = vpow2.f32 %v4607_v42  ;;  %v695_v56 = vmax.f32 %v631_v32, 1e-06  ;;  %v1779_v6 = vmul.f32 %v1681_v29, %v4321_v41  ;;  %v767_v57 = vmul.f32 0.6931472, %v3159_v40 }
 0x1e1   : > { %v3163_v31 = vpop.eup %3162  ;;  %v708_v15 = vmax.f32 %v644_v53, 1e-06  ;;  %3174 = vrsqrt.f32 %v554_v33  ;;  %v999_v42 = vmul.f32 1.442695, %v893_v20  ;;  %v1792_v12 = vmul.f32 %v1707_v52, %v4321_v41  ;;  %v3604_v52 = vld [vmem:[%s4090_s6 + $0x178] sm:$0xff] }
 0x1e2   : > { %3176 = vlog2.f32 %v694_v47  ;;  %v769_v43 = vmul.f32 0.6931472, %v3161_v49  ;;  %v1001_v48 = vmul.f32 1.442695, %v894_v60  ;;  %v1793_v24 = vmul.f32 %v1709_v39, %v4321_v41  ;;  %v4658_v60 = vpop.xlane.xlu0 %519 }
 0x1e3   : > { %3178 = vrsqrt.f32 %v1448_v62  ;;  %v1455_v11 = vmax.f32 %v4620_v23, 1e-24  ;;  %v1075_v30 = vrot.slane %v1074_v63, 2  ;;  %v1870_v9 = vmul.f32 1.442695, %v1778_v3 }
 0x1e4   : > { %3180 = vlog2.f32 %v695_v56  ;;  %v1454_v44 = vmax.f32 %v4623_v61, 1e-24  ;;  %v1067_v36 = vadd.f32 %v1066_v51, %v4615_v38  ;;  %v1872_v54 = vmul.f32 1.442695, %v1779_v6  ;;  %v4662_v6 = vpop.xlane.xlu1 %1401 }
 0x1e5   : > { %v873_v35 = vmul.f32 %v767_v57, %v4321_v41  ;;  %3182 = vlog2.f32 %v708_v15  ;;  %v1898_v8 = vmul.f32 1.442695, %v1792_v12  ;;  %v874_v18 = vmul.f32 %v769_v43, %v4321_v41 }
 0x1e6   : > { %v3165_v33 = vpop.eup %3164  ;;  %3184 = vpow2.f32 %v999_v42  ;;  %v1900_v29 = vmul.f32 1.442695, %v1793_v24  ;;  %v1516_v53 = vmul.f32 %v3603_v2, %v3163_v31  ;;  %v2102_v40 = vmul.f32 0.015625, %v2086_v27 }
 0x1e7   : > { %v3167_v45 = vpop.eup %3166  ;;  %v1962_v32 = vadd.f32 %v3165_v33, %v4484_v17  ;;  %3186 = vpow2.f32 %v1001_v48  ;;  %v1517_v49 = vmul.f32 %v3604_v52, %v3163_v31  ;;  %v1076_v17 = vadd.f32 %v1075_v30, %v1074_v63  ;;  %v3605_v52 = vld [vmem:[%s4090_s6 + $0x318] sm:$0xff] }
 0x1e8   : > { %v3169_v28 = vpop.eup %3168  ;;  %v1971_v47 = vadd.f32 %v3167_v45, %v4487_v34  ;;  %3188 = vpow2.f32 %v1870_v9  ;;  %v959_v51 = vmul.f32 1.442695, %v873_v35  ;;  %v961_v56 = vmul.f32 1.442695, %v874_v18 }
 0x1e9   : > { %v3171_v38 = vpop.eup %3170  ;;  %v1963_v20 = vrot.slane %v1962_v32, 4  ;;  %3190 = vpow2.f32 %v1872_v54  ;;  %v1703_v34 = vmul.f32 0.6931472, %v3169_v28  ;;  %v1580_v42 = vmax.f32 %v1516_v53, 1e-06 }
 0x1ea   : > { %v4660_v39 = vpop.eup %3172  ;;  %v1972_v62 = vrot.slane %v1971_v47, 4  ;;  %3192 = vpow2.f32 %v1898_v8  ;;  %v1705_v15 = vmul.f32 0.6931472, %v3171_v38  ;;  %v1068_v12 = vrot.slane %v1067_v36, 1  ;;  %v4673_v38 = vpop.xlane.xlu1 %1422 }
 0x1eb   : > { %v1964_v3 = vadd.f32 %v1963_v20, %v1962_v32  ;;  %v3175_v57 = vpop.eup %3174  ;;  %3194 = vpow2.f32 %v1900_v29  ;;  %v1581_v48 = vmax.f32 %v1517_v49, 1e-06  ;;  %v1077_v24 = vrot.slane %v1076_v17, 1  ;;  %v4667_v32 = vpop.xlane.xlu0 %1380 }
 0x1ec   : > { %v1973_v27 = vadd.f32 %v1972_v62, %v1971_v47  ;;  %v3177_v31 = vpop.eup %3176  ;;  %3196 = vlog2.f32 %v2102_v40  ;;  %v552_v9 = vmax.f32 %v4632_v19, 1e-24  ;;  %v1790_v35 = vmul.f32 %v1703_v34, %v4321_v41 }
 0x1ed   : > { %v1965_v43 = vrot.slane %v1964_v3, 2  ;;  %v3179_v63 = vpop.eup %3178  ;;  %3198 = vpow2.f32 %v959_v51  ;;  %v545_v45 = vmax.f32 %v4644_v21, 1e-24  ;;  %v1791_v28 = vmul.f32 %v1705_v15, %v4321_v41  ;;  %v3607_v15 = vld [vmem:[%s4090_s6 + $0x308] sm:$0xff] }
 0x1ee   : > { %v1974_v30 = vrot.slane %v1973_v27, 2  ;;  %v3181_v33 = vpop.eup %3180  ;;  %3200 = vpow2.f32 %v961_v56  ;;  %v795_v47 = vmul.f32 0.6931472, %v3177_v31  ;;  %v1069_v19 = vadd.f32 %v1068_v12, %v1067_v36 }
 0x1ef   : > { %v1966_v54 = vadd.f32 %v1965_v43, %v1964_v3  ;;  %v3183_v8 = vpop.eup %3182  ;;  %3202 = vlog2.f32 %v1580_v42  ;;  %v2103_v2 = vmul.f32 0.015625, %v4629_v46  ;;  %v1078_v40 = vadd.f32 %v1077_v24, %v1076_v17  ;;  %v3606_v46 = vld [vmem:[%s4090_s6 + $0x300] sm:$0xff]  ;;  %v4695_v61 = vpop.xlane.xlu0 %1419 }
 0x1f0   : > { %v1975_v18 = vadd.f32 %v1974_v30, %v1973_v27  ;;  %v4670_v29 = vpop.eup %3184  ;;  %3204 = vlog2.f32 %v1581_v48  ;;  %v645_v49 = vmul.f32 %v3605_v52, %v4611_v50  ;;  %v1894_v51 = vmul.f32 1.442695, %v1790_v35  ;;  %v3608_v43 = vld [vmem:[%s4090_s6 + $0x260] sm:$0xff]  ;;  %v4704_v35 = vpop.xlane.xlu1 %513 }
 0x1f1   : > { %v1967_v53 = vrot.slane %v1966_v54, 1  ;;  %v4675_v21 = vpop.eup %3186  ;;  %3206 = vrsqrt.f32 %v1455_v11  ;;  %v642_v3 = vmul.f32 %v3606_v46, %v3175_v57  ;;  %v1896_v56 = vmul.f32 1.442695, %v1791_v28 }
 0x1f2   : > { %v1976_v20 = vrot.slane %v1975_v18, 1  ;;  %v4681_v62 = vpop.eup %3188  ;;  %3208 = vrsqrt.f32 %v1454_v44  ;;  %v887_v50 = vmul.f32 %v795_v47, %v4321_v41  ;;  %v797_v27 = vmul.f32 0.6931472, %v3181_v33 }
 0x1f3   : > { %v1968_v36 = vadd.f32 %v1967_v53, %v1966_v54  ;;  %v4686_v34 = vpop.eup %3190  ;;  %3210 = vrcp.f32 %v4321_v41  ;;  %v643_v42 = vmul.f32 %v3607_v15, %v3175_v57  ;;  %v709_v12 = vmax.f32 %v645_v49, 1e-06  ;;  %v4711_v49 = vpop.xlane.xlu0 %492  ;;  %v3615_v15 = vld [vmem:[%s4090_s6 + $0x1b8] sm:$0xff] }
 0x1f4   : > { %v1977_v17 = vadd.f32 %v1976_v20, %v1975_v18  ;;  %v4690_v23 = vpop.eup %3192  ;;  %3212 = vlog2.f32 %v2103_v2  ;;  %v1530_v48 = vmul.f32 %v3608_v43, %v3179_v63  ;;  %v823_v30 = vmul.f32 0.6931472, %v3183_v8  ;;  %v3609_v18 = vld [vmem:[%s4090_s6 + $0x268] sm:$0xff] }
 0x1f5   : > { %v4692_v11 = vadd.f32 %v1968_v36, %v1069_v19  ;;  %v4697_v44 = vpop.eup %3194  ;;  %3214 = vrsqrt.f32 %v545_v45  ;;  %v706_v54 = vmax.f32 %v642_v3, 1e-06  ;;  %v987_v57 = vmul.f32 1.442695, %v887_v50  ;;  %v4715_v50 = vpop.xlane.xlu1 %1413 }
 0x1f6   : > { %v4699_v31 = vadd.f32 %v1977_v17, %v1078_v40  ;;  %v4702_v24 = vpop.eup %3196  ;;  %3216 = vpow2.f32 %v1894_v51  ;;  %v1531_v28 = vmul.f32 %v3609_v18, %v3179_v63  ;;  %v888_v19 = vmul.f32 %v797_v27, %v4321_v41 }
 0x1f7   : > { %v3199_v33 = vpop.eup %3198  ;;  %3218 = vpow2.f32 %v1896_v56  ;;  %v707_v2 = vmax.f32 %v643_v42, 1e-06  ;;  %v1594_v45 = vmax.f32 %v1530_v48, 1e-06  ;;  %v901_v20 = vmul.f32 %v823_v30, %v4321_v41 }
 0x1f8   : > { %v3201_v47 = vpop.eup %3200  ;;  %3220 = vrsqrt.f32 %v552_v9  ;;  %v559_v8 = vmax.f32 %v4649_v14, 1e-24  ;;  %v1595_v63 = vmax.f32 %v1531_v28, 1e-06  ;;  %v989_v3 = vmul.f32 1.442695, %v888_v19 }
 0x1f9   : > { %v3203_v53 = vpop.eup %3202  ;;  %3222 = vlog2.f32 %v709_v12  ;;  %v1081_v43 = vadd.f32 %v3199_v33, %v4525_v26  ;;  %v1015_v48 = vmul.f32 1.442695, %v901_v20  ;;  %v1090_v28 = vadd.f32 %v3201_v47, %v4528_v37  ;;  %v4731_v20 = vpop.xlane.xlu0 %1392  ;;  %v3614_v47 = vld [vmem:[%s4090_s6 + $0x348] sm:$0xff] }
 0x1fa   : > { %v3205_v40 = vpop.eup %3204  ;;  %3224 = vlog2.f32 %v706_v54  ;;  %v1667_v51 = vmul.f32 0.6931472, %v3203_v53  ;;  %v3610_v54 = vld [vmem:[%s4090_s6 + $0x350] sm:$0xff]  ;;  %v2104_v33 = vmul.f32 0.015625, %v4692_v11 }
 0x1fb   : > { %v3207_v36 = vpop.eup %3206  ;;  %3226 = vpow2.f32 %v987_v57  ;;  %v1669_v17 = vmul.f32 0.6931472, %v3205_v40 }
 0x1fc   : > { %v3209_v9 = vpop.eup %3208  ;;  %3228 = vlog2.f32 %v707_v2  ;;  %v1772_v27 = vmul.f32 %v1667_v51, %v4321_v41  ;;  %v1544_v57 = vmul.f32 %v3610_v54, %v3207_v36  ;;  %v3611_v2 = vld [vmem:[%s4090_s6 + $0x358] sm:$0xff]  ;;  %v3612_v51 = vld [vmem:[%s4090_s6 + $0x340] sm:$0xff]  ;;  %v4738_v54 = vpop.xlane.xlu1 %525 }
 0x1fd   : > { %v3211_v14 = vpop.eup %3210  ;;  %3230 = vlog2.f32 %v1594_v45  ;;  %v1773_v30 = vmul.f32 %v1669_v17, %v4321_v41  ;;  %v1545_v53 = vmul.f32 %v3611_v2, %v3207_v36  ;;  %v1542_v26 = vmul.f32 %v3612_v51, %v3209_v9 }
 0x1fe   : > { %v4720_v12 = vpop.eup %3212  ;;  %2728 = vpush %v3211_v14  ;;  %3232 = vlog2.f32 %v1595_v63  ;;  %v1858_v19 = vmul.f32 1.442695, %v1772_v27  ;;  %v1608_v14 = vmax.f32 %v1544_v57, 1e-06  ;;  %v1082_v63 = vrot.slane %v1081_v43, 4  ;;  %v3613_v27 = vld [vmem:[%s4090_s6 + $0x1b0] sm:$0xff] }
 0x1ff   : > { %v3215_v18 = vpop.eup %3214  ;;  %3234 = vpow2.f32 %v989_v3  ;;  %v1860_v40 = vmul.f32 1.442695, %v1773_v30  ;;  %v1609_v3 = vmax.f32 %v1545_v53, 1e-06  ;;  %v1091_v51 = vrot.slane %v1090_v28, 4 }
 0x200   : > { %v4727_v45 = vpop.eup %3216  ;;  %3236 = vpow2.f32 %v1858_v19  ;;  %v624_v30 = vmul.f32 %v3613_v27, %v3215_v18  ;;  %v1606_v19 = vmax.f32 %v1542_v26, 1e-06  ;;  %v1543_v42 = vmul.f32 %v3614_v47, %v3209_v9 }
 0x201   : > { %v4733_v17 = vpop.eup %3218  ;;  %3238 = vpow2.f32 %v1860_v40  ;;  %v625_v56 = vmul.f32 %v3615_v15, %v3215_v18  ;;  %v3616_v40 = vld [vmem:[%s4090_s6 + $0x2a0] sm:$0xff]  ;;  %v1083_v52 = vadd.f32 %v1082_v63, %v1081_v43  ;;  %v2105_v9 = vmul.f32 0.015625, %v4699_v31 }
 0x202   : > { %v3221_v36 = vpop.eup %3220  ;;  %3240 = vpow2.f32 %v1015_v48  ;;  %v688_v46 = vmax.f32 %v624_v30, 1e-06  ;;  %v4752_v18 = vadd.f32 %v4625_v4, %v4476_v1  ;;  %v1607_v30 = vmax.f32 %v1543_v42, 1e-06 }
 0x203   : > { %v3223_v2 = vpop.eup %3222  ;;  %3242 = vrsqrt.f32 %v559_v8  ;;  %v638_v27 = vmul.f32 %v3616_v40, %v3221_v36  ;;  %v689_v22 = vmax.f32 %v625_v56, 1e-06  ;;  %v3617_v8 = vld [vmem:[%s4090_s6 + $0x2a8] sm:$0xff]  ;;  %v4756_v43 = vadd.f32 %v4660_v39, %v4481_v25 }
 0x204   : > { %v3225_v37 = vpop.eup %3224  ;;  %3244 = vlog2.f32 %v1608_v14  ;;  %v825_v57 = vmul.f32 0.6931472, %v3223_v2  ;;  %v639_v15 = vmul.f32 %v3617_v8, %v3221_v36  ;;  %v1092_v14 = vadd.f32 %v1091_v51, %v1090_v28 }
 0x205   : > { %v4744_v53 = vpop.eup %3226  ;;  %3246 = vlog2.f32 %v1609_v3  ;;  %v819_v47 = vmul.f32 0.6931472, %v3225_v37  ;;  %v702_v63 = vmax.f32 %v638_v27, 1e-06  ;;  %v4762_v37 = vadd.f32 %v4670_v29, %v4598_v10 }
 0x206   : > { %v3229_v26 = vpop.eup %3228  ;;  %3248 = vlog2.f32 %v1606_v19  ;;  %v902_v1 = vmul.f32 %v825_v57, %v4321_v41  ;;  %v1084_v42 = vrot.slane %v1083_v52, 2  ;;  %v703_v25 = vmax.f32 %v639_v15, 1e-06 }
 0x207   : > { %v3231_v11 = vpop.eup %3230  ;;  %3250 = vlog2.f32 %v2104_v33  ;;  %v821_v56 = vmul.f32 0.6931472, %v3229_v26  ;;  %v899_v33 = vmul.f32 %v819_v47, %v4321_v41  ;;  %v1093_v36 = vrot.slane %v1092_v14, 2 }
 0x208   : > { %v3233_v40 = vpop.eup %3232  ;;  %3252 = vlog2.f32 %v688_v46  ;;  %v1695_v4 = vmul.f32 0.6931472, %v3231_v11  ;;  %v4771_v10 = vadd.f32 %v4675_v21, %v4602_v13  ;;  %v1017_v19 = vmul.f32 1.442695, %v902_v1 }
 0x209   : > { %v4758_v31 = vpop.eup %3234  ;;  %3254 = vlog2.f32 %v689_v22  ;;  %v1697_v3 = vmul.f32 0.6931472, %v3233_v40  ;;  %v900_v22 = vmul.f32 %v821_v56, %v4321_v41  ;;  %v5288_v26 = vmax.f32 %v4658_v60, 1e-24 }
 0x20a   : > { %v3237_v28 = vpop.eup %3236  ;;  %3256 = vlog2.f32 %v2105_v9  ;;  %v1786_v57 = vmul.f32 %v1695_v4, %v4321_v41  ;;  %v1085_v9 = vadd.f32 %v1084_v42, %v1083_v52  ;;  %v1011_v13 = vmul.f32 1.442695, %v899_v33 }
 0x20b   : > { %v3239_v39 = vpop.eup %3238  ;;  %v1980_v46 = vadd.f32 %v3237_v28, %v4551_v58  ;;  %3258 = vlog2.f32 %v1607_v30  ;;  %v4778_v58 = vpop.xlane.xlu0 %504  ;;  %v1094_v8 = vadd.f32 %v1093_v36, %v1092_v14  ;;  %v5289_v30 = vmax.f32 %v4662_v6, 1e-24  ;;  %v3619_v36 = vld [vmem:[%s4090_s6 + $0x398] sm:$0xff] }
 0x20c   : > { %v4767_v2 = vpop.eup %3240  ;;  %v1989_v29 = vadd.f32 %v3239_v39, %v4554_v59  ;;  %3260 = vlog2.f32 %v702_v63  ;;  %v1787_v59 = vmul.f32 %v1697_v3, %v4321_v41  ;;  %v1013_v60 = vmul.f32 1.442695, %v900_v22  ;;  %v3618_v63 = vld [vmem:[%s4090_s6 + $0x390] sm:$0xff] }
 0x20d   : > { %v3243_v51 = vpop.eup %3242  ;;  %v1981_v27 = vrot.slane %v1980_v46, 4  ;;  %3262 = vrsqrt.f32 %v5288_v26  ;;  %v5290_v4 = vmax.f32 %v4667_v32, 1e-24  ;;  %v1886_v28 = vmul.f32 1.442695, %v1786_v57  ;;  %v4789_v26 = vpop.xlane.xlu1 %1425 }
 0x20e   : > { %v3245_v11 = vpop.eup %3244  ;;  %v1990_v21 = vrot.slane %v1989_v29, 4  ;;  %3264 = vlog2.f32 %v703_v25  ;;  %v652_v1 = vmul.f32 %v3618_v63, %v3243_v51  ;;  %v1086_v25 = vrot.slane %v1085_v9, 1  ;;  %5291 = vst [vmem:[#allocation19_spill] sm:$0xff] %v4789_v26 }
 0x20f   : > { %v3247_v47 = vpop.eup %3246  ;;  %v1982_v15 = vadd.f32 %v1981_v27, %v1980_v46  ;;  %3266 = vrsqrt.f32 %v5289_v30  ;;  %v1723_v42 = vmul.f32 0.6931472, %v3245_v11  ;;  %v653_v3 = vmul.f32 %v3619_v36, %v3243_v51  ;;  %v4791_v32 = vpop.xlane.xlu0 %1404 }
 0x210   : > { %v3249_v40 = vpop.eup %3248  ;;  %v1991_v56 = vadd.f32 %v1990_v21, %v1989_v29  ;;  %3268 = vrsqrt.f32 %v5290_v4  ;;  %v1725_v6 = vmul.f32 0.6931472, %v3247_v47  ;;  %v1888_v22 = vmul.f32 1.442695, %v1787_v59 }
 0x211   : > { %v4786_v52 = vpop.eup %3250  ;;  %3270 = vpow2.f32 %v1017_v19  ;;  %v1983_v14 = vrot.slane %v1982_v15, 2  ;;  %v1719_v27 = vmul.f32 0.6931472, %v3249_v40  ;;  %v1095_v19 = vrot.slane %v1094_v8, 1 }
 0x212   : > { %v3253_v33 = vpop.eup %3252  ;;  %v1992_v39 = vrot.slane %v1991_v56, 2  ;;  %3272 = vpow2.f32 %v1011_v13  ;;  %v716_v11 = vmax.f32 %v652_v1, 1e-06  ;;  %v1800_v51 = vmul.f32 %v1723_v42, %v4321_v41 }
 0x213   : > { %v3255_v46 = vpop.eup %3254  ;;  %v1984_v29 = vadd.f32 %v1983_v14, %v1982_v15  ;;  %3274 = vpow2.f32 %v1013_v60  ;;  %v783_v63 = vmul.f32 0.6931472, %v3253_v33  ;;  %v1801_v15 = vmul.f32 %v1725_v6, %v4321_v41 }
 0x214   : > { %v4793_v21 = vpop.eup %3256  ;;  %v1993_v57 = vadd.f32 %v1992_v39, %v1991_v56  ;;  %3276 = vpow2.f32 %v1886_v28  ;;  %v785_v40 = vmul.f32 0.6931472, %v3255_v46  ;;  %v717_v4 = vmax.f32 %v653_v3, 1e-06  ;;  %v4808_v46 = vpop.xlane.xlu0 %516 }
 0x215   : > { %v3259_v30 = vpop.eup %3258  ;;  %v1985_v47 = vrot.slane %v1984_v29, 1  ;;  %v1087_v36 = vadd.f32 %v1086_v25, %v1085_v9  ;;  %3278 = vpow2.f32 %v1888_v22  ;;  %v1798_v60 = vmul.f32 %v1719_v27, %v4321_v41  ;;  %v4806_v25 = vpop.xlane.xlu1 %1416  ;;  %v3620_v27 = vld [vmem:[%s4090_s6 + $0x380] sm:$0xff] }
 0x216   : > { %v3261_v13 = vpop.eup %3260  ;;  %v1994_v59 = vrot.slane %v1993_v57, 1  ;;  %v1096_v1 = vadd.f32 %v1095_v19, %v1094_v8  ;;  %v881_v39 = vmul.f32 %v783_v63, %v4321_v41  ;;  %3280 = vlog2.f32 %v716_v11 }
 0x217   : > { %v3263_v14 = vpop.eup %3262  ;;  %v1986_v48 = vadd.f32 %v1985_v47, %v1984_v29  ;;  %v1914_v6 = vmul.f32 1.442695, %v1800_v51  ;;  %v882_v3 = vmul.f32 %v785_v40, %v4321_v41  ;;  %v5292_v9 = vmax.f32 %v4673_v38, 1e-24  ;;  %v3621_v38 = vld [vmem:[%s4090_s6 + $0x388] sm:$0xff] }
 0x218   : > { %v3265_v56 = vpop.eup %3264  ;;  %v1995_v28 = vadd.f32 %v1994_v59, %v1993_v57  ;;  %v1916_v29 = vmul.f32 1.442695, %v1801_v15  ;;  %v1721_v57 = vmul.f32 0.6931472, %v3259_v30  ;;  %v1910_v11 = vmul.f32 1.442695, %v1798_v60 }
 0x219   : > { %v4799_v42 = vpop.eup %3266  ;;  %v4801_v33 = vadd.f32 %v1986_v48, %v1087_v36  ;;  %3282 = vrsqrt.f32 %v5292_v9  ;;  %v650_v48 = vmul.f32 %v3620_v27, %v3263_v14  ;;  %v811_v47 = vmul.f32 0.6931472, %v3261_v13  ;;  %v3623_v30 = vld [vmem:[%s4090_s6 + $0x1f0] sm:$0xff] }
 0x21a   : > { %v3269_v8 = vpop.eup %3268  ;;  %v4810_v22 = vadd.f32 %v1995_v28, %v1096_v1  ;;  %3284 = vlog2.f32 %v717_v4  ;;  %v651_v51 = vmul.f32 %v3621_v38, %v3263_v14  ;;  %v813_v63 = vmul.f32 0.6931472, %v3265_v56  ;;  %v3622_v1 = vld [vmem:[%s4090_s6 + $0x2e0] sm:$0xff]  ;;  %v3624_v56 = vld [vmem:[%s4090_s6 + $0x1f8] sm:$0xff]  ;;  %v4832_v38 = vpop.xlane.xlu1 %1428 }
 0x21b   : > { %v4813_v19 = vpop.eup %3270  ;;  %v975_v59 = vmul.f32 1.442695, %v881_v39  ;;  %v5293_v40 = vmax.f32 %v4695_v61, 1e-24  ;;  %v977_v36 = vmul.f32 1.442695, %v882_v3  ;;  %v1538_v28 = vmul.f32 %v3622_v1, %v4799_v42 }
 0x21c   : > { %v4819_v4 = vpop.eup %3272  ;;  %v1524_v60 = vmul.f32 %v3623_v30, %v3269_v8  ;;  %v714_v14 = vmax.f32 %v650_v48, 1e-06  ;;  %v1525_v39 = vmul.f32 %v3624_v56, %v3269_v8  ;;  %v1799_v27 = vmul.f32 %v1721_v57, %v4321_v41  ;;  %5294 = vst [vmem:[#allocation20_spill] sm:$0xff] %v4832_v38  ;;  %v2216_v56 = vld [vmem:[#allocation7 + $0x88] sm:$0xff]  ;;  %v2219_v38 = vld [vmem:[#allocation7 + $0xa0] sm:$0xff] }
 0x21d   : > { %3286 = vrsqrt.f32 %v5293_v40  ;;  %v4824_v13 = vpop.eup %3274  ;;  %v715_v3 = vmax.f32 %v651_v51, 1e-06  ;;  %v4834_v40 = vpop.xlane.xlu0 %528  ;;  %v896_v1 = vmul.f32 %v813_v63, %v4321_v41  ;;  %v2215_v63 = vld [vmem:[#allocation7 + $0x80] sm:$0xff]  ;;  %v2200_v57 = vld [vmem:[#allocation7 + $0x8] sm:$0xff] }
 0x21e   : > { %3288 = vpow2.f32 %v1914_v6  ;;  %v4828_v9 = vpop.eup %3276  ;;  %v895_v6 = vmul.f32 %v811_v47, %v4321_v41  ;;  %5295 = vst [vmem:[#allocation21_spill] sm:$0xff] %v4834_v40  ;;  %v1588_v30 = vmax.f32 %v1524_v60, 1e-06  ;;  %v1589_v51 = vmax.f32 %v1525_v39, 1e-06  ;;  %v2202_v40 = vld [vmem:[#allocation7 + $0x18] sm:$0xff] }
 0x21f   : > { %3290 = vpow2.f32 %v1916_v29  ;;  %v1602_v29 = vmax.f32 %v1538_v28, 1e-06  ;;  %v4838_v48 = vpop.eup %3278  ;;  %v4845_v28 = vmul.f32 0.6931472, %v4702_v24  ;;  %v1912_v61 = vmul.f32 1.442695, %v1799_v27 }
 0x220   : > { %3292 = vpow2.f32 %v1910_v11  ;;  %v3281_v47 = vpop.eup %3280  ;;  %v1003_v8 = vmul.f32 1.442695, %v895_v6  ;;  %v4849_v60 = vadd.f32 %v4681_v62, %v4516_v16  ;;  %v1005_v39 = vmul.f32 1.442695, %v896_v1  ;;  %v2199_v11 = vld [vmem:[#allocation7] sm:$0xff]  ;;  %v3625_v27 = vld [vmem:[%s4090_s6 + $0x2e8] sm:$0xff] }
 0x221   : > { %3294 = vpow2.f32 %v975_v59  ;;  %5296 = vst [vmem:[#allocation22_spill] sm:$0xff] %v4845_v28  ;;  %v2106_v24 = vmul.f32 0.015625, %v4801_v33  ;;  %v1539_v6 = vmul.f32 %v3625_v27, %v4799_v42  ;;  %v2217_v16 = vld [vmem:[#allocation7 + $0x90] sm:$0xff]  ;;  %v2218_v62 = vld [vmem:[#allocation7 + $0x98] sm:$0xff]  ;;  %v2698_v1 = vpack.c.bf16 %v2200_v57, %v2199_v11 }
 0x222   : > { %3296 = vpow2.f32 %v977_v36  ;;  %v2201_v28 = vld [vmem:[#allocation7 + $0x10] sm:$0xff]  ;;  %v4865_v42 = vadd.f32 %v4727_v45, %v4690_v23  ;;  %v4869_v33 = vadd.f32 %v4733_v17, %v4697_v44  ;;  %v4874_v57 = vmul.f32 0.6931472, %v4786_v52 }
 0x223   : > { %3298 = vlog2.f32 %v714_v14  ;;  %v3283_v59 = vpop.eup %3282  ;;  %v4853_v14 = vadd.f32 %v4686_v34, %v4519_v5  ;;  %v3626_v5 = vld [vmem:[%s4090_s6 + $0x3d0] sm:$0xff]  ;;  %v4878_v11 = vadd.f32 %v4744_v53, %v4557_v55  ;;  %v2702_v23 = vpack.c.bf16 %v2202_v40, %v2201_v28  ;;  %v2222_v28 = vld [vmem:[#allocation7 + $0xb8] sm:$0xff] }
 0x224   : > { %3300 = vlog2.f32 %v715_v3  ;;  %v3285_v36 = vpop.eup %3284  ;;  %v2696_v3 = vpack.c.bf16 %v2216_v56, %v2215_v63  ;;  %v1552_v34 = vmul.f32 %v3626_v5, %v3283_v59  ;;  %v1603_v44 = vmax.f32 %v1539_v6, 1e-06  ;;  %v2206_v5 = vld [vmem:[#allocation7 + $0x38] sm:$0xff] }
 0x225   : > { %3302 = vlog2.f32 %v1602_v29  ;;  %v2700_v29 = vpack.c.bf16 %v2218_v62, %v2217_v16  ;;  %v4883_v63 = vmul.f32 0.6931472, %v4720_v12  ;;  %v4887_v55 = vadd.f32 %v4758_v31, %v4559_v7  ;;  %v3628_v31 = vld [vmem:[%s4090_s6 + $0x3c0] sm:$0xff] }
 0x226   : > { %3304 = vlog2.f32 %v1588_v30  ;;  %v839_v30 = vmul.f32 0.6931472, %v3281_v47  ;;  %2697 = vmatprep.subr.bf16.mxu0 %v2696_v3  ;;  %v2204_v47 = vld [vmem:[#allocation7 + $0x28] sm:$0xff]  ;;  %v841_v53 = vmul.f32 0.6931472, %v3285_v36  ;;  %v4898_v7 = vadd.f32 %v4819_v4, %v4767_v2  ;;  %v2205_v4 = vld [vmem:[#allocation7 + $0x30] sm:$0xff] }
 0x227   : > { %v4858_v15 = vpop.eup %3286  ;;  %3306 = vlog2.f32 %v1589_v51  ;;  %v2220_v51 = vld [vmem:[#allocation7 + $0xa8] sm:$0xff]  ;;  %2699 = vmatpush3.bf16.msra.mxu0 %v2698_v1  ;;  %v1616_v40 = vmax.f32 %v1552_v34, 1e-06  ;;  %v5297_v3 = vmax.f32 %v4704_v35, 1e-24  ;;  %v4906_v35 = vadd.f32 %v4824_v13, %v4813_v19 }
 0x228   : > { %v4861_v26 = vpop.eup %3288  ;;  %3308 = vpow2.f32 %v1912_v61  ;;  %2701 = vmatprep.subr.bf16.mxu0 %v2700_v29  ;;  %v2704_v17 = vpack.c.bf16 %v2220_v51, %v2219_v38  ;;  %v2203_v61 = vld [vmem:[#allocation7 + $0x20] sm:$0xff]  ;;  %v909_v27 = vmul.f32 %v839_v30, %v4321_v41  ;;  %v3627_v38 = vld [vmem:[%s4090_s6 + $0x3d8] sm:$0xff]  ;;  %v4894_v12 = vmul.f32 0.6931472, %v4793_v21  ;;  %v2224_v51 = vld [vmem:[#allocation7 + $0xc8] sm:$0xff] }
 0x229   : > { %v4871_v56 = vpop.eup %3290  ;;  %3310 = vpow2.f32 %v1003_v8  ;;  %v2221_v8 = vld [vmem:[#allocation7 + $0xb0] sm:$0xff]  ;;  %v1553_v6 = vmul.f32 %v3627_v38, %v3283_v59  ;;  %v1550_v36 = vmul.f32 %v3628_v31, %v4858_v15  ;;  %v2706_v62 = vpack.c.bf16 %v2204_v47, %v2203_v61  ;;  %v2223_v30 = vld [vmem:[#allocation7 + $0xc0] sm:$0xff]  ;;  %v2226_v31 = vld [vmem:[#allocation7 + $0xd8] sm:$0xff] }
 0x22a   : > { %v4880_v45 = vpop.eup %3292  ;;  %3312 = vpow2.f32 %v1005_v39  ;;  %v2107_v21 = vmul.f32 0.015625, %v4810_v22  ;;  %v2708_v2 = vpack.c.bf16 %v2222_v28, %v2221_v8  ;;  %v910_v29 = vmul.f32 %v841_v53, %v4321_v41  ;;  %v3629_v22 = vld [vmem:[%s4090_s6 + $0x3c8] sm:$0xff] }
 0x22b   : > { %v3295_v52 = vpop.eup %3294  ;;  %3314 = vlog2.f32 %v2106_v24  ;;  %v5298_v24 = vmax.f32 %v4711_v49, 1e-24  ;;  %2703 = vmatpush3.bf16.msra.mxu0 %v2702_v23  ;;  %v1031_v13 = vmul.f32 1.442695, %v909_v27  ;;  %v1617_v23 = vmax.f32 %v1553_v6, 1e-06 }
 0x22c   : > { %v3297_v39 = vpop.eup %3296  ;;  %3316 = vrsqrt.f32 %v5297_v3  ;;  %2705 = vmatprep.subr.bf16.mxu0 %v2704_v17  ;;  %v1099_v1 = vadd.f32 %v3295_v52, %v4752_v18  ;;  %v5299_v17 = vmax.f32 %v4731_v20, 1e-24  ;;  %v1614_v52 = vmax.f32 %v1550_v36, 1e-06  ;;  %v2208_v27 = vld [vmem:[#allocation7 + $0x48] sm:$0xff] }
 0x22d   : > { %v3299_v16 = vpop.eup %3298  ;;  %3318 = vrsqrt.f32 %v5298_v24  ;;  %v1108_v49 = vadd.f32 %v3297_v39, %v4756_v43  ;;  %v2710_v43 = vpack.c.bf16 %v2206_v5, %v2205_v4  ;;  %v2712_v28 = vpack.c.bf16 %v2224_v51, %v2223_v30  ;;  %v2207_v39 = vld [vmem:[#allocation7 + $0x40] sm:$0xff] }
 0x22e   : > { %v3301_v59 = vpop.eup %3300  ;;  %3320 = vlog2.f32 %v1603_v44  ;;  %v4914_v44 = vmul.f32 %v3629_v22, %v4858_v15  ;;  %v835_v47 = vmul.f32 0.6931472, %v3299_v16  ;;  %v1100_v38 = vrot.slane %v1099_v1, 4  ;;  %v2225_v16 = vld [vmem:[#allocation7 + $0xd0] sm:$0xff]  ;;  %v2210_v22 = vld [vmem:[#allocation7 + $0x58] sm:$0xff] }
 0x22f   : > { %v3303_v34 = vpop.eup %3302  ;;  %3322 = vlog2.f32 %v1616_v40  ;;  %2707 = vmatpush3.bf16.msra.mxu0 %v2706_v62  ;;  %v837_v40 = vmul.f32 0.6931472, %v3301_v59  ;;  %v1109_v20 = vrot.slane %v1108_v49, 4  ;;  %v1033_v24 = vmul.f32 1.442695, %v910_v29  ;;  %s2729_s26 = spop %2728 }
 0x230   : > { %v3305_v19 = vpop.eup %3304  ;;  %3324 = vrsqrt.f32 %v5299_v17  ;;  %2709 = vmatprep.subr.bf16.mxu0 %v2708_v2  ;;  %v1711_v6 = vmul.f32 0.6931472, %v3303_v34  ;;  %v1615_v59 = vmax.f32 %v4914_v44, 1e-06  ;;  %v907_v2 = vmul.f32 %v835_v47, %v4321_v41 }
 0x231   : > { %v3307_v61 = vpop.eup %3306  ;;  %v1683_v18 = vmul.f32 0.6931472, %v3305_v19  ;;  %3326 = vlog2.f32 %v2107_v21  ;;  %v2714_v5 = vpack.c.bf16 %v2208_v27, %v2207_v39  ;;  %v908_v30 = vmul.f32 %v837_v40, %v4321_v41  ;;  %v3630_v40 = vld [vmem:[%s4090_s6 + $0x320] sm:$0xff] }
 0x232   : > { %v4918_v53 = vpop.eup %3308  ;;  %v1685_v8 = vmul.f32 0.6931472, %v3307_v61  ;;  %3328 = vlog2.f32 %v1617_v23  ;;  %v5300_v29 = vmax.f32 %v4715_v50, 1e-24  ;;  %v2716_v19 = vpack.c.bf16 %v2226_v31, %v2225_v16  ;;  %v2209_v23 = vld [vmem:[#allocation7 + $0x50] sm:$0xff] }
 0x233   : > { %v4920_v15 = vpop.eup %3310  ;;  %v1780_v3 = vmul.f32 %v1683_v18, %v4321_v41  ;;  %3330 = vlog2.f32 %v1614_v52  ;;  %2711 = vmatpush3.bf16.msra.mxu0 %v2710_v43  ;;  %v1101_v17 = vadd.f32 %v1100_v38, %v1099_v1  ;;  %v1110_v61 = vadd.f32 %v1109_v20, %v1108_v49  ;;  %v5301_v43 = vld [vmem:[#allocation18_spill] sm:$0xff] }
 0x234   : > { %v4923_v36 = vpop.eup %3312  ;;  %v1781_v62 = vmul.f32 %v1685_v8, %v4321_v41  ;;  %3332 = vrsqrt.f32 %v5300_v29  ;;  %2713 = vmatprep.subr.bf16.mxu0 %v2712_v28  ;;  %v1794_v47 = vmul.f32 %v1711_v6, %v4321_v41  ;;  %v4936_v52 = vadd.f32 %v4828_v9, %v4565_v0  ;;  %v3631_v49 = vld [vmem:[%s4090_s6 + $0x230] sm:$0xff]  ;;  %v2228_v29 = vld [vmem:[#allocation7 + $0xe8] sm:$0xff] }
 0x235   : > { %v4927_v21 = vpop.eup %3314  ;;  %v1874_v4 = vmul.f32 1.442695, %v1780_v3  ;;  %v4940_v50 = vadd.f32 %v4838_v48, %v5301_v43  ;;  %v1027_v1 = vmul.f32 1.442695, %v907_v2  ;;  %v2718_v27 = vpack.c.bf16 %v2210_v22, %v2209_v23  ;;  %v3632_v48 = vld [vmem:[%s4090_s6 + $0x238] sm:$0xff] }
 0x236   : > { %v3317_v34 = vpop.eup %3316  ;;  %v1876_v51 = vmul.f32 1.442695, %v1781_v62  ;;  %v4946_v0 = vadd.f32 %v4880_v45, %v4861_v26  ;;  %v1029_v9 = vmul.f32 1.442695, %v908_v30  ;;  %v1102_v6 = vrot.slane %v1101_v17, 2  ;;  %v3633_v62 = vld [vmem:[%s4090_s6 + $0x328] sm:$0xff] }
 0x237   : > { %v3319_v44 = vpop.eup %3318  ;;  %3334 = vpow2.f32 %v1874_v4  ;;  %v646_v8 = vmul.f32 %v3630_v40, %v3317_v34  ;;  %2715 = vmatpush3.bf16.msra.mxu0 %v2714_v5  ;;  %v1111_v3 = vrot.slane %v1110_v61, 2  ;;  %v647_v2 = vmul.f32 %v3633_v62, %v3317_v34  ;;  %v3634_v5 = vld [vmem:[%s4090_s6 + $0x270] sm:$0xff]  ;;  %v3635_v34 = vld [vmem:[%s4090_s6 + $0x278] sm:$0xff] }
 0x238   : > { %v3321_v18 = vpop.eup %3320  ;;  %3336 = vpow2.f32 %v1876_v51  ;;  %v632_v39 = vmul.f32 %v3631_v49, %v3319_v44  ;;  %v633_v20 = vmul.f32 %v3632_v48, %v3319_v44  ;;  %2717 = vmatprep.subr.bf16.mxu0 %v2716_v19  ;;  %v5302_v26 = vmax.f32 %v4738_v54, 1e-24  ;;  %v2227_v51 = vld [vmem:[#allocation7 + $0xe0] sm:$0xff]  ;;  %v2212_v54 = vld [vmem:[#allocation7 + $0x68] sm:$0xff] }
 0x239   : > { %v3323_v28 = vpop.eup %3322  ;;  %3338 = vpow2.f32 %v1031_v13  ;;  %v1902_v13 = vmul.f32 1.442695, %v1794_v47  ;;  %v1713_v31 = vmul.f32 0.6931472, %v3321_v18  ;;  %v710_v4 = vmax.f32 %v646_v8, 1e-06 }
 0x23a   : > { %v3325_v38 = vpop.eup %3324  ;;  %3340 = vlog2.f32 %v1615_v59  ;;  %v1739_v45 = vmul.f32 0.6931472, %v3323_v28  ;;  %v696_v59 = vmax.f32 %v632_v39, 1e-06  ;;  %v4957_v19 = vadd.f32 %v4918_v53, %v4871_v56  ;;  %v2211_v44 = vld [vmem:[#allocation7 + $0x60] sm:$0xff]  ;;  %v2229_v8 = vld [vmem:[#allocation7 + $0xf0] sm:$0xff] }
 0x23b   : > { %3342 = vpow2.f32 %v1033_v24  ;;  %v4949_v16 = vpop.eup %3326  ;;  %v1532_v30 = vmul.f32 %v3634_v5, %v3325_v38  ;;  %2719 = vmatpush3.bf16.msra.mxu0 %v2718_v27  ;;  %v697_v23 = vmax.f32 %v633_v20, 1e-06  ;;  %v1533_v22 = vmul.f32 %v3635_v34, %v3325_v38  ;;  %v2230_v28 = vld [vmem:[#allocation7 + $0xf8] sm:$0xff]  ;;  %v2213_v39 = vld [vmem:[#allocation7 + $0x70] sm:$0xff] }
 0x23c   : > { %3344 = vrsqrt.f32 %v5302_v26  ;;  %v3329_v24 = vpop.eup %3328  ;;  %v4962_v18 = vadd.f32 %v4920_v15, %v4762_v37  ;;  %v1103_v43 = vadd.f32 %v1102_v6, %v1101_v17  ;;  %v4964_v40 = vadd.f32 %v1111_v3, %v1110_v61  ;;  %v2214_v27 = vld [vmem:[#allocation7 + $0x78] sm:$0xff] }
 0x23d   : > { %3346 = vpow2.f32 %v1027_v1  ;;  %v3331_v47 = vpop.eup %3330  ;;  %v1795_v56 = vmul.f32 %v1713_v31, %v4321_v41  ;;  %v711_v53 = vmax.f32 %v647_v2, 1e-06  ;;  %v2720_v49 = vpack.c.bf16 %v2228_v29, %v2227_v51  ;;  %v3636_v31 = vld [vmem:[%s4090_s6 + $0x360] sm:$0xff] }
 0x23e   : > { %3348 = vpow2.f32 %v1029_v9  ;;  %v3333_v1 = vpop.eup %3332  ;;  %v1808_v9 = vmul.f32 %v1739_v45, %v4321_v41  ;;  %v1596_v37 = vmax.f32 %v1532_v30, 1e-06  ;;  %v2722_v15 = vpack.c.bf16 %v2212_v54, %v2211_v44 }
 0x23f   : > { %3350 = vpow2.f32 %v1902_v13  ;;  %v1597_v48 = vmax.f32 %v1533_v22, 1e-06  ;;  %2721 = vmatprep.subr.bf16.mxu0 %v2720_v49  ;;  %v2724_v20 = vpack.c.bf16 %v2230_v28, %v2229_v8  ;;  %v1741_v13 = vmul.f32 0.6931472, %v3329_v24 }
 0x240   : > { %3352 = vlog2.f32 %v710_v4  ;;  %v1546_v62 = vmul.f32 %v3636_v31, %v3333_v1  ;;  %2723 = vmatpush3.bf16.msra.mxu0 %v2722_v15  ;;  %v2726_v2 = vpack.c.bf16 %v2214_v27, %v2213_v39  ;;  %v1904_v26 = vmul.f32 1.442695, %v1795_v56 }
 0x241   : > { %v3335_v38 = vpop.eup %3334  ;;  %3354 = vlog2.f32 %v696_v59  ;;  %v1735_v59 = vmul.f32 0.6931472, %v3331_v47  ;;  %2725 = vmatprep.subr.bf16.mxu0 %v2724_v20  ;;  %v1104_v5 = vrot.slane %v1103_v43, 1  ;;  %v1113_v30 = vrot.slane %v4964_v40, 1 }
 0x242   : > { %v3337_v17 = vpop.eup %3336  ;;  %v1998_v61 = vadd.f32 %v3335_v38, %v4849_v60  ;;  %3356 = vlog2.f32 %v697_v23  ;;  %v1930_v24 = vmul.f32 1.442695, %v1808_v9  ;;  %v3637_v23 = vld [vmem:[%s4090_s6 + $0x368] sm:$0xff]  ;;  %v1809_v54 = vmul.f32 %v1741_v13, %v4321_v41 }
 0x243   : > { %v4969_v6 = vpop.eup %3338  ;;  %v2007_v3 = vadd.f32 %v3337_v17, %v4853_v14  ;;  %3358 = vlog2.f32 %v711_v53  ;;  %v1547_v34 = vmul.f32 %v3637_v23, %v3333_v1  ;;  %v1610_v8 = vmax.f32 %v1546_v62, 1e-06  ;;  %v3638_v62 = vld [vmem:[%s4090_s6 + $0x3a0] sm:$0xff] }
 0x244   : > { %v3341_v4 = vpop.eup %3340  ;;  %v1999_v45 = vrot.slane %v1998_v61, 4  ;;  %3360 = vlog2.f32 %v1596_v37  ;;  %2727 = vmatpush3.bf16.msra.mxu0 %v2726_v2  ;;  %v4984_v56 = vadd.f32 %v4923_v36, %v4771_v10  ;;  %v1806_v49 = vmul.f32 %v1735_v59, %v4321_v41 }
 0x245   : > { %v4973_v60 = vpop.eup %3342  ;;  %v2008_v51 = vrot.slane %v2007_v3, 4  ;;  %3362 = vlog2.f32 %v1597_v48  ;;  %v1737_v47 = vmul.f32 0.6931472, %v3341_v4  ;;  %v1105_v39 = vadd.f32 %v1104_v5, %v1103_v43  ;;  %v3639_v5 = vld [vmem:[%s4090_s6 + $0x3a8] sm:$0xff] }
 0x246   : > { %v3345_v14 = vpop.eup %3344  ;;  %v2000_v29 = vadd.f32 %v1999_v45, %v1998_v61  ;;  %3364 = vpow2.f32 %v1904_v26  ;;  %v5303_v38 = vmax.f32 %v4778_v58, 1e-24  ;;  %v4992_v9 = vmul.f32 0.6931472, %v4949_v16 }
 0x247   : > { %v4977_v22 = vpop.eup %3346  ;;  %v2009_v44 = vadd.f32 %v2008_v51, %v2007_v3  ;;  %v1114_v15 = vadd.f32 %v1113_v30, %v4964_v40  ;;  %v1611_v36 = vmax.f32 %v1547_v34, 1e-06  ;;  %v1932_v48 = vmul.f32 1.442695, %v1809_v54 }
 0x248   : > { %v4980_v28 = vpop.eup %3348  ;;  %v2001_v53 = vrot.slane %v2000_v29, 2  ;;  %3366 = vrsqrt.f32 %v5303_v38  ;;  %v1807_v20 = vmul.f32 %v1737_v47, %v4321_v41  ;;  %v1926_v3 = vmul.f32 1.442695, %v1806_v49 }
 0x249   : > { %v4987_v1 = vpop.eup %3350  ;;  %v2010_v27 = vrot.slane %v2009_v44, 2  ;;  %3368 = vpow2.f32 %v1930_v24  ;;  %v5304_v16 = vmax.f32 %v4791_v32, 1e-24  ;;  %v654_v2 = vmul.f32 %v3638_v62, %v3345_v14 }
 0x24a   : > { %v3353_v37 = vpop.eup %3352  ;;  %v2002_v10 = vadd.f32 %v2001_v53, %v2000_v29  ;;  %3370 = vlog2.f32 %v1610_v8  ;;  %v5305_v4 = vmax.f32 %v4806_v25, 1e-24  ;;  %v655_v30 = vmul.f32 %v3639_v5, %v3345_v14 }
 0x24b   : > { %v3355_v17 = vpop.eup %3354  ;;  %v2011_v61 = vadd.f32 %v2010_v27, %v2009_v44  ;;  %3372 = vrsqrt.f32 %v5304_v16  ;;  %v827_v24 = vmul.f32 0.6931472, %v3353_v37  ;;  %v1928_v44 = vmul.f32 1.442695, %v1807_v20 }
 0x24c   : > { %v3357_v43 = vpop.eup %3356  ;;  %v2003_v58 = vrot.slane %v2002_v10, 1  ;;  %v799_v13 = vmul.f32 0.6931472, %v3355_v17  ;;  %3374 = vrsqrt.f32 %v5305_v4  ;;  %v5306_v25 = vmax.f32 %v4808_v46, 1e-24  ;;  %v5307_v4 = vld [vmem:[#allocation19_spill] sm:$0xff] }
 0x24d   : > { %v2012_v31 = vrot.slane %v2011_v61, 1  ;;  %v801_v40 = vmul.f32 0.6931472, %v3357_v43  ;;  %v3359_v26 = vpop.eup %3358  ;;  %3376 = vlog2.f32 %v1611_v36  ;;  %v718_v53 = vmax.f32 %v654_v2, 1e-06  ;;  %v3640_v43 = vld [vmem:[%s4090_s6 + $0x2b0] sm:$0xff] }
 0x24e   : > { %v2004_v45 = vadd.f32 %v2003_v58, %v2002_v10  ;;  %v889_v59 = vmul.f32 %v799_v13, %v4321_v41  ;;  %v3361_v51 = vpop.eup %3360  ;;  %3378 = vpow2.f32 %v1932_v48  ;;  %v829_v49 = vmul.f32 0.6931472, %v3359_v26 }
 0x24f   : > { %v2013_v29 = vadd.f32 %v2012_v31, %v2011_v61  ;;  %v890_v32 = vmul.f32 %v801_v40, %v4321_v41  ;;  %v3363_v23 = vpop.eup %3362  ;;  %3380 = vrsqrt.f32 %v5306_v25  ;;  %v1699_v27 = vmul.f32 0.6931472, %v3361_v51 }
 0x250   : > { %v2092_v34 = vadd.f32 %v2004_v45, %v1105_v39  ;;  %v991_v54 = vmul.f32 1.442695, %v889_v59  ;;  %3382 = vpow2.f32 %v1926_v3  ;;  %v3365_v14 = vpop.eup %3364  ;;  %v719_v38 = vmax.f32 %v655_v30, 1e-06  ;;  %v3641_v3 = vld [vmem:[%s4090_s6 + $0x2b8] sm:$0xff] }
 0x251   : > { %v5006_v47 = vadd.f32 %v2013_v29, %v1114_v15  ;;  %v993_v8 = vmul.f32 1.442695, %v890_v32  ;;  %v903_v39 = vmul.f32 %v827_v24, %v4321_v41  ;;  %v1701_v10 = vmul.f32 0.6931472, %v3363_v23  ;;  %v3643_v29 = vld [vmem:[%s4090_s6 + $0x2f8] sm:$0xff] }
 0x252   : > { %3384 = vpow2.f32 %v991_v54  ;;  %v3367_v37 = vpop.eup %3366  ;;  %v5010_v46 = vmul.f32 0.6931472, %v4927_v21  ;;  %v5016_v36 = vadd.f32 %v4977_v22, %v4969_v6  ;;  %v1788_v17 = vmul.f32 %v1699_v27, %v4321_v41 }
 0x253   : > { %3386 = vpow2.f32 %v993_v8  ;;  %v5012_v15 = vpop.eup %3368  ;;  %v5019_v61 = vstv %s2729_s26  ;;  %v1789_v20 = vmul.f32 %v1701_v10, %v4321_v41  ;;  %v640_v58 = vmul.f32 %v3640_v43, %v3367_v37 }
 0x254   : > { %3388 = vpow2.f32 %v1928_v44  ;;  %v3371_v48 = vpop.eup %3370  ;;  %v641_v21 = vmul.f32 %v3641_v3, %v3367_v37  ;;  %v5026_v16 = vadd.f32 %v4987_v1, %v4865_v42  ;;  %v904_v6 = vmul.f32 %v829_v49, %v4321_v41  ;;  %v3644_v44 = vld [vmem:[%s4090_s6 + $0x370] sm:$0xff]  ;;  %v3645_v49 = vld [vmem:[%s4090_s6 + $0x378] sm:$0xff] }
 0x255   : > { %3390 = vlog2.f32 %v718_v53  ;;  %v3373_v13 = vpop.eup %3372  ;;  %v1890_v22 = vmul.f32 1.442695, %v1788_v17  ;;  %v5030_v40 = vadd.f32 %v3365_v14, %v4869_v33  ;;  %v1019_v62 = vmul.f32 1.442695, %v903_v39  ;;  %v3642_v33 = vld [vmem:[%s4090_s6 + $0x2f0] sm:$0xff]  ;;  %v3647_v3 = vld [vmem:[%s4090_s6 + $0x338] sm:$0xff] }
 0x256   : > { %3392 = vlog2.f32 %v719_v38  ;;  %v3375_v31 = vpop.eup %3374  ;;  %v1892_v2 = vmul.f32 1.442695, %v1789_v20  ;;  %v5308_v26 = vmax.f32 %v5307_v4, 1e-24  ;;  %v1727_v59 = vmul.f32 0.6931472, %v3371_v48 }
 0x257   : > { %v3377_v45 = vpop.eup %3376  ;;  %v704_v42 = vmax.f32 %v640_v58, 1e-06  ;;  %v2152_v1 = vmul.f32 %v5019_v61, %v4883_v63  ;;  %v705_v30 = vmax.f32 %v641_v21, 1e-06  ;;  %v1540_v51 = vmul.f32 %v3642_v33, %v3373_v13  ;;  %v3646_v48 = vld [vmem:[%s4090_s6 + $0x330] sm:$0xff] }
 0x258   : > { %3394 = vrsqrt.f32 %v5308_v26  ;;  %v5036_v5 = vpop.eup %3378  ;;  %v1541_v24 = vmul.f32 %v3643_v29, %v3373_v13  ;;  %v1021_v23 = vmul.f32 1.442695, %v904_v6  ;;  %v1548_v54 = vmul.f32 %v3644_v44, %v3375_v31 }
 0x259   : > { %3396 = vpow2.f32 %v1890_v22  ;;  %v3381_v32 = vpop.eup %3380  ;;  %v2154_v25 = vmul.f32 %v5019_v61, %v4894_v12  ;;  %v2156_v8 = vmul.f32 %v5019_v61, %v4992_v9  ;;  %v2108_v53 = vmul.f32 0.015625, %v2092_v34 }
 0x25a   : > { %3398 = vpow2.f32 %v1892_v2  ;;  %v5045_v63 = vpop.eup %3382  ;;  %v1729_v14 = vmul.f32 0.6931472, %v3377_v45  ;;  %v1549_v27 = vmul.f32 %v3645_v49, %v3375_v31  ;;  %v1802_v37 = vmul.f32 %v1727_v59, %v4321_v41 }
 0x25b   : > { %3400 = vpow2.f32 %v1019_v62  ;;  %v1604_v39 = vmax.f32 %v1540_v51, 1e-06  ;;  %v5049_v10 = vmul.f32 1.442695, %v2152_v1  ;;  %v1605_v9 = vmax.f32 %v1541_v24, 1e-06 }
 0x25c   : > { %v3385_v38 = vpop.eup %3384  ;;  %3402 = vlog2.f32 %v704_v42  ;;  %v648_v20 = vmul.f32 %v3646_v48, %v3381_v32  ;;  %v1612_v58 = vmax.f32 %v1548_v54, 1e-06  ;;  %v649_v21 = vmul.f32 %v3647_v3, %v3381_v32  ;;  %v3648_v54 = vld [vmem:[%s4090_s6 + $0x3e0] sm:$0xff] }
 0x25d   : > { %v3387_v12 = vpop.eup %3386  ;;  %v1117_v17 = vadd.f32 %v3385_v38, %v4878_v11  ;;  %3404 = vlog2.f32 %v705_v30  ;;  %v1803_v22 = vmul.f32 %v1729_v14, %v4321_v41  ;;  %v1613_v31 = vmax.f32 %v1549_v27, 1e-06  ;;  %v3649_v14 = vld [vmem:[%s4090_s6 + $0x3e8] sm:$0xff] }
 0x25e   : > { %v5053_v34 = vpop.eup %3388  ;;  %3406 = vpow2.f32 %v1021_v23  ;;  %v1126_v43 = vadd.f32 %v3387_v12, %v4887_v55  ;;  %v712_v2 = vmax.f32 %v648_v20, 1e-06  ;;  %v5058_v4 = vmul.f32 1.442695, %v2154_v25 }
 0x25f   : > { %v3391_v13 = vpop.eup %3390  ;;  %3408 = vlog2.f32 %v2108_v53  ;;  %v1118_v6 = vrot.slane %v1117_v17, 4  ;;  %v713_v55 = vmax.f32 %v649_v21, 1e-06  ;;  %v5060_v59 = vmul.f32 1.442695, %v2156_v8  ;;  %v5311_v21 = vld [vmem:[#allocation21_spill] sm:$0xff] }
 0x260   : > { %v3393_v62 = vpop.eup %3392  ;;  %v1127_v11 = vrot.slane %v1126_v43, 4  ;;  %3410 = vlog2.f32 %v1604_v39  ;;  %v2109_v1 = vmul.f32 0.015625, %v5006_v47  ;;  %v1918_v33 = vmul.f32 1.442695, %v1802_v37 }
 0x261   : > { %v1119_v45 = vadd.f32 %v1118_v6, %v1117_v17  ;;  %3412 = vlog2.f32 %v1605_v9  ;;  %v5063_v24 = vmul.f32 1.442695, %v1803_v22  ;;  %v843_v53 = vmul.f32 0.6931472, %v3391_v13 }
 0x262   : > { %v3395_v26 = vpop.eup %3394  ;;  %v1128_v30 = vadd.f32 %v1127_v11, %v1126_v43  ;;  %3414 = vlog2.f32 %v1612_v58  ;;  %v5071_v39 = vmul.f32 0.6931472, %v3393_v62  ;;  %v5312_v13 = vmax.f32 %v5311_v21, 1e-24 }
 0x263   : > { %v3397_v42 = vpop.eup %3396  ;;  %v1120_v29 = vrot.slane %v1119_v45, 2  ;;  %3416 = vlog2.f32 %v1613_v31  ;;  %v1554_v25 = vmul.f32 %v3648_v54, %v3395_v26  ;;  %v1555_v49 = vmul.f32 %v3649_v14, %v3395_v26 }
 0x264   : > { %v3399_v51 = vpop.eup %3398  ;;  %v2016_v32 = vadd.f32 %v3397_v42, %v4936_v52  ;;  %v1129_v23 = vrot.slane %v1128_v30, 2  ;;  %3418 = vlog2.f32 %v712_v2  ;;  %v5309_v52 = vld [vmem:[#allocation20_spill] sm:$0xff]  ;;  %v911_v31 = vmul.f32 %v843_v53, %v4321_v41 }
 0x265   : > { %v2025_v44 = vadd.f32 %v3399_v51, %v4940_v50  ;;  %v5068_v8 = vpop.eup %3400  ;;  %3420 = vlog2.f32 %v713_v55  ;;  %v1121_v38 = vadd.f32 %v1120_v29, %v1119_v45  ;;  %v5310_v12 = vmax.f32 %v5309_v52, 1e-24 }
 0x266   : > { %v2017_v47 = vrot.slane %v2016_v32, 4  ;;  %v3403_v27 = vpop.eup %3402  ;;  %v1130_v50 = vadd.f32 %v1129_v23, %v1128_v30  ;;  %v1618_v3 = vmax.f32 %v1554_v25, 1e-06  ;;  %v1619_v11 = vmax.f32 %v1555_v49, 1e-06 }
 0x267   : > { %v2026_v37 = vrot.slane %v2025_v44, 4  ;;  %3422 = vrsqrt.f32 %v5310_v12  ;;  %v3405_v17 = vpop.eup %3404  ;;  %v815_v48 = vmul.f32 0.6931472, %v3403_v27  ;;  %v1122_v26 = vrot.slane %v1121_v38, 1 }
 0x268   : > { %3424 = vlog2.f32 %v2109_v1  ;;  %v2018_v9 = vadd.f32 %v2017_v47, %v2016_v32  ;;  %v5075_v20 = vpop.eup %3406  ;;  %v817_v58 = vmul.f32 0.6931472, %v3405_v17  ;;  %v1131_v1 = vrot.slane %v1130_v50, 1 }
 0x269   : > { %v2027_v43 = vadd.f32 %v2026_v37, %v2025_v44  ;;  %3426 = vrsqrt.f32 %v5312_v13  ;;  %v5079_v6 = vpop.eup %3408  ;;  %v897_v62 = vmul.f32 %v815_v48, %v4321_v41  ;;  %v1035_v53 = vmul.f32 1.442695, %v911_v31 }
 0x26a   : > { %v2019_v22 = vrot.slane %v2018_v9, 2  ;;  %v3411_v2 = vpop.eup %3410  ;;  %3428 = vpow2.f32 %v1918_v33  ;;  %v898_v55 = vmul.f32 %v817_v58, %v4321_v41  ;;  %v1123_v49 = vadd.f32 %v1122_v26, %v1121_v38 }
 0x26b   : > { %v2028_v45 = vrot.slane %v2027_v43, 2  ;;  %v3413_v42 = vpop.eup %3412  ;;  %v1007_v51 = vmul.f32 1.442695, %v897_v62  ;;  %v1715_v29 = vmul.f32 0.6931472, %v3411_v2  ;;  %3430 = vlog2.f32 %v1618_v3 }
 0x26c   : > { %v2020_v30 = vadd.f32 %v2019_v22, %v2018_v9  ;;  %v3415_v32 = vpop.eup %3414  ;;  %v1009_v44 = vmul.f32 1.442695, %v898_v55  ;;  %v1717_v54 = vmul.f32 0.6931472, %v3413_v42  ;;  %3432 = vlog2.f32 %v1619_v11  ;;  %v3650_v55 = vld [vmem:[%s4090_s6 + $0x3f0] sm:$0xff] }
 0x26d   : > { %v2029_v23 = vadd.f32 %v2028_v45, %v2027_v43  ;;  %v3417_v25 = vpop.eup %3416  ;;  %v1796_v14 = vmul.f32 %v1715_v29, %v4321_v41  ;;  %3434 = vpow2.f32 %v1007_v51  ;;  %v1132_v12 = vadd.f32 %v1131_v1, %v1130_v50 }
 0x26e   : > { %v2021_v47 = vrot.slane %v2020_v30, 1  ;;  %v3419_v33 = vpop.eup %3418  ;;  %v1797_v37 = vmul.f32 %v1717_v54, %v4321_v41  ;;  %v1731_v48 = vmul.f32 0.6931472, %v3415_v32  ;;  %3436 = vpow2.f32 %v1009_v44  ;;  %v3651_v32 = vld [vmem:[%s4090_s6 + $0x3f8] sm:$0xff]  ;;  %v3652_v54 = vld [vmem:[%s4090_s6 + $0x3b0] sm:$0xff] }
 0x26f   : > { %v2030_v27 = vrot.slane %v2029_v23, 1  ;;  %v3421_v52 = vpop.eup %3420  ;;  %v1906_v9 = vmul.f32 1.442695, %v1796_v14  ;;  %v1733_v21 = vmul.f32 0.6931472, %v3417_v25  ;;  %v5097_v44 = vadd.f32 %v5045_v63, %v5012_v15 }
 0x270   : > { %v2022_v17 = vadd.f32 %v2021_v47, %v2020_v30  ;;  %v1908_v3 = vmul.f32 1.442695, %v1797_v37  ;;  %v1804_v38 = vmul.f32 %v1731_v48, %v4321_v41  ;;  %v831_v31 = vmul.f32 0.6931472, %v3419_v33 }
 0x271   : > { %v3423_v43 = vpop.eup %3422  ;;  %v2031_v58 = vadd.f32 %v2030_v27, %v2029_v23  ;;  %3438 = vpow2.f32 %v1906_v9  ;;  %v1805_v50 = vmul.f32 %v1733_v21, %v4321_v41  ;;  %v833_v2 = vmul.f32 0.6931472, %v3421_v52 }
 0x272   : > { %v3425_v13 = vpop.eup %3424  ;;  %v2094_v22 = vadd.f32 %v2022_v17, %v1123_v49  ;;  %3440 = vpow2.f32 %v1908_v3  ;;  %v1922_v26 = vmul.f32 1.442695, %v1804_v38  ;;  %v905_v45 = vmul.f32 %v831_v31, %v4321_v41  ;;  %v3653_v49 = vld [vmem:[%s4090_s6 + $0x3b8] sm:$0xff]  ;;  %s3759_s6 = scalar_lea.vmem %s3758_s17, 256 }
 0x273   : > { %v3427_v62 = vpop.eup %3426  ;;  %v2095_v11 = vadd.f32 %v2031_v58, %v1132_v12  ;;  %3442 = vpow2.f32 %v5063_v24  ;;  %v1556_v42 = vmul.f32 %v3650_v55, %v3423_v43  ;;  %v912_v30 = vmul.f32 %v5071_v39, %v4321_v41  ;;  %v5313_v12 = vld [vmem:[#allocation22_spill] sm:$0xff]  ;;  %p3761_p4 = scmp.lt.s32.totalorder %s3759_s6, %s3753_s13 }
 0x274   : > { %v3429_v1 = vpop.eup %3428  ;;  %v1924_v51 = vmul.f32 1.442695, %v1805_v50  ;;  %v906_v29 = vmul.f32 %v833_v2, %v4321_v41  ;;  %v1557_v23 = vmul.f32 %v3651_v32, %v3423_v43  ;;  %3444 = vpow2.f32 %v1035_v53 }
 0x275   : > { %v1023_v24 = vmul.f32 1.442695, %v905_v45  ;;  %v656_v25 = vmul.f32 %v3652_v54, %v3427_v62  ;;  %v3431_v47 = vpop.eup %3430  ;;  %3446 = vpow2.f32 %v1922_v26  ;;  %v1620_v33 = vmax.f32 %v1556_v42, 1e-06  ;;  %p3762_p6 = por %p3761_p4, %p3760_p1 }
 0x276   : > { %v1025_v14 = vmul.f32 1.442695, %v906_v29  ;;  %v657_v27 = vmul.f32 %v3653_v49, %v3427_v62  ;;  %v3433_v39 = vpop.eup %3432  ;;  %v5103_v37 = vadd.f32 %v5053_v34, %v5036_v5  ;;  %3448 = vpow2.f32 %v1924_v51 }
 0x277   : > { %v1621_v52 = vmax.f32 %v1557_v23, 1e-06  ;;  %v2151_v15 = vmul.f32 %v5019_v61, %v5313_v12  ;;  %v3435_v63 = vpop.eup %3434  ;;  %v1037_v53 = vmul.f32 1.442695, %v912_v30  ;;  %3450 = vpow2.f32 %v1023_v24  ;;  %p3763_p12 = pnand %p3762_p6, %p3756_p9 }
 0x278   : > { %v2133_v17 = vmul.f32 0.6931472, %v3425_v13  ;;  %v5109_v9 = vmul.f32 %v5019_v61, %v4874_v57  ;;  %v1152_v48 = vadd.f32 %v5068_v8, %v4898_v7  ;;  %3452 = vpow2.f32 %v1025_v14  ;;  %v3437_v34 = vpop.eup %3436 }
 0x279   : > { %v720_v43 = vmax.f32 %v656_v25, 1e-06  ;;  %v5115_v5 = vmul.f32 %v5019_v61, %v5010_v46  ;;  %v1743_v58 = vmul.f32 0.6931472, %v3431_v47  ;;  %v1745_v3 = vmul.f32 0.6931472, %v3433_v39 }
 0x27a   : > { %3454 = vlog2.f32 %v1620_v33  ;;  %v721_v21 = vmax.f32 %v657_v27, 1e-06  ;;  %v2110_v13 = vmul.f32 0.015625, %v2094_v22  ;;  %v1135_v31 = vadd.f32 %v3435_v63, %v4962_v18 }
 0x27b   : > { %v3439_v38 = vpop.eup %3438  ;;  %3456 = vlog2.f32 %v1621_v52  ;;  %v2131_v57 = vmul.f32 0.6931472, %v5079_v6  ;;  %v1161_v7 = vadd.f32 %v5075_v20, %v4906_v35  ;;  %v2111_v8 = vmul.f32 0.015625, %v2095_v11 }
 0x27c   : > { %v3441_v62 = vpop.eup %3440  ;;  %3458 = vpow2.f32 %v1037_v53  ;;  %v2158_v46 = vmul.f32 %v5019_v61, %v2133_v17  ;;  %v1144_v2 = vadd.f32 %v3437_v34, %v4984_v56  ;;  %v2034_v26 = vadd.f32 %v3439_v38, %v5026_v16 }
 0x27d   : > { %v3443_v50 = vpop.eup %3442  ;;  %v2043_v22 = vadd.f32 %v3441_v62, %v5030_v40  ;;  %3460 = vlog2.f32 %v720_v43  ;;  %v1810_v18 = vmul.f32 %v1743_v58, %v4321_v41  ;;  %v1811_v6 = vmul.f32 %v1745_v3, %v4321_v41 }
 0x27e   : > { %3462 = vlog2.f32 %v721_v21  ;;  %v5127_v45 = vmul.f32 1.442695, %v2151_v15  ;;  %v5129_v35 = vpop.eup %3444  ;;  %v2051_v20 = vadd.f32 %v3429_v1, %v4946_v0  ;;  %v1136_v11 = vrot.slane %v1135_v31, 4 }
 0x27f   : > { %3464 = vlog2.f32 %v2110_v13  ;;  %v5133_v56 = vmul.f32 %v5019_v61, %v2131_v57  ;;  %v3447_v16 = vpop.eup %3446  ;;  %v2060_v40 = vadd.f32 %v3443_v50, %v4957_v19  ;;  %v2044_v55 = vrot.slane %v2043_v22, 4 }
 0x280   : > { %3466 = vpow2.f32 %v5049_v10  ;;  %v2181_v42 = vmul.f32 1.442695, %v2158_v46  ;;  %v3449_v30 = vpop.eup %3448  ;;  %v1145_v51 = vrot.slane %v1144_v2, 4  ;;  %v2035_v29 = vrot.slane %v2034_v26, 4 }
 0x281   : > { %v2052_v32 = vadd.f32 %v3447_v16, %v2051_v20  ;;  %3468 = vlog2.f32 %v2111_v8  ;;  %v3451_v23 = vpop.eup %3450  ;;  %v1934_v24 = vmul.f32 1.442695, %v1810_v18  ;;  %v1936_v0 = vmul.f32 1.442695, %v1811_v6 }
 0x282   : > { %v2061_v1 = vadd.f32 %v3449_v30, %v2060_v40  ;;  %3470 = vpow2.f32 %v5058_v4  ;;  %v3453_v54 = vpop.eup %3452  ;;  %v1137_v25 = vadd.f32 %v1136_v11, %v1135_v31  ;;  %v1153_v14 = vadd.f32 %v3451_v23, %v1152_v48 }
 0x283   : > { %v2053_v47 = vrot.slane %v2052_v32, 4  ;;  %3472 = vpow2.f32 %v5060_v59  ;;  %v2045_v10 = vadd.f32 %v2044_v55, %v2043_v22  ;;  %v1162_v49 = vadd.f32 %v3453_v54, %v1161_v7 }
 0x284   : > { %v3455_v19 = vpop.eup %3454  ;;  %v2062_v33 = vrot.slane %v2061_v1, 4  ;;  %3474 = vpow2.f32 %v2181_v42  ;;  %v1146_v39 = vadd.f32 %v1145_v51, %v1144_v2  ;;  %v2036_v52 = vadd.f32 %v2035_v29, %v2034_v26 }
 0x285   : > { %v3457_v27 = vpop.eup %3456  ;;  %v2054_v12 = vadd.f32 %v2053_v47, %v2052_v32  ;;  %v1154_v15 = vrot.slane %v1153_v14, 4  ;;  %v1163_v53 = vrot.slane %v1162_v49, 4  ;;  %v1747_v17 = vmul.f32 0.6931472, %v3455_v19 }
 0x286   : > { %v5139_v63 = vpop.eup %3458  ;;  %v2063_v4 = vadd.f32 %v2062_v33, %v2061_v1  ;;  %v5142_v59 = vmul.f32 1.442695, %v5109_v9  ;;  %v1138_v43 = vrot.slane %v1137_v25, 2  ;;  %3476 = vpow2.f32 %v1934_v24 }
 0x287   : > { %v3461_v48 = vpop.eup %3460  ;;  %v1155_v34 = vadd.f32 %v1154_v15, %v1153_v14  ;;  %v1749_v58 = vmul.f32 0.6931472, %v3457_v27  ;;  %3478 = vpow2.f32 %v1936_v0  ;;  %v2046_v21 = vrot.slane %v2045_v10, 2 }
 0x288   : > { %v3463_v3 = vpop.eup %3462  ;;  %v1164_v38 = vadd.f32 %v1163_v53, %v1162_v49  ;;  %v1812_v13 = vmul.f32 %v1747_v17, %v4321_v41  ;;  %v1147_v57 = vrot.slane %v1146_v39, 2  ;;  %v2037_v62 = vrot.slane %v2036_v52, 2 }
 0x289   : > { %v3465_v31 = vpop.eup %3464  ;;  %v2055_v7 = vrot.slane %v2054_v12, 2  ;;  %v1813_v8 = vmul.f32 %v1749_v58, %v4321_v41  ;;  %v2064_v9 = vrot.slane %v2063_v4, 2  ;;  %v1156_v50 = vrot.slane %v1155_v34, 2 }
 0x28a   : > { %v3467_v46 = vpop.eup %3466  ;;  %v1938_v2 = vmul.f32 1.442695, %v1812_v13  ;;  %v847_v26 = vmul.f32 0.6931472, %v3461_v48  ;;  %v1139_v18 = vadd.f32 %v1138_v43, %v1137_v25  ;;  %v1165_v6 = vrot.slane %v1164_v38, 2 }
 0x28b   : > { %v3469_v22 = vpop.eup %3468  ;;  %v1940_v20 = vmul.f32 1.442695, %v1813_v8  ;;  %v849_v11 = vmul.f32 0.6931472, %v3463_v3  ;;  %v2047_v40 = vadd.f32 %v2046_v21, %v2045_v10  ;;  %v2135_v42 = vmul.f32 0.6931472, %v3465_v31 }
 0x28c   : > { %v3471_v16 = vpop.eup %3470  ;;  %3480 = vpow2.f32 %v1938_v2  ;;  %v913_v55 = vmul.f32 %v847_v26, %v4321_v41  ;;  %v1148_v51 = vadd.f32 %v1147_v57, %v1146_v39  ;;  %v2038_v29 = vadd.f32 %v2037_v62, %v2036_v52 }
 0x28d   : > { %v3473_v30 = vpop.eup %3472  ;;  %3482 = vpow2.f32 %v1940_v20  ;;  %v914_v32 = vmul.f32 %v849_v11, %v4321_v41  ;;  %v2056_v24 = vadd.f32 %v2055_v7, %v2054_v12  ;;  %v2065_v0 = vadd.f32 %v2064_v9, %v2063_v4 }
 0x28e   : > { %v3475_v23 = vpop.eup %3474  ;;  %v1157_v1 = vadd.f32 %v1156_v50, %v1155_v34  ;;  %v1039_v54 = vmul.f32 1.442695, %v913_v55  ;;  %v1166_v25 = vadd.f32 %v1165_v6, %v1164_v38  ;;  %v2137_v14 = vmul.f32 0.6931472, %v3469_v22 }
 0x28f   : > { %v1041_v47 = vmul.f32 1.442695, %v914_v32  ;;  %v2268_v19 = vsel %vm2254_vm0, %v3471_v16, %v3467_v46  ;;  %v1140_v10 = vrot.slane %v1139_v18, 1  ;;  %v2048_v33 = vrot.slane %v2047_v40, 1 }
 0x290   : > { %3484 = vpow2.f32 %v1039_v54  ;;  %v2269_v49 = vsel %vm2256_vm1, %v3473_v30, %v2268_v19  ;;  %v3477_v27 = vpop.eup %3476  ;;  %v2039_v39 = vrot.slane %v2038_v29, 1  ;;  %v2160_v41 = vmul.f32 %v5019_v61, %v2137_v14 }
 0x291   : > { %3486 = vpow2.f32 %v1041_v47  ;;  %v5152_v52 = vsel %vm2258_vm2, %v3475_v23, %v2269_v49  ;;  %v3479_v12 = vpop.eup %3478  ;;  %v1149_v15 = vrot.slane %v1148_v51, 1  ;;  %v2057_v4 = vrot.slane %v2056_v24, 1 }
 0x292   : > { %v1158_v53 = vrot.slane %v1157_v1, 1  ;;  %v2159_v17 = vmul.f32 %v5019_v61, %v2135_v42  ;;  %v2066_v48 = vrot.slane %v2065_v0, 1  ;;  %v1167_v43 = vrot.slane %v1166_v25, 1 }
 0x293   : > { %v2185_v34 = vmul.f32 1.442695, %v2160_v41  ;;  %3488 = vpow2.f32 %v5127_v45  ;;  %v2049_v58 = vadd.f32 %v2048_v33, %v2047_v40  ;;  %v2175_v3 = vmul.f32 1.442695, %v5115_v5 }
 0x294   : > { %3490 = vpow2.f32 %v5142_v59  ;;  %v2179_v21 = vmul.f32 1.442695, %v5133_v56  ;;  %v2069_v38 = vadd.f32 %v3477_v27, %v5097_v44  ;;  %v2078_v13 = vadd.f32 %v3479_v12, %v5103_v37 }
 0x295   : > { %v2040_v31 = vadd.f32 %v2039_v39, %v2038_v29  ;;  %3492 = vpow2.f32 %v2185_v34  ;;  %v1141_v62 = vadd.f32 %v1140_v10, %v1139_v18  ;;  %v1150_v7 = vadd.f32 %v1149_v15, %v1148_v51 }
 0x296   : > { %v3481_v57 = vpop.eup %3480  ;;  %v2058_v8 = vadd.f32 %v2057_v4, %v2056_v24  ;;  %v1159_v46 = vadd.f32 %v1158_v53, %v1157_v1  ;;  %v1168_v50 = vadd.f32 %v1167_v43, %v1166_v25  ;;  %v2067_v2 = vadd.f32 %v2066_v48, %v2065_v0 }
 0x297   : > { %v3483_v9 = vpop.eup %3482  ;;  %v2070_v45 = vadd.f32 %v3481_v57, %v2069_v38  ;;  %v2183_v59 = vmul.f32 1.442695, %v2159_v17  ;;  %v1178_v5 = vadd.f32 %v4980_v28, %v4973_v60  ;;  %v2097_v26 = vadd.f32 %v2049_v58, %v1150_v7 }
 0x298   : > { %v2079_v56 = vadd.f32 %v3483_v9, %v2078_v13  ;;  %v1170_v44 = vadd.f32 %v5129_v35, %v5016_v36  ;;  %v2096_v22 = vadd.f32 %v2040_v31, %v1141_v62  ;;  %3494 = vpow2.f32 %v2175_v3 }
 0x299   : > { %v2071_v37 = vrot.slane %v2070_v45, 4  ;;  %v1179_v6 = vadd.f32 %v5139_v63, %v1178_v5  ;;  %v2098_v11 = vadd.f32 %v2058_v8, %v1159_v46  ;;  %3496 = vpow2.f32 %v2179_v21 }
 0x29a   : > { %v3485_v18 = vpop.eup %3484  ;;  %v2080_v20 = vrot.slane %v2079_v56, 4  ;;  %v2099_v42 = vadd.f32 %v2067_v2, %v1168_v50  ;;  %3498 = vpow2.f32 %v2183_v59  ;;  %v2113_v30 = vmul.f32 0.015625, %v2097_v26 }
 0x29b   : > { %v3487_v16 = vpop.eup %3486  ;;  %v2072_v40 = vadd.f32 %v2071_v37, %v2070_v45  ;;  %v1171_v55 = vadd.f32 %v3485_v18, %v1170_v44  ;;  %v2112_v35 = vmul.f32 0.015625, %v2096_v22  ;;  %v2114_v63 = vmul.f32 0.015625, %v2098_v11 }
 0x29c   : > { %v2081_v60 = vadd.f32 %v2080_v20, %v2079_v56  ;;  %v1180_v28 = vadd.f32 %v3487_v16, %v1179_v6  ;;  %v2115_v25 = vmul.f32 0.015625, %v2099_v42  ;;  %3500 = vlog2.f32 %v2113_v30 }
 0x29d   : > { %v3489_v51 = vpop.eup %3488  ;;  %v2073_v29 = vrot.slane %v2072_v40, 2  ;;  %v1172_v36 = vrot.slane %v1171_v55, 4  ;;  %3502 = vlog2.f32 %v2112_v35 }
 0x29e   : > { %v3491_v32 = vpop.eup %3490  ;;  %v2082_v23 = vrot.slane %v2081_v60, 2  ;;  %v1181_v24 = vrot.slane %v1180_v28, 4  ;;  %3504 = vlog2.f32 %v2114_v63 }
 0x29f   : > { %v3493_v0 = vpop.eup %3492  ;;  %v2074_v1 = vadd.f32 %v2073_v29, %v2072_v40  ;;  %v1173_v54 = vadd.f32 %v1172_v36, %v1171_v55  ;;  %v2255_v47 = vsel %vm2254_vm0, %v3491_v32, %v3489_v51  ;;  %3506 = vlog2.f32 %v2115_v25  ;;  %v2652_v25 = vld [vmem:[#allocation9] ss:$0 sm:$0xff] }
 0x2a0   : > { %v2083_v14 = vadd.f32 %v2082_v23, %v2081_v60  ;;  %v1182_v19 = vadd.f32 %v1181_v24, %v1180_v28  ;;  %v5169_v10 = vsel %vm2260_vm3, %v3493_v0, %v5152_v52 }
 0x2a1   : > { %v2075_v33 = vrot.slane %v2074_v1, 1  ;;  %v1174_v49 = vrot.slane %v1173_v54, 2 }
 0x2a2   : > { %v2084_v27 = vrot.slane %v2083_v14, 1  ;;  %v1183_v39 = vrot.slane %v1182_v19, 2  ;;  %v3495_v41 = vpop.eup %3494 }
 0x2a3   : > { %v1175_v12 = vadd.f32 %v1174_v49, %v1173_v54  ;;  %v3497_v15 = vpop.eup %3496  ;;  %v2076_v17 = vadd.f32 %v2075_v33, %v2074_v1  ;;  %v2257_v43 = vsel %vm2256_vm1, %v3495_v41, %v2255_v47  ;;  %v300_v49 = vstv %s2587_s30 }
 0x2a4   : > { %v1184_v4 = vadd.f32 %v1183_v39, %v1182_v19  ;;  %v3499_v53 = vpop.eup %3498  ;;  %v2085_v58 = vadd.f32 %v2084_v27, %v2083_v14  ;;  %v2259_v52 = vsel %vm2258_vm2, %v3497_v15, %v2257_v43 }
 0x2a5   : > { %v1176_v48 = vrot.slane %v1175_v12, 1  ;;  %v2261_v21 = vsel %vm2260_vm3, %v3499_v53, %v2259_v52 }
 0x2a6   : > { %v1185_v34 = vrot.slane %v1184_v4, 1  ;;  %v3501_v31 = vpop.eup %3500 }
 0x2a7   : > { %v1177_v3 = vadd.f32 %v1176_v48, %v1175_v12  ;;  %v3503_v62 = vpop.eup %3502  ;;  %v2141_v45 = vmul.f32 0.6931472, %v3501_v31 }
 0x2a8   : > { %v1186_v38 = vadd.f32 %v1185_v34, %v1184_v4  ;;  %v3505_v8 = vpop.eup %3504  ;;  %v2139_v50 = vmul.f32 0.6931472, %v3503_v62 }
 0x2a9   : > { %v2100_v13 = vadd.f32 %v2076_v17, %v1177_v3  ;;  %v3507_v9 = vpop.eup %3506  ;;  %v2143_v2 = vmul.f32 0.6931472, %v3505_v8  ;;  %v2162_v5 = vmul.f32 %v5019_v61, %v2141_v45 }
 0x2aa   : > { %v2101_v57 = vadd.f32 %v2085_v58, %v1186_v38  ;;  %v2145_v59 = vmul.f32 0.6931472, %v3507_v9  ;;  %v2161_v56 = vmul.f32 %v5019_v61, %v2139_v50 }
 0x2ab   : > { %v2116_v7 = vmul.f32 0.015625, %v2100_v13  ;;  %v2163_v26 = vmul.f32 %v5019_v61, %v2143_v2  ;;  %v2189_v37 = vmul.f32 1.442695, %v2162_v5 }
 0x2ac   : > { %v2117_v46 = vmul.f32 0.015625, %v2101_v57  ;;  %v2164_v44 = vmul.f32 %v5019_v61, %v2145_v59  ;;  %v2187_v22 = vmul.f32 1.442695, %v2161_v56 }
 0x2ad   : > { %3508 = vlog2.f32 %v2116_v7  ;;  %v2191_v6 = vmul.f32 1.442695, %v2163_v26 }
 0x2ae   : > { %3510 = vlog2.f32 %v2117_v46  ;;  %v2193_v11 = vmul.f32 1.442695, %v2164_v44 }
 0x2af   : > { %3512 = vpow2.f32 %v2189_v37 }
 0x2b0   : > { %3514 = vpow2.f32 %v2187_v22 }
 0x2b1   : > { %3516 = vpow2.f32 %v2191_v6 }
 0x2b2   : > { %3518 = vpow2.f32 %v2193_v11 }
 0x2b7   : > { %v3509_v18 = vpop.eup %3508 }
 0x2b8   : > { %v3511_v20 = vpop.eup %3510  ;;  %v2147_v16 = vmul.f32 0.6931472, %v3509_v18 }
 0x2b9   : > { %v2149_v40 = vmul.f32 0.6931472, %v3511_v20  ;;  %v3513_v30 = vpop.eup %3512 }
 0x2ba   : > { %v2165_v55 = vmul.f32 %v5019_v61, %v2147_v16  ;;  %v3515_v51 = vpop.eup %3514  ;;  %v2272_v23 = vsel %vm2262_vm4, %v3513_v30, %v5169_v10 }
 0x2bb   : > { %v2166_v42 = vmul.f32 %v5019_v61, %v2149_v40  ;;  %v3517_v29 = vpop.eup %3516  ;;  %v2263_v35 = vsel %vm2262_vm4, %v3515_v51, %v2261_v21 }
 0x2bc   : > { %v2195_v60 = vmul.f32 1.442695, %v2165_v55  ;;  %v3519_v36 = vpop.eup %3518  ;;  %v2265_v24 = vsel %vm2264_vm5, %v3517_v29, %v2263_v35 }
 0x2bd   : > { %v2197_v28 = vmul.f32 1.442695, %v2166_v42  ;;  %v2273_v61 = vsel %vm2264_vm5, %v3519_v36, %v2272_v23 }
 0x2be   : > { %3520 = vpow2.f32 %v2195_v60 }
 0x2bf   : > { %3522 = vpow2.f32 %v2197_v28 }
 0x2c0   : > { %3524 = vrcp.f32 %v300_v49 }
 0x2c8   : > { %v3521_v32 = vpop.eup %3520 }
 0x2c9   : > { %v3523_v63 = vpop.eup %3522  ;;  %v2267_v0 = vsel %vm2266_vm6, %v3521_v32, %v2265_v24 }
 0x2ca   : > { %v2274_v1 = vsel %vm2266_vm6, %v3523_v63, %v2273_v61  ;;  %v3525_v10 = vpop.eup %3524 }
 0x2cb   : > { %2341 = vmatprep.mubr.f32.mxu0 %v2274_v1  ;;  %2730 = vpush %v3525_v10 }
 0x2cc   : > { %2342 = vmatmul.mubr.f32.vlgmr.msra.gmra.mrb[0].mxu0 %v2267_v0 }
 0x39f   : > { %v2693_v54 = vpop.f32.mrb[0].mxu0 }
 0x3a0   : > { %v2694_v47 = vpop.f32.mrb[1].mxu0 }
 0x3a1   : > { %v2695_v14 = vadd.f32 %v2694_v47, %v2693_v54 }
 0x3a3   : > { %v2344_v19 = vadd.f32 %v2695_v14, %v2652_v25 }
 0x3a5   : > { %v2347_v33 = vmul.f32 %v2344_v19, %v2344_v19 }
 0x3a7   : > { %2348 = vadd.xlane.f32.xlu0 %v2347_v33 }
 0x434   : > { %v2349_v27 = vpop.xlane.xlu0 %2348 }
 0x435   : > { %v2350_v39 = vmax.f32 %v2349_v27, 1e-24 }
 0x437   : > { %3526 = vrsqrt.f32 %v2350_v39 }
 0x441   : > { %v3527_v41 = vpop.eup %3526 }
 0x442   : > { %v2352_v12 = vmul.f32 %v3527_v41, %v2344_v19 }
 0x444   : > { %v2355_v15 = vcombine.high %v2352_v12, %v2352_v12  ;;  %v2357_v4 = vmax.f32 %v2352_v12, 1e-06  ;;  %2353 = vst [vmem:[%s286_s10] sm:$0xff] %v2352_v12 }
 0x445   : > { %3766 = shalt.err (!%p3763_p12)
}
 0x446   : > { %s3767_s24 = scalar_lea.hbm %s5186_s7, 128  ;;  %s3771_s8 = scalar_lea.hbm %s5265_s4, 512 }
 0x447   : > { %p3768_p11 = scmp.ne.s32.totalorder %s5186_s7, %s3767_s24  ;;  %p3772_p10 = scmp.lt.u32.totalorder %s5186_s7, %s5265_s4 }
 0x448   : > { %p3773_p13 = scmp.lt.u32.totalorder %s3771_s8, %s3767_s24  ;;  %p3775_p3 = scmp.lt.u32.totalorder %s3767_s24, %s5186_s7 }
 0x449   : > { %p3769_p2 = pnand %p3768_p11, %p4034_p7 }
 0x44a   : > { %p3774_p0 = por %p3773_p13, %p3772_p10 }
 0x44b   : > { %p3770_p8 = pneg %p3769_p2 }
 0x44c   : > { %p3776_p5 = por %p3775_p3, %p3774_p0 }
 0x44e   : > { %p3777_p9 = pnand %p3776_p5, %p3770_p8 }
 0x450   : > { %3780 = shalt.err (!%p3777_p9)
}
 0x451   : > { %2746 = dma.vmem_to_hbm [thread:$0]  (%p4034_p7), %s5188_s16, 128, %s5186_s7, %s2405_s11   ;;  %v2358_v53 = vmax.f32 %v2355_v15, 1e-06  ;;  %3528 = vlog2.f32 %v2357_v4  ;;  %vm2370_vm7 = vcmask 1043456  }
 0x452   : > { %s2731_s16 = spop %2730  ;;  %s2586_s23 = sshll.u32 %s4086_s29, 1 }
 0x453   : > { %3530 = vlog2.f32 %v2358_v53  ;;  %v2392_v18 = vstv %s2731_s16  ;;  %s2656_s27 = sshll.u32 %s3922_s22, 5  ;;  %s293_s7 = scalar_lea.vmem [#allocation11], %s2586_s23 }
 0x454   : > { %s2436_s11 = sshll.u32 %s293_s7, 4  ;;  %s5217_s17 = scalar_lea.hbm %s5266_s5, %s2656_s27  ;;  %s5219_s11 = int_to_ptr.vmem [resolvable:$true] %s2436_s11 }
 0x455   : > { %s2410_s6 = scalar_lea.sflag [#allocation12], %s4086_s29  ;;  %s3781_s24 = scalar_lea.vmem %s5219_s11, 32 }
 0x456   : > { %p3782_p1 = scmp.ne.s32.totalorder %s5219_s11, %s3781_s24  ;;  %s3870_s22 = smov [#allocation11]  }
 0x457   : > { %s3785_s26 = sshll.u32 %s3870_s22, 4  ;;  %s3786_s26 = int_to_ptr.vmem [resolvable:$false] %s3785_s26 }
 0x458   : > { %p3783_p4 = pnand %p3782_p1, %p4034_p7  ;;  %s3787_s30 = scalar_lea.vmem %s3786_s26, 64 }
 0x459   : > { %p3788_p12 = scmp.lt.s32.totalorder %s5219_s11, %s3786_s26  ;;  %p3789_p11 = scmp.lt.s32.totalorder %s3787_s30, %s3781_s24 }
 0x45a   : > { %p3784_p6 = pneg %p3783_p4 }
 0x45b   : > { %v3529_v17 = vpop.eup %3528  ;;  %p3790_p2 = por %p3789_p11, %p3788_p12 }
 0x45c   : > { %v2360_v48 = vmul.f32 0.6931472, %v3529_v17 }
 0x45d   : > { %v3531_v43 = vpop.eup %3530  ;;  %p3791_p8 = pnand %p3790_p2, %p3784_p6 }
 0x45e   : > { %v2362_v34 = vmul.f32 0.6931472, %v3531_v43  ;;  %v2364_v58 = vmul.f32 %v2360_v48, %v300_v49 }
 0x460   : > { %v2365_v52 = vmul.f32 %v2362_v34, %v300_v49  ;;  %v2366_v3 = vmul.f32 1.442695, %v2364_v58 }
 0x462   : > { %3532 = vpow2.f32 %v2366_v3  ;;  %v2368_v21 = vmul.f32 1.442695, %v2365_v52 }
 0x464   : > { %3534 = vpow2.f32 %v2368_v21 }
 0x46c   : > { %v3533_v38 = vpop.eup %3532 }
 0x46d   : > { %v2371_v13 = vsel %vm2370_vm7, %v3533_v38, 0.0 }
 0x46e   : > { %v3535_v31 = vpop.eup %3534  ;;  %v2372_v57 = vrot.slane %v2371_v13, 4 }
 0x46f   : > { %v2378_v62 = vsel %vm2370_vm7, %v3535_v31, 0.0 }
 0x470   : > { %v2373_v7 = vadd.f32 %v2372_v57, %v2371_v13  ;;  %v2379_v8 = vrot.slane %v2378_v62, 4 }
 0x472   : > { %v2374_v46 = vrot.slane %v2373_v7, 2  ;;  %v2380_v9 = vadd.f32 %v2379_v8, %v2378_v62 }
 0x474   : > { %v2375_v45 = vadd.f32 %v2374_v46, %v2373_v7  ;;  %v2381_v50 = vrot.slane %v2380_v9, 2 }
 0x476   : > { %v2376_v2 = vrot.slane %v2375_v45, 1  ;;  %v2382_v59 = vadd.f32 %v2381_v50, %v2380_v9 }
 0x478   : > { %v2377_v5 = vadd.f32 %v2376_v2, %v2375_v45  ;;  %v2383_v56 = vrot.slane %v2382_v59, 1 }
 0x47a   : > { %v2384_v26 = vadd.f32 %v2383_v56, %v2382_v59  ;;  %v2386_v44 = vmul.f32 0.25, %v2377_v5 }
 0x47c   : > { %v2387_v37 = vmul.f32 0.25, %v2384_v26  ;;  %3536 = vlog2.f32 %v2386_v44 }
 0x47e   : > { %3538 = vlog2.f32 %v2387_v37 }
 0x486   : > { %v3537_v22 = vpop.eup %3536 }
 0x487   : > { %v2389_v6 = vmul.f32 0.6931472, %v3537_v22 }
 0x488   : > { %v3539_v20 = vpop.eup %3538 }
 0x489   : > { %v2391_v11 = vmul.f32 0.6931472, %v3539_v20  ;;  %v2393_v16 = vmul.f32 %v2392_v18, %v2389_v6 }
 0x48b   : > { %v2394_v40 = vmul.f32 %v2392_v18, %v2391_v11  ;;  %v2395_v55 = vmul.f32 1.442695, %v2393_v16 }
 0x48d   : > { %v2397_v42 = vmul.f32 1.442695, %v2394_v40  ;;  %3540 = vpow2.f32 %v2395_v55 }
 0x48f   : > { %3542 = vpow2.f32 %v2397_v42 }
 0x497   : > { %v3541_v60 = vpop.eup %3540 }
 0x499   : > { %v3543_v28 = vpop.eup %3542 }
 0x49a   : > { %v2401_v30 = vsel %vm2254_vm0, %v3543_v28, %v3541_v60 }
 0x49b   : > { %2403 = vst [vmem:[%s293_s7] sm:$0x3] %v2401_v30 }
 0x49c   : > { %3794 = shalt.err (!%p3791_p8)
}
 0x49d   : > { %s3795_s29 = scalar_lea.hbm %s5217_s17, 32  ;;  %s3799_s10 = scalar_lea.hbm %s5266_s5, 128 }
 0x49e   : > { %p3796_p10 = scmp.ne.s32.totalorder %s5217_s17, %s3795_s29  ;;  %p3800_p3 = scmp.lt.u32.totalorder %s5217_s17, %s5266_s5 }
 0x49f   : > { %p3801_p5 = scmp.lt.u32.totalorder %s3799_s10, %s3795_s29  ;;  %p3803_p1 = scmp.lt.u32.totalorder %s3795_s29, %s5217_s17 }
 0x4a0   : > { %p3797_p13 = pnand %p3796_p10, %p4034_p7 }
 0x4a1   : > { %p3802_p9 = por %p3801_p5, %p3800_p3 }
 0x4a2   : > { %p3798_p0 = pneg %p3797_p13 }
 0x4a3   : > { %p3804_p4 = por %p3803_p1, %p3802_p9 }
 0x4a5   : > { %p3805_p6 = pnand %p3804_p4, %p3798_p0 }
 0x4a7   : > { %3808 = shalt.err (!%p3805_p6)
}
 0x4a8   : > { %2747 = dma.vmem_to_hbm [thread:$0]  (%p4034_p7), %s5219_s11, 32, %s5217_s17, %s2410_s6  }
 0x4a9 PF: > { %p2778_p12 = scmp.ge.s32.totalorder %s3859_s21, 2  ;;  %s2448_s27 = sand.u32 1, %s3847_s18  }
 0x4aa   : > { %p5314_p11 = scmp.ne.s32.totalorder %s5274_s25, 0  ;;  %s2449_s7 = scalar_lea.sflag [#allocation4], %s2448_s27 }
 0x4ac   : > { %p2765_p2 = pnand %p2778_p12, %p5314_p11 }
 0x4ae   : > { %3838 = dma.done.wait (!%p2765_p2), %s2449_s7, 128  }
 0x4af   : > { %3840 = vsyncadd (!%p2765_p2), %s2449_s7, 4294967168  ;;  %s2458_s13 = scalar_lea.sflag [#allocation12], %s2448_s27 }
 0x4b0   : > { %3842 = dma.done.wait (!%p2765_p2), %s2458_s13, 32  }
 0x4b1   : > { %3844 = vsyncadd (!%p2765_p2), %s2458_s13, 4294967264  ;;  %p24_p7 = scmp.ge.s32.totalorder %s4020_s12, 6   ;;  %s5315_s18 = smov %s3851_s19 }
 0x4b2   : > { %s5316_s19 = smov %s3855_s20  ;;  %s5317_s20 = smov %s4030_s28 }
 0x4b3   : > { %s5318_s21 = smov %s4020_s12  ;;  %26 = sbr.rel (!%p24_p7) target bundleno = 9 (0x9), region = 113 }
 0x4ba   :  { %2463 = vsyncpa [#allocation3], 1 }
 0x4bb   :  { %2465 = vsyncpa [#allocation3 + $0x1], 1 }
 0x4bc   :  { %2466 = vsyncpa [#allocation8], 1 }
 0x4bd   :  { %2467 = vsyncpa [#allocation4], 1 }
 0x4be   :  { %2469 = vsyncpa [#allocation4 + $0x1], 1 }
 0x4bf   :  { %2470 = vsyncpa [#allocation12], 1 }
 0x4c0   :  { %2472 = vsyncpa [#allocation12 + $0x1], 1 }
 0x4c1   :  { %2473 = vsyncpa [#allocation5], 1 }
 0x4c2   :  { %2475 = vsyncpa [#allocation5 + $0x1], 1 }

</bundles_post_ra>
